<compile_context>
chip_gen: v7x
topology: tpu7x:2x2x1
jax: 0.10.0
libtpu: 0.0.40
codegen_flags: <defaults>
</compile_context>

<pallas_src>
import functools

import jax
import jax.numpy as jnp
from jax import lax
from jax.experimental import pallas as pl
from jax.experimental.pallas import tpu as pltpu


def _round_up(x, m):
    return (x + m - 1) // m * m


def _fused_srcnn_kernel(x_ref, w1_ref, b1_ref, w2_ref, b2_ref, w3_ref, b3_ref,
                        o_ref, padf1, padf2, padf3, col,
                        *, H, W, K1, K2, ncol1, ncol2):
    """Fused conv(9x9)+ReLU -> conv(5x5)+ReLU -> conv(5x5) for one image.

    x_ref : (C1p, H*W)  bf16   channels-first, flattened spatial (lane-dense)
    wN_ref: (CoutN, KN*KN*CinN) bf16   im2col-flattened weights
    bN_ref: (CoutN, 1) f32
    o_ref : (C3p, H*W)  f32
    padfN : (CinN, LN)  bf16   zero-padded flattened activation (VMEM scratch)
    col   : (rows_max, ncol_max) bf16   shared im2col scratch (reused per layer)
    """
    f32 = jnp.float32
    bf16 = jnp.bfloat16

    p1, p2 = (K1 - 1) // 2, (K2 - 1) // 2
    wp1, wp2 = W + K1 - 1, W + K2 - 1

    # One-time zero fill of the padded scratches (hoisted out of the per-image
    # work).  Invariant: only the H*W interiors are written below and they are
    # fully rewritten for every image, so the borders / row gaps / rounding
    # tails keep their zeros across all grid steps.  Requires the batch grid
    # axis to be "arbitrary" (single-core sequential) -- see module docstring.
    @pl.when(pl.program_id(0) == 0)
    def _init_pads():
        padf1[...] = jnp.zeros_like(padf1)
        padf2[...] = jnp.zeros_like(padf2)
        padf3[...] = jnp.zeros_like(padf3)

    def copy_rows(src, src_wp, dst, dst_wp, dst_pad, dst_dtype):
        # Scatter the H valid W-wide row strips of `src` (row y starts at lane
        # y*src_wp) into `dst` (row y starts at lane (y+dst_pad)*dst_wp+dst_pad).
        # Used for: input -> padf1, conv result -> next padf interior (bf16),
        # and conv result -> lane-dense output block (replaces the old
        # materialize + embed pass and the final jnp.concatenate gather).
        # TODO(synk): for large H convert to lax.fori_loop with pl.ds /
        # pl.multiple_of and group rows so each store is >=128 lanes; the
        # unrolled form is right at H=16.
        for y in range(H):
            q = (y + dst_pad) * dst_wp + dst_pad
            dst[:, q:q + W] = src[:, y * src_wp:y * src_wp + W].astype(dst_dtype)

    def conv_layer(padf, wp, K, ncol_r, w_ref, b_ref, relu):
        # Same-padded KxK conv as ONE deep-K MXU matmul:
        #     (Cout, K*K*Cin) @ (K*K*Cin, ncol_r)   bf16 operands, f32 acc.
        # im2col row block t = ky*K + kx is just padf lane-shifted by ky*wp+kx;
        # output column y*wp + x (x < W, y < H) is the conv output at (y, x).
        # Columns past (H-1)*wp+W (incl. the 128-rounding tail) read zero lanes
        # and produce garbage that copy_rows never copies out.
        cin = padf.shape[0]
        rows = K * K * cin
        for ky in range(K):
            for kx in range(K):
                t = ky * K + kx
                s = ky * wp + kx
                # bf16 -> bf16 copy, ncol_r is a multiple of 128 (unmasked store).
                col[t * cin:(t + 1) * cin, 0:ncol_r] = padf[:, s:s + ncol_r]
        acc = jnp.dot(w_ref[...], col[0:rows, 0:ncol_r],
                      preferred_element_type=f32)          # (Cout, ncol_r) f32
        acc = acc + b_ref[...]                              # bias (Cout, 1)
        if relu:
            acc = jnp.maximum(acc, 0.0)
        return acc

    # ---- layer 1: Conv2d(3->64, 9x9, pad 4) + ReLU (input channels padded ->16)
    copy_rows(x_ref, W, padf1, wp1, p1, bf16)
    h1 = conv_layer(padf1, wp1, K1, ncol1, w1_ref, b1_ref, relu=True)

    # ---- layer 2: Conv2d(64->32, 5x5, pad 2) + ReLU
    # Conv-1 result rows go straight into padf2's interior (bf16) -- no separate
    # materialized-activation copy pass.
    copy_rows(h1, wp1, padf2, wp2, p2, bf16)
    h2 = conv_layer(padf2, wp2, K2, ncol2, w2_ref, b2_ref, relu=True)

    # ---- layer 3: Conv2d(32->3 (padded to 8), 5x5, pad 2)
    copy_rows(h2, wp2, padf3, wp2, p2, bf16)
    h3 = conv_layer(padf3, wp2, K2, ncol2, w3_ref, b3_ref, relu=False)

    # ---- output: direct per-row stores into the lane-dense (C3p, H*W) block
    # (no concat, no temporaries; rows tile the full lane extent).
    copy_rows(h3, wp2, o_ref, W, 0, o_ref.dtype)


def _prep_weight(w_hwio, cin_pad):
    """HWIO (K, K, Cin, Cout) -> (Cout, K*K*cin_pad) bf16, tap-major / channel-minor."""
    K, _, cin, cout = w_hwio.shape
    w = jnp.pad(w_hwio, ((0, 0), (0, 0), (0, cin_pad - cin), (0, 0)))
    w = jnp.transpose(w, (3, 0, 1, 2)).reshape(cout, K * K * cin_pad)
    return w.astype(jnp.bfloat16)


def super_resolution_forward(x_nchw, params):
    """Forward pass of SuperResolutionModel. Input/output are NCHW float32."""
    N, C, H, W = x_nchw.shape
    HW = H * W
    K1 = params["w1"].shape[0]
    K2 = params["w2"].shape[0]
    c1 = params["w1"].shape[3]          # 64
    c2 = params["w2"].shape[3]          # 32
    c3 = params["w3"].shape[3]          # 3
    c1p = _round_up(C, 16)              # layer-1 input channels padded 3 -> 16
    c3p = _round_up(c3, 8)              # layer-3 output channels padded 3 -> 8

    # Channels-first lane-dense input, bf16 (halves input HBM DMA): NCHW needs
    # only a reshape, no transpose.
    x2 = jnp.pad(x_nchw, ((0, 0), (0, c1p - C), (0, 0), (0, 0)))
    x2 = x2.reshape(N, c1p, HW).astype(jnp.bfloat16)

    w1 = _prep_weight(params["w1"], c1p)                       # (64, K1*K1*16)
    w2 = _prep_weight(params["w2"], c1)                        # (32, K2*K2*64)
    w3 = jnp.pad(_prep_weight(params["w3"], c2),               # (8,  K2*K2*32)
                 ((0, c3p - c3), (0, 0)))
    b1 = params["b1"].reshape(c1, 1).astype(jnp.float32)
    b2 = params["b2"].reshape(c2, 1).astype(jnp.float32)
    b3 = jnp.pad(params["b3"], (0, c3p - c3)).reshape(c3p, 1).astype(jnp.float32)

    p1, p2 = (K1 - 1) // 2, (K2 - 1) // 2
    wp1, wp2 = W + K1 - 1, W + K2 - 1

    # Lane-dense sizing: round the matmul N dimension (valid output columns) up
    # to a multiple of 128, and size each padded-flat scratch so every im2col
    # slice padf[:, s : s+ncol_r] stays in bounds (extra lanes stay zero).
    ncol1 = _round_up((H - 1) * wp1 + W, 128)
    ncol2 = _round_up((H - 1) * wp2 + W, 128)
    L1 = _round_up((K1 - 1) * wp1 + (K1 - 1) + ncol1, 128)
    L2 = _round_up((K2 - 1) * wp2 + (K2 - 1) + ncol2, 128)
    rows_max = max(K1 * K1 * c1p, K2 * K2 * c1, K2 * K2 * c2)
    ncol_max = max(ncol1, ncol2)

    # Explicit VMEM budget: scratches + (double-buffered) params and I/O blocks,
    # with 2x headroom, capped below physical VMEM.
    bf2, f4 = 2, 4
    scratch_bytes = (c1p * L1 + c1 * L2 + c2 * L2 + rows_max * ncol_max) * bf2
    param_bytes = (w1.size + w2.size + w3.size) * bf2 \
        + (b1.size + b2.size + b3.size) * f4
    io_block_bytes = c1p * HW * bf2 + c3p * HW * f4
    vmem_limit = int(min(
        2 * (scratch_bytes + 2 * param_bytes + 2 * io_block_bytes) + (4 << 20),
        64 << 20))

    kernel = functools.partial(_fused_srcnn_kernel, H=H, W=W, K1=K1, K2=K2,
                               ncol1=ncol1, ncol2=ncol2)

    out = pl.pallas_call(
        kernel,
        out_shape=jax.ShapeDtypeStruct((N, c3p, HW), jnp.float32),
        grid_spec=pltpu.PrefetchScalarGridSpec(
            num_scalar_prefetch=0,
            grid=(N,),
            in_specs=[
                pl.BlockSpec((None, c1p, HW), lambda n: (n, 0, 0)),
                pl.BlockSpec(w1.shape, lambda n: (0, 0)),
                pl.BlockSpec(b1.shape, lambda n: (0, 0)),
                pl.BlockSpec(w2.shape, lambda n: (0, 0)),
                pl.BlockSpec(b2.shape, lambda n: (0, 0)),
                pl.BlockSpec(w3.shape, lambda n: (0, 0)),
                pl.BlockSpec(b3.shape, lambda n: (0, 0)),
            ],
            out_specs=pl.BlockSpec((None, c3p, HW), lambda n: (n, 0, 0)),
            scratch_shapes=[
                pltpu.VMEM((c1p, L1), jnp.bfloat16),             # padded layer-1 input
                pltpu.VMEM((c1, L2), jnp.bfloat16),              # padded layer-2 input
                pltpu.VMEM((c2, L2), jnp.bfloat16),              # padded layer-3 input
                pltpu.VMEM((rows_max, ncol_max), jnp.bfloat16),  # shared im2col scratch
            ],
        ),
        compiler_params=pltpu.CompilerParams(
            # "arbitrary" (not "parallel"): required by the init-once scratch
            # zero fill; identical performance on single-TC v5e/v6e.  When the
            # spatial halo-tiled axis is added (see TODO above), mark THAT axis
            # "parallel" for v7x's two TensorCores.
            dimension_semantics=("arbitrary",),
            vmem_limit_bytes=vmem_limit),
    )(x2, w1, b1, w2, b2, w3, b3)

    return out.reshape(N, c3p, H, W)[:, :c3]


def init_params(key):
    """Deterministic synthetic parameters matching the PyTorch module shapes."""
    keys = jax.random.split(key, 6)

    # PyTorch Conv2d weight shape is (Cout, Cin, K, K); stored here as HWIO.
    # Round-trip through bf16 so the kernel (bf16 MXU operands) and the f32
    # reference see numerically identical weight values.
    def mk_w(k, K, cin, cout, scale):
        w = scale * jax.random.normal(k, (K, K, cin, cout), jnp.float32)
        return w.astype(jnp.bfloat16).astype(jnp.float32)

    return {
        "w1": mk_w(keys[0], 9, 3, 64, 0.05),
        "b1": 0.01 * jax.random.normal(keys[1], (64,), jnp.float32),
        "w2": mk_w(keys[2], 5, 64, 32, 0.05),
        "b2": 0.01 * jax.random.normal(keys[3], (32,), jnp.float32),
        "w3": mk_w(keys[4], 5, 32, 3, 0.05),
        "b3": 0.01 * jax.random.normal(keys[5], (3,), jnp.float32),
    }


def _reference_forward(x_nchw, params):
    """Pure-JAX reference (lax conv), emulating the kernel's bf16 MXU operands."""
    x = jnp.transpose(x_nchw, (0, 2, 3, 1))
    dn = ("NHWC", "HWIO", "NHWC")

    def conv(h, w, b, relu):
        h = h.astype(jnp.bfloat16).astype(jnp.float32)   # kernel feeds MXU in bf16
        o = lax.conv_general_dilated(
            h, w, window_strides=(1, 1), padding="SAME", dimension_numbers=dn)
        o = o + b
        return jnp.maximum(o, 0.0) if relu else o

    h = conv(x, params["w1"], params["b1"], True)
    h = conv(h, params["w2"], params["b2"], True)
    y = conv(h, params["w3"], params["b3"], False)
    return jnp.transpose(y, (0, 3, 1, 2))


if __name__ == "__main__":
    key = jax.random.PRNGKey(0)
    k_x, k_p = jax.random.split(key)

    # Small NCHW input consistent with the module: batch=2, channels=3, 16x16.
    x = jax.random.normal(k_x, (2, 3, 16, 16), jnp.float32)
    params = init_params(k_p)

    out = jax.jit(super_resolution_forward)(x, params)
    out = jax.block_until_ready(out)

    ref = _reference_forward(x, params)
    assert out.shape == (2, 3, 16, 16)
    assert jnp.allclose(out, ref, atol=2e-2, rtol=2e-2), \
        float(jnp.max(jnp.abs(out - ref)))

    print("KERNEL_OK")
</pallas_src>

<mosaic_0001>
module attributes {stable_mosaic.version = 11 : i64} {
  func.func @_fused_srcnn_kernel(%arg0: i32, %arg1: memref<1x16x256xbf16, #tpu.memory_space<vmem>>, %arg2: memref<64x1296xbf16, #tpu.memory_space<vmem>>, %arg3: memref<64x1xf32, #tpu.memory_space<vmem>>, %arg4: memref<32x1600xbf16, #tpu.memory_space<vmem>>, %arg5: memref<32x1xf32, #tpu.memory_space<vmem>>, %arg6: memref<8x800xbf16, #tpu.memory_space<vmem>>, %arg7: memref<8x1xf32, #tpu.memory_space<vmem>>, %arg8: memref<1x8x256xf32, #tpu.memory_space<vmem>>, %arg9: memref<16x640xbf16, #tpu.memory_space<vmem>>, %arg10: memref<64x512xbf16, #tpu.memory_space<vmem>>, %arg11: memref<32x512xbf16, #tpu.memory_space<vmem>>, %arg12: memref<1600x384xbf16, #tpu.memory_space<vmem>>) attributes {dimension_semantics = [#tpu.dimension_semantics<arbitrary>], iteration_bounds = array<i64: 2>, scalar_prefetch = 0 : i64, scratch_operands = 4 : i64, tpu.core_type = #tpu.core_type<tc>, window_params = [{transform_indices = @transform_0, window_bounds = array<i64: 1, 16, 256>}, {pipeline_mode = #tpu.pipeline_mode<synchronous>, transform_indices = @transform_1, window_bounds = array<i64: 64, 1296>}, {pipeline_mode = #tpu.pipeline_mode<synchronous>, transform_indices = @transform_2, window_bounds = array<i64: 64, 1>}, {pipeline_mode = #tpu.pipeline_mode<synchronous>, transform_indices = @transform_3, window_bounds = array<i64: 32, 1600>}, {pipeline_mode = #tpu.pipeline_mode<synchronous>, transform_indices = @transform_4, window_bounds = array<i64: 32, 1>}, {pipeline_mode = #tpu.pipeline_mode<synchronous>, transform_indices = @transform_5, window_bounds = array<i64: 8, 800>}, {pipeline_mode = #tpu.pipeline_mode<synchronous>, transform_indices = @transform_6, window_bounds = array<i64: 8, 1>}, {transform_indices = @transform_7, window_bounds = array<i64: 1, 8, 256>}]} {
    %c0_i32 = arith.constant 0 : i32
    %0 = arith.cmpi eq, %arg0, %c0_i32 : i32
    %1 = arith.extui %0 : i1 to i32
    %c0_i32_0 = arith.constant 0 : i32
    %2 = arith.cmpi ne, %1, %c0_i32_0 : i32
    scf.if %2 {
      %cst_543 = arith.constant 0.000000e+00 : bf16
      %495 = vector.broadcast %cst_543 : bf16 to vector<16x640xbf16>
      %c0_544 = arith.constant 0 : index
      %c0_545 = arith.constant 0 : index
      %496 = vector.load %arg9[%c0_544, %c0_545] : memref<16x640xbf16, #tpu.memory_space<vmem>>, vector<16x640xbf16>
      tpu.vector_store %arg9[%c0_544, %c0_545], %495 {strides = array<i32>} : memref<16x640xbf16, #tpu.memory_space<vmem>>, vector<16x640xbf16>,
      %cst_546 = arith.constant 0.000000e+00 : bf16
      %497 = vector.broadcast %cst_546 : bf16 to vector<64x512xbf16>
      %c0_547 = arith.constant 0 : index
      %c0_548 = arith.constant 0 : index
      %498 = vector.load %arg10[%c0_547, %c0_548] : memref<64x512xbf16, #tpu.memory_space<vmem>>, vector<64x512xbf16>
      tpu.vector_store %arg10[%c0_547, %c0_548], %497 {strides = array<i32>} : memref<64x512xbf16, #tpu.memory_space<vmem>>, vector<64x512xbf16>,
      %cst_549 = arith.constant 0.000000e+00 : bf16
      %499 = vector.broadcast %cst_549 : bf16 to vector<32x512xbf16>
      %c0_550 = arith.constant 0 : index
      %c0_551 = arith.constant 0 : index
      %500 = vector.load %arg11[%c0_550, %c0_551] : memref<32x512xbf16, #tpu.memory_space<vmem>>, vector<32x512xbf16>
      tpu.vector_store %arg11[%c0_550, %c0_551], %499 {strides = array<i32>} : memref<32x512xbf16, #tpu.memory_space<vmem>>, vector<32x512xbf16>,
    } else {
    }
    %c0 = arith.constant 0 : index
    %c0_1 = arith.constant 0 : index
    %c0_2 = arith.constant 0 : index
    %3 = vector.load %arg1[%c0, %c0_1, %c0_2] : memref<1x16x256xbf16, #tpu.memory_space<vmem>>, vector<1x16x16xbf16>
    %4 = vector.shape_cast %3 : vector<1x16x16xbf16> to vector<16x16xbf16>
    %c0_3 = arith.constant 0 : index
    %c100 = arith.constant 100 : index
    %5 = vector.load %arg9[%c0_3, %c100] : memref<16x640xbf16, #tpu.memory_space<vmem>>, vector<16x16xbf16>
    tpu.vector_store %arg9[%c0_3, %c100], %4 {strides = array<i32>} : memref<16x640xbf16, #tpu.memory_space<vmem>>, vector<16x16xbf16>,
    %c0_4 = arith.constant 0 : index
    %c0_5 = arith.constant 0 : index
    %c16 = arith.constant 16 : index
    %6 = vector.load %arg1[%c0_4, %c0_5, %c16] : memref<1x16x256xbf16, #tpu.memory_space<vmem>>, vector<1x16x16xbf16>
    %7 = vector.shape_cast %6 : vector<1x16x16xbf16> to vector<16x16xbf16>
    %c0_6 = arith.constant 0 : index
    %c124 = arith.constant 124 : index
    %8 = vector.load %arg9[%c0_6, %c124] : memref<16x640xbf16, #tpu.memory_space<vmem>>, vector<16x16xbf16>
    tpu.vector_store %arg9[%c0_6, %c124], %7 {strides = array<i32>} : memref<16x640xbf16, #tpu.memory_space<vmem>>, vector<16x16xbf16>,
    %c0_7 = arith.constant 0 : index
    %c0_8 = arith.constant 0 : index
    %c32 = arith.constant 32 : index
    %9 = vector.load %arg1[%c0_7, %c0_8, %c32] : memref<1x16x256xbf16, #tpu.memory_space<vmem>>, vector<1x16x16xbf16>
    %10 = vector.shape_cast %9 : vector<1x16x16xbf16> to vector<16x16xbf16>
    %c0_9 = arith.constant 0 : index
    %c148 = arith.constant 148 : index
    %11 = vector.load %arg9[%c0_9, %c148] : memref<16x640xbf16, #tpu.memory_space<vmem>>, vector<16x16xbf16>
    tpu.vector_store %arg9[%c0_9, %c148], %10 {strides = array<i32>} : memref<16x640xbf16, #tpu.memory_space<vmem>>, vector<16x16xbf16>,
    %c0_10 = arith.constant 0 : index
    %c0_11 = arith.constant 0 : index
    %c48 = arith.constant 48 : index
    %12 = vector.load %arg1[%c0_10, %c0_11, %c48] : memref<1x16x256xbf16, #tpu.memory_space<vmem>>, vector<1x16x16xbf16>
    %13 = vector.shape_cast %12 : vector<1x16x16xbf16> to vector<16x16xbf16>
    %c0_12 = arith.constant 0 : index
    %c172 = arith.constant 172 : index
    %14 = vector.load %arg9[%c0_12, %c172] : memref<16x640xbf16, #tpu.memory_space<vmem>>, vector<16x16xbf16>
    tpu.vector_store %arg9[%c0_12, %c172], %13 {strides = array<i32>} : memref<16x640xbf16, #tpu.memory_space<vmem>>, vector<16x16xbf16>,
    %c0_13 = arith.constant 0 : index
    %c0_14 = arith.constant 0 : index
    %c64 = arith.constant 64 : index
    %15 = vector.load %arg1[%c0_13, %c0_14, %c64] : memref<1x16x256xbf16, #tpu.memory_space<vmem>>, vector<1x16x16xbf16>
    %16 = vector.shape_cast %15 : vector<1x16x16xbf16> to vector<16x16xbf16>
    %c0_15 = arith.constant 0 : index
    %c196 = arith.constant 196 : index
    %17 = vector.load %arg9[%c0_15, %c196] : memref<16x640xbf16, #tpu.memory_space<vmem>>, vector<16x16xbf16>
    tpu.vector_store %arg9[%c0_15, %c196], %16 {strides = array<i32>} : memref<16x640xbf16, #tpu.memory_space<vmem>>, vector<16x16xbf16>,
    %c0_16 = arith.constant 0 : index
    %c0_17 = arith.constant 0 : index
    %c80 = arith.constant 80 : index
    %18 = vector.load %arg1[%c0_16, %c0_17, %c80] : memref<1x16x256xbf16, #tpu.memory_space<vmem>>, vector<1x16x16xbf16>
    %19 = vector.shape_cast %18 : vector<1x16x16xbf16> to vector<16x16xbf16>
    %c0_18 = arith.constant 0 : index
    %c220 = arith.constant 220 : index
    %20 = vector.load %arg9[%c0_18, %c220] : memref<16x640xbf16, #tpu.memory_space<vmem>>, vector<16x16xbf16>
    tpu.vector_store %arg9[%c0_18, %c220], %19 {strides = array<i32>} : memref<16x640xbf16, #tpu.memory_space<vmem>>, vector<16x16xbf16>,
    %c0_19 = arith.constant 0 : index
    %c0_20 = arith.constant 0 : index
    %c96 = arith.constant 96 : index
    %21 = vector.load %arg1[%c0_19, %c0_20, %c96] : memref<1x16x256xbf16, #tpu.memory_space<vmem>>, vector<1x16x16xbf16>
    %22 = vector.shape_cast %21 : vector<1x16x16xbf16> to vector<16x16xbf16>
    %c0_21 = arith.constant 0 : index
    %c244 = arith.constant 244 : index
    %23 = vector.load %arg9[%c0_21, %c244] : memref<16x640xbf16, #tpu.memory_space<vmem>>, vector<16x16xbf16>
    tpu.vector_store %arg9[%c0_21, %c244], %22 {strides = array<i32>} : memref<16x640xbf16, #tpu.memory_space<vmem>>, vector<16x16xbf16>,
    %c0_22 = arith.constant 0 : index
    %c0_23 = arith.constant 0 : index
    %c112 = arith.constant 112 : index
    %24 = vector.load %arg1[%c0_22, %c0_23, %c112] : memref<1x16x256xbf16, #tpu.memory_space<vmem>>, vector<1x16x16xbf16>
    %25 = vector.shape_cast %24 : vector<1x16x16xbf16> to vector<16x16xbf16>
    %c0_24 = arith.constant 0 : index
    %c268 = arith.constant 268 : index
    %26 = vector.load %arg9[%c0_24, %c268] : memref<16x640xbf16, #tpu.memory_space<vmem>>, vector<16x16xbf16>
    tpu.vector_store %arg9[%c0_24, %c268], %25 {strides = array<i32>} : memref<16x640xbf16, #tpu.memory_space<vmem>>, vector<16x16xbf16>,
    %c0_25 = arith.constant 0 : index
    %c0_26 = arith.constant 0 : index
    %c128 = arith.constant 128 : index
    %27 = vector.load %arg1[%c0_25, %c0_26, %c128] : memref<1x16x256xbf16, #tpu.memory_space<vmem>>, vector<1x16x16xbf16>
    %28 = vector.shape_cast %27 : vector<1x16x16xbf16> to vector<16x16xbf16>
    %c0_27 = arith.constant 0 : index
    %c292 = arith.constant 292 : index
    %29 = vector.load %arg9[%c0_27, %c292] : memref<16x640xbf16, #tpu.memory_space<vmem>>, vector<16x16xbf16>
    tpu.vector_store %arg9[%c0_27, %c292], %28 {strides = array<i32>} : memref<16x640xbf16, #tpu.memory_space<vmem>>, vector<16x16xbf16>,
    %c0_28 = arith.constant 0 : index
    %c0_29 = arith.constant 0 : index
    %c144 = arith.constant 144 : index
    %30 = vector.load %arg1[%c0_28, %c0_29, %c144] : memref<1x16x256xbf16, #tpu.memory_space<vmem>>, vector<1x16x16xbf16>
    %31 = vector.shape_cast %30 : vector<1x16x16xbf16> to vector<16x16xbf16>
    %c0_30 = arith.constant 0 : index
    %c316 = arith.constant 316 : index
    %32 = vector.load %arg9[%c0_30, %c316] : memref<16x640xbf16, #tpu.memory_space<vmem>>, vector<16x16xbf16>
    tpu.vector_store %arg9[%c0_30, %c316], %31 {strides = array<i32>} : memref<16x640xbf16, #tpu.memory_space<vmem>>, vector<16x16xbf16>,
    %c0_31 = arith.constant 0 : index
    %c0_32 = arith.constant 0 : index
    %c160 = arith.constant 160 : index
    %33 = vector.load %arg1[%c0_31, %c0_32, %c160] : memref<1x16x256xbf16, #tpu.memory_space<vmem>>, vector<1x16x16xbf16>
    %34 = vector.shape_cast %33 : vector<1x16x16xbf16> to vector<16x16xbf16>
    %c0_33 = arith.constant 0 : index
    %c340 = arith.constant 340 : index
    %35 = vector.load %arg9[%c0_33, %c340] : memref<16x640xbf16, #tpu.memory_space<vmem>>, vector<16x16xbf16>
    tpu.vector_store %arg9[%c0_33, %c340], %34 {strides = array<i32>} : memref<16x640xbf16, #tpu.memory_space<vmem>>, vector<16x16xbf16>,
    %c0_34 = arith.constant 0 : index
    %c0_35 = arith.constant 0 : index
    %c176 = arith.constant 176 : index
    %36 = vector.load %arg1[%c0_34, %c0_35, %c176] : memref<1x16x256xbf16, #tpu.memory_space<vmem>>, vector<1x16x16xbf16>
    %37 = vector.shape_cast %36 : vector<1x16x16xbf16> to vector<16x16xbf16>
    %c0_36 = arith.constant 0 : index
    %c364 = arith.constant 364 : index
    %38 = vector.load %arg9[%c0_36, %c364] : memref<16x640xbf16, #tpu.memory_space<vmem>>, vector<16x16xbf16>
    tpu.vector_store %arg9[%c0_36, %c364], %37 {strides = array<i32>} : memref<16x640xbf16, #tpu.memory_space<vmem>>, vector<16x16xbf16>,
    %c0_37 = arith.constant 0 : index
    %c0_38 = arith.constant 0 : index
    %c192 = arith.constant 192 : index
    %39 = vector.load %arg1[%c0_37, %c0_38, %c192] : memref<1x16x256xbf16, #tpu.memory_space<vmem>>, vector<1x16x16xbf16>
    %40 = vector.shape_cast %39 : vector<1x16x16xbf16> to vector<16x16xbf16>
    %c0_39 = arith.constant 0 : index
    %c388 = arith.constant 388 : index
    %41 = vector.load %arg9[%c0_39, %c388] : memref<16x640xbf16, #tpu.memory_space<vmem>>, vector<16x16xbf16>
    tpu.vector_store %arg9[%c0_39, %c388], %40 {strides = array<i32>} : memref<16x640xbf16, #tpu.memory_space<vmem>>, vector<16x16xbf16>,
    %c0_40 = arith.constant 0 : index
    %c0_41 = arith.constant 0 : index
    %c208 = arith.constant 208 : index
    %42 = vector.load %arg1[%c0_40, %c0_41, %c208] : memref<1x16x256xbf16, #tpu.memory_space<vmem>>, vector<1x16x16xbf16>
    %43 = vector.shape_cast %42 : vector<1x16x16xbf16> to vector<16x16xbf16>
    %c0_42 = arith.constant 0 : index
    %c412 = arith.constant 412 : index
    %44 = vector.load %arg9[%c0_42, %c412] : memref<16x640xbf16, #tpu.memory_space<vmem>>, vector<16x16xbf16>
    tpu.vector_store %arg9[%c0_42, %c412], %43 {strides = array<i32>} : memref<16x640xbf16, #tpu.memory_space<vmem>>, vector<16x16xbf16>,
    %c0_43 = arith.constant 0 : index
    %c0_44 = arith.constant 0 : index
    %c224 = arith.constant 224 : index
    %45 = vector.load %arg1[%c0_43, %c0_44, %c224] : memref<1x16x256xbf16, #tpu.memory_space<vmem>>, vector<1x16x16xbf16>
    %46 = vector.shape_cast %45 : vector<1x16x16xbf16> to vector<16x16xbf16>
    %c0_45 = arith.constant 0 : index
    %c436 = arith.constant 436 : index
    %47 = vector.load %arg9[%c0_45, %c436] : memref<16x640xbf16, #tpu.memory_space<vmem>>, vector<16x16xbf16>
    tpu.vector_store %arg9[%c0_45, %c436], %46 {strides = array<i32>} : memref<16x640xbf16, #tpu.memory_space<vmem>>, vector<16x16xbf16>,
    %c0_46 = arith.constant 0 : index
    %c0_47 = arith.constant 0 : index
    %c240 = arith.constant 240 : index
    %48 = vector.load %arg1[%c0_46, %c0_47, %c240] : memref<1x16x256xbf16, #tpu.memory_space<vmem>>, vector<1x16x16xbf16>
    %49 = vector.shape_cast %48 : vector<1x16x16xbf16> to vector<16x16xbf16>
    %c0_48 = arith.constant 0 : index
    %c460 = arith.constant 460 : index
    %50 = vector.load %arg9[%c0_48, %c460] : memref<16x640xbf16, #tpu.memory_space<vmem>>, vector<16x16xbf16>
    tpu.vector_store %arg9[%c0_48, %c460], %49 {strides = array<i32>} : memref<16x640xbf16, #tpu.memory_space<vmem>>, vector<16x16xbf16>,
    %c0_49 = arith.constant 0 : index
    %c0_50 = arith.constant 0 : index
    %51 = vector.load %arg9[%c0_49, %c0_50] : memref<16x640xbf16, #tpu.memory_space<vmem>>, vector<16x384xbf16>
    %c0_51 = arith.constant 0 : index
    %c0_52 = arith.constant 0 : index
    %52 = vector.load %arg12[%c0_51, %c0_52] : memref<1600x384xbf16, #tpu.memory_space<vmem>>, vector<16x384xbf16>
    tpu.vector_store %arg12[%c0_51, %c0_52], %51 {strides = array<i32>} : memref<1600x384xbf16, #tpu.memory_space<vmem>>, vector<16x384xbf16>,
    %c0_53 = arith.constant 0 : index
    %c1 = arith.constant 1 : index
    %53 = vector.load %arg9[%c0_53, %c1] : memref<16x640xbf16, #tpu.memory_space<vmem>>, vector<16x384xbf16>
    %c16_54 = arith.constant 16 : index
    %c0_55 = arith.constant 0 : index
    %54 = vector.load %arg12[%c16_54, %c0_55] : memref<1600x384xbf16, #tpu.memory_space<vmem>>, vector<16x384xbf16>
    tpu.vector_store %arg12[%c16_54, %c0_55], %53 {strides = array<i32>} : memref<1600x384xbf16, #tpu.memory_space<vmem>>, vector<16x384xbf16>,
    %c0_56 = arith.constant 0 : index
    %c2 = arith.constant 2 : index
    %55 = vector.load %arg9[%c0_56, %c2] : memref<16x640xbf16, #tpu.memory_space<vmem>>, vector<16x384xbf16>
    %c32_57 = arith.constant 32 : index
    %c0_58 = arith.constant 0 : index
    %56 = vector.load %arg12[%c32_57, %c0_58] : memref<1600x384xbf16, #tpu.memory_space<vmem>>, vector<16x384xbf16>
    tpu.vector_store %arg12[%c32_57, %c0_58], %55 {strides = array<i32>} : memref<1600x384xbf16, #tpu.memory_space<vmem>>, vector<16x384xbf16>,
    %c0_59 = arith.constant 0 : index
    %c3 = arith.constant 3 : index
    %57 = vector.load %arg9[%c0_59, %c3] : memref<16x640xbf16, #tpu.memory_space<vmem>>, vector<16x384xbf16>
    %c48_60 = arith.constant 48 : index
    %c0_61 = arith.constant 0 : index
    %58 = vector.load %arg12[%c48_60, %c0_61] : memref<1600x384xbf16, #tpu.memory_space<vmem>>, vector<16x384xbf16>
    tpu.vector_store %arg12[%c48_60, %c0_61], %57 {strides = array<i32>} : memref<1600x384xbf16, #tpu.memory_space<vmem>>, vector<16x384xbf16>,
    %c0_62 = arith.constant 0 : index
    %c4 = arith.constant 4 : index
    %59 = vector.load %arg9[%c0_62, %c4] : memref<16x640xbf16, #tpu.memory_space<vmem>>, vector<16x384xbf16>
    %c64_63 = arith.constant 64 : index
    %c0_64 = arith.constant 0 : index
    %60 = vector.load %arg12[%c64_63, %c0_64] : memref<1600x384xbf16, #tpu.memory_space<vmem>>, vector<16x384xbf16>
    tpu.vector_store %arg12[%c64_63, %c0_64], %59 {strides = array<i32>} : memref<1600x384xbf16, #tpu.memory_space<vmem>>, vector<16x384xbf16>,
    %c0_65 = arith.constant 0 : index
    %c5 = arith.constant 5 : index
    %61 = vector.load %arg9[%c0_65, %c5] : memref<16x640xbf16, #tpu.memory_space<vmem>>, vector<16x384xbf16>
    %c80_66 = arith.constant 80 : index
    %c0_67 = arith.constant 0 : index
    %62 = vector.load %arg12[%c80_66, %c0_67] : memref<1600x384xbf16, #tpu.memory_space<vmem>>, vector<16x384xbf16>
    tpu.vector_store %arg12[%c80_66, %c0_67], %61 {strides = array<i32>} : memref<1600x384xbf16, #tpu.memory_space<vmem>>, vector<16x384xbf16>,
    %c0_68 = arith.constant 0 : index
    %c6 = arith.constant 6 : index
    %63 = vector.load %arg9[%c0_68, %c6] : memref<16x640xbf16, #tpu.memory_space<vmem>>, vector<16x384xbf16>
    %c96_69 = arith.constant 96 : index
    %c0_70 = arith.constant 0 : index
    %64 = vector.load %arg12[%c96_69, %c0_70] : memref<1600x384xbf16, #tpu.memory_space<vmem>>, vector<16x384xbf16>
    tpu.vector_store %arg12[%c96_69, %c0_70], %63 {strides = array<i32>} : memref<1600x384xbf16, #tpu.memory_space<vmem>>, vector<16x384xbf16>,
    %c0_71 = arith.constant 0 : index
    %c7 = arith.constant 7 : index
    %65 = vector.load %arg9[%c0_71, %c7] : memref<16x640xbf16, #tpu.memory_space<vmem>>, vector<16x384xbf16>
    %c112_72 = arith.constant 112 : index
    %c0_73 = arith.constant 0 : index
    %66 = vector.load %arg12[%c112_72, %c0_73] : memref<1600x384xbf16, #tpu.memory_space<vmem>>, vector<16x384xbf16>
    tpu.vector_store %arg12[%c112_72, %c0_73], %65 {strides = array<i32>} : memref<1600x384xbf16, #tpu.memory_space<vmem>>, vector<16x384xbf16>,
    %c0_74 = arith.constant 0 : index
    %c8 = arith.constant 8 : index
    %67 = vector.load %arg9[%c0_74, %c8] : memref<16x640xbf16, #tpu.memory_space<vmem>>, vector<16x384xbf16>
    %c128_75 = arith.constant 128 : index
    %c0_76 = arith.constant 0 : index
    %68 = vector.load %arg12[%c128_75, %c0_76] : memref<1600x384xbf16, #tpu.memory_space<vmem>>, vector<16x384xbf16>
    tpu.vector_store %arg12[%c128_75, %c0_76], %67 {strides = array<i32>} : memref<1600x384xbf16, #tpu.memory_space<vmem>>, vector<16x384xbf16>,
    %c0_77 = arith.constant 0 : index
    %c24 = arith.constant 24 : index
    %69 = vector.load %arg9[%c0_77, %c24] : memref<16x640xbf16, #tpu.memory_space<vmem>>, vector<16x384xbf16>
    %c144_78 = arith.constant 144 : index
    %c0_79 = arith.constant 0 : index
    %70 = vector.load %arg12[%c144_78, %c0_79] : memref<1600x384xbf16, #tpu.memory_space<vmem>>, vector<16x384xbf16>
    tpu.vector_store %arg12[%c144_78, %c0_79], %69 {strides = array<i32>} : memref<1600x384xbf16, #tpu.memory_space<vmem>>, vector<16x384xbf16>,
    %c0_80 = arith.constant 0 : index
    %c25 = arith.constant 25 : index
    %71 = vector.load %arg9[%c0_80, %c25] : memref<16x640xbf16, #tpu.memory_space<vmem>>, vector<16x384xbf16>
    %c160_81 = arith.constant 160 : index
    %c0_82 = arith.constant 0 : index
    %72 = vector.load %arg12[%c160_81, %c0_82] : memref<1600x384xbf16, #tpu.memory_space<vmem>>, vector<16x384xbf16>
    tpu.vector_store %arg12[%c160_81, %c0_82], %71 {strides = array<i32>} : memref<1600x384xbf16, #tpu.memory_space<vmem>>, vector<16x384xbf16>,
    %c0_83 = arith.constant 0 : index
    %c26 = arith.constant 26 : index
    %73 = vector.load %arg9[%c0_83, %c26] : memref<16x640xbf16, #tpu.memory_space<vmem>>, vector<16x384xbf16>
    %c176_84 = arith.constant 176 : index
    %c0_85 = arith.constant 0 : index
    %74 = vector.load %arg12[%c176_84, %c0_85] : memref<1600x384xbf16, #tpu.memory_space<vmem>>, vector<16x384xbf16>
    tpu.vector_store %arg12[%c176_84, %c0_85], %73 {strides = array<i32>} : memref<1600x384xbf16, #tpu.memory_space<vmem>>, vector<16x384xbf16>,
    %c0_86 = arith.constant 0 : index
    %c27 = arith.constant 27 : index
    %75 = vector.load %arg9[%c0_86, %c27] : memref<16x640xbf16, #tpu.memory_space<vmem>>, vector<16x384xbf16>
    %c192_87 = arith.constant 192 : index
    %c0_88 = arith.constant 0 : index
    %76 = vector.load %arg12[%c192_87, %c0_88] : memref<1600x384xbf16, #tpu.memory_space<vmem>>, vector<16x384xbf16>
    tpu.vector_store %arg12[%c192_87, %c0_88], %75 {strides = array<i32>} : memref<1600x384xbf16, #tpu.memory_space<vmem>>, vector<16x384xbf16>,
    %c0_89 = arith.constant 0 : index
    %c28 = arith.constant 28 : index
    %77 = vector.load %arg9[%c0_89, %c28] : memref<16x640xbf16, #tpu.memory_space<vmem>>, vector<16x384xbf16>
    %c208_90 = arith.constant 208 : index
    %c0_91 = arith.constant 0 : index
    %78 = vector.load %arg12[%c208_90, %c0_91] : memref<1600x384xbf16, #tpu.memory_space<vmem>>, vector<16x384xbf16>
    tpu.vector_store %arg12[%c208_90, %c0_91], %77 {strides = array<i32>} : memref<1600x384xbf16, #tpu.memory_space<vmem>>, vector<16x384xbf16>,
    %c0_92 = arith.constant 0 : index
    %c29 = arith.constant 29 : index
    %79 = vector.load %arg9[%c0_92, %c29] : memref<16x640xbf16, #tpu.memory_space<vmem>>, vector<16x384xbf16>
    %c224_93 = arith.constant 224 : index
    %c0_94 = arith.constant 0 : index
    %80 = vector.load %arg12[%c224_93, %c0_94] : memref<1600x384xbf16, #tpu.memory_space<vmem>>, vector<16x384xbf16>
    tpu.vector_store %arg12[%c224_93, %c0_94], %79 {strides = array<i32>} : memref<1600x384xbf16, #tpu.memory_space<vmem>>, vector<16x384xbf16>,
    %c0_95 = arith.constant 0 : index
    %c30 = arith.constant 30 : index
    %81 = vector.load %arg9[%c0_95, %c30] : memref<16x640xbf16, #tpu.memory_space<vmem>>, vector<16x384xbf16>
    %c240_96 = arith.constant 240 : index
    %c0_97 = arith.constant 0 : index
    %82 = vector.load %arg12[%c240_96, %c0_97] : memref<1600x384xbf16, #tpu.memory_space<vmem>>, vector<16x384xbf16>
    tpu.vector_store %arg12[%c240_96, %c0_97], %81 {strides = array<i32>} : memref<1600x384xbf16, #tpu.memory_space<vmem>>, vector<16x384xbf16>,
    %c0_98 = arith.constant 0 : index
    %c31 = arith.constant 31 : index
    %83 = vector.load %arg9[%c0_98, %c31] : memref<16x640xbf16, #tpu.memory_space<vmem>>, vector<16x384xbf16>
    %c256 = arith.constant 256 : index
    %c0_99 = arith.constant 0 : index
    %84 = vector.load %arg12[%c256, %c0_99] : memref<1600x384xbf16, #tpu.memory_space<vmem>>, vector<16x384xbf16>
    tpu.vector_store %arg12[%c256, %c0_99], %83 {strides = array<i32>} : memref<1600x384xbf16, #tpu.memory_space<vmem>>, vector<16x384xbf16>,
    %c0_100 = arith.constant 0 : index
    %c32_101 = arith.constant 32 : index
    %85 = vector.load %arg9[%c0_100, %c32_101] : memref<16x640xbf16, #tpu.memory_space<vmem>>, vector<16x384xbf16>
    %c272 = arith.constant 272 : index
    %c0_102 = arith.constant 0 : index
    %86 = vector.load %arg12[%c272, %c0_102] : memref<1600x384xbf16, #tpu.memory_space<vmem>>, vector<16x384xbf16>
    tpu.vector_store %arg12[%c272, %c0_102], %85 {strides = array<i32>} : memref<1600x384xbf16, #tpu.memory_space<vmem>>, vector<16x384xbf16>,
    %c0_103 = arith.constant 0 : index
    %c48_104 = arith.constant 48 : index
    %87 = vector.load %arg9[%c0_103, %c48_104] : memref<16x640xbf16, #tpu.memory_space<vmem>>, vector<16x384xbf16>
    %c288 = arith.constant 288 : index
    %c0_105 = arith.constant 0 : index
    %88 = vector.load %arg12[%c288, %c0_105] : memref<1600x384xbf16, #tpu.memory_space<vmem>>, vector<16x384xbf16>
    tpu.vector_store %arg12[%c288, %c0_105], %87 {strides = array<i32>} : memref<1600x384xbf16, #tpu.memory_space<vmem>>, vector<16x384xbf16>,
    %c0_106 = arith.constant 0 : index
    %c49 = arith.constant 49 : index
    %89 = vector.load %arg9[%c0_106, %c49] : memref<16x640xbf16, #tpu.memory_space<vmem>>, vector<16x384xbf16>
    %c304 = arith.constant 304 : index
    %c0_107 = arith.constant 0 : index
    %90 = vector.load %arg12[%c304, %c0_107] : memref<1600x384xbf16, #tpu.memory_space<vmem>>, vector<16x384xbf16>
    tpu.vector_store %arg12[%c304, %c0_107], %89 {strides = array<i32>} : memref<1600x384xbf16, #tpu.memory_space<vmem>>, vector<16x384xbf16>,
    %c0_108 = arith.constant 0 : index
    %c50 = arith.constant 50 : index
    %91 = vector.load %arg9[%c0_108, %c50] : memref<16x640xbf16, #tpu.memory_space<vmem>>, vector<16x384xbf16>
    %c320 = arith.constant 320 : index
    %c0_109 = arith.constant 0 : index
    %92 = vector.load %arg12[%c320, %c0_109] : memref<1600x384xbf16, #tpu.memory_space<vmem>>, vector<16x384xbf16>
    tpu.vector_store %arg12[%c320, %c0_109], %91 {strides = array<i32>} : memref<1600x384xbf16, #tpu.memory_space<vmem>>, vector<16x384xbf16>,
    %c0_110 = arith.constant 0 : index
    %c51 = arith.constant 51 : index
    %93 = vector.load %arg9[%c0_110, %c51] : memref<16x640xbf16, #tpu.memory_space<vmem>>, vector<16x384xbf16>
    %c336 = arith.constant 336 : index
    %c0_111 = arith.constant 0 : index
    %94 = vector.load %arg12[%c336, %c0_111] : memref<1600x384xbf16, #tpu.memory_space<vmem>>, vector<16x384xbf16>
    tpu.vector_store %arg12[%c336, %c0_111], %93 {strides = array<i32>} : memref<1600x384xbf16, #tpu.memory_space<vmem>>, vector<16x384xbf16>,
    %c0_112 = arith.constant 0 : index
    %c52 = arith.constant 52 : index
    %95 = vector.load %arg9[%c0_112, %c52] : memref<16x640xbf16, #tpu.memory_space<vmem>>, vector<16x384xbf16>
    %c352 = arith.constant 352 : index
    %c0_113 = arith.constant 0 : index
    %96 = vector.load %arg12[%c352, %c0_113] : memref<1600x384xbf16, #tpu.memory_space<vmem>>, vector<16x384xbf16>
    tpu.vector_store %arg12[%c352, %c0_113], %95 {strides = array<i32>} : memref<1600x384xbf16, #tpu.memory_space<vmem>>, vector<16x384xbf16>,
    %c0_114 = arith.constant 0 : index
    %c53 = arith.constant 53 : index
    %97 = vector.load %arg9[%c0_114, %c53] : memref<16x640xbf16, #tpu.memory_space<vmem>>, vector<16x384xbf16>
    %c368 = arith.constant 368 : index
    %c0_115 = arith.constant 0 : index
    %98 = vector.load %arg12[%c368, %c0_115] : memref<1600x384xbf16, #tpu.memory_space<vmem>>, vector<16x384xbf16>
    tpu.vector_store %arg12[%c368, %c0_115], %97 {strides = array<i32>} : memref<1600x384xbf16, #tpu.memory_space<vmem>>, vector<16x384xbf16>,
    %c0_116 = arith.constant 0 : index
    %c54 = arith.constant 54 : index
    %99 = vector.load %arg9[%c0_116, %c54] : memref<16x640xbf16, #tpu.memory_space<vmem>>, vector<16x384xbf16>
    %c384 = arith.constant 384 : index
    %c0_117 = arith.constant 0 : index
    %100 = vector.load %arg12[%c384, %c0_117] : memref<1600x384xbf16, #tpu.memory_space<vmem>>, vector<16x384xbf16>
    tpu.vector_store %arg12[%c384, %c0_117], %99 {strides = array<i32>} : memref<1600x384xbf16, #tpu.memory_space<vmem>>, vector<16x384xbf16>,
    %c0_118 = arith.constant 0 : index
    %c55 = arith.constant 55 : index
    %101 = vector.load %arg9[%c0_118, %c55] : memref<16x640xbf16, #tpu.memory_space<vmem>>, vector<16x384xbf16>
    %c400 = arith.constant 400 : index
    %c0_119 = arith.constant 0 : index
    %102 = vector.load %arg12[%c400, %c0_119] : memref<1600x384xbf16, #tpu.memory_space<vmem>>, vector<16x384xbf16>
    tpu.vector_store %arg12[%c400, %c0_119], %101 {strides = array<i32>} : memref<1600x384xbf16, #tpu.memory_space<vmem>>, vector<16x384xbf16>,
    %c0_120 = arith.constant 0 : index
    %c56 = arith.constant 56 : index
    %103 = vector.load %arg9[%c0_120, %c56] : memref<16x640xbf16, #tpu.memory_space<vmem>>, vector<16x384xbf16>
    %c416 = arith.constant 416 : index
    %c0_121 = arith.constant 0 : index
    %104 = vector.load %arg12[%c416, %c0_121] : memref<1600x384xbf16, #tpu.memory_space<vmem>>, vector<16x384xbf16>
    tpu.vector_store %arg12[%c416, %c0_121], %103 {strides = array<i32>} : memref<1600x384xbf16, #tpu.memory_space<vmem>>, vector<16x384xbf16>,
    %c0_122 = arith.constant 0 : index
    %c72 = arith.constant 72 : index
    %105 = vector.load %arg9[%c0_122, %c72] : memref<16x640xbf16, #tpu.memory_space<vmem>>, vector<16x384xbf16>
    %c432 = arith.constant 432 : index
    %c0_123 = arith.constant 0 : index
    %106 = vector.load %arg12[%c432, %c0_123] : memref<1600x384xbf16, #tpu.memory_space<vmem>>, vector<16x384xbf16>
    tpu.vector_store %arg12[%c432, %c0_123], %105 {strides = array<i32>} : memref<1600x384xbf16, #tpu.memory_space<vmem>>, vector<16x384xbf16>,
    %c0_124 = arith.constant 0 : index
    %c73 = arith.constant 73 : index
    %107 = vector.load %arg9[%c0_124, %c73] : memref<16x640xbf16, #tpu.memory_space<vmem>>, vector<16x384xbf16>
    %c448 = arith.constant 448 : index
    %c0_125 = arith.constant 0 : index
    %108 = vector.load %arg12[%c448, %c0_125] : memref<1600x384xbf16, #tpu.memory_space<vmem>>, vector<16x384xbf16>
    tpu.vector_store %arg12[%c448, %c0_125], %107 {strides = array<i32>} : memref<1600x384xbf16, #tpu.memory_space<vmem>>, vector<16x384xbf16>,
    %c0_126 = arith.constant 0 : index
    %c74 = arith.constant 74 : index
    %109 = vector.load %arg9[%c0_126, %c74] : memref<16x640xbf16, #tpu.memory_space<vmem>>, vector<16x384xbf16>
    %c464 = arith.constant 464 : index
    %c0_127 = arith.constant 0 : index
    %110 = vector.load %arg12[%c464, %c0_127] : memref<1600x384xbf16, #tpu.memory_space<vmem>>, vector<16x384xbf16>
    tpu.vector_store %arg12[%c464, %c0_127], %109 {strides = array<i32>} : memref<1600x384xbf16, #tpu.memory_space<vmem>>, vector<16x384xbf16>,
    %c0_128 = arith.constant 0 : index
    %c75 = arith.constant 75 : index
    %111 = vector.load %arg9[%c0_128, %c75] : memref<16x640xbf16, #tpu.memory_space<vmem>>, vector<16x384xbf16>
    %c480 = arith.constant 480 : index
    %c0_129 = arith.constant 0 : index
    %112 = vector.load %arg12[%c480, %c0_129] : memref<1600x384xbf16, #tpu.memory_space<vmem>>, vector<16x384xbf16>
    tpu.vector_store %arg12[%c480, %c0_129], %111 {strides = array<i32>} : memref<1600x384xbf16, #tpu.memory_space<vmem>>, vector<16x384xbf16>,
    %c0_130 = arith.constant 0 : index
    %c76 = arith.constant 76 : index
    %113 = vector.load %arg9[%c0_130, %c76] : memref<16x640xbf16, #tpu.memory_space<vmem>>, vector<16x384xbf16>
    %c496 = arith.constant 496 : index
    %c0_131 = arith.constant 0 : index
    %114 = vector.load %arg12[%c496, %c0_131] : memref<1600x384xbf16, #tpu.memory_space<vmem>>, vector<16x384xbf16>
    tpu.vector_store %arg12[%c496, %c0_131], %113 {strides = array<i32>} : memref<1600x384xbf16, #tpu.memory_space<vmem>>, vector<16x384xbf16>,
    %c0_132 = arith.constant 0 : index
    %c77 = arith.constant 77 : index
    %115 = vector.load %arg9[%c0_132, %c77] : memref<16x640xbf16, #tpu.memory_space<vmem>>, vector<16x384xbf16>
    %c512 = arith.constant 512 : index
    %c0_133 = arith.constant 0 : index
    %116 = vector.load %arg12[%c512, %c0_133] : memref<1600x384xbf16, #tpu.memory_space<vmem>>, vector<16x384xbf16>
    tpu.vector_store %arg12[%c512, %c0_133], %115 {strides = array<i32>} : memref<1600x384xbf16, #tpu.memory_space<vmem>>, vector<16x384xbf16>,
    %c0_134 = arith.constant 0 : index
    %c78 = arith.constant 78 : index
    %117 = vector.load %arg9[%c0_134, %c78] : memref<16x640xbf16, #tpu.memory_space<vmem>>, vector<16x384xbf16>
    %c528 = arith.constant 528 : index
    %c0_135 = arith.constant 0 : index
    %118 = vector.load %arg12[%c528, %c0_135] : memref<1600x384xbf16, #tpu.memory_space<vmem>>, vector<16x384xbf16>
    tpu.vector_store %arg12[%c528, %c0_135], %117 {strides = array<i32>} : memref<1600x384xbf16, #tpu.memory_space<vmem>>, vector<16x384xbf16>,
    %c0_136 = arith.constant 0 : index
    %c79 = arith.constant 79 : index
    %119 = vector.load %arg9[%c0_136, %c79] : memref<16x640xbf16, #tpu.memory_space<vmem>>, vector<16x384xbf16>
    %c544 = arith.constant 544 : index
    %c0_137 = arith.constant 0 : index
    %120 = vector.load %arg12[%c544, %c0_137] : memref<1600x384xbf16, #tpu.memory_space<vmem>>, vector<16x384xbf16>
    tpu.vector_store %arg12[%c544, %c0_137], %119 {strides = array<i32>} : memref<1600x384xbf16, #tpu.memory_space<vmem>>, vector<16x384xbf16>,
    %c0_138 = arith.constant 0 : index
    %c80_139 = arith.constant 80 : index
    %121 = vector.load %arg9[%c0_138, %c80_139] : memref<16x640xbf16, #tpu.memory_space<vmem>>, vector<16x384xbf16>
    %c560 = arith.constant 560 : index
    %c0_140 = arith.constant 0 : index
    %122 = vector.load %arg12[%c560, %c0_140] : memref<1600x384xbf16, #tpu.memory_space<vmem>>, vector<16x384xbf16>
    tpu.vector_store %arg12[%c560, %c0_140], %121 {strides = array<i32>} : memref<1600x384xbf16, #tpu.memory_space<vmem>>, vector<16x384xbf16>,
    %c0_141 = arith.constant 0 : index
    %c96_142 = arith.constant 96 : index
    %123 = vector.load %arg9[%c0_141, %c96_142] : memref<16x640xbf16, #tpu.memory_space<vmem>>, vector<16x384xbf16>
    %c576 = arith.constant 576 : index
    %c0_143 = arith.constant 0 : index
    %124 = vector.load %arg12[%c576, %c0_143] : memref<1600x384xbf16, #tpu.memory_space<vmem>>, vector<16x384xbf16>
    tpu.vector_store %arg12[%c576, %c0_143], %123 {strides = array<i32>} : memref<1600x384xbf16, #tpu.memory_space<vmem>>, vector<16x384xbf16>,
    %c0_144 = arith.constant 0 : index
    %c97 = arith.constant 97 : index
    %125 = vector.load %arg9[%c0_144, %c97] : memref<16x640xbf16, #tpu.memory_space<vmem>>, vector<16x384xbf16>
    %c592 = arith.constant 592 : index
    %c0_145 = arith.constant 0 : index
    %126 = vector.load %arg12[%c592, %c0_145] : memref<1600x384xbf16, #tpu.memory_space<vmem>>, vector<16x384xbf16>
    tpu.vector_store %arg12[%c592, %c0_145], %125 {strides = array<i32>} : memref<1600x384xbf16, #tpu.memory_space<vmem>>, vector<16x384xbf16>,
    %c0_146 = arith.constant 0 : index
    %c98 = arith.constant 98 : index
    %127 = vector.load %arg9[%c0_146, %c98] : memref<16x640xbf16, #tpu.memory_space<vmem>>, vector<16x384xbf16>
    %c608 = arith.constant 608 : index
    %c0_147 = arith.constant 0 : index
    %128 = vector.load %arg12[%c608, %c0_147] : memref<1600x384xbf16, #tpu.memory_space<vmem>>, vector<16x384xbf16>
    tpu.vector_store %arg12[%c608, %c0_147], %127 {strides = array<i32>} : memref<1600x384xbf16, #tpu.memory_space<vmem>>, vector<16x384xbf16>,
    %c0_148 = arith.constant 0 : index
    %c99 = arith.constant 99 : index
    %129 = vector.load %arg9[%c0_148, %c99] : memref<16x640xbf16, #tpu.memory_space<vmem>>, vector<16x384xbf16>
    %c624 = arith.constant 624 : index
    %c0_149 = arith.constant 0 : index
    %130 = vector.load %arg12[%c624, %c0_149] : memref<1600x384xbf16, #tpu.memory_space<vmem>>, vector<16x384xbf16>
    tpu.vector_store %arg12[%c624, %c0_149], %129 {strides = array<i32>} : memref<1600x384xbf16, #tpu.memory_space<vmem>>, vector<16x384xbf16>,
    %c0_150 = arith.constant 0 : index
    %c100_151 = arith.constant 100 : index
    %131 = vector.load %arg9[%c0_150, %c100_151] : memref<16x640xbf16, #tpu.memory_space<vmem>>, vector<16x384xbf16>
    %c640 = arith.constant 640 : index
    %c0_152 = arith.constant 0 : index
    %132 = vector.load %arg12[%c640, %c0_152] : memref<1600x384xbf16, #tpu.memory_space<vmem>>, vector<16x384xbf16>
    tpu.vector_store %arg12[%c640, %c0_152], %131 {strides = array<i32>} : memref<1600x384xbf16, #tpu.memory_space<vmem>>, vector<16x384xbf16>,
    %c0_153 = arith.constant 0 : index
    %c101 = arith.constant 101 : index
    %133 = vector.load %arg9[%c0_153, %c101] : memref<16x640xbf16, #tpu.memory_space<vmem>>, vector<16x384xbf16>
    %c656 = arith.constant 656 : index
    %c0_154 = arith.constant 0 : index
    %134 = vector.load %arg12[%c656, %c0_154] : memref<1600x384xbf16, #tpu.memory_space<vmem>>, vector<16x384xbf16>
    tpu.vector_store %arg12[%c656, %c0_154], %133 {strides = array<i32>} : memref<1600x384xbf16, #tpu.memory_space<vmem>>, vector<16x384xbf16>,
    %c0_155 = arith.constant 0 : index
    %c102 = arith.constant 102 : index
    %135 = vector.load %arg9[%c0_155, %c102] : memref<16x640xbf16, #tpu.memory_space<vmem>>, vector<16x384xbf16>
    %c672 = arith.constant 672 : index
    %c0_156 = arith.constant 0 : index
    %136 = vector.load %arg12[%c672, %c0_156] : memref<1600x384xbf16, #tpu.memory_space<vmem>>, vector<16x384xbf16>
    tpu.vector_store %arg12[%c672, %c0_156], %135 {strides = array<i32>} : memref<1600x384xbf16, #tpu.memory_space<vmem>>, vector<16x384xbf16>,
    %c0_157 = arith.constant 0 : index
    %c103 = arith.constant 103 : index
    %137 = vector.load %arg9[%c0_157, %c103] : memref<16x640xbf16, #tpu.memory_space<vmem>>, vector<16x384xbf16>
    %c688 = arith.constant 688 : index
    %c0_158 = arith.constant 0 : index
    %138 = vector.load %arg12[%c688, %c0_158] : memref<1600x384xbf16, #tpu.memory_space<vmem>>, vector<16x384xbf16>
    tpu.vector_store %arg12[%c688, %c0_158], %137 {strides = array<i32>} : memref<1600x384xbf16, #tpu.memory_space<vmem>>, vector<16x384xbf16>,
    %c0_159 = arith.constant 0 : index
    %c104 = arith.constant 104 : index
    %139 = vector.load %arg9[%c0_159, %c104] : memref<16x640xbf16, #tpu.memory_space<vmem>>, vector<16x384xbf16>
    %c704 = arith.constant 704 : index
    %c0_160 = arith.constant 0 : index
    %140 = vector.load %arg12[%c704, %c0_160] : memref<1600x384xbf16, #tpu.memory_space<vmem>>, vector<16x384xbf16>
    tpu.vector_store %arg12[%c704, %c0_160], %139 {strides = array<i32>} : memref<1600x384xbf16, #tpu.memory_space<vmem>>, vector<16x384xbf16>,
    %c0_161 = arith.constant 0 : index
    %c120 = arith.constant 120 : index
    %141 = vector.load %arg9[%c0_161, %c120] : memref<16x640xbf16, #tpu.memory_space<vmem>>, vector<16x384xbf16>
    %c720 = arith.constant 720 : index
    %c0_162 = arith.constant 0 : index
    %142 = vector.load %arg12[%c720, %c0_162] : memref<1600x384xbf16, #tpu.memory_space<vmem>>, vector<16x384xbf16>
    tpu.vector_store %arg12[%c720, %c0_162], %141 {strides = array<i32>} : memref<1600x384xbf16, #tpu.memory_space<vmem>>, vector<16x384xbf16>,
    %c0_163 = arith.constant 0 : index
    %c121 = arith.constant 121 : index
    %143 = vector.load %arg9[%c0_163, %c121] : memref<16x640xbf16, #tpu.memory_space<vmem>>, vector<16x384xbf16>
    %c736 = arith.constant 736 : index
    %c0_164 = arith.constant 0 : index
    %144 = vector.load %arg12[%c736, %c0_164] : memref<1600x384xbf16, #tpu.memory_space<vmem>>, vector<16x384xbf16>
    tpu.vector_store %arg12[%c736, %c0_164], %143 {strides = array<i32>} : memref<1600x384xbf16, #tpu.memory_space<vmem>>, vector<16x384xbf16>,
    %c0_165 = arith.constant 0 : index
    %c122 = arith.constant 122 : index
    %145 = vector.load %arg9[%c0_165, %c122] : memref<16x640xbf16, #tpu.memory_space<vmem>>, vector<16x384xbf16>
    %c752 = arith.constant 752 : index
    %c0_166 = arith.constant 0 : index
    %146 = vector.load %arg12[%c752, %c0_166] : memref<1600x384xbf16, #tpu.memory_space<vmem>>, vector<16x384xbf16>
    tpu.vector_store %arg12[%c752, %c0_166], %145 {strides = array<i32>} : memref<1600x384xbf16, #tpu.memory_space<vmem>>, vector<16x384xbf16>,
    %c0_167 = arith.constant 0 : index
    %c123 = arith.constant 123 : index
    %147 = vector.load %arg9[%c0_167, %c123] : memref<16x640xbf16, #tpu.memory_space<vmem>>, vector<16x384xbf16>
    %c768 = arith.constant 768 : index
    %c0_168 = arith.constant 0 : index
    %148 = vector.load %arg12[%c768, %c0_168] : memref<1600x384xbf16, #tpu.memory_space<vmem>>, vector<16x384xbf16>
    tpu.vector_store %arg12[%c768, %c0_168], %147 {strides = array<i32>} : memref<1600x384xbf16, #tpu.memory_space<vmem>>, vector<16x384xbf16>,
    %c0_169 = arith.constant 0 : index
    %c124_170 = arith.constant 124 : index
    %149 = vector.load %arg9[%c0_169, %c124_170] : memref<16x640xbf16, #tpu.memory_space<vmem>>, vector<16x384xbf16>
    %c784 = arith.constant 784 : index
    %c0_171 = arith.constant 0 : index
    %150 = vector.load %arg12[%c784, %c0_171] : memref<1600x384xbf16, #tpu.memory_space<vmem>>, vector<16x384xbf16>
    tpu.vector_store %arg12[%c784, %c0_171], %149 {strides = array<i32>} : memref<1600x384xbf16, #tpu.memory_space<vmem>>, vector<16x384xbf16>,
    %c0_172 = arith.constant 0 : index
    %c125 = arith.constant 125 : index
    %151 = vector.load %arg9[%c0_172, %c125] : memref<16x640xbf16, #tpu.memory_space<vmem>>, vector<16x384xbf16>
    %c800 = arith.constant 800 : index
    %c0_173 = arith.constant 0 : index
    %152 = vector.load %arg12[%c800, %c0_173] : memref<1600x384xbf16, #tpu.memory_space<vmem>>, vector<16x384xbf16>
    tpu.vector_store %arg12[%c800, %c0_173], %151 {strides = array<i32>} : memref<1600x384xbf16, #tpu.memory_space<vmem>>, vector<16x384xbf16>,
    %c0_174 = arith.constant 0 : index
    %c126 = arith.constant 126 : index
    %153 = vector.load %arg9[%c0_174, %c126] : memref<16x640xbf16, #tpu.memory_space<vmem>>, vector<16x384xbf16>
    %c816 = arith.constant 816 : index
    %c0_175 = arith.constant 0 : index
    %154 = vector.load %arg12[%c816, %c0_175] : memref<1600x384xbf16, #tpu.memory_space<vmem>>, vector<16x384xbf16>
    tpu.vector_store %arg12[%c816, %c0_175], %153 {strides = array<i32>} : memref<1600x384xbf16, #tpu.memory_space<vmem>>, vector<16x384xbf16>,
    %c0_176 = arith.constant 0 : index
    %c127 = arith.constant 127 : index
    %155 = vector.load %arg9[%c0_176, %c127] : memref<16x640xbf16, #tpu.memory_space<vmem>>, vector<16x384xbf16>
    %c832 = arith.constant 832 : index
    %c0_177 = arith.constant 0 : index
    %156 = vector.load %arg12[%c832, %c0_177] : memref<1600x384xbf16, #tpu.memory_space<vmem>>, vector<16x384xbf16>
    tpu.vector_store %arg12[%c832, %c0_177], %155 {strides = array<i32>} : memref<1600x384xbf16, #tpu.memory_space<vmem>>, vector<16x384xbf16>,
    %c0_178 = arith.constant 0 : index
    %c128_179 = arith.constant 128 : index
    %157 = vector.load %arg9[%c0_178, %c128_179] : memref<16x640xbf16, #tpu.memory_space<vmem>>, vector<16x384xbf16>
    %c848 = arith.constant 848 : index
    %c0_180 = arith.constant 0 : index
    %158 = vector.load %arg12[%c848, %c0_180] : memref<1600x384xbf16, #tpu.memory_space<vmem>>, vector<16x384xbf16>
    tpu.vector_store %arg12[%c848, %c0_180], %157 {strides = array<i32>} : memref<1600x384xbf16, #tpu.memory_space<vmem>>, vector<16x384xbf16>,
    %c0_181 = arith.constant 0 : index
    %c144_182 = arith.constant 144 : index
    %159 = vector.load %arg9[%c0_181, %c144_182] : memref<16x640xbf16, #tpu.memory_space<vmem>>, vector<16x384xbf16>
    %c864 = arith.constant 864 : index
    %c0_183 = arith.constant 0 : index
    %160 = vector.load %arg12[%c864, %c0_183] : memref<1600x384xbf16, #tpu.memory_space<vmem>>, vector<16x384xbf16>
    tpu.vector_store %arg12[%c864, %c0_183], %159 {strides = array<i32>} : memref<1600x384xbf16, #tpu.memory_space<vmem>>, vector<16x384xbf16>,
    %c0_184 = arith.constant 0 : index
    %c145 = arith.constant 145 : index
    %161 = vector.load %arg9[%c0_184, %c145] : memref<16x640xbf16, #tpu.memory_space<vmem>>, vector<16x384xbf16>
    %c880 = arith.constant 880 : index
    %c0_185 = arith.constant 0 : index
    %162 = vector.load %arg12[%c880, %c0_185] : memref<1600x384xbf16, #tpu.memory_space<vmem>>, vector<16x384xbf16>
    tpu.vector_store %arg12[%c880, %c0_185], %161 {strides = array<i32>} : memref<1600x384xbf16, #tpu.memory_space<vmem>>, vector<16x384xbf16>,
    %c0_186 = arith.constant 0 : index
    %c146 = arith.constant 146 : index
    %163 = vector.load %arg9[%c0_186, %c146] : memref<16x640xbf16, #tpu.memory_space<vmem>>, vector<16x384xbf16>
    %c896 = arith.constant 896 : index
    %c0_187 = arith.constant 0 : index
    %164 = vector.load %arg12[%c896, %c0_187] : memref<1600x384xbf16, #tpu.memory_space<vmem>>, vector<16x384xbf16>
    tpu.vector_store %arg12[%c896, %c0_187], %163 {strides = array<i32>} : memref<1600x384xbf16, #tpu.memory_space<vmem>>, vector<16x384xbf16>,
    %c0_188 = arith.constant 0 : index
    %c147 = arith.constant 147 : index
    %165 = vector.load %arg9[%c0_188, %c147] : memref<16x640xbf16, #tpu.memory_space<vmem>>, vector<16x384xbf16>
    %c912 = arith.constant 912 : index
    %c0_189 = arith.constant 0 : index
    %166 = vector.load %arg12[%c912, %c0_189] : memref<1600x384xbf16, #tpu.memory_space<vmem>>, vector<16x384xbf16>
    tpu.vector_store %arg12[%c912, %c0_189], %165 {strides = array<i32>} : memref<1600x384xbf16, #tpu.memory_space<vmem>>, vector<16x384xbf16>,
    %c0_190 = arith.constant 0 : index
    %c148_191 = arith.constant 148 : index
    %167 = vector.load %arg9[%c0_190, %c148_191] : memref<16x640xbf16, #tpu.memory_space<vmem>>, vector<16x384xbf16>
    %c928 = arith.constant 928 : index
    %c0_192 = arith.constant 0 : index
    %168 = vector.load %arg12[%c928, %c0_192] : memref<1600x384xbf16, #tpu.memory_space<vmem>>, vector<16x384xbf16>
    tpu.vector_store %arg12[%c928, %c0_192], %167 {strides = array<i32>} : memref<1600x384xbf16, #tpu.memory_space<vmem>>, vector<16x384xbf16>,
    %c0_193 = arith.constant 0 : index
    %c149 = arith.constant 149 : index
    %169 = vector.load %arg9[%c0_193, %c149] : memref<16x640xbf16, #tpu.memory_space<vmem>>, vector<16x384xbf16>
    %c944 = arith.constant 944 : index
    %c0_194 = arith.constant 0 : index
    %170 = vector.load %arg12[%c944, %c0_194] : memref<1600x384xbf16, #tpu.memory_space<vmem>>, vector<16x384xbf16>
    tpu.vector_store %arg12[%c944, %c0_194], %169 {strides = array<i32>} : memref<1600x384xbf16, #tpu.memory_space<vmem>>, vector<16x384xbf16>,
    %c0_195 = arith.constant 0 : index
    %c150 = arith.constant 150 : index
    %171 = vector.load %arg9[%c0_195, %c150] : memref<16x640xbf16, #tpu.memory_space<vmem>>, vector<16x384xbf16>
    %c960 = arith.constant 960 : index
    %c0_196 = arith.constant 0 : index
    %172 = vector.load %arg12[%c960, %c0_196] : memref<1600x384xbf16, #tpu.memory_space<vmem>>, vector<16x384xbf16>
    tpu.vector_store %arg12[%c960, %c0_196], %171 {strides = array<i32>} : memref<1600x384xbf16, #tpu.memory_space<vmem>>, vector<16x384xbf16>,
    %c0_197 = arith.constant 0 : index
    %c151 = arith.constant 151 : index
    %173 = vector.load %arg9[%c0_197, %c151] : memref<16x640xbf16, #tpu.memory_space<vmem>>, vector<16x384xbf16>
    %c976 = arith.constant 976 : index
    %c0_198 = arith.constant 0 : index
    %174 = vector.load %arg12[%c976, %c0_198] : memref<1600x384xbf16, #tpu.memory_space<vmem>>, vector<16x384xbf16>
    tpu.vector_store %arg12[%c976, %c0_198], %173 {strides = array<i32>} : memref<1600x384xbf16, #tpu.memory_space<vmem>>, vector<16x384xbf16>,
    %c0_199 = arith.constant 0 : index
    %c152 = arith.constant 152 : index
    %175 = vector.load %arg9[%c0_199, %c152] : memref<16x640xbf16, #tpu.memory_space<vmem>>, vector<16x384xbf16>
    %c992 = arith.constant 992 : index
    %c0_200 = arith.constant 0 : index
    %176 = vector.load %arg12[%c992, %c0_200] : memref<1600x384xbf16, #tpu.memory_space<vmem>>, vector<16x384xbf16>
    tpu.vector_store %arg12[%c992, %c0_200], %175 {strides = array<i32>} : memref<1600x384xbf16, #tpu.memory_space<vmem>>, vector<16x384xbf16>,
    %c0_201 = arith.constant 0 : index
    %c168 = arith.constant 168 : index
    %177 = vector.load %arg9[%c0_201, %c168] : memref<16x640xbf16, #tpu.memory_space<vmem>>, vector<16x384xbf16>
    %c1008 = arith.constant 1008 : index
    %c0_202 = arith.constant 0 : index
    %178 = vector.load %arg12[%c1008, %c0_202] : memref<1600x384xbf16, #tpu.memory_space<vmem>>, vector<16x384xbf16>
    tpu.vector_store %arg12[%c1008, %c0_202], %177 {strides = array<i32>} : memref<1600x384xbf16, #tpu.memory_space<vmem>>, vector<16x384xbf16>,
    %c0_203 = arith.constant 0 : index
    %c169 = arith.constant 169 : index
    %179 = vector.load %arg9[%c0_203, %c169] : memref<16x640xbf16, #tpu.memory_space<vmem>>, vector<16x384xbf16>
    %c1024 = arith.constant 1024 : index
    %c0_204 = arith.constant 0 : index
    %180 = vector.load %arg12[%c1024, %c0_204] : memref<1600x384xbf16, #tpu.memory_space<vmem>>, vector<16x384xbf16>
    tpu.vector_store %arg12[%c1024, %c0_204], %179 {strides = array<i32>} : memref<1600x384xbf16, #tpu.memory_space<vmem>>, vector<16x384xbf16>,
    %c0_205 = arith.constant 0 : index
    %c170 = arith.constant 170 : index
    %181 = vector.load %arg9[%c0_205, %c170] : memref<16x640xbf16, #tpu.memory_space<vmem>>, vector<16x384xbf16>
    %c1040 = arith.constant 1040 : index
    %c0_206 = arith.constant 0 : index
    %182 = vector.load %arg12[%c1040, %c0_206] : memref<1600x384xbf16, #tpu.memory_space<vmem>>, vector<16x384xbf16>
    tpu.vector_store %arg12[%c1040, %c0_206], %181 {strides = array<i32>} : memref<1600x384xbf16, #tpu.memory_space<vmem>>, vector<16x384xbf16>,
    %c0_207 = arith.constant 0 : index
    %c171 = arith.constant 171 : index
    %183 = vector.load %arg9[%c0_207, %c171] : memref<16x640xbf16, #tpu.memory_space<vmem>>, vector<16x384xbf16>
    %c1056 = arith.constant 1056 : index
    %c0_208 = arith.constant 0 : index
    %184 = vector.load %arg12[%c1056, %c0_208] : memref<1600x384xbf16, #tpu.memory_space<vmem>>, vector<16x384xbf16>
    tpu.vector_store %arg12[%c1056, %c0_208], %183 {strides = array<i32>} : memref<1600x384xbf16, #tpu.memory_space<vmem>>, vector<16x384xbf16>,
    %c0_209 = arith.constant 0 : index
    %c172_210 = arith.constant 172 : index
    %185 = vector.load %arg9[%c0_209, %c172_210] : memref<16x640xbf16, #tpu.memory_space<vmem>>, vector<16x384xbf16>
    %c1072 = arith.constant 1072 : index
    %c0_211 = arith.constant 0 : index
    %186 = vector.load %arg12[%c1072, %c0_211] : memref<1600x384xbf16, #tpu.memory_space<vmem>>, vector<16x384xbf16>
    tpu.vector_store %arg12[%c1072, %c0_211], %185 {strides = array<i32>} : memref<1600x384xbf16, #tpu.memory_space<vmem>>, vector<16x384xbf16>,
    %c0_212 = arith.constant 0 : index
    %c173 = arith.constant 173 : index
    %187 = vector.load %arg9[%c0_212, %c173] : memref<16x640xbf16, #tpu.memory_space<vmem>>, vector<16x384xbf16>
    %c1088 = arith.constant 1088 : index
    %c0_213 = arith.constant 0 : index
    %188 = vector.load %arg12[%c1088, %c0_213] : memref<1600x384xbf16, #tpu.memory_space<vmem>>, vector<16x384xbf16>
    tpu.vector_store %arg12[%c1088, %c0_213], %187 {strides = array<i32>} : memref<1600x384xbf16, #tpu.memory_space<vmem>>, vector<16x384xbf16>,
    %c0_214 = arith.constant 0 : index
    %c174 = arith.constant 174 : index
    %189 = vector.load %arg9[%c0_214, %c174] : memref<16x640xbf16, #tpu.memory_space<vmem>>, vector<16x384xbf16>
    %c1104 = arith.constant 1104 : index
    %c0_215 = arith.constant 0 : index
    %190 = vector.load %arg12[%c1104, %c0_215] : memref<1600x384xbf16, #tpu.memory_space<vmem>>, vector<16x384xbf16>
    tpu.vector_store %arg12[%c1104, %c0_215], %189 {strides = array<i32>} : memref<1600x384xbf16, #tpu.memory_space<vmem>>, vector<16x384xbf16>,
    %c0_216 = arith.constant 0 : index
    %c175 = arith.constant 175 : index
    %191 = vector.load %arg9[%c0_216, %c175] : memref<16x640xbf16, #tpu.memory_space<vmem>>, vector<16x384xbf16>
    %c1120 = arith.constant 1120 : index
    %c0_217 = arith.constant 0 : index
    %192 = vector.load %arg12[%c1120, %c0_217] : memref<1600x384xbf16, #tpu.memory_space<vmem>>, vector<16x384xbf16>
    tpu.vector_store %arg12[%c1120, %c0_217], %191 {strides = array<i32>} : memref<1600x384xbf16, #tpu.memory_space<vmem>>, vector<16x384xbf16>,
    %c0_218 = arith.constant 0 : index
    %c176_219 = arith.constant 176 : index
    %193 = vector.load %arg9[%c0_218, %c176_219] : memref<16x640xbf16, #tpu.memory_space<vmem>>, vector<16x384xbf16>
    %c1136 = arith.constant 1136 : index
    %c0_220 = arith.constant 0 : index
    %194 = vector.load %arg12[%c1136, %c0_220] : memref<1600x384xbf16, #tpu.memory_space<vmem>>, vector<16x384xbf16>
    tpu.vector_store %arg12[%c1136, %c0_220], %193 {strides = array<i32>} : memref<1600x384xbf16, #tpu.memory_space<vmem>>, vector<16x384xbf16>,
    %c0_221 = arith.constant 0 : index
    %c192_222 = arith.constant 192 : index
    %195 = vector.load %arg9[%c0_221, %c192_222] : memref<16x640xbf16, #tpu.memory_space<vmem>>, vector<16x384xbf16>
    %c1152 = arith.constant 1152 : index
    %c0_223 = arith.constant 0 : index
    %196 = vector.load %arg12[%c1152, %c0_223] : memref<1600x384xbf16, #tpu.memory_space<vmem>>, vector<16x384xbf16>
    tpu.vector_store %arg12[%c1152, %c0_223], %195 {strides = array<i32>} : memref<1600x384xbf16, #tpu.memory_space<vmem>>, vector<16x384xbf16>,
    %c0_224 = arith.constant 0 : index
    %c193 = arith.constant 193 : index
    %197 = vector.load %arg9[%c0_224, %c193] : memref<16x640xbf16, #tpu.memory_space<vmem>>, vector<16x384xbf16>
    %c1168 = arith.constant 1168 : index
    %c0_225 = arith.constant 0 : index
    %198 = vector.load %arg12[%c1168, %c0_225] : memref<1600x384xbf16, #tpu.memory_space<vmem>>, vector<16x384xbf16>
    tpu.vector_store %arg12[%c1168, %c0_225], %197 {strides = array<i32>} : memref<1600x384xbf16, #tpu.memory_space<vmem>>, vector<16x384xbf16>,
    %c0_226 = arith.constant 0 : index
    %c194 = arith.constant 194 : index
    %199 = vector.load %arg9[%c0_226, %c194] : memref<16x640xbf16, #tpu.memory_space<vmem>>, vector<16x384xbf16>
    %c1184 = arith.constant 1184 : index
    %c0_227 = arith.constant 0 : index
    %200 = vector.load %arg12[%c1184, %c0_227] : memref<1600x384xbf16, #tpu.memory_space<vmem>>, vector<16x384xbf16>
    tpu.vector_store %arg12[%c1184, %c0_227], %199 {strides = array<i32>} : memref<1600x384xbf16, #tpu.memory_space<vmem>>, vector<16x384xbf16>,
    %c0_228 = arith.constant 0 : index
    %c195 = arith.constant 195 : index
    %201 = vector.load %arg9[%c0_228, %c195] : memref<16x640xbf16, #tpu.memory_space<vmem>>, vector<16x384xbf16>
    %c1200 = arith.constant 1200 : index
    %c0_229 = arith.constant 0 : index
    %202 = vector.load %arg12[%c1200, %c0_229] : memref<1600x384xbf16, #tpu.memory_space<vmem>>, vector<16x384xbf16>
    tpu.vector_store %arg12[%c1200, %c0_229], %201 {strides = array<i32>} : memref<1600x384xbf16, #tpu.memory_space<vmem>>, vector<16x384xbf16>,
    %c0_230 = arith.constant 0 : index
    %c196_231 = arith.constant 196 : index
    %203 = vector.load %arg9[%c0_230, %c196_231] : memref<16x640xbf16, #tpu.memory_space<vmem>>, vector<16x384xbf16>
    %c1216 = arith.constant 1216 : index
    %c0_232 = arith.constant 0 : index
    %204 = vector.load %arg12[%c1216, %c0_232] : memref<1600x384xbf16, #tpu.memory_space<vmem>>, vector<16x384xbf16>
    tpu.vector_store %arg12[%c1216, %c0_232], %203 {strides = array<i32>} : memref<1600x384xbf16, #tpu.memory_space<vmem>>, vector<16x384xbf16>,
    %c0_233 = arith.constant 0 : index
    %c197 = arith.constant 197 : index
    %205 = vector.load %arg9[%c0_233, %c197] : memref<16x640xbf16, #tpu.memory_space<vmem>>, vector<16x384xbf16>
    %c1232 = arith.constant 1232 : index
    %c0_234 = arith.constant 0 : index
    %206 = vector.load %arg12[%c1232, %c0_234] : memref<1600x384xbf16, #tpu.memory_space<vmem>>, vector<16x384xbf16>
    tpu.vector_store %arg12[%c1232, %c0_234], %205 {strides = array<i32>} : memref<1600x384xbf16, #tpu.memory_space<vmem>>, vector<16x384xbf16>,
    %c0_235 = arith.constant 0 : index
    %c198 = arith.constant 198 : index
    %207 = vector.load %arg9[%c0_235, %c198] : memref<16x640xbf16, #tpu.memory_space<vmem>>, vector<16x384xbf16>
    %c1248 = arith.constant 1248 : index
    %c0_236 = arith.constant 0 : index
    %208 = vector.load %arg12[%c1248, %c0_236] : memref<1600x384xbf16, #tpu.memory_space<vmem>>, vector<16x384xbf16>
    tpu.vector_store %arg12[%c1248, %c0_236], %207 {strides = array<i32>} : memref<1600x384xbf16, #tpu.memory_space<vmem>>, vector<16x384xbf16>,
    %c0_237 = arith.constant 0 : index
    %c199 = arith.constant 199 : index
    %209 = vector.load %arg9[%c0_237, %c199] : memref<16x640xbf16, #tpu.memory_space<vmem>>, vector<16x384xbf16>
    %c1264 = arith.constant 1264 : index
    %c0_238 = arith.constant 0 : index
    %210 = vector.load %arg12[%c1264, %c0_238] : memref<1600x384xbf16, #tpu.memory_space<vmem>>, vector<16x384xbf16>
    tpu.vector_store %arg12[%c1264, %c0_238], %209 {strides = array<i32>} : memref<1600x384xbf16, #tpu.memory_space<vmem>>, vector<16x384xbf16>,
    %c0_239 = arith.constant 0 : index
    %c200 = arith.constant 200 : index
    %211 = vector.load %arg9[%c0_239, %c200] : memref<16x640xbf16, #tpu.memory_space<vmem>>, vector<16x384xbf16>
    %c1280 = arith.constant 1280 : index
    %c0_240 = arith.constant 0 : index
    %212 = vector.load %arg12[%c1280, %c0_240] : memref<1600x384xbf16, #tpu.memory_space<vmem>>, vector<16x384xbf16>
    tpu.vector_store %arg12[%c1280, %c0_240], %211 {strides = array<i32>} : memref<1600x384xbf16, #tpu.memory_space<vmem>>, vector<16x384xbf16>,
    %c0_241 = arith.constant 0 : index
    %c0_242 = arith.constant 0 : index
    %213 = vector.load %arg2[%c0_241, %c0_242] : memref<64x1296xbf16, #tpu.memory_space<vmem>>, vector<64x1296xbf16>
    %c0_243 = arith.constant 0 : index
    %c0_244 = arith.constant 0 : index
    %214 = vector.load %arg12[%c0_243, %c0_244] : memref<1600x384xbf16, #tpu.memory_space<vmem>>, vector<1296x384xbf16>
    %cst = arith.constant dense<0.000000e+00> : vector<64x384xf32>
    %215 = tpu.matmul %213, %214, %cst {dimension_numbers = #tpu.dot_dimension_numbers<[1], [0], [0], [1], [0, 0, 1, 1], [], []>} : vector<64x1296xbf16>, vector<1296x384xbf16>, vector<64x384xf32> -> vector<64x384xf32>
    %c0_245 = arith.constant 0 : index
    %c0_246 = arith.constant 0 : index
    %216 = vector.load %arg3[%c0_245, %c0_246] : memref<64x1xf32, #tpu.memory_space<vmem>>, vector<64x1xf32>
    %217 = vector.broadcast %216 : vector<64x1xf32> to vector<64x384xf32>
    %218 = arith.addf %215, %217 : vector<64x384xf32>
    %cst_247 = arith.constant 0.000000e+00 : f32
    %219 = vector.broadcast %cst_247 : f32 to vector<64x384xf32>
    %220 = arith.maximumf %218, %219 : vector<64x384xf32>
    %221 = vector.extract_strided_slice %220 {offsets = [0, 0], sizes = [64, 16], strides = [1, 1]} : vector<64x384xf32> to vector<64x16xf32>
    %222 = arith.truncf %221 : vector<64x16xf32> to vector<64x16xbf16>
    %c0_248 = arith.constant 0 : index
    %c42 = arith.constant 42 : index
    %223 = vector.load %arg10[%c0_248, %c42] : memref<64x512xbf16, #tpu.memory_space<vmem>>, vector<64x16xbf16>
    tpu.vector_store %arg10[%c0_248, %c42], %222 {strides = array<i32>} : memref<64x512xbf16, #tpu.memory_space<vmem>>, vector<64x16xbf16>,
    %224 = vector.extract_strided_slice %220 {offsets = [0, 24], sizes = [64, 16], strides = [1, 1]} : vector<64x384xf32> to vector<64x16xf32>
    %225 = arith.truncf %224 : vector<64x16xf32> to vector<64x16xbf16>
    %c0_249 = arith.constant 0 : index
    %c62 = arith.constant 62 : index
    %226 = vector.load %arg10[%c0_249, %c62] : memref<64x512xbf16, #tpu.memory_space<vmem>>, vector<64x16xbf16>
    tpu.vector_store %arg10[%c0_249, %c62], %225 {strides = array<i32>} : memref<64x512xbf16, #tpu.memory_space<vmem>>, vector<64x16xbf16>,
    %227 = vector.extract_strided_slice %220 {offsets = [0, 48], sizes = [64, 16], strides = [1, 1]} : vector<64x384xf32> to vector<64x16xf32>
    %228 = arith.truncf %227 : vector<64x16xf32> to vector<64x16xbf16>
    %c0_250 = arith.constant 0 : index
    %c82 = arith.constant 82 : index
    %229 = vector.load %arg10[%c0_250, %c82] : memref<64x512xbf16, #tpu.memory_space<vmem>>, vector<64x16xbf16>
    tpu.vector_store %arg10[%c0_250, %c82], %228 {strides = array<i32>} : memref<64x512xbf16, #tpu.memory_space<vmem>>, vector<64x16xbf16>,
    %230 = vector.extract_strided_slice %220 {offsets = [0, 72], sizes = [64, 16], strides = [1, 1]} : vector<64x384xf32> to vector<64x16xf32>
    %231 = arith.truncf %230 : vector<64x16xf32> to vector<64x16xbf16>
    %c0_251 = arith.constant 0 : index
    %c102_252 = arith.constant 102 : index
    %232 = vector.load %arg10[%c0_251, %c102_252] : memref<64x512xbf16, #tpu.memory_space<vmem>>, vector<64x16xbf16>
    tpu.vector_store %arg10[%c0_251, %c102_252], %231 {strides = array<i32>} : memref<64x512xbf16, #tpu.memory_space<vmem>>, vector<64x16xbf16>,
    %233 = vector.extract_strided_slice %220 {offsets = [0, 96], sizes = [64, 16], strides = [1, 1]} : vector<64x384xf32> to vector<64x16xf32>
    %234 = arith.truncf %233 : vector<64x16xf32> to vector<64x16xbf16>
    %c0_253 = arith.constant 0 : index
    %c122_254 = arith.constant 122 : index
    %235 = vector.load %arg10[%c0_253, %c122_254] : memref<64x512xbf16, #tpu.memory_space<vmem>>, vector<64x16xbf16>
    tpu.vector_store %arg10[%c0_253, %c122_254], %234 {strides = array<i32>} : memref<64x512xbf16, #tpu.memory_space<vmem>>, vector<64x16xbf16>,
    %236 = vector.extract_strided_slice %220 {offsets = [0, 120], sizes = [64, 16], strides = [1, 1]} : vector<64x384xf32> to vector<64x16xf32>
    %237 = arith.truncf %236 : vector<64x16xf32> to vector<64x16xbf16>
    %c0_255 = arith.constant 0 : index
    %c142 = arith.constant 142 : index
    %238 = vector.load %arg10[%c0_255, %c142] : memref<64x512xbf16, #tpu.memory_space<vmem>>, vector<64x16xbf16>
    tpu.vector_store %arg10[%c0_255, %c142], %237 {strides = array<i32>} : memref<64x512xbf16, #tpu.memory_space<vmem>>, vector<64x16xbf16>,
    %239 = vector.extract_strided_slice %220 {offsets = [0, 144], sizes = [64, 16], strides = [1, 1]} : vector<64x384xf32> to vector<64x16xf32>
    %240 = arith.truncf %239 : vector<64x16xf32> to vector<64x16xbf16>
    %c0_256 = arith.constant 0 : index
    %c162 = arith.constant 162 : index
    %241 = vector.load %arg10[%c0_256, %c162] : memref<64x512xbf16, #tpu.memory_space<vmem>>, vector<64x16xbf16>
    tpu.vector_store %arg10[%c0_256, %c162], %240 {strides = array<i32>} : memref<64x512xbf16, #tpu.memory_space<vmem>>, vector<64x16xbf16>,
    %242 = vector.extract_strided_slice %220 {offsets = [0, 168], sizes = [64, 16], strides = [1, 1]} : vector<64x384xf32> to vector<64x16xf32>
    %243 = arith.truncf %242 : vector<64x16xf32> to vector<64x16xbf16>
    %c0_257 = arith.constant 0 : index
    %c182 = arith.constant 182 : index
    %244 = vector.load %arg10[%c0_257, %c182] : memref<64x512xbf16, #tpu.memory_space<vmem>>, vector<64x16xbf16>
    tpu.vector_store %arg10[%c0_257, %c182], %243 {strides = array<i32>} : memref<64x512xbf16, #tpu.memory_space<vmem>>, vector<64x16xbf16>,
    %245 = vector.extract_strided_slice %220 {offsets = [0, 192], sizes = [64, 16], strides = [1, 1]} : vector<64x384xf32> to vector<64x16xf32>
    %246 = arith.truncf %245 : vector<64x16xf32> to vector<64x16xbf16>
    %c0_258 = arith.constant 0 : index
    %c202 = arith.constant 202 : index
    %247 = vector.load %arg10[%c0_258, %c202] : memref<64x512xbf16, #tpu.memory_space<vmem>>, vector<64x16xbf16>
    tpu.vector_store %arg10[%c0_258, %c202], %246 {strides = array<i32>} : memref<64x512xbf16, #tpu.memory_space<vmem>>, vector<64x16xbf16>,
    %248 = vector.extract_strided_slice %220 {offsets = [0, 216], sizes = [64, 16], strides = [1, 1]} : vector<64x384xf32> to vector<64x16xf32>
    %249 = arith.truncf %248 : vector<64x16xf32> to vector<64x16xbf16>
    %c0_259 = arith.constant 0 : index
    %c222 = arith.constant 222 : index
    %250 = vector.load %arg10[%c0_259, %c222] : memref<64x512xbf16, #tpu.memory_space<vmem>>, vector<64x16xbf16>
    tpu.vector_store %arg10[%c0_259, %c222], %249 {strides = array<i32>} : memref<64x512xbf16, #tpu.memory_space<vmem>>, vector<64x16xbf16>,
    %251 = vector.extract_strided_slice %220 {offsets = [0, 240], sizes = [64, 16], strides = [1, 1]} : vector<64x384xf32> to vector<64x16xf32>
    %252 = arith.truncf %251 : vector<64x16xf32> to vector<64x16xbf16>
    %c0_260 = arith.constant 0 : index
    %c242 = arith.constant 242 : index
    %253 = vector.load %arg10[%c0_260, %c242] : memref<64x512xbf16, #tpu.memory_space<vmem>>, vector<64x16xbf16>
    tpu.vector_store %arg10[%c0_260, %c242], %252 {strides = array<i32>} : memref<64x512xbf16, #tpu.memory_space<vmem>>, vector<64x16xbf16>,
    %254 = vector.extract_strided_slice %220 {offsets = [0, 264], sizes = [64, 16], strides = [1, 1]} : vector<64x384xf32> to vector<64x16xf32>
    %255 = arith.truncf %254 : vector<64x16xf32> to vector<64x16xbf16>
    %c0_261 = arith.constant 0 : index
    %c262 = arith.constant 262 : index
    %256 = vector.load %arg10[%c0_261, %c262] : memref<64x512xbf16, #tpu.memory_space<vmem>>, vector<64x16xbf16>
    tpu.vector_store %arg10[%c0_261, %c262], %255 {strides = array<i32>} : memref<64x512xbf16, #tpu.memory_space<vmem>>, vector<64x16xbf16>,
    %257 = vector.extract_strided_slice %220 {offsets = [0, 288], sizes = [64, 16], strides = [1, 1]} : vector<64x384xf32> to vector<64x16xf32>
    %258 = arith.truncf %257 : vector<64x16xf32> to vector<64x16xbf16>
    %c0_262 = arith.constant 0 : index
    %c282 = arith.constant 282 : index
    %259 = vector.load %arg10[%c0_262, %c282] : memref<64x512xbf16, #tpu.memory_space<vmem>>, vector<64x16xbf16>
    tpu.vector_store %arg10[%c0_262, %c282], %258 {strides = array<i32>} : memref<64x512xbf16, #tpu.memory_space<vmem>>, vector<64x16xbf16>,
    %260 = vector.extract_strided_slice %220 {offsets = [0, 312], sizes = [64, 16], strides = [1, 1]} : vector<64x384xf32> to vector<64x16xf32>
    %261 = arith.truncf %260 : vector<64x16xf32> to vector<64x16xbf16>
    %c0_263 = arith.constant 0 : index
    %c302 = arith.constant 302 : index
    %262 = vector.load %arg10[%c0_263, %c302] : memref<64x512xbf16, #tpu.memory_space<vmem>>, vector<64x16xbf16>
    tpu.vector_store %arg10[%c0_263, %c302], %261 {strides = array<i32>} : memref<64x512xbf16, #tpu.memory_space<vmem>>, vector<64x16xbf16>,
    %263 = vector.extract_strided_slice %220 {offsets = [0, 336], sizes = [64, 16], strides = [1, 1]} : vector<64x384xf32> to vector<64x16xf32>
    %264 = arith.truncf %263 : vector<64x16xf32> to vector<64x16xbf16>
    %c0_264 = arith.constant 0 : index
    %c322 = arith.constant 322 : index
    %265 = vector.load %arg10[%c0_264, %c322] : memref<64x512xbf16, #tpu.memory_space<vmem>>, vector<64x16xbf16>
    tpu.vector_store %arg10[%c0_264, %c322], %264 {strides = array<i32>} : memref<64x512xbf16, #tpu.memory_space<vmem>>, vector<64x16xbf16>,
    %266 = vector.extract_strided_slice %220 {offsets = [0, 360], sizes = [64, 16], strides = [1, 1]} : vector<64x384xf32> to vector<64x16xf32>
    %267 = arith.truncf %266 : vector<64x16xf32> to vector<64x16xbf16>
    %c0_265 = arith.constant 0 : index
    %c342 = arith.constant 342 : index
    %268 = vector.load %arg10[%c0_265, %c342] : memref<64x512xbf16, #tpu.memory_space<vmem>>, vector<64x16xbf16>
    tpu.vector_store %arg10[%c0_265, %c342], %267 {strides = array<i32>} : memref<64x512xbf16, #tpu.memory_space<vmem>>, vector<64x16xbf16>,
    %c0_266 = arith.constant 0 : index
    %c0_267 = arith.constant 0 : index
    %269 = vector.load %arg10[%c0_266, %c0_267] : memref<64x512xbf16, #tpu.memory_space<vmem>>, vector<64x384xbf16>
    %c0_268 = arith.constant 0 : index
    %c0_269 = arith.constant 0 : index
    %270 = vector.load %arg12[%c0_268, %c0_269] : memref<1600x384xbf16, #tpu.memory_space<vmem>>, vector<64x384xbf16>
    tpu.vector_store %arg12[%c0_268, %c0_269], %269 {strides = array<i32>} : memref<1600x384xbf16, #tpu.memory_space<vmem>>, vector<64x384xbf16>,
    %c0_270 = arith.constant 0 : index
    %c1_271 = arith.constant 1 : index
    %271 = vector.load %arg10[%c0_270, %c1_271] : memref<64x512xbf16, #tpu.memory_space<vmem>>, vector<64x384xbf16>
    %c64_272 = arith.constant 64 : index
    %c0_273 = arith.constant 0 : index
    %272 = vector.load %arg12[%c64_272, %c0_273] : memref<1600x384xbf16, #tpu.memory_space<vmem>>, vector<64x384xbf16>
    tpu.vector_store %arg12[%c64_272, %c0_273], %271 {strides = array<i32>} : memref<1600x384xbf16, #tpu.memory_space<vmem>>, vector<64x384xbf16>,
    %c0_274 = arith.constant 0 : index
    %c2_275 = arith.constant 2 : index
    %273 = vector.load %arg10[%c0_274, %c2_275] : memref<64x512xbf16, #tpu.memory_space<vmem>>, vector<64x384xbf16>
    %c128_276 = arith.constant 128 : index
    %c0_277 = arith.constant 0 : index
    %274 = vector.load %arg12[%c128_276, %c0_277] : memref<1600x384xbf16, #tpu.memory_space<vmem>>, vector<64x384xbf16>
    tpu.vector_store %arg12[%c128_276, %c0_277], %273 {strides = array<i32>} : memref<1600x384xbf16, #tpu.memory_space<vmem>>, vector<64x384xbf16>,
    %c0_278 = arith.constant 0 : index
    %c3_279 = arith.constant 3 : index
    %275 = vector.load %arg10[%c0_278, %c3_279] : memref<64x512xbf16, #tpu.memory_space<vmem>>, vector<64x384xbf16>
    %c192_280 = arith.constant 192 : index
    %c0_281 = arith.constant 0 : index
    %276 = vector.load %arg12[%c192_280, %c0_281] : memref<1600x384xbf16, #tpu.memory_space<vmem>>, vector<64x384xbf16>
    tpu.vector_store %arg12[%c192_280, %c0_281], %275 {strides = array<i32>} : memref<1600x384xbf16, #tpu.memory_space<vmem>>, vector<64x384xbf16>,
    %c0_282 = arith.constant 0 : index
    %c4_283 = arith.constant 4 : index
    %277 = vector.load %arg10[%c0_282, %c4_283] : memref<64x512xbf16, #tpu.memory_space<vmem>>, vector<64x384xbf16>
    %c256_284 = arith.constant 256 : index
    %c0_285 = arith.constant 0 : index
    %278 = vector.load %arg12[%c256_284, %c0_285] : memref<1600x384xbf16, #tpu.memory_space<vmem>>, vector<64x384xbf16>
    tpu.vector_store %arg12[%c256_284, %c0_285], %277 {strides = array<i32>} : memref<1600x384xbf16, #tpu.memory_space<vmem>>, vector<64x384xbf16>,
    %c0_286 = arith.constant 0 : index
    %c20 = arith.constant 20 : index
    %279 = vector.load %arg10[%c0_286, %c20] : memref<64x512xbf16, #tpu.memory_space<vmem>>, vector<64x384xbf16>
    %c320_287 = arith.constant 320 : index
    %c0_288 = arith.constant 0 : index
    %280 = vector.load %arg12[%c320_287, %c0_288] : memref<1600x384xbf16, #tpu.memory_space<vmem>>, vector<64x384xbf16>
    tpu.vector_store %arg12[%c320_287, %c0_288], %279 {strides = array<i32>} : memref<1600x384xbf16, #tpu.memory_space<vmem>>, vector<64x384xbf16>,
    %c0_289 = arith.constant 0 : index
    %c21 = arith.constant 21 : index
    %281 = vector.load %arg10[%c0_289, %c21] : memref<64x512xbf16, #tpu.memory_space<vmem>>, vector<64x384xbf16>
    %c384_290 = arith.constant 384 : index
    %c0_291 = arith.constant 0 : index
    %282 = vector.load %arg12[%c384_290, %c0_291] : memref<1600x384xbf16, #tpu.memory_space<vmem>>, vector<64x384xbf16>
    tpu.vector_store %arg12[%c384_290, %c0_291], %281 {strides = array<i32>} : memref<1600x384xbf16, #tpu.memory_space<vmem>>, vector<64x384xbf16>,
    %c0_292 = arith.constant 0 : index
    %c22 = arith.constant 22 : index
    %283 = vector.load %arg10[%c0_292, %c22] : memref<64x512xbf16, #tpu.memory_space<vmem>>, vector<64x384xbf16>
    %c448_293 = arith.constant 448 : index
    %c0_294 = arith.constant 0 : index
    %284 = vector.load %arg12[%c448_293, %c0_294] : memref<1600x384xbf16, #tpu.memory_space<vmem>>, vector<64x384xbf16>
    tpu.vector_store %arg12[%c448_293, %c0_294], %283 {strides = array<i32>} : memref<1600x384xbf16, #tpu.memory_space<vmem>>, vector<64x384xbf16>,
    %c0_295 = arith.constant 0 : index
    %c23 = arith.constant 23 : index
    %285 = vector.load %arg10[%c0_295, %c23] : memref<64x512xbf16, #tpu.memory_space<vmem>>, vector<64x384xbf16>
    %c512_296 = arith.constant 512 : index
    %c0_297 = arith.constant 0 : index
    %286 = vector.load %arg12[%c512_296, %c0_297] : memref<1600x384xbf16, #tpu.memory_space<vmem>>, vector<64x384xbf16>
    tpu.vector_store %arg12[%c512_296, %c0_297], %285 {strides = array<i32>} : memref<1600x384xbf16, #tpu.memory_space<vmem>>, vector<64x384xbf16>,
    %c0_298 = arith.constant 0 : index
    %c24_299 = arith.constant 24 : index
    %287 = vector.load %arg10[%c0_298, %c24_299] : memref<64x512xbf16, #tpu.memory_space<vmem>>, vector<64x384xbf16>
    %c576_300 = arith.constant 576 : index
    %c0_301 = arith.constant 0 : index
    %288 = vector.load %arg12[%c576_300, %c0_301] : memref<1600x384xbf16, #tpu.memory_space<vmem>>, vector<64x384xbf16>
    tpu.vector_store %arg12[%c576_300, %c0_301], %287 {strides = array<i32>} : memref<1600x384xbf16, #tpu.memory_space<vmem>>, vector<64x384xbf16>,
    %c0_302 = arith.constant 0 : index
    %c40 = arith.constant 40 : index
    %289 = vector.load %arg10[%c0_302, %c40] : memref<64x512xbf16, #tpu.memory_space<vmem>>, vector<64x384xbf16>
    %c640_303 = arith.constant 640 : index
    %c0_304 = arith.constant 0 : index
    %290 = vector.load %arg12[%c640_303, %c0_304] : memref<1600x384xbf16, #tpu.memory_space<vmem>>, vector<64x384xbf16>
    tpu.vector_store %arg12[%c640_303, %c0_304], %289 {strides = array<i32>} : memref<1600x384xbf16, #tpu.memory_space<vmem>>, vector<64x384xbf16>,
    %c0_305 = arith.constant 0 : index
    %c41 = arith.constant 41 : index
    %291 = vector.load %arg10[%c0_305, %c41] : memref<64x512xbf16, #tpu.memory_space<vmem>>, vector<64x384xbf16>
    %c704_306 = arith.constant 704 : index
    %c0_307 = arith.constant 0 : index
    %292 = vector.load %arg12[%c704_306, %c0_307] : memref<1600x384xbf16, #tpu.memory_space<vmem>>, vector<64x384xbf16>
    tpu.vector_store %arg12[%c704_306, %c0_307], %291 {strides = array<i32>} : memref<1600x384xbf16, #tpu.memory_space<vmem>>, vector<64x384xbf16>,
    %c0_308 = arith.constant 0 : index
    %c42_309 = arith.constant 42 : index
    %293 = vector.load %arg10[%c0_308, %c42_309] : memref<64x512xbf16, #tpu.memory_space<vmem>>, vector<64x384xbf16>
    %c768_310 = arith.constant 768 : index
    %c0_311 = arith.constant 0 : index
    %294 = vector.load %arg12[%c768_310, %c0_311] : memref<1600x384xbf16, #tpu.memory_space<vmem>>, vector<64x384xbf16>
    tpu.vector_store %arg12[%c768_310, %c0_311], %293 {strides = array<i32>} : memref<1600x384xbf16, #tpu.memory_space<vmem>>, vector<64x384xbf16>,
    %c0_312 = arith.constant 0 : index
    %c43 = arith.constant 43 : index
    %295 = vector.load %arg10[%c0_312, %c43] : memref<64x512xbf16, #tpu.memory_space<vmem>>, vector<64x384xbf16>
    %c832_313 = arith.constant 832 : index
    %c0_314 = arith.constant 0 : index
    %296 = vector.load %arg12[%c832_313, %c0_314] : memref<1600x384xbf16, #tpu.memory_space<vmem>>, vector<64x384xbf16>
    tpu.vector_store %arg12[%c832_313, %c0_314], %295 {strides = array<i32>} : memref<1600x384xbf16, #tpu.memory_space<vmem>>, vector<64x384xbf16>,
    %c0_315 = arith.constant 0 : index
    %c44 = arith.constant 44 : index
    %297 = vector.load %arg10[%c0_315, %c44] : memref<64x512xbf16, #tpu.memory_space<vmem>>, vector<64x384xbf16>
    %c896_316 = arith.constant 896 : index
    %c0_317 = arith.constant 0 : index
    %298 = vector.load %arg12[%c896_316, %c0_317] : memref<1600x384xbf16, #tpu.memory_space<vmem>>, vector<64x384xbf16>
    tpu.vector_store %arg12[%c896_316, %c0_317], %297 {strides = array<i32>} : memref<1600x384xbf16, #tpu.memory_space<vmem>>, vector<64x384xbf16>,
    %c0_318 = arith.constant 0 : index
    %c60 = arith.constant 60 : index
    %299 = vector.load %arg10[%c0_318, %c60] : memref<64x512xbf16, #tpu.memory_space<vmem>>, vector<64x384xbf16>
    %c960_319 = arith.constant 960 : index
    %c0_320 = arith.constant 0 : index
    %300 = vector.load %arg12[%c960_319, %c0_320] : memref<1600x384xbf16, #tpu.memory_space<vmem>>, vector<64x384xbf16>
    tpu.vector_store %arg12[%c960_319, %c0_320], %299 {strides = array<i32>} : memref<1600x384xbf16, #tpu.memory_space<vmem>>, vector<64x384xbf16>,
    %c0_321 = arith.constant 0 : index
    %c61 = arith.constant 61 : index
    %301 = vector.load %arg10[%c0_321, %c61] : memref<64x512xbf16, #tpu.memory_space<vmem>>, vector<64x384xbf16>
    %c1024_322 = arith.constant 1024 : index
    %c0_323 = arith.constant 0 : index
    %302 = vector.load %arg12[%c1024_322, %c0_323] : memref<1600x384xbf16, #tpu.memory_space<vmem>>, vector<64x384xbf16>
    tpu.vector_store %arg12[%c1024_322, %c0_323], %301 {strides = array<i32>} : memref<1600x384xbf16, #tpu.memory_space<vmem>>, vector<64x384xbf16>,
    %c0_324 = arith.constant 0 : index
    %c62_325 = arith.constant 62 : index
    %303 = vector.load %arg10[%c0_324, %c62_325] : memref<64x512xbf16, #tpu.memory_space<vmem>>, vector<64x384xbf16>
    %c1088_326 = arith.constant 1088 : index
    %c0_327 = arith.constant 0 : index
    %304 = vector.load %arg12[%c1088_326, %c0_327] : memref<1600x384xbf16, #tpu.memory_space<vmem>>, vector<64x384xbf16>
    tpu.vector_store %arg12[%c1088_326, %c0_327], %303 {strides = array<i32>} : memref<1600x384xbf16, #tpu.memory_space<vmem>>, vector<64x384xbf16>,
    %c0_328 = arith.constant 0 : index
    %c63 = arith.constant 63 : index
    %305 = vector.load %arg10[%c0_328, %c63] : memref<64x512xbf16, #tpu.memory_space<vmem>>, vector<64x384xbf16>
    %c1152_329 = arith.constant 1152 : index
    %c0_330 = arith.constant 0 : index
    %306 = vector.load %arg12[%c1152_329, %c0_330] : memref<1600x384xbf16, #tpu.memory_space<vmem>>, vector<64x384xbf16>
    tpu.vector_store %arg12[%c1152_329, %c0_330], %305 {strides = array<i32>} : memref<1600x384xbf16, #tpu.memory_space<vmem>>, vector<64x384xbf16>,
    %c0_331 = arith.constant 0 : index
    %c64_332 = arith.constant 64 : index
    %307 = vector.load %arg10[%c0_331, %c64_332] : memref<64x512xbf16, #tpu.memory_space<vmem>>, vector<64x384xbf16>
    %c1216_333 = arith.constant 1216 : index
    %c0_334 = arith.constant 0 : index
    %308 = vector.load %arg12[%c1216_333, %c0_334] : memref<1600x384xbf16, #tpu.memory_space<vmem>>, vector<64x384xbf16>
    tpu.vector_store %arg12[%c1216_333, %c0_334], %307 {strides = array<i32>} : memref<1600x384xbf16, #tpu.memory_space<vmem>>, vector<64x384xbf16>,
    %c0_335 = arith.constant 0 : index
    %c80_336 = arith.constant 80 : index
    %309 = vector.load %arg10[%c0_335, %c80_336] : memref<64x512xbf16, #tpu.memory_space<vmem>>, vector<64x384xbf16>
    %c1280_337 = arith.constant 1280 : index
    %c0_338 = arith.constant 0 : index
    %310 = vector.load %arg12[%c1280_337, %c0_338] : memref<1600x384xbf16, #tpu.memory_space<vmem>>, vector<64x384xbf16>
    tpu.vector_store %arg12[%c1280_337, %c0_338], %309 {strides = array<i32>} : memref<1600x384xbf16, #tpu.memory_space<vmem>>, vector<64x384xbf16>,
    %c0_339 = arith.constant 0 : index
    %c81 = arith.constant 81 : index
    %311 = vector.load %arg10[%c0_339, %c81] : memref<64x512xbf16, #tpu.memory_space<vmem>>, vector<64x384xbf16>
    %c1344 = arith.constant 1344 : index
    %c0_340 = arith.constant 0 : index
    %312 = vector.load %arg12[%c1344, %c0_340] : memref<1600x384xbf16, #tpu.memory_space<vmem>>, vector<64x384xbf16>
    tpu.vector_store %arg12[%c1344, %c0_340], %311 {strides = array<i32>} : memref<1600x384xbf16, #tpu.memory_space<vmem>>, vector<64x384xbf16>,
    %c0_341 = arith.constant 0 : index
    %c82_342 = arith.constant 82 : index
    %313 = vector.load %arg10[%c0_341, %c82_342] : memref<64x512xbf16, #tpu.memory_space<vmem>>, vector<64x384xbf16>
    %c1408 = arith.constant 1408 : index
    %c0_343 = arith.constant 0 : index
    %314 = vector.load %arg12[%c1408, %c0_343] : memref<1600x384xbf16, #tpu.memory_space<vmem>>, vector<64x384xbf16>
    tpu.vector_store %arg12[%c1408, %c0_343], %313 {strides = array<i32>} : memref<1600x384xbf16, #tpu.memory_space<vmem>>, vector<64x384xbf16>,
    %c0_344 = arith.constant 0 : index
    %c83 = arith.constant 83 : index
    %315 = vector.load %arg10[%c0_344, %c83] : memref<64x512xbf16, #tpu.memory_space<vmem>>, vector<64x384xbf16>
    %c1472 = arith.constant 1472 : index
    %c0_345 = arith.constant 0 : index
    %316 = vector.load %arg12[%c1472, %c0_345] : memref<1600x384xbf16, #tpu.memory_space<vmem>>, vector<64x384xbf16>
    tpu.vector_store %arg12[%c1472, %c0_345], %315 {strides = array<i32>} : memref<1600x384xbf16, #tpu.memory_space<vmem>>, vector<64x384xbf16>,
    %c0_346 = arith.constant 0 : index
    %c84 = arith.constant 84 : index
    %317 = vector.load %arg10[%c0_346, %c84] : memref<64x512xbf16, #tpu.memory_space<vmem>>, vector<64x384xbf16>
    %c1536 = arith.constant 1536 : index
    %c0_347 = arith.constant 0 : index
    %318 = vector.load %arg12[%c1536, %c0_347] : memref<1600x384xbf16, #tpu.memory_space<vmem>>, vector<64x384xbf16>
    tpu.vector_store %arg12[%c1536, %c0_347], %317 {strides = array<i32>} : memref<1600x384xbf16, #tpu.memory_space<vmem>>, vector<64x384xbf16>,
    %c0_348 = arith.constant 0 : index
    %c0_349 = arith.constant 0 : index
    %319 = vector.load %arg4[%c0_348, %c0_349] : memref<32x1600xbf16, #tpu.memory_space<vmem>>, vector<32x1600xbf16>
    %c0_350 = arith.constant 0 : index
    %c0_351 = arith.constant 0 : index
    %320 = vector.load %arg12[%c0_350, %c0_351] : memref<1600x384xbf16, #tpu.memory_space<vmem>>, vector<1600x384xbf16>
    %cst_352 = arith.constant dense<0.000000e+00> : vector<32x384xf32>
    %321 = tpu.matmul %319, %320, %cst_352 {dimension_numbers = #tpu.dot_dimension_numbers<[1], [0], [0], [1], [0, 0, 1, 1], [], []>} : vector<32x1600xbf16>, vector<1600x384xbf16>, vector<32x384xf32> -> vector<32x384xf32>
    %c0_353 = arith.constant 0 : index
    %c0_354 = arith.constant 0 : index
    %322 = vector.load %arg5[%c0_353, %c0_354] : memref<32x1xf32, #tpu.memory_space<vmem>>, vector<32x1xf32>
    %323 = vector.broadcast %322 : vector<32x1xf32> to vector<32x384xf32>
    %324 = arith.addf %321, %323 : vector<32x384xf32>
    %cst_355 = arith.constant 0.000000e+00 : f32
    %325 = vector.broadcast %cst_355 : f32 to vector<32x384xf32>
    %326 = arith.maximumf %324, %325 : vector<32x384xf32>
    %327 = vector.extract_strided_slice %326 {offsets = [0, 0], sizes = [32, 16], strides = [1, 1]} : vector<32x384xf32> to vector<32x16xf32>
    %328 = arith.truncf %327 : vector<32x16xf32> to vector<32x16xbf16>
    %c0_356 = arith.constant 0 : index
    %c42_357 = arith.constant 42 : index
    %329 = vector.load %arg11[%c0_356, %c42_357] : memref<32x512xbf16, #tpu.memory_space<vmem>>, vector<32x16xbf16>
    tpu.vector_store %arg11[%c0_356, %c42_357], %328 {strides = array<i32>} : memref<32x512xbf16, #tpu.memory_space<vmem>>, vector<32x16xbf16>,
    %330 = vector.extract_strided_slice %326 {offsets = [0, 20], sizes = [32, 16], strides = [1, 1]} : vector<32x384xf32> to vector<32x16xf32>
    %331 = arith.truncf %330 : vector<32x16xf32> to vector<32x16xbf16>
    %c0_358 = arith.constant 0 : index
    %c62_359 = arith.constant 62 : index
    %332 = vector.load %arg11[%c0_358, %c62_359] : memref<32x512xbf16, #tpu.memory_space<vmem>>, vector<32x16xbf16>
    tpu.vector_store %arg11[%c0_358, %c62_359], %331 {strides = array<i32>} : memref<32x512xbf16, #tpu.memory_space<vmem>>, vector<32x16xbf16>,
    %333 = vector.extract_strided_slice %326 {offsets = [0, 40], sizes = [32, 16], strides = [1, 1]} : vector<32x384xf32> to vector<32x16xf32>
    %334 = arith.truncf %333 : vector<32x16xf32> to vector<32x16xbf16>
    %c0_360 = arith.constant 0 : index
    %c82_361 = arith.constant 82 : index
    %335 = vector.load %arg11[%c0_360, %c82_361] : memref<32x512xbf16, #tpu.memory_space<vmem>>, vector<32x16xbf16>
    tpu.vector_store %arg11[%c0_360, %c82_361], %334 {strides = array<i32>} : memref<32x512xbf16, #tpu.memory_space<vmem>>, vector<32x16xbf16>,
    %336 = vector.extract_strided_slice %326 {offsets = [0, 60], sizes = [32, 16], strides = [1, 1]} : vector<32x384xf32> to vector<32x16xf32>
    %337 = arith.truncf %336 : vector<32x16xf32> to vector<32x16xbf16>
    %c0_362 = arith.constant 0 : index
    %c102_363 = arith.constant 102 : index
    %338 = vector.load %arg11[%c0_362, %c102_363] : memref<32x512xbf16, #tpu.memory_space<vmem>>, vector<32x16xbf16>
    tpu.vector_store %arg11[%c0_362, %c102_363], %337 {strides = array<i32>} : memref<32x512xbf16, #tpu.memory_space<vmem>>, vector<32x16xbf16>,
    %339 = vector.extract_strided_slice %326 {offsets = [0, 80], sizes = [32, 16], strides = [1, 1]} : vector<32x384xf32> to vector<32x16xf32>
    %340 = arith.truncf %339 : vector<32x16xf32> to vector<32x16xbf16>
    %c0_364 = arith.constant 0 : index
    %c122_365 = arith.constant 122 : index
    %341 = vector.load %arg11[%c0_364, %c122_365] : memref<32x512xbf16, #tpu.memory_space<vmem>>, vector<32x16xbf16>
    tpu.vector_store %arg11[%c0_364, %c122_365], %340 {strides = array<i32>} : memref<32x512xbf16, #tpu.memory_space<vmem>>, vector<32x16xbf16>,
    %342 = vector.extract_strided_slice %326 {offsets = [0, 100], sizes = [32, 16], strides = [1, 1]} : vector<32x384xf32> to vector<32x16xf32>
    %343 = arith.truncf %342 : vector<32x16xf32> to vector<32x16xbf16>
    %c0_366 = arith.constant 0 : index
    %c142_367 = arith.constant 142 : index
    %344 = vector.load %arg11[%c0_366, %c142_367] : memref<32x512xbf16, #tpu.memory_space<vmem>>, vector<32x16xbf16>
    tpu.vector_store %arg11[%c0_366, %c142_367], %343 {strides = array<i32>} : memref<32x512xbf16, #tpu.memory_space<vmem>>, vector<32x16xbf16>,
    %345 = vector.extract_strided_slice %326 {offsets = [0, 120], sizes = [32, 16], strides = [1, 1]} : vector<32x384xf32> to vector<32x16xf32>
    %346 = arith.truncf %345 : vector<32x16xf32> to vector<32x16xbf16>
    %c0_368 = arith.constant 0 : index
    %c162_369 = arith.constant 162 : index
    %347 = vector.load %arg11[%c0_368, %c162_369] : memref<32x512xbf16, #tpu.memory_space<vmem>>, vector<32x16xbf16>
    tpu.vector_store %arg11[%c0_368, %c162_369], %346 {strides = array<i32>} : memref<32x512xbf16, #tpu.memory_space<vmem>>, vector<32x16xbf16>,
    %348 = vector.extract_strided_slice %326 {offsets = [0, 140], sizes = [32, 16], strides = [1, 1]} : vector<32x384xf32> to vector<32x16xf32>
    %349 = arith.truncf %348 : vector<32x16xf32> to vector<32x16xbf16>
    %c0_370 = arith.constant 0 : index
    %c182_371 = arith.constant 182 : index
    %350 = vector.load %arg11[%c0_370, %c182_371] : memref<32x512xbf16, #tpu.memory_space<vmem>>, vector<32x16xbf16>
    tpu.vector_store %arg11[%c0_370, %c182_371], %349 {strides = array<i32>} : memref<32x512xbf16, #tpu.memory_space<vmem>>, vector<32x16xbf16>,
    %351 = vector.extract_strided_slice %326 {offsets = [0, 160], sizes = [32, 16], strides = [1, 1]} : vector<32x384xf32> to vector<32x16xf32>
    %352 = arith.truncf %351 : vector<32x16xf32> to vector<32x16xbf16>
    %c0_372 = arith.constant 0 : index
    %c202_373 = arith.constant 202 : index
    %353 = vector.load %arg11[%c0_372, %c202_373] : memref<32x512xbf16, #tpu.memory_space<vmem>>, vector<32x16xbf16>
    tpu.vector_store %arg11[%c0_372, %c202_373], %352 {strides = array<i32>} : memref<32x512xbf16, #tpu.memory_space<vmem>>, vector<32x16xbf16>,
    %354 = vector.extract_strided_slice %326 {offsets = [0, 180], sizes = [32, 16], strides = [1, 1]} : vector<32x384xf32> to vector<32x16xf32>
    %355 = arith.truncf %354 : vector<32x16xf32> to vector<32x16xbf16>
    %c0_374 = arith.constant 0 : index
    %c222_375 = arith.constant 222 : index
    %356 = vector.load %arg11[%c0_374, %c222_375] : memref<32x512xbf16, #tpu.memory_space<vmem>>, vector<32x16xbf16>
    tpu.vector_store %arg11[%c0_374, %c222_375], %355 {strides = array<i32>} : memref<32x512xbf16, #tpu.memory_space<vmem>>, vector<32x16xbf16>,
    %357 = vector.extract_strided_slice %326 {offsets = [0, 200], sizes = [32, 16], strides = [1, 1]} : vector<32x384xf32> to vector<32x16xf32>
    %358 = arith.truncf %357 : vector<32x16xf32> to vector<32x16xbf16>
    %c0_376 = arith.constant 0 : index
    %c242_377 = arith.constant 242 : index
    %359 = vector.load %arg11[%c0_376, %c242_377] : memref<32x512xbf16, #tpu.memory_space<vmem>>, vector<32x16xbf16>
    tpu.vector_store %arg11[%c0_376, %c242_377], %358 {strides = array<i32>} : memref<32x512xbf16, #tpu.memory_space<vmem>>, vector<32x16xbf16>,
    %360 = vector.extract_strided_slice %326 {offsets = [0, 220], sizes = [32, 16], strides = [1, 1]} : vector<32x384xf32> to vector<32x16xf32>
    %361 = arith.truncf %360 : vector<32x16xf32> to vector<32x16xbf16>
    %c0_378 = arith.constant 0 : index
    %c262_379 = arith.constant 262 : index
    %362 = vector.load %arg11[%c0_378, %c262_379] : memref<32x512xbf16, #tpu.memory_space<vmem>>, vector<32x16xbf16>
    tpu.vector_store %arg11[%c0_378, %c262_379], %361 {strides = array<i32>} : memref<32x512xbf16, #tpu.memory_space<vmem>>, vector<32x16xbf16>,
    %363 = vector.extract_strided_slice %326 {offsets = [0, 240], sizes = [32, 16], strides = [1, 1]} : vector<32x384xf32> to vector<32x16xf32>
    %364 = arith.truncf %363 : vector<32x16xf32> to vector<32x16xbf16>
    %c0_380 = arith.constant 0 : index
    %c282_381 = arith.constant 282 : index
    %365 = vector.load %arg11[%c0_380, %c282_381] : memref<32x512xbf16, #tpu.memory_space<vmem>>, vector<32x16xbf16>
    tpu.vector_store %arg11[%c0_380, %c282_381], %364 {strides = array<i32>} : memref<32x512xbf16, #tpu.memory_space<vmem>>, vector<32x16xbf16>,
    %366 = vector.extract_strided_slice %326 {offsets = [0, 260], sizes = [32, 16], strides = [1, 1]} : vector<32x384xf32> to vector<32x16xf32>
    %367 = arith.truncf %366 : vector<32x16xf32> to vector<32x16xbf16>
    %c0_382 = arith.constant 0 : index
    %c302_383 = arith.constant 302 : index
    %368 = vector.load %arg11[%c0_382, %c302_383] : memref<32x512xbf16, #tpu.memory_space<vmem>>, vector<32x16xbf16>
    tpu.vector_store %arg11[%c0_382, %c302_383], %367 {strides = array<i32>} : memref<32x512xbf16, #tpu.memory_space<vmem>>, vector<32x16xbf16>,
    %369 = vector.extract_strided_slice %326 {offsets = [0, 280], sizes = [32, 16], strides = [1, 1]} : vector<32x384xf32> to vector<32x16xf32>
    %370 = arith.truncf %369 : vector<32x16xf32> to vector<32x16xbf16>
    %c0_384 = arith.constant 0 : index
    %c322_385 = arith.constant 322 : index
    %371 = vector.load %arg11[%c0_384, %c322_385] : memref<32x512xbf16, #tpu.memory_space<vmem>>, vector<32x16xbf16>
    tpu.vector_store %arg11[%c0_384, %c322_385], %370 {strides = array<i32>} : memref<32x512xbf16, #tpu.memory_space<vmem>>, vector<32x16xbf16>,
    %372 = vector.extract_strided_slice %326 {offsets = [0, 300], sizes = [32, 16], strides = [1, 1]} : vector<32x384xf32> to vector<32x16xf32>
    %373 = arith.truncf %372 : vector<32x16xf32> to vector<32x16xbf16>
    %c0_386 = arith.constant 0 : index
    %c342_387 = arith.constant 342 : index
    %374 = vector.load %arg11[%c0_386, %c342_387] : memref<32x512xbf16, #tpu.memory_space<vmem>>, vector<32x16xbf16>
    tpu.vector_store %arg11[%c0_386, %c342_387], %373 {strides = array<i32>} : memref<32x512xbf16, #tpu.memory_space<vmem>>, vector<32x16xbf16>,
    %c0_388 = arith.constant 0 : index
    %c0_389 = arith.constant 0 : index
    %375 = vector.load %arg11[%c0_388, %c0_389] : memref<32x512xbf16, #tpu.memory_space<vmem>>, vector<32x384xbf16>
    %c0_390 = arith.constant 0 : index
    %c0_391 = arith.constant 0 : index
    %376 = vector.load %arg12[%c0_390, %c0_391] : memref<1600x384xbf16, #tpu.memory_space<vmem>>, vector<32x384xbf16>
    tpu.vector_store %arg12[%c0_390, %c0_391], %375 {strides = array<i32>} : memref<1600x384xbf16, #tpu.memory_space<vmem>>, vector<32x384xbf16>,
    %c0_392 = arith.constant 0 : index
    %c1_393 = arith.constant 1 : index
    %377 = vector.load %arg11[%c0_392, %c1_393] : memref<32x512xbf16, #tpu.memory_space<vmem>>, vector<32x384xbf16>
    %c32_394 = arith.constant 32 : index
    %c0_395 = arith.constant 0 : index
    %378 = vector.load %arg12[%c32_394, %c0_395] : memref<1600x384xbf16, #tpu.memory_space<vmem>>, vector<32x384xbf16>
    tpu.vector_store %arg12[%c32_394, %c0_395], %377 {strides = array<i32>} : memref<1600x384xbf16, #tpu.memory_space<vmem>>, vector<32x384xbf16>,
    %c0_396 = arith.constant 0 : index
    %c2_397 = arith.constant 2 : index
    %379 = vector.load %arg11[%c0_396, %c2_397] : memref<32x512xbf16, #tpu.memory_space<vmem>>, vector<32x384xbf16>
    %c64_398 = arith.constant 64 : index
    %c0_399 = arith.constant 0 : index
    %380 = vector.load %arg12[%c64_398, %c0_399] : memref<1600x384xbf16, #tpu.memory_space<vmem>>, vector<32x384xbf16>
    tpu.vector_store %arg12[%c64_398, %c0_399], %379 {strides = array<i32>} : memref<1600x384xbf16, #tpu.memory_space<vmem>>, vector<32x384xbf16>,
    %c0_400 = arith.constant 0 : index
    %c3_401 = arith.constant 3 : index
    %381 = vector.load %arg11[%c0_400, %c3_401] : memref<32x512xbf16, #tpu.memory_space<vmem>>, vector<32x384xbf16>
    %c96_402 = arith.constant 96 : index
    %c0_403 = arith.constant 0 : index
    %382 = vector.load %arg12[%c96_402, %c0_403] : memref<1600x384xbf16, #tpu.memory_space<vmem>>, vector<32x384xbf16>
    tpu.vector_store %arg12[%c96_402, %c0_403], %381 {strides = array<i32>} : memref<1600x384xbf16, #tpu.memory_space<vmem>>, vector<32x384xbf16>,
    %c0_404 = arith.constant 0 : index
    %c4_405 = arith.constant 4 : index
    %383 = vector.load %arg11[%c0_404, %c4_405] : memref<32x512xbf16, #tpu.memory_space<vmem>>, vector<32x384xbf16>
    %c128_406 = arith.constant 128 : index
    %c0_407 = arith.constant 0 : index
    %384 = vector.load %arg12[%c128_406, %c0_407] : memref<1600x384xbf16, #tpu.memory_space<vmem>>, vector<32x384xbf16>
    tpu.vector_store %arg12[%c128_406, %c0_407], %383 {strides = array<i32>} : memref<1600x384xbf16, #tpu.memory_space<vmem>>, vector<32x384xbf16>,
    %c0_408 = arith.constant 0 : index
    %c20_409 = arith.constant 20 : index
    %385 = vector.load %arg11[%c0_408, %c20_409] : memref<32x512xbf16, #tpu.memory_space<vmem>>, vector<32x384xbf16>
    %c160_410 = arith.constant 160 : index
    %c0_411 = arith.constant 0 : index
    %386 = vector.load %arg12[%c160_410, %c0_411] : memref<1600x384xbf16, #tpu.memory_space<vmem>>, vector<32x384xbf16>
    tpu.vector_store %arg12[%c160_410, %c0_411], %385 {strides = array<i32>} : memref<1600x384xbf16, #tpu.memory_space<vmem>>, vector<32x384xbf16>,
    %c0_412 = arith.constant 0 : index
    %c21_413 = arith.constant 21 : index
    %387 = vector.load %arg11[%c0_412, %c21_413] : memref<32x512xbf16, #tpu.memory_space<vmem>>, vector<32x384xbf16>
    %c192_414 = arith.constant 192 : index
    %c0_415 = arith.constant 0 : index
    %388 = vector.load %arg12[%c192_414, %c0_415] : memref<1600x384xbf16, #tpu.memory_space<vmem>>, vector<32x384xbf16>
    tpu.vector_store %arg12[%c192_414, %c0_415], %387 {strides = array<i32>} : memref<1600x384xbf16, #tpu.memory_space<vmem>>, vector<32x384xbf16>,
    %c0_416 = arith.constant 0 : index
    %c22_417 = arith.constant 22 : index
    %389 = vector.load %arg11[%c0_416, %c22_417] : memref<32x512xbf16, #tpu.memory_space<vmem>>, vector<32x384xbf16>
    %c224_418 = arith.constant 224 : index
    %c0_419 = arith.constant 0 : index
    %390 = vector.load %arg12[%c224_418, %c0_419] : memref<1600x384xbf16, #tpu.memory_space<vmem>>, vector<32x384xbf16>
    tpu.vector_store %arg12[%c224_418, %c0_419], %389 {strides = array<i32>} : memref<1600x384xbf16, #tpu.memory_space<vmem>>, vector<32x384xbf16>,
    %c0_420 = arith.constant 0 : index
    %c23_421 = arith.constant 23 : index
    %391 = vector.load %arg11[%c0_420, %c23_421] : memref<32x512xbf16, #tpu.memory_space<vmem>>, vector<32x384xbf16>
    %c256_422 = arith.constant 256 : index
    %c0_423 = arith.constant 0 : index
    %392 = vector.load %arg12[%c256_422, %c0_423] : memref<1600x384xbf16, #tpu.memory_space<vmem>>, vector<32x384xbf16>
    tpu.vector_store %arg12[%c256_422, %c0_423], %391 {strides = array<i32>} : memref<1600x384xbf16, #tpu.memory_space<vmem>>, vector<32x384xbf16>,
    %c0_424 = arith.constant 0 : index
    %c24_425 = arith.constant 24 : index
    %393 = vector.load %arg11[%c0_424, %c24_425] : memref<32x512xbf16, #tpu.memory_space<vmem>>, vector<32x384xbf16>
    %c288_426 = arith.constant 288 : index
    %c0_427 = arith.constant 0 : index
    %394 = vector.load %arg12[%c288_426, %c0_427] : memref<1600x384xbf16, #tpu.memory_space<vmem>>, vector<32x384xbf16>
    tpu.vector_store %arg12[%c288_426, %c0_427], %393 {strides = array<i32>} : memref<1600x384xbf16, #tpu.memory_space<vmem>>, vector<32x384xbf16>,
    %c0_428 = arith.constant 0 : index
    %c40_429 = arith.constant 40 : index
    %395 = vector.load %arg11[%c0_428, %c40_429] : memref<32x512xbf16, #tpu.memory_space<vmem>>, vector<32x384xbf16>
    %c320_430 = arith.constant 320 : index
    %c0_431 = arith.constant 0 : index
    %396 = vector.load %arg12[%c320_430, %c0_431] : memref<1600x384xbf16, #tpu.memory_space<vmem>>, vector<32x384xbf16>
    tpu.vector_store %arg12[%c320_430, %c0_431], %395 {strides = array<i32>} : memref<1600x384xbf16, #tpu.memory_space<vmem>>, vector<32x384xbf16>,
    %c0_432 = arith.constant 0 : index
    %c41_433 = arith.constant 41 : index
    %397 = vector.load %arg11[%c0_432, %c41_433] : memref<32x512xbf16, #tpu.memory_space<vmem>>, vector<32x384xbf16>
    %c352_434 = arith.constant 352 : index
    %c0_435 = arith.constant 0 : index
    %398 = vector.load %arg12[%c352_434, %c0_435] : memref<1600x384xbf16, #tpu.memory_space<vmem>>, vector<32x384xbf16>
    tpu.vector_store %arg12[%c352_434, %c0_435], %397 {strides = array<i32>} : memref<1600x384xbf16, #tpu.memory_space<vmem>>, vector<32x384xbf16>,
    %c0_436 = arith.constant 0 : index
    %c42_437 = arith.constant 42 : index
    %399 = vector.load %arg11[%c0_436, %c42_437] : memref<32x512xbf16, #tpu.memory_space<vmem>>, vector<32x384xbf16>
    %c384_438 = arith.constant 384 : index
    %c0_439 = arith.constant 0 : index
    %400 = vector.load %arg12[%c384_438, %c0_439] : memref<1600x384xbf16, #tpu.memory_space<vmem>>, vector<32x384xbf16>
    tpu.vector_store %arg12[%c384_438, %c0_439], %399 {strides = array<i32>} : memref<1600x384xbf16, #tpu.memory_space<vmem>>, vector<32x384xbf16>,
    %c0_440 = arith.constant 0 : index
    %c43_441 = arith.constant 43 : index
    %401 = vector.load %arg11[%c0_440, %c43_441] : memref<32x512xbf16, #tpu.memory_space<vmem>>, vector<32x384xbf16>
    %c416_442 = arith.constant 416 : index
    %c0_443 = arith.constant 0 : index
    %402 = vector.load %arg12[%c416_442, %c0_443] : memref<1600x384xbf16, #tpu.memory_space<vmem>>, vector<32x384xbf16>
    tpu.vector_store %arg12[%c416_442, %c0_443], %401 {strides = array<i32>} : memref<1600x384xbf16, #tpu.memory_space<vmem>>, vector<32x384xbf16>,
    %c0_444 = arith.constant 0 : index
    %c44_445 = arith.constant 44 : index
    %403 = vector.load %arg11[%c0_444, %c44_445] : memref<32x512xbf16, #tpu.memory_space<vmem>>, vector<32x384xbf16>
    %c448_446 = arith.constant 448 : index
    %c0_447 = arith.constant 0 : index
    %404 = vector.load %arg12[%c448_446, %c0_447] : memref<1600x384xbf16, #tpu.memory_space<vmem>>, vector<32x384xbf16>
    tpu.vector_store %arg12[%c448_446, %c0_447], %403 {strides = array<i32>} : memref<1600x384xbf16, #tpu.memory_space<vmem>>, vector<32x384xbf16>,
    %c0_448 = arith.constant 0 : index
    %c60_449 = arith.constant 60 : index
    %405 = vector.load %arg11[%c0_448, %c60_449] : memref<32x512xbf16, #tpu.memory_space<vmem>>, vector<32x384xbf16>
    %c480_450 = arith.constant 480 : index
    %c0_451 = arith.constant 0 : index
    %406 = vector.load %arg12[%c480_450, %c0_451] : memref<1600x384xbf16, #tpu.memory_space<vmem>>, vector<32x384xbf16>
    tpu.vector_store %arg12[%c480_450, %c0_451], %405 {strides = array<i32>} : memref<1600x384xbf16, #tpu.memory_space<vmem>>, vector<32x384xbf16>,
    %c0_452 = arith.constant 0 : index
    %c61_453 = arith.constant 61 : index
    %407 = vector.load %arg11[%c0_452, %c61_453] : memref<32x512xbf16, #tpu.memory_space<vmem>>, vector<32x384xbf16>
    %c512_454 = arith.constant 512 : index
    %c0_455 = arith.constant 0 : index
    %408 = vector.load %arg12[%c512_454, %c0_455] : memref<1600x384xbf16, #tpu.memory_space<vmem>>, vector<32x384xbf16>
    tpu.vector_store %arg12[%c512_454, %c0_455], %407 {strides = array<i32>} : memref<1600x384xbf16, #tpu.memory_space<vmem>>, vector<32x384xbf16>,
    %c0_456 = arith.constant 0 : index
    %c62_457 = arith.constant 62 : index
    %409 = vector.load %arg11[%c0_456, %c62_457] : memref<32x512xbf16, #tpu.memory_space<vmem>>, vector<32x384xbf16>
    %c544_458 = arith.constant 544 : index
    %c0_459 = arith.constant 0 : index
    %410 = vector.load %arg12[%c544_458, %c0_459] : memref<1600x384xbf16, #tpu.memory_space<vmem>>, vector<32x384xbf16>
    tpu.vector_store %arg12[%c544_458, %c0_459], %409 {strides = array<i32>} : memref<1600x384xbf16, #tpu.memory_space<vmem>>, vector<32x384xbf16>,
    %c0_460 = arith.constant 0 : index
    %c63_461 = arith.constant 63 : index
    %411 = vector.load %arg11[%c0_460, %c63_461] : memref<32x512xbf16, #tpu.memory_space<vmem>>, vector<32x384xbf16>
    %c576_462 = arith.constant 576 : index
    %c0_463 = arith.constant 0 : index
    %412 = vector.load %arg12[%c576_462, %c0_463] : memref<1600x384xbf16, #tpu.memory_space<vmem>>, vector<32x384xbf16>
    tpu.vector_store %arg12[%c576_462, %c0_463], %411 {strides = array<i32>} : memref<1600x384xbf16, #tpu.memory_space<vmem>>, vector<32x384xbf16>,
    %c0_464 = arith.constant 0 : index
    %c64_465 = arith.constant 64 : index
    %413 = vector.load %arg11[%c0_464, %c64_465] : memref<32x512xbf16, #tpu.memory_space<vmem>>, vector<32x384xbf16>
    %c608_466 = arith.constant 608 : index
    %c0_467 = arith.constant 0 : index
    %414 = vector.load %arg12[%c608_466, %c0_467] : memref<1600x384xbf16, #tpu.memory_space<vmem>>, vector<32x384xbf16>
    tpu.vector_store %arg12[%c608_466, %c0_467], %413 {strides = array<i32>} : memref<1600x384xbf16, #tpu.memory_space<vmem>>, vector<32x384xbf16>,
    %c0_468 = arith.constant 0 : index
    %c80_469 = arith.constant 80 : index
    %415 = vector.load %arg11[%c0_468, %c80_469] : memref<32x512xbf16, #tpu.memory_space<vmem>>, vector<32x384xbf16>
    %c640_470 = arith.constant 640 : index
    %c0_471 = arith.constant 0 : index
    %416 = vector.load %arg12[%c640_470, %c0_471] : memref<1600x384xbf16, #tpu.memory_space<vmem>>, vector<32x384xbf16>
    tpu.vector_store %arg12[%c640_470, %c0_471], %415 {strides = array<i32>} : memref<1600x384xbf16, #tpu.memory_space<vmem>>, vector<32x384xbf16>,
    %c0_472 = arith.constant 0 : index
    %c81_473 = arith.constant 81 : index
    %417 = vector.load %arg11[%c0_472, %c81_473] : memref<32x512xbf16, #tpu.memory_space<vmem>>, vector<32x384xbf16>
    %c672_474 = arith.constant 672 : index
    %c0_475 = arith.constant 0 : index
    %418 = vector.load %arg12[%c672_474, %c0_475] : memref<1600x384xbf16, #tpu.memory_space<vmem>>, vector<32x384xbf16>
    tpu.vector_store %arg12[%c672_474, %c0_475], %417 {strides = array<i32>} : memref<1600x384xbf16, #tpu.memory_space<vmem>>, vector<32x384xbf16>,
    %c0_476 = arith.constant 0 : index
    %c82_477 = arith.constant 82 : index
    %419 = vector.load %arg11[%c0_476, %c82_477] : memref<32x512xbf16, #tpu.memory_space<vmem>>, vector<32x384xbf16>
    %c704_478 = arith.constant 704 : index
    %c0_479 = arith.constant 0 : index
    %420 = vector.load %arg12[%c704_478, %c0_479] : memref<1600x384xbf16, #tpu.memory_space<vmem>>, vector<32x384xbf16>
    tpu.vector_store %arg12[%c704_478, %c0_479], %419 {strides = array<i32>} : memref<1600x384xbf16, #tpu.memory_space<vmem>>, vector<32x384xbf16>,
    %c0_480 = arith.constant 0 : index
    %c83_481 = arith.constant 83 : index
    %421 = vector.load %arg11[%c0_480, %c83_481] : memref<32x512xbf16, #tpu.memory_space<vmem>>, vector<32x384xbf16>
    %c736_482 = arith.constant 736 : index
    %c0_483 = arith.constant 0 : index
    %422 = vector.load %arg12[%c736_482, %c0_483] : memref<1600x384xbf16, #tpu.memory_space<vmem>>, vector<32x384xbf16>
    tpu.vector_store %arg12[%c736_482, %c0_483], %421 {strides = array<i32>} : memref<1600x384xbf16, #tpu.memory_space<vmem>>, vector<32x384xbf16>,
    %c0_484 = arith.constant 0 : index
    %c84_485 = arith.constant 84 : index
    %423 = vector.load %arg11[%c0_484, %c84_485] : memref<32x512xbf16, #tpu.memory_space<vmem>>, vector<32x384xbf16>
    %c768_486 = arith.constant 768 : index
    %c0_487 = arith.constant 0 : index
    %424 = vector.load %arg12[%c768_486, %c0_487] : memref<1600x384xbf16, #tpu.memory_space<vmem>>, vector<32x384xbf16>
    tpu.vector_store %arg12[%c768_486, %c0_487], %423 {strides = array<i32>} : memref<1600x384xbf16, #tpu.memory_space<vmem>>, vector<32x384xbf16>,
    %c0_488 = arith.constant 0 : index
    %c0_489 = arith.constant 0 : index
    %425 = vector.load %arg6[%c0_488, %c0_489] : memref<8x800xbf16, #tpu.memory_space<vmem>>, vector<8x800xbf16>
    %c0_490 = arith.constant 0 : index
    %c0_491 = arith.constant 0 : index
    %426 = vector.load %arg12[%c0_490, %c0_491] : memref<1600x384xbf16, #tpu.memory_space<vmem>>, vector<800x384xbf16>
    %cst_492 = arith.constant dense<0.000000e+00> : vector<8x384xf32>
    %427 = tpu.matmul %425, %426, %cst_492 {dimension_numbers = #tpu.dot_dimension_numbers<[1], [0], [0], [1], [0, 0, 1, 1], [], []>} : vector<8x800xbf16>, vector<800x384xbf16>, vector<8x384xf32> -> vector<8x384xf32>
    %c0_493 = arith.constant 0 : index
    %c0_494 = arith.constant 0 : index
    %428 = vector.load %arg7[%c0_493, %c0_494] : memref<8x1xf32, #tpu.memory_space<vmem>>, vector<8x1xf32>
    %429 = vector.broadcast %428 : vector<8x1xf32> to vector<8x384xf32>
    %430 = arith.addf %427, %429 : vector<8x384xf32>
    %431 = vector.extract_strided_slice %430 {offsets = [0, 0], sizes = [8, 16], strides = [1, 1]} : vector<8x384xf32> to vector<8x16xf32>
    %c0_495 = arith.constant 0 : index
    %c0_496 = arith.constant 0 : index
    %c0_497 = arith.constant 0 : index
    %432 = vector.load %arg8[%c0_495, %c0_496, %c0_497] : memref<1x8x256xf32, #tpu.memory_space<vmem>>, vector<1x8x16xf32>
    %433 = vector.shape_cast %432 : vector<1x8x16xf32> to vector<8x16xf32>
    %434 = vector.shape_cast %431 : vector<8x16xf32> to vector<1x8x16xf32>
    tpu.vector_store %arg8[%c0_495, %c0_496, %c0_497], %434 {strides = array<i32>} : memref<1x8x256xf32, #tpu.memory_space<vmem>>, vector<1x8x16xf32>,
    %435 = vector.extract_strided_slice %430 {offsets = [0, 20], sizes = [8, 16], strides = [1, 1]} : vector<8x384xf32> to vector<8x16xf32>
    %c0_498 = arith.constant 0 : index
    %c0_499 = arith.constant 0 : index
    %c16_500 = arith.constant 16 : index
    %436 = vector.load %arg8[%c0_498, %c0_499, %c16_500] : memref<1x8x256xf32, #tpu.memory_space<vmem>>, vector<1x8x16xf32>
    %437 = vector.shape_cast %436 : vector<1x8x16xf32> to vector<8x16xf32>
    %438 = vector.shape_cast %435 : vector<8x16xf32> to vector<1x8x16xf32>
    tpu.vector_store %arg8[%c0_498, %c0_499, %c16_500], %438 {strides = array<i32>} : memref<1x8x256xf32, #tpu.memory_space<vmem>>, vector<1x8x16xf32>,
    %439 = vector.extract_strided_slice %430 {offsets = [0, 40], sizes = [8, 16], strides = [1, 1]} : vector<8x384xf32> to vector<8x16xf32>
    %c0_501 = arith.constant 0 : index
    %c0_502 = arith.constant 0 : index
    %c32_503 = arith.constant 32 : index
    %440 = vector.load %arg8[%c0_501, %c0_502, %c32_503] : memref<1x8x256xf32, #tpu.memory_space<vmem>>, vector<1x8x16xf32>
    %441 = vector.shape_cast %440 : vector<1x8x16xf32> to vector<8x16xf32>
    %442 = vector.shape_cast %439 : vector<8x16xf32> to vector<1x8x16xf32>
    tpu.vector_store %arg8[%c0_501, %c0_502, %c32_503], %442 {strides = array<i32>} : memref<1x8x256xf32, #tpu.memory_space<vmem>>, vector<1x8x16xf32>,
    %443 = vector.extract_strided_slice %430 {offsets = [0, 60], sizes = [8, 16], strides = [1, 1]} : vector<8x384xf32> to vector<8x16xf32>
    %c0_504 = arith.constant 0 : index
    %c0_505 = arith.constant 0 : index
    %c48_506 = arith.constant 48 : index
    %444 = vector.load %arg8[%c0_504, %c0_505, %c48_506] : memref<1x8x256xf32, #tpu.memory_space<vmem>>, vector<1x8x16xf32>
    %445 = vector.shape_cast %444 : vector<1x8x16xf32> to vector<8x16xf32>
    %446 = vector.shape_cast %443 : vector<8x16xf32> to vector<1x8x16xf32>
    tpu.vector_store %arg8[%c0_504, %c0_505, %c48_506], %446 {strides = array<i32>} : memref<1x8x256xf32, #tpu.memory_space<vmem>>, vector<1x8x16xf32>,
    %447 = vector.extract_strided_slice %430 {offsets = [0, 80], sizes = [8, 16], strides = [1, 1]} : vector<8x384xf32> to vector<8x16xf32>
    %c0_507 = arith.constant 0 : index
    %c0_508 = arith.constant 0 : index
    %c64_509 = arith.constant 64 : index
    %448 = vector.load %arg8[%c0_507, %c0_508, %c64_509] : memref<1x8x256xf32, #tpu.memory_space<vmem>>, vector<1x8x16xf32>
    %449 = vector.shape_cast %448 : vector<1x8x16xf32> to vector<8x16xf32>
    %450 = vector.shape_cast %447 : vector<8x16xf32> to vector<1x8x16xf32>
    tpu.vector_store %arg8[%c0_507, %c0_508, %c64_509], %450 {strides = array<i32>} : memref<1x8x256xf32, #tpu.memory_space<vmem>>, vector<1x8x16xf32>,
    %451 = vector.extract_strided_slice %430 {offsets = [0, 100], sizes = [8, 16], strides = [1, 1]} : vector<8x384xf32> to vector<8x16xf32>
    %c0_510 = arith.constant 0 : index
    %c0_511 = arith.constant 0 : index
    %c80_512 = arith.constant 80 : index
    %452 = vector.load %arg8[%c0_510, %c0_511, %c80_512] : memref<1x8x256xf32, #tpu.memory_space<vmem>>, vector<1x8x16xf32>
    %453 = vector.shape_cast %452 : vector<1x8x16xf32> to vector<8x16xf32>
    %454 = vector.shape_cast %451 : vector<8x16xf32> to vector<1x8x16xf32>
    tpu.vector_store %arg8[%c0_510, %c0_511, %c80_512], %454 {strides = array<i32>} : memref<1x8x256xf32, #tpu.memory_space<vmem>>, vector<1x8x16xf32>,
    %455 = vector.extract_strided_slice %430 {offsets = [0, 120], sizes = [8, 16], strides = [1, 1]} : vector<8x384xf32> to vector<8x16xf32>
    %c0_513 = arith.constant 0 : index
    %c0_514 = arith.constant 0 : index
    %c96_515 = arith.constant 96 : index
    %456 = vector.load %arg8[%c0_513, %c0_514, %c96_515] : memref<1x8x256xf32, #tpu.memory_space<vmem>>, vector<1x8x16xf32>
    %457 = vector.shape_cast %456 : vector<1x8x16xf32> to vector<8x16xf32>
    %458 = vector.shape_cast %455 : vector<8x16xf32> to vector<1x8x16xf32>
    tpu.vector_store %arg8[%c0_513, %c0_514, %c96_515], %458 {strides = array<i32>} : memref<1x8x256xf32, #tpu.memory_space<vmem>>, vector<1x8x16xf32>,
    %459 = vector.extract_strided_slice %430 {offsets = [0, 140], sizes = [8, 16], strides = [1, 1]} : vector<8x384xf32> to vector<8x16xf32>
    %c0_516 = arith.constant 0 : index
    %c0_517 = arith.constant 0 : index
    %c112_518 = arith.constant 112 : index
    %460 = vector.load %arg8[%c0_516, %c0_517, %c112_518] : memref<1x8x256xf32, #tpu.memory_space<vmem>>, vector<1x8x16xf32>
    %461 = vector.shape_cast %460 : vector<1x8x16xf32> to vector<8x16xf32>
    %462 = vector.shape_cast %459 : vector<8x16xf32> to vector<1x8x16xf32>
    tpu.vector_store %arg8[%c0_516, %c0_517, %c112_518], %462 {strides = array<i32>} : memref<1x8x256xf32, #tpu.memory_space<vmem>>, vector<1x8x16xf32>,
    %463 = vector.extract_strided_slice %430 {offsets = [0, 160], sizes = [8, 16], strides = [1, 1]} : vector<8x384xf32> to vector<8x16xf32>
    %c0_519 = arith.constant 0 : index
    %c0_520 = arith.constant 0 : index
    %c128_521 = arith.constant 128 : index
    %464 = vector.load %arg8[%c0_519, %c0_520, %c128_521] : memref<1x8x256xf32, #tpu.memory_space<vmem>>, vector<1x8x16xf32>
    %465 = vector.shape_cast %464 : vector<1x8x16xf32> to vector<8x16xf32>
    %466 = vector.shape_cast %463 : vector<8x16xf32> to vector<1x8x16xf32>
    tpu.vector_store %arg8[%c0_519, %c0_520, %c128_521], %466 {strides = array<i32>} : memref<1x8x256xf32, #tpu.memory_space<vmem>>, vector<1x8x16xf32>,
    %467 = vector.extract_strided_slice %430 {offsets = [0, 180], sizes = [8, 16], strides = [1, 1]} : vector<8x384xf32> to vector<8x16xf32>
    %c0_522 = arith.constant 0 : index
    %c0_523 = arith.constant 0 : index
    %c144_524 = arith.constant 144 : index
    %468 = vector.load %arg8[%c0_522, %c0_523, %c144_524] : memref<1x8x256xf32, #tpu.memory_space<vmem>>, vector<1x8x16xf32>
    %469 = vector.shape_cast %468 : vector<1x8x16xf32> to vector<8x16xf32>
    %470 = vector.shape_cast %467 : vector<8x16xf32> to vector<1x8x16xf32>
    tpu.vector_store %arg8[%c0_522, %c0_523, %c144_524], %470 {strides = array<i32>} : memref<1x8x256xf32, #tpu.memory_space<vmem>>, vector<1x8x16xf32>,
    %471 = vector.extract_strided_slice %430 {offsets = [0, 200], sizes = [8, 16], strides = [1, 1]} : vector<8x384xf32> to vector<8x16xf32>
    %c0_525 = arith.constant 0 : index
    %c0_526 = arith.constant 0 : index
    %c160_527 = arith.constant 160 : index
    %472 = vector.load %arg8[%c0_525, %c0_526, %c160_527] : memref<1x8x256xf32, #tpu.memory_space<vmem>>, vector<1x8x16xf32>
    %473 = vector.shape_cast %472 : vector<1x8x16xf32> to vector<8x16xf32>
    %474 = vector.shape_cast %471 : vector<8x16xf32> to vector<1x8x16xf32>
    tpu.vector_store %arg8[%c0_525, %c0_526, %c160_527], %474 {strides = array<i32>} : memref<1x8x256xf32, #tpu.memory_space<vmem>>, vector<1x8x16xf32>,
    %475 = vector.extract_strided_slice %430 {offsets = [0, 220], sizes = [8, 16], strides = [1, 1]} : vector<8x384xf32> to vector<8x16xf32>
    %c0_528 = arith.constant 0 : index
    %c0_529 = arith.constant 0 : index
    %c176_530 = arith.constant 176 : index
    %476 = vector.load %arg8[%c0_528, %c0_529, %c176_530] : memref<1x8x256xf32, #tpu.memory_space<vmem>>, vector<1x8x16xf32>
    %477 = vector.shape_cast %476 : vector<1x8x16xf32> to vector<8x16xf32>
    %478 = vector.shape_cast %475 : vector<8x16xf32> to vector<1x8x16xf32>
    tpu.vector_store %arg8[%c0_528, %c0_529, %c176_530], %478 {strides = array<i32>} : memref<1x8x256xf32, #tpu.memory_space<vmem>>, vector<1x8x16xf32>,
    %479 = vector.extract_strided_slice %430 {offsets = [0, 240], sizes = [8, 16], strides = [1, 1]} : vector<8x384xf32> to vector<8x16xf32>
    %c0_531 = arith.constant 0 : index
    %c0_532 = arith.constant 0 : index
    %c192_533 = arith.constant 192 : index
    %480 = vector.load %arg8[%c0_531, %c0_532, %c192_533] : memref<1x8x256xf32, #tpu.memory_space<vmem>>, vector<1x8x16xf32>
    %481 = vector.shape_cast %480 : vector<1x8x16xf32> to vector<8x16xf32>
    %482 = vector.shape_cast %479 : vector<8x16xf32> to vector<1x8x16xf32>
    tpu.vector_store %arg8[%c0_531, %c0_532, %c192_533], %482 {strides = array<i32>} : memref<1x8x256xf32, #tpu.memory_space<vmem>>, vector<1x8x16xf32>,
    %483 = vector.extract_strided_slice %430 {offsets = [0, 260], sizes = [8, 16], strides = [1, 1]} : vector<8x384xf32> to vector<8x16xf32>
    %c0_534 = arith.constant 0 : index
    %c0_535 = arith.constant 0 : index
    %c208_536 = arith.constant 208 : index
    %484 = vector.load %arg8[%c0_534, %c0_535, %c208_536] : memref<1x8x256xf32, #tpu.memory_space<vmem>>, vector<1x8x16xf32>
    %485 = vector.shape_cast %484 : vector<1x8x16xf32> to vector<8x16xf32>
    %486 = vector.shape_cast %483 : vector<8x16xf32> to vector<1x8x16xf32>
    tpu.vector_store %arg8[%c0_534, %c0_535, %c208_536], %486 {strides = array<i32>} : memref<1x8x256xf32, #tpu.memory_space<vmem>>, vector<1x8x16xf32>,
    %487 = vector.extract_strided_slice %430 {offsets = [0, 280], sizes = [8, 16], strides = [1, 1]} : vector<8x384xf32> to vector<8x16xf32>
    %c0_537 = arith.constant 0 : index
    %c0_538 = arith.constant 0 : index
    %c224_539 = arith.constant 224 : index
    %488 = vector.load %arg8[%c0_537, %c0_538, %c224_539] : memref<1x8x256xf32, #tpu.memory_space<vmem>>, vector<1x8x16xf32>
    %489 = vector.shape_cast %488 : vector<1x8x16xf32> to vector<8x16xf32>
    %490 = vector.shape_cast %487 : vector<8x16xf32> to vector<1x8x16xf32>
    tpu.vector_store %arg8[%c0_537, %c0_538, %c224_539], %490 {strides = array<i32>} : memref<1x8x256xf32, #tpu.memory_space<vmem>>, vector<1x8x16xf32>,
    %491 = vector.extract_strided_slice %430 {offsets = [0, 300], sizes = [8, 16], strides = [1, 1]} : vector<8x384xf32> to vector<8x16xf32>
    %c0_540 = arith.constant 0 : index
    %c0_541 = arith.constant 0 : index
    %c240_542 = arith.constant 240 : index
    %492 = vector.load %arg8[%c0_540, %c0_541, %c240_542] : memref<1x8x256xf32, #tpu.memory_space<vmem>>, vector<1x8x16xf32>
    %493 = vector.shape_cast %492 : vector<1x8x16xf32> to vector<8x16xf32>
    %494 = vector.shape_cast %491 : vector<8x16xf32> to vector<1x8x16xf32>
    tpu.vector_store %arg8[%c0_540, %c0_541, %c240_542], %494 {strides = array<i32>} : memref<1x8x256xf32, #tpu.memory_space<vmem>>, vector<1x8x16xf32>,
    return
  }
  func.func @transform_0(%arg0: i32) -> (i32, i32, i32) {
    %c0_i32 = arith.constant 0 : i32
    %c0_i32_0 = arith.constant 0 : i32
    %c0_i32_1 = arith.constant 0 : i32
    return %arg0, %c0_i32, %c0_i32_0 : i32, i32, i32
  }
  func.func @transform_1(%arg0: i32) -> (i32, i32) {
    %c0_i32 = arith.constant 0 : i32
    %c0_i32_0 = arith.constant 0 : i32
    %c0_i32_1 = arith.constant 0 : i32
    return %c0_i32, %c0_i32_0 : i32, i32
  }
  func.func @transform_2(%arg0: i32) -> (i32, i32) {
    %c0_i32 = arith.constant 0 : i32
    %c0_i32_0 = arith.constant 0 : i32
    %c0_i32_1 = arith.constant 0 : i32
    return %c0_i32, %c0_i32_0 : i32, i32
  }
  func.func @transform_3(%arg0: i32) -> (i32, i32) {
    %c0_i32 = arith.constant 0 : i32
    %c0_i32_0 = arith.constant 0 : i32
    %c0_i32_1 = arith.constant 0 : i32
    return %c0_i32, %c0_i32_0 : i32, i32
  }
  func.func @transform_4(%arg0: i32) -> (i32, i32) {
    %c0_i32 = arith.constant 0 : i32
    %c0_i32_0 = arith.constant 0 : i32
    %c0_i32_1 = arith.constant 0 : i32
    return %c0_i32, %c0_i32_0 : i32, i32
  }
  func.func @transform_5(%arg0: i32) -> (i32, i32) {
    %c0_i32 = arith.constant 0 : i32
    %c0_i32_0 = arith.constant 0 : i32
    %c0_i32_1 = arith.constant 0 : i32
    return %c0_i32, %c0_i32_0 : i32, i32
  }
  func.func @transform_6(%arg0: i32) -> (i32, i32) {
    %c0_i32 = arith.constant 0 : i32
    %c0_i32_0 = arith.constant 0 : i32
    %c0_i32_1 = arith.constant 0 : i32
    return %c0_i32, %c0_i32_0 : i32, i32
  }
  func.func @transform_7(%arg0: i32) -> (i32, i32, i32) {
    %c0_i32 = arith.constant 0 : i32
    %c0_i32_0 = arith.constant 0 : i32
    %c0_i32_1 = arith.constant 0 : i32
    return %arg0, %c0_i32, %c0_i32_0 : i32, i32, i32
  }
}

</mosaic_0001>

<bundles_post_ra>
// kernel: super_resolution_forward.1
= control target key start
LH: loop header
LB: loop body
LE: loop exit
PB: predicated region body
PF: predicated region fallthrough
CT: control target
= control target key end

     0   :  { %s11051_s24 = smov 0   ;;  %s16207_s0 = inlined_call_operand.vmem [shape: bf16[2,16,256], index: 0, kind: input, shape index: {}]   ;;  %s16208_s1 = inlined_call_operand.vmem [shape: bf16[64,1296], index: 1, kind: input, shape index: {}]   ;;  %s16209_s2 = inlined_call_operand.vmem [shape: f32[64,1], index: 2, kind: input, shape index: {}]   ;;  %s16210_s3 = inlined_call_operand.vmem [shape: bf16[32,1600], index: 3, kind: input, shape index: {}]   ;;  %s16211_s4 = inlined_call_operand.vmem [shape: f32[32,1], index: 4, kind: input, shape index: {}]   ;;  %s16212_s5 = inlined_call_operand.vmem [shape: bf16[8,800], index: 5, kind: input, shape index: {}]   ;;  %s16213_s6 = inlined_call_operand.vmem [shape: f32[8,1], index: 6, kind: input, shape index: {}]   ;;  %s16214_s7 = inlined_call_operand.vmem [shape: f32[2,8,256], index: 7, kind: output, shape index: {}]  }
   0x1   :  { %16407 = sst [smem:[#allocation26_spill]] %s16207_s0 }
   0x2   :  { %16408 = sst [smem:[#allocation27_spill]] %s16208_s1 }
   0x3   :  { %16409 = sst [smem:[#allocation28_spill]] %s16209_s2 }
   0x4   :  { %16410 = sst [smem:[#allocation29_spill]] %s16213_s6 }
   0x5   :  { %16411 = sst [smem:[#allocation30_spill]] %s16214_s7 }
   0x6 LB: > { %16412 = sst [smem:[#allocation6_spill]] %s10907_s24  ;;  %s9887_s25 = sadd.s32 4294967295, %s10907_s24   ;;  %s10907_s24 = sphi %s11051_s24, %s17_s24  }
   0x7   : > { %p9891_p0 = scmp.ge.s32.totalorder %s10907_s24, 1  ;;  %p237_p1 = scmp.lt.s32.totalorder %s10907_s24, 3 }
   0x9   : > { %p238_p2 = pnand %p9891_p0, %p237_p1 }
   0xb   : > { %241 = sbr.rel (%p238_p2) target bundleno = 3423 (0xd5f), region = 48 }
  0x12   : > { %p269_p3 = scmp.lt.s32.totalorder %s9887_s25, 1  ;;  %s16413_s0 = sld [smem:[#allocation26_spill]] }
  0x13   : > { %s16414_s7 = sld [smem:[#allocation30_spill]]  ;;  %p9896_p4 = scmp.ne.s32.totalorder %s9887_s25, 0 }
  0x14   : > { %s270_s26 = scalar_select %p269_p3, %s9887_s25, 1 }
  0x15   : > { %283 = sbr.rel (%p9896_p4) target bundleno = 37 (0x25), region = 52  ;;  %v10909_v0 = vmov (!%p9896_p4), 0  }
  0x16   : > { %s10006_s27 = sshll.u32 %s270_s26, 4  ;;  %284 = vst [vmem:[#allocation2] sm:$0xff] (!%p9896_p4), %v10909_v0  ;;  %285 = vst [vmem:[#allocation2 + $0x8] sm:$0xff] (!%p9896_p4), %v10909_v0 }
  0x17   : > { %286 = vst [vmem:[#allocation2 + $0x10] sm:$0xff] (!%p9896_p4), %v10909_v0  ;;  %287 = vst [vmem:[#allocation2 + $0x18] sm:$0xff] (!%p9896_p4), %v10909_v0 }
  0x18   : > { %s11062_s30 = scalar_lea.vmem %s16413_s0, %s10006_s27  ;;  %288 = vst [vmem:[#allocation2 + $0x20] sm:$0xff] (!%p9896_p4), %v10909_v0  ;;  %289 = vst [vmem:[#allocation3] sm:$0xff] (!%p9896_p4), %v10909_v0 }
  0x19   : > { %s11067_s10 = scalar_lea.vmem %s16414_s7, %s10006_s27  ;;  %290 = vst [vmem:[#allocation3 + $0x8] sm:$0xff] (!%p9896_p4), %v10909_v0  ;;  %291 = vst [vmem:[#allocation3 + $0x10] sm:$0xff] (!%p9896_p4), %v10909_v0 }
  0x1a   : > { %16415 = sst [smem:[#allocation7_spill]] %s11067_s10  ;;  %292 = vst [vmem:[#allocation3 + $0x18] sm:$0xff] (!%p9896_p4), %v10909_v0  ;;  %293 = vst [vmem:[#allocation3 + $0x20] sm:$0xff] (!%p9896_p4), %v10909_v0 }
  0x1b   : > { %294 = vst [vmem:[#allocation3 + $0x28] sm:$0xff] (!%p9896_p4), %v10909_v0  ;;  %295 = vst [vmem:[#allocation3 + $0x30] sm:$0xff] (!%p9896_p4), %v10909_v0 }
  0x1c   : > { %296 = vst [vmem:[#allocation3 + $0x38] sm:$0xff] %v10909_v0  ;;  %297 = vst [vmem:[#allocation3 + $0x40] sm:$0xff] %v10909_v0 }
  0x1d   : > { %298 = vst [vmem:[#allocation3 + $0x48] sm:$0xff] %v10909_v0  ;;  %299 = vst [vmem:[#allocation3 + $0x50] sm:$0xff] %v10909_v0 }
  0x1e   : > { %300 = vst [vmem:[#allocation3 + $0x58] sm:$0xff] %v10909_v0  ;;  %301 = vst [vmem:[#allocation3 + $0x60] sm:$0xff] %v10909_v0 }
  0x1f   : > { %302 = vst [vmem:[#allocation3 + $0x68] sm:$0xff] %v10909_v0  ;;  %303 = vst [vmem:[#allocation3 + $0x70] sm:$0xff] %v10909_v0 }
  0x20   : > { %304 = vst [vmem:[#allocation3 + $0x78] sm:$0xff] %v10909_v0  ;;  %305 = vst [vmem:[#allocation4] sm:$0xff] %v10909_v0 }
  0x21   : > { %306 = vst [vmem:[#allocation4 + $0x8] sm:$0xff] %v10909_v0  ;;  %307 = vst [vmem:[#allocation4 + $0x10] sm:$0xff] %v10909_v0 }
  0x22   : > { %308 = vst [vmem:[#allocation4 + $0x18] sm:$0xff] %v10909_v0  ;;  %309 = vst [vmem:[#allocation4 + $0x20] sm:$0xff] %v10909_v0 }
  0x23   : > { %310 = vst [vmem:[#allocation4 + $0x28] sm:$0xff] %v10909_v0  ;;  %311 = vst [vmem:[#allocation4 + $0x30] sm:$0xff] %v10909_v0 }
  0x24   : > { %312 = vst [vmem:[#allocation4 + $0x38] sm:$0xff] %v10909_v0 }
  0x25 PF: > { %v10764_v1 = vld [vmem:[%s11062_s30] ss:$8 sps:$4 sm:$0xff]   ;;  %s16222_s11 = smov 100   ;;  %s16216_s12 = smov 116   ;;  %v10772_v9 = vld [vmem:[%s11062_s30 + $0x4] ss:$8 sps:$4 sm:$0xff]  }
  0x26   : > { %320 = vrot.lane.b32.xlu0 %v10764_v1, %s16222_s11  ;;  %v10765_v2 = vld [vmem:[%s11062_s30] ss:$8 sps:$4 sm:$0xff]   ;;  %s16239_s13 = smov 108   ;;  %s16223_s14 = smov 124   ;;  %v10773_v10 = vld [vmem:[%s11062_s30 + $0x4] ss:$8 sps:$4 sm:$0xff]  }
  0x27   : > { %v10766_v3 = vld [vmem:[%s11062_s30] ss:$8 sps:$4 sm:$0xff]   ;;  %346 = vrot.lane.b32.xlu1 %v10765_v2, %s16216_s12  ;;  %s16254_s15 = smov 4   ;;  %s10915_s16 = smov 12   ;;  %v10774_v11 = vld [vmem:[%s11062_s30 + $0x4] ss:$8 sps:$4 sm:$0xff]  }
  0x28   : > { %v10767_v4 = vld [vmem:[%s11062_s30] ss:$8 sps:$4 sm:$0xff]   ;;  %s10916_s17 = smov 20   ;;  %s10917_s18 = smov 28   ;;  %v10775_v12 = vld [vmem:[%s11062_s30 + $0x4] ss:$8 sps:$4 sm:$0xff]  }
  0x29   : > { %v10768_v5 = vld [vmem:[%s11062_s30] ss:$8 sps:$4 sm:$0xff]   ;;  %s10918_s19 = smov 36   ;;  %s16217_s20 = smov 44   ;;  %v10776_v13 = vld [vmem:[%s11062_s30 + $0x4] ss:$8 sps:$4 sm:$0xff]  }
  0x2a   : > { %332 = vrot.lane.b32.xlu0 %v10766_v3, %s16239_s13  ;;  %v10769_v6 = vld [vmem:[%s11062_s30] ss:$8 sps:$4 sm:$0xff]   ;;  %s16244_s21 = smov 52   ;;  %v10777_v14 = vld [vmem:[%s11062_s30 + $0x4] ss:$8 sps:$4 sm:$0xff]   ;;  %s16233_s22 = smov 60  }
  0x2b   : > { %358 = vrot.lane.b32.xlu1 %v10767_v4, %s16223_s14  ;;  %v10770_v7 = vld [vmem:[%s11062_s30] ss:$8 sps:$4 sm:$0xff]   ;;  %v10778_v15 = vld [vmem:[%s11062_s30 + $0x4] ss:$8 sps:$4 sm:$0xff]   ;;  %s16219_s23 = smov 68   ;;  %s16247_s25 = smov 76  }
  0x2c   : > { %v10771_v8 = vld [vmem:[%s11062_s30] ss:$8 sps:$4 sm:$0xff]   ;;  %v10779_v16 = vld [vmem:[%s11062_s30 + $0x4] ss:$8 sps:$4 sm:$0xff]   ;;  %s16235_s26 = smov 84   ;;  %s16215_s27 = smov 92  }
  0x2d   : > { %vm323_vm0 = vcmask 950048   ;;  %vm335_vm1 = vcmask 1048544   ;;  %vm337_vm2 = vcmask 97280   ;;  %vm349_vm3 = vcmask 294048   ;;  %s16227_s28 = smov 127   ;;  %s16229_s29 = smov 126  }
  0x2e   : > { %370 = vrot.lane.b32.xlu0 %v10768_v5, %s16254_s15  ;;  %vm361_vm4 = vcmask 490848   ;;  %vm373_vm5 = vcmask 687648   ;;  %vm385_vm6 = vcmask 884448   ;;  %vm397_vm7 = vcmask 1048480   ;;  %s16225_s30 = smov 125   ;;  %s10929_s8 = smov 123  }
  0x2f   : > { %382 = vrot.lane.b32.xlu1 %v10769_v6, %s10915_s16  ;;  %vm16249_vm8 = vcmask 31744   ;;  %vm411_vm9 = vcmask 228448   ;;  %vm423_vm10 = vcmask 425248   ;;  %vm435_vm11 = vcmask 622048   ;;  %s16231_s9 = smov 122   ;;  %s10931_s16 = smov 121  }
  0x30   : > { %vm447_vm12 = vcmask 818848   ;;  %vm459_vm13 = vcmask 1015648   ;;  %vm471_vm14 = vcmask 162848   ;;  %vm483_vm15 = vcmask 359648   ;;  %s10935_s12 = smov 102   ;;  %s16416_s1 = sld [smem:[#allocation27_spill]] }
  0x31   : > { %s16245_s13 = smov 51   ;;  %s10964_s15 = smov 25  }
  0x32   : > { %394 = vrot.lane.b32.xlu0 %v10770_v7, %s10916_s17  ;;  %s16221_s17 = smov 120   ;;  %s16496_s2 = sld [smem:[#allocation28_spill]] }
  0x33   : > { %408 = vrot.lane.b32.xlu1 %v10771_v8, %s10917_s18  ;;  %s16620_s0 = smov 107   ;;  %s16384_s24 = smov 45  }
  0x34   : > { %s16704_s7 = smov 46   ;;  %s16927_s6 = smov 96  }
  0x35   : > { %s16928_s10 = smov 116  }
  0x36   : > { %420 = vrot.lane.b32.xlu0 %v10772_v9, %s10918_s19  ;;  %s16237_s19 = smov 104   ;;  %v10782_v41 = vld [vmem:[%s16416_s1 + $0x4] ss:$44 sps:$4 sm:$0xff]  }
  0x37   : > { %432 = vrot.lane.b32.xlu1 %v10773_v10, %s16217_s20  ;;  %s10936_s20 = smov 101   ;;  %3176 = vmatprep.mubr.bf16.mxu0 %v10782_v41 }
  0x3a   : > { %444 = vrot.lane.b32.xlu0 %v10774_v11, %s16244_s21 }
  0x3b   : > { %456 = vrot.lane.b32.xlu1 %v10775_v12, %s16233_s22  ;;  %s16251_s22 = smov 55  }
  0x3e   : > { %468 = vrot.lane.b32.xlu0 %v10776_v13, %s16219_s23  ;;  %s10937_s23 = smov 99  }
  0x3f   : > { %480 = vrot.lane.b32.xlu1 %v10777_v14, %s16247_s25 }
  0x42   : > { %492 = vrot.lane.b32.xlu0 %v10778_v15, %s16235_s26  ;;  %s10951_s26 = smov 54  }
  0x43   : > { %504 = vrot.lane.b32.xlu1 %v10779_v16, %s16215_s27  ;;  %s10934_s27 = smov 103  }
  0x98   : > { %v321_v17 = vpop.permute.xlu0 %320 }
  0x99   : > { %324 = vst.msk [vmem:[#allocation2] sm:$0xff] %vm323_vm0, %v321_v17  ;;  %v347_v18 = vpop.permute.xlu1 %346  ;;  %vm495_vm0 = vcmask 556448  }
  0x9c   : > { %v333_v19 = vpop.permute.xlu0 %332 }
  0x9d   : > { %336 = vst.msk [vmem:[#allocation2] sm:$0xff] %vm335_vm1, %v333_v19  ;;  %v359_v20 = vpop.permute.xlu1 %358  ;;  %vm507_vm1 = vcmask 753248  }
  0x9e   : > { %338 = vst.msk [vmem:[#allocation2 + $0x8] sm:$0xff] %vm337_vm2, %v333_v19  ;;  %vm16304_vm2 = vcmask 1039360  }
  0x9f   : > { %350 = vst.msk [vmem:[#allocation2 + $0x8] sm:$0xff] %vm349_vm3, %v347_v18  ;;  %vm16307_vm3 = vcmask 1031168  }
  0xa0   : > { %362 = vst.msk [vmem:[#allocation2 + $0x8] sm:$0xff] %vm361_vm4, %v359_v20  ;;  %v371_v21 = vpop.permute.xlu0 %370  ;;  %vm16306_vm4 = vcmask 1022976  }
  0xa1   : > { %374 = vst.msk [vmem:[#allocation2 + $0x8] sm:$0xff] %vm373_vm5, %v371_v21  ;;  %v383_v22 = vpop.permute.xlu1 %382  ;;  %vm16305_vm5 = vcmask 1014784  }
  0xa2   : > { %386 = vst.msk [vmem:[#allocation2 + $0x8] sm:$0xff] %vm385_vm6, %v383_v22  ;;  %vm635_vm6 = vcmask 1006592  }
  0xa4   : > { %v395_v23 = vpop.permute.xlu0 %394  ;;  %v11098_v24 = vld [vmem:[#allocation2] sm:$0xff] }
  0xa5   : > { %398 = vst.msk [vmem:[#allocation2 + $0x8] sm:$0xff] %vm397_vm7, %v395_v23  ;;  %523 = vrot.lane.b32.xlu0 %v11098_v24, %s16227_s28  ;;  %v409_v25 = vpop.permute.xlu1 %408  ;;  %vm661_vm7 = vcmask 998400  }
  0xa6   : > { %400 = vst.msk [vmem:[#allocation2 + $0x10] sm:$0xff] %vm16249_vm8, %v395_v23  ;;  %vm16256_vm8 = vcmask 793600  }
  0xa7   : > { %412 = vst.msk [vmem:[#allocation2 + $0x10] sm:$0xff] %vm411_vm9, %v409_v25  ;;  %vm16253_vm9 = vcmask 990208  }
  0xa8   : > { %v421_v26 = vpop.permute.xlu0 %420 }
  0xa9   : > { %424 = vst.msk [vmem:[#allocation2 + $0x10] sm:$0xff] %vm423_vm10, %v421_v26  ;;  %549 = vrot.lane.b32.xlu0 %v11098_v24, %s16229_s29  ;;  %v433_v27 = vpop.permute.xlu1 %432  ;;  %vm713_vm10 = vcmask 982016  }
  0xaa   : > { %436 = vst.msk [vmem:[#allocation2 + $0x10] sm:$0xff] %vm435_vm11, %v433_v27  ;;  %vm16310_vm11 = vcmask 850944  }
  0xac   : > { %v445_v28 = vpop.permute.xlu0 %444  ;;  %v11105_v29 = vld [vmem:[#allocation2 + $0x8] sm:$0xff] }
  0xad   : > { %448 = vst.msk [vmem:[#allocation2 + $0x10] sm:$0xff] %vm447_vm12, %v445_v28  ;;  %575 = vrot.lane.b32.xlu0 %v11098_v24, %s16225_s30  ;;  %3144 = vmatprep.subr.bf16.mxu0 %v11105_v29  ;;  %v457_v30 = vpop.permute.xlu1 %456  ;;  %vm765_vm12 = vcmask 842752  }
  0xae   : > { %3145 = vmatpush1.bf16.msra.mxu0 %v11098_v24  ;;  %460 = vst.msk [vmem:[#allocation2 + $0x10] sm:$0xff] %vm459_vm13, %v457_v30  ;;  %vm791_vm13 = vcmask 834560  }
  0xb0   : > { %v469_v31 = vpop.permute.xlu0 %468 }
  0xb1   : > { %472 = vst.msk [vmem:[#allocation2 + $0x18] sm:$0xff] %vm471_vm14, %v469_v31  ;;  %601 = vrot.lane.b32.xlu0 %v11098_v24, %s16223_s14  ;;  %v481_v32 = vpop.permute.xlu1 %480  ;;  %vm817_vm14 = vcmask 826368  }
  0xb2   : > { %484 = vst.msk [vmem:[#allocation2 + $0x18] sm:$0xff] %vm483_vm15, %v481_v32  ;;  %vm843_vm15 = vcmask 818176  }
  0xb4   : > { %v493_v33 = vpop.permute.xlu0 %492 }
  0xb5   : > { %496 = vst.msk [vmem:[#allocation2 + $0x18] sm:$0xff] %vm495_vm0, %v493_v33  ;;  %627 = vrot.lane.b32.xlu0 %v11098_v24, %s10929_s8  ;;  %v505_v34 = vpop.permute.xlu1 %504  ;;  %v11147_v36 = vld [vmem:[#allocation2 + $0x10] sm:$0xff]  ;;  %vm869_vm0 = vcmask 809984  }
  0xb6   : > { %508 = vst.msk [vmem:[#allocation2 + $0x18] sm:$0xff] %vm507_vm1, %v505_v34  ;;  %vm16273_vm1 = vcmask 801792  }
  0xb9   : > { %653 = vrot.lane.b32.xlu0 %v11098_v24, %s16231_s9 }
  0xbd   : > { %679 = vrot.lane.b32.xlu0 %v11098_v24, %s10931_s16  ;;  %v11119_v35 = vld [vmem:[#allocation2 + $0x18] sm:$0xff] }
  0xbe   : > { %529 = vrot.lane.b32.xlu1 %v11119_v35, %s16227_s28 }
  0xc1   : > { %705 = vrot.lane.b32.xlu0 %v11098_v24, %s16221_s17 }
  0xc2   : > { %555 = vrot.lane.b32.xlu1 %v11119_v35, %s16229_s29 }
  0xc5   : > { %731 = vrot.lane.b32.xlu0 %v11098_v24, %s16237_s19 }
  0xc6   : > { %581 = vrot.lane.b32.xlu1 %v11119_v35, %s16225_s30 }
  0xc9   : > { %757 = vrot.lane.b32.xlu0 %v11098_v24, %s10934_s27 }
  0xca   : > { %607 = vrot.lane.b32.xlu1 %v11119_v35, %s16223_s14 }
  0xcd   : > { %783 = vrot.lane.b32.xlu0 %v11098_v24, %s10935_s12 }
  0xce   : > { %633 = vrot.lane.b32.xlu1 %v11119_v35, %s10929_s8 }
  0xd1   : > { %809 = vrot.lane.b32.xlu0 %v11098_v24, %s10936_s20 }
  0xd2   : > { %659 = vrot.lane.b32.xlu1 %v11119_v35, %s16231_s9 }
  0xd5   : > { %835 = vrot.lane.b32.xlu0 %v11098_v24, %s16222_s11 }
  0xd6   : > { %685 = vrot.lane.b32.xlu1 %v11119_v35, %s10931_s16 }
  0xd9   : > { %527 = vrot.lane.b32.xlu0 %v11147_v36, %s16227_s28 }
  0xda   : > { %711 = vrot.lane.b32.xlu1 %v11119_v35, %s16221_s17 }
  0xdd   : > { %553 = vrot.lane.b32.xlu0 %v11147_v36, %s16229_s29 }
  0xde   : > { %737 = vrot.lane.b32.xlu1 %v11119_v35, %s16237_s19 }
  0xe1   : > { %579 = vrot.lane.b32.xlu0 %v11147_v36, %s16225_s30 }
  0xe2   : > { %763 = vrot.lane.b32.xlu1 %v11119_v35, %s10934_s27 }
  0xe5   : > { %605 = vrot.lane.b32.xlu0 %v11147_v36, %s16223_s14 }
  0xe6   : > { %789 = vrot.lane.b32.xlu1 %v11119_v35, %s10935_s12 }
  0xe9   : > { %631 = vrot.lane.b32.xlu0 %v11147_v36, %s10929_s8 }
  0xea   : > { %815 = vrot.lane.b32.xlu1 %v11119_v35, %s10936_s20 }
  0xed   : > { %657 = vrot.lane.b32.xlu0 %v11147_v36, %s16231_s9 }
  0xee   : > { %525 = vrot.lane.b32.xlu1 %v11105_v29, %s16227_s28  ;;  %s10947_s28 = smov 73  }
  0xf1   : > { %683 = vrot.lane.b32.xlu0 %v11147_v36, %s10931_s16 }
  0xf2   : > { %551 = vrot.lane.b32.xlu1 %v11105_v29, %s16229_s29  ;;  %s16285_s29 = smov 72  }
  0xf5   : > { %709 = vrot.lane.b32.xlu0 %v11147_v36, %s16221_s17 }
  0xf6   : > { %577 = vrot.lane.b32.xlu1 %v11105_v29, %s16225_s30  ;;  %s10946_s30 = smov 74  }
  0xf9   : > { %735 = vrot.lane.b32.xlu0 %v11147_v36, %s16237_s19 }
  0xfa   : > { %603 = vrot.lane.b32.xlu1 %v11105_v29, %s16223_s14  ;;  %s16241_s14 = smov 75  }
  0xfd   : > { %761 = vrot.lane.b32.xlu0 %v11147_v36, %s10934_s27 }
  0xfe   : > { %629 = vrot.lane.b32.xlu1 %v11105_v29, %s10929_s8  ;;  %s10938_s8 = smov 98  }
 0x101   : > { %787 = vrot.lane.b32.xlu0 %v11147_v36, %s10935_s12 }
 0x102   : > { %655 = vrot.lane.b32.xlu1 %v11105_v29, %s16231_s9  ;;  %s16286_s9 = smov 56  }
 0x105   : > { %813 = vrot.lane.b32.xlu0 %v11147_v36, %s10936_s20 }
 0x106   : > { %681 = vrot.lane.b32.xlu1 %v11105_v29, %s10931_s16  ;;  %s10939_s16 = smov 97  }
 0x109   : > { %839 = vrot.lane.b32.xlu0 %v11147_v36, %s16222_s11 }
 0x10a   : > { %707 = vrot.lane.b32.xlu1 %v11105_v29, %s16221_s17  ;;  %s10943_s17 = smov 78  }
 0x10d   : > { %863 = vrot.lane.b32.xlu0 %v11105_v29, %s10937_s23 }
 0x10e   : > { %733 = vrot.lane.b32.xlu1 %v11105_v29, %s16237_s19  ;;  %s16243_s19 = smov 53  }
 0x111   : > { %861 = vrot.lane.b32.xlu0 %v11098_v24, %s10937_s23 }
 0x112   : > { %759 = vrot.lane.b32.xlu1 %v11105_v29, %s10934_s27  ;;  %s16242_s27 = smov 77  }
 0x115   : > { %891 = vrot.lane.b32.xlu0 %v11147_v36, %s10938_s8 }
 0x116   : > { %785 = vrot.lane.b32.xlu1 %v11105_v29, %s10935_s12  ;;  %s16284_s12 = smov 96  }
 0x117   : > { %v11213_v37 = vpop.permute.xlu0 %523 }
 0x119   : > { %915 = vrot.lane.b32.xlu0 %v11105_v29, %s10939_s16 }
 0x11a   : > { %811 = vrot.lane.b32.xlu1 %v11105_v29, %s10936_s20  ;;  %s16297_s20 = smov 80  }
 0x11b   : > { %v11219_v38 = vpop.permute.xlu0 %549 }
 0x11d   : > { %913 = vrot.lane.b32.xlu0 %v11098_v24, %s10939_s16 }
 0x11e   : > { %837 = vrot.lane.b32.xlu1 %v11105_v29, %s16222_s11 }
 0x11f   : > { %v11225_v39 = vpop.permute.xlu0 %575 }
 0x121   : > { %943 = vrot.lane.b32.xlu0 %v11147_v36, %s16284_s12 }
 0x122   : > { %841 = vrot.lane.b32.xlu1 %v11119_v35, %s16222_s11  ;;  %s16252_s11 = smov 79  }
 0x123   : > { %v11231_v40 = vpop.permute.xlu0 %601 }
 0x125   : > { %967 = vrot.lane.b32.xlu0 %v11105_v29, %s16297_s20 }
 0x126   : > { %865 = vrot.lane.b32.xlu1 %v11147_v36, %s10937_s23 }
 0x127   : > { %v11240_v42 = vpop.permute.xlu0 %627 }
 0x129   : > { %965 = vrot.lane.b32.xlu0 %v11098_v24, %s16297_s20 }
 0x12a   : > { %889 = vrot.lane.b32.xlu1 %v11105_v29, %s10938_s8 }
 0x12b   : > { %v11246_v43 = vpop.permute.xlu0 %653 }
 0x12d   : > { %995 = vrot.lane.b32.xlu0 %v11147_v36, %s16252_s11 }
 0x12e   : > { %887 = vrot.lane.b32.xlu1 %v11098_v24, %s10938_s8 }
 0x12f   : > { %v11252_v44 = vpop.permute.xlu0 %679 }
 0x130   : > { %v11254_v45 = vpop.permute.xlu1 %529 }
 0x131   : > { %1019 = vrot.lane.b32.xlu0 %v11105_v29, %s10943_s17 }
 0x132   : > { %917 = vrot.lane.b32.xlu1 %v11147_v36, %s10939_s16 }
 0x133   : > { %v11260_v46 = vpop.permute.xlu0 %705 }
 0x134   : > { %v11262_v47 = vpop.permute.xlu1 %555 }
 0x135   : > { %1017 = vrot.lane.b32.xlu0 %v11098_v24, %s10943_s17 }
 0x136   : > { %941 = vrot.lane.b32.xlu1 %v11105_v29, %s16284_s12 }
 0x137   : > { %v11268_v48 = vpop.permute.xlu0 %731 }
 0x138   : > { %v11270_v49 = vpop.permute.xlu1 %581 }
 0x139   : > { %1047 = vrot.lane.b32.xlu0 %v11147_v36, %s16242_s27 }
 0x13a   : > { %939 = vrot.lane.b32.xlu1 %v11098_v24, %s16284_s12 }
 0x13b   : > { %v11276_v50 = vpop.permute.xlu0 %757 }
 0x13c   : > { %v11278_v51 = vpop.permute.xlu1 %607 }
 0x13d   : > { %1071 = vrot.lane.b32.xlu0 %v11105_v29, %s16247_s25 }
 0x13e   : > { %969 = vrot.lane.b32.xlu1 %v11147_v36, %s16297_s20 }
 0x13f   : > { %v11284_v52 = vpop.permute.xlu0 %783 }
 0x140   : > { %v11286_v53 = vpop.permute.xlu1 %633 }
 0x141   : > { %1069 = vrot.lane.b32.xlu0 %v11098_v24, %s16247_s25 }
 0x142   : > { %993 = vrot.lane.b32.xlu1 %v11105_v29, %s16252_s11 }
 0x143   : > { %v11292_v54 = vpop.permute.xlu0 %809 }
 0x144   : > { %v11294_v55 = vpop.permute.xlu1 %659 }
 0x145   : > { %1099 = vrot.lane.b32.xlu0 %v11147_v36, %s16241_s14 }
 0x146   : > { %991 = vrot.lane.b32.xlu1 %v11098_v24, %s16252_s11  ;;  %s16312_s11 = smov 30  }
 0x147   : > { %v11300_v56 = vpop.permute.xlu0 %835 }
 0x148   : > { %v11302_v57 = vpop.permute.xlu1 %685 }
 0x149   : > { %1123 = vrot.lane.b32.xlu0 %v11105_v29, %s10946_s30 }
 0x14a   : > { %1021 = vrot.lane.b32.xlu1 %v11147_v36, %s10943_s17 }
 0x14b   : > { %v11308_v58 = vpop.permute.xlu0 %527 }
 0x14c   : > { %v11310_v59 = vpop.permute.xlu1 %711 }
 0x14d   : > { %1121 = vrot.lane.b32.xlu0 %v11098_v24, %s10946_s30 }
 0x14e   : > { %1045 = vrot.lane.b32.xlu1 %v11105_v29, %s16242_s27 }
 0x14f   : > { %v11316_v60 = vpop.permute.xlu0 %553 }
 0x150   : > { %v11318_v61 = vpop.permute.xlu1 %737 }
 0x151   : > { %1151 = vrot.lane.b32.xlu0 %v11147_v36, %s10947_s28 }
 0x152   : > { %1043 = vrot.lane.b32.xlu1 %v11098_v24, %s16242_s27  ;;  %s16250_s27 = smov 49  }
 0x153   : > { %v11324_v62 = vpop.permute.xlu0 %579 }
 0x154   : > { %v11326_v63 = vpop.permute.xlu1 %763 }
 0x155   : > { %1175 = vrot.lane.b32.xlu0 %v11105_v29, %s16285_s29 }
 0x156   : > { %1073 = vrot.lane.b32.xlu1 %v11147_v36, %s16247_s25  ;;  %s10970_s25 = smov 3  }
 0x157   : > { %v11332_v0 = vpop.permute.xlu0 %605 }
 0x158   : > { %v11334_v1 = vpop.permute.xlu1 %789 }
 0x159   : > { %1173 = vrot.lane.b32.xlu0 %v11098_v24, %s16285_s29 }
 0x15a   : > { %1097 = vrot.lane.b32.xlu1 %v11105_v29, %s16241_s14 }
 0x15b   : > { %v11340_v2 = vpop.permute.xlu0 %631 }
 0x15c   : > { %v11342_v3 = vpop.permute.xlu1 %815 }
 0x15d   : > { %1203 = vrot.lane.b32.xlu0 %v11147_v36, %s16286_s9 }
 0x15e   : > { %1095 = vrot.lane.b32.xlu1 %v11098_v24, %s16241_s14  ;;  %s16246_s14 = smov 50  }
 0x15f   : > { %v11348_v4 = vpop.permute.xlu0 %657 }
 0x160   : > { %v526_v5 = vpop.permute.xlu1 %525 }
 0x161   : > { %1227 = vrot.lane.b32.xlu0 %v11105_v29, %s16251_s22  ;;  %v533_v6 = vsel %vm16304_vm2, %v526_v5, %v11308_v58  ;;  %v532_v7 = vsel %vm16304_vm2, %v11213_v37, %v526_v5 }
 0x162   : > { %1125 = vrot.lane.b32.xlu1 %v11147_v36, %s10946_s30  ;;  %3146 = vmatprep.subr.bf16.mxu0 %v533_v6 }
 0x163   : > { %v11358_v8 = vpop.permute.xlu0 %683  ;;  %3147 = vmatpush1.bf16.msra.mxu0 %v532_v7 }
 0x164   : > { %v552_v9 = vpop.permute.xlu1 %551 }
 0x165   : > { %1225 = vrot.lane.b32.xlu0 %v11098_v24, %s16251_s22  ;;  %v559_v10 = vsel %vm16307_vm3, %v552_v9, %v11316_v60  ;;  %v558_v11 = vsel %vm16307_vm3, %v11219_v38, %v552_v9 }
 0x166   : > { %1149 = vrot.lane.b32.xlu1 %v11105_v29, %s10947_s28  ;;  %3148 = vmatprep.subr.bf16.mxu0 %v559_v10 }
 0x167   : > { %v11368_v12 = vpop.permute.xlu0 %709  ;;  %3149 = vmatpush1.bf16.msra.mxu0 %v558_v11 }
 0x168   : > { %v578_v13 = vpop.permute.xlu1 %577 }
 0x169   : > { %1255 = vrot.lane.b32.xlu0 %v11147_v36, %s10951_s26  ;;  %v585_v14 = vsel %vm16306_vm4, %v578_v13, %v11324_v62  ;;  %v584_v15 = vsel %vm16306_vm4, %v11225_v39, %v578_v13 }
 0x16a   : > { %1147 = vrot.lane.b32.xlu1 %v11098_v24, %s10947_s28  ;;  %3150 = vmatprep.subr.bf16.mxu0 %v585_v14 }
 0x16b   : > { %v11378_v16 = vpop.permute.xlu0 %735  ;;  %3151 = vmatpush1.bf16.msra.mxu0 %v584_v15 }
 0x16c   : > { %v604_v17 = vpop.permute.xlu1 %603 }
 0x16d   : > { %1279 = vrot.lane.b32.xlu0 %v11105_v29, %s16243_s19  ;;  %v611_v18 = vsel %vm16305_vm5, %v604_v17, %v11332_v0  ;;  %v610_v19 = vsel %vm16305_vm5, %v11231_v40, %v604_v17 }
 0x16e   : > { %1177 = vrot.lane.b32.xlu1 %v11147_v36, %s16285_s29  ;;  %3152 = vmatprep.subr.bf16.mxu0 %v611_v18 }
 0x16f   : > { %v11388_v20 = vpop.permute.xlu0 %761  ;;  %3153 = vmatpush1.bf16.msra.mxu0 %v610_v19 }
 0x170   : > { %v630_v21 = vpop.permute.xlu1 %629 }
 0x171   : > { %1277 = vrot.lane.b32.xlu0 %v11098_v24, %s16243_s19  ;;  %v637_v22 = vsel %vm635_vm6, %v630_v21, %v11340_v2  ;;  %v636_v23 = vsel %vm635_vm6, %v11240_v42, %v630_v21 }
 0x172   : > { %1201 = vrot.lane.b32.xlu1 %v11105_v29, %s16286_s9  ;;  %3154 = vmatprep.subr.bf16.mxu0 %v637_v22 }
 0x173   : > { %v11398_v25 = vpop.permute.xlu0 %787  ;;  %3155 = vmatpush1.bf16.msra.mxu0 %v636_v23 }
 0x174   : > { %v656_v26 = vpop.permute.xlu1 %655 }
 0x175   : > { %1307 = vrot.lane.b32.xlu0 %v11147_v36, %s16244_s21  ;;  %v663_v27 = vsel %vm661_vm7, %v656_v26, %v11348_v4  ;;  %v662_v28 = vsel %vm661_vm7, %v11246_v43, %v656_v26 }
 0x176   : > { %1199 = vrot.lane.b32.xlu1 %v11098_v24, %s16286_s9  ;;  %3156 = vmatprep.subr.bf16.mxu0 %v663_v27 }
 0x177   : > { %v11408_v30 = vpop.permute.xlu0 %813  ;;  %3157 = vmatpush1.bf16.msra.mxu0 %v662_v28 }
 0x178   : > { %v682_v31 = vpop.permute.xlu1 %681 }
 0x179   : > { %1331 = vrot.lane.b32.xlu0 %v11105_v29, %s16245_s13  ;;  %v689_v32 = vsel %vm16253_vm9, %v682_v31, %v11358_v8  ;;  %v688_v33 = vsel %vm16253_vm9, %v11252_v44, %v682_v31  ;;  %v16269_v31 = vmov 0   ;;  %vm16257_vm9 = vcmask 785408  }
 0x17a   : > { %1229 = vrot.lane.b32.xlu1 %v11147_v36, %s16251_s22  ;;  %3158 = vmatprep.subr.bf16.mxu0 %v689_v32  ;;  %s10965_s22 = smov 24  }
 0x17b   : > { %v11418_v34 = vpop.permute.xlu0 %839  ;;  %3159 = vmatpush1.bf16.msra.mxu0 %v688_v33  ;;  %3541 = vmatprep.mubr.bf16.mxu1 %v16269_v31 }
 0x17c   : > { %v708_v37 = vpop.permute.xlu1 %707  ;;  %10763 = vset.pattern.permute.xlu1 %v16269_v31  ;;  %10762 = vset.pattern.permute.xlu0 %v16269_v31 }
 0x17d   : > { %1329 = vrot.lane.b32.xlu0 %v11098_v24, %s16245_s13  ;;  %v715_v38 = vsel %vm713_vm10, %v708_v37, %v11368_v12  ;;  %v714_v39 = vsel %vm713_vm10, %v11260_v46, %v708_v37  ;;  %v11505_v37 = vld [vmem:[%s16416_s1] ss:$44 sps:$4 sm:$0xff]  }
 0x17e   : > { %1253 = vrot.lane.b32.xlu1 %v11105_v29, %s10951_s26  ;;  %3160 = vmatprep.subr.bf16.mxu0 %v715_v38 }
 0x17f   : > { %v864_v40 = vpop.permute.xlu0 %863  ;;  %3161 = vmatpush1.bf16.msra.mxu0 %v714_v39  ;;  %v11515_v39 = vld [vmem:[%s16416_s1 + $0x5c] ss:$44 sps:$4 sm:$0xff]  }
 0x180   : > { %v734_v41 = vpop.permute.xlu1 %733 }
 0x181   : > { %1359 = vrot.lane.b32.xlu0 %v11147_v36, %s16246_s14  ;;  %v741_v42 = vsel %vm16310_vm11, %v734_v41, %v11378_v16  ;;  %v740_v43 = vsel %vm16310_vm11, %v11268_v48, %v734_v41 }
 0x182   : > { %1251 = vrot.lane.b32.xlu1 %v11098_v24, %s10951_s26  ;;  %3162 = vmatprep.subr.bf16.mxu0 %v741_v42 }
 0x183   : > { %v862_v44 = vpop.permute.xlu0 %861  ;;  %3163 = vmatpush1.bf16.msra.mxu0 %v740_v43 }
 0x184   : > { %v760_v46 = vpop.permute.xlu1 %759  ;;  %v870_v22 = vsel %vm869_vm0, %v862_v44, %v864_v40 }
 0x185   : > { %1383 = vrot.lane.b32.xlu0 %v11105_v29, %s16250_s27  ;;  %v767_v5 = vsel %vm765_vm12, %v760_v46, %v11388_v20  ;;  %v766_v6 = vsel %vm765_vm12, %v11276_v50, %v760_v46 }
 0x186   : > { %1281 = vrot.lane.b32.xlu1 %v11147_v36, %s16243_s19  ;;  %3164 = vmatprep.subr.bf16.mxu0 %v767_v5  ;;  %s16258_s19 = smov 48   ;;  %v11535_v5 = vld [vmem:[%s16416_s1 + $0x58] ss:$44 sps:$4 sm:$0xff]  }
 0x187   : > { %v11444_v48 = vpop.permute.xlu0 %891  ;;  %3165 = vmatpush1.bf16.msra.mxu0 %v766_v6 }
 0x188   : > { %v786_v7 = vpop.permute.xlu1 %785 }
 0x189   : > { %1381 = vrot.lane.b32.xlu0 %v11098_v24, %s16250_s27  ;;  %v793_v9 = vsel %vm791_vm13, %v786_v7, %v11398_v25  ;;  %v792_v10 = vsel %vm791_vm13, %v11284_v52, %v786_v7  ;;  %v11544_v7 = vld [vmem:[%s16416_s1 + $0xb4] ss:$44 sps:$4 sm:$0xff]  }
 0x18a   : > { %1305 = vrot.lane.b32.xlu1 %v11105_v29, %s16244_s21  ;;  %3166 = vmatprep.subr.bf16.mxu0 %v793_v9 }
 0x18b   : > { %v916_v50 = vpop.permute.xlu0 %915  ;;  %3167 = vmatpush1.bf16.msra.mxu0 %v792_v10 }
 0x18c   : > { %v812_v11 = vpop.permute.xlu1 %811 }
 0x18d   : > { %1411 = vrot.lane.b32.xlu0 %v11147_v36, %s16258_s19  ;;  %v819_v13 = vsel %vm817_vm14, %v812_v11, %v11408_v30  ;;  %v818_v14 = vsel %vm817_vm14, %v11292_v54, %v812_v11 }
 0x18e   : > { %1303 = vrot.lane.b32.xlu1 %v11098_v24, %s16244_s21  ;;  %3168 = vmatprep.subr.bf16.mxu0 %v819_v13  ;;  %s16261_s21 = smov 32  }
 0x18f   : > { %v914_v52 = vpop.permute.xlu0 %913  ;;  %3169 = vmatpush1.bf16.msra.mxu0 %v818_v14  ;;  %v11565_v14 = vld [vmem:[%s16416_s1 + $0xb0] ss:$44 sps:$4 sm:$0xff]  }
 0x190   : > { %v838_v15 = vpop.permute.xlu1 %837  ;;  %v922_v42 = vsel %vm16256_vm8, %v914_v52, %v916_v50 }
 0x191   : > { %2559 = vrot.lane.b32.xlu0 %v11119_v35, %s16286_s9  ;;  %v845_v17 = vsel %vm843_vm15, %v838_v15, %v11418_v34  ;;  %v844_v18 = vsel %vm843_vm15, %v11300_v56, %v838_v15 }
 0x192   : > { %1333 = vrot.lane.b32.xlu1 %v11147_v36, %s16245_s13  ;;  %3170 = vmatprep.subr.bf16.mxu0 %v845_v17  ;;  %s10958_s13 = smov 31   ;;  %v11574_v17 = vld [vmem:[%s16416_s1 + $0x10c] ss:$44 sps:$4 sm:$0xff]  }
 0x193   : > { %v11470_v54 = vpop.permute.xlu0 %943  ;;  %3171 = vmatpush1.bf16.msra.mxu0 %v844_v18 }
 0x194   : > { %v11472_v19 = vpop.permute.xlu1 %841 }
 0x195   : > { %2555 = vrot.lane.b32.xlu0 %v11105_v29, %s16286_s9 }
 0x196   : > { %1357 = vrot.lane.b32.xlu1 %v11105_v29, %s16246_s14 }
 0x197   : > { %v11478_v35 = vpop.permute.xlu0 %967 }
 0x198   : > { %v11480_v21 = vpop.permute.xlu1 %865 }
 0x199   : > { %1437 = vrot.lane.b32.xlu0 %v11147_v36, %s16261_s21  ;;  %v871_v56 = vsel %vm869_vm0, %v864_v40, %v11480_v21 }
 0x19a   : > { %1355 = vrot.lane.b32.xlu1 %v11098_v24, %s16246_s14  ;;  %3172 = vmatprep.subr.bf16.mxu0 %v871_v56  ;;  %s10961_s14 = smov 29  }
 0x19b   : > { %v966_v23 = vpop.permute.xlu0 %965  ;;  %3173 = vmatpush1.bf16.msra.mxu0 %v870_v22 }
 0x19c   : > { %v890_v26 = vpop.permute.xlu1 %889 }
 0x19d   : > { %1461 = vrot.lane.b32.xlu0 %v11105_v29, %s10958_s13  ;;  %v897_v27 = vsel %vm16273_vm1, %v890_v26, %v11444_v48 }
 0x19e   : > { %1385 = vrot.lane.b32.xlu1 %v11147_v36, %s16250_s27  ;;  %3174 = vmatprep.subr.bf16.mxu0 %v897_v27  ;;  %s16438_s27 = smov 77  }
 0x19f   : > { %v11495_v28 = vpop.permute.xlu0 %995 }
 0x1a0   : > { %v888_v32 = vpop.permute.xlu1 %887 }
 0x1a1   : > { %1459 = vrot.lane.b32.xlu0 %v11098_v24, %s10958_s13  ;;  %v896_v33 = vsel %vm16273_vm1, %v888_v32, %v890_v26  ;;  %v11592_v26 = vld [vmem:[%s16416_s1 + $0x108] ss:$44 sps:$4 sm:$0xff]   ;;  %v11599_v32 = vld [vmem:[%s16416_s1 + $0xc] ss:$44 sps:$4 sm:$0xff]   ;;  %vm16277_vm1 = vcmask 441344  }
 0x1a2   : > { %1409 = vrot.lane.b32.xlu1 %v11105_v29, %s16258_s19  ;;  %3175 = vmatpush1.bf16.msra.mxu0 %v896_v33 }
 0x1a3   : > { %v11510_v38 = vpop.permute.xlu0 %1019 }
 0x1a4   : > { %v11517_v40 = vpop.permute.xlu1 %917 }
 0x1a5   : > { %1489 = vrot.lane.b32.xlu0 %v11147_v36, %s16312_s11  ;;  %v923_v41 = vsel %vm16256_vm8, %v916_v50, %v11517_v40  ;;  %3177 = vmatmul.mubr.bf16.vlgmr.msra.gmra.mrb[0].mxu0 %v11505_v37  ;;  %vm16260_vm8 = vcmask 654336  }
 0x1a6   : > { %2557 = vrot.lane.b32.xlu1 %v11147_v36, %s16286_s9  ;;  %3217 = vmatprep.subr.bf16.mxu0 %v923_v41  ;;  %v974_v52 = vsel %vm16260_vm8, %v966_v23, %v11478_v35 }
 0x1a7   : > { %v1018_v43 = vpop.permute.xlu0 %1017  ;;  %3218 = vmatpush1.bf16.msra.mxu0 %v922_v42  ;;  %3186 = vmatprep.mubr.bf16.mxu0 %v11515_v39 }
 0x1a8   : > { %v942_v44 = vpop.permute.xlu1 %941 }
 0x1a9   : > { %1513 = vrot.lane.b32.xlu0 %v11105_v29, %s10961_s14  ;;  %v949_v46 = vsel %vm16257_vm9, %v942_v44, %v11470_v54 }
 0x1aa   : > { %1407 = vrot.lane.b32.xlu1 %v11098_v24, %s16258_s19  ;;  %3219 = vmatprep.subr.bf16.mxu0 %v949_v46  ;;  %s10962_s19 = smov 27  }
 0x1ab   : > { %v11539_v6 = vpop.permute.xlu0 %1047 }
 0x1ac   : > { %16417 = vst [vmem:[#allocation8_spill] sm:$0xff] %v11539_v6  ;;  %v940_v9 = vpop.permute.xlu1 %939 }
 0x1ad   : > { %1511 = vrot.lane.b32.xlu0 %v11098_v24, %s10961_s14  ;;  %v948_v10 = vsel %vm16257_vm9, %v940_v9, %v942_v44  ;;  %3187 = vmatmul.mubr.bf16.gmra.mrb[4].mxu0 %v11535_v5  ;;  %vm16262_vm9 = vcmask 646144  }
 0x1ae   : > { %1435 = vrot.lane.b32.xlu1 %v11105_v29, %s16261_s21  ;;  %3220 = vmatpush1.bf16.msra.mxu0 %v948_v10 }
 0x1af   : > { %v11552_v50 = vpop.permute.xlu0 %1071  ;;  %3196 = vmatprep.mubr.bf16.mxu0 %v11544_v7 }
 0x1b0   : > { %v11555_v11 = vpop.permute.xlu1 %969 }
 0x1b1   : > { %1541 = vrot.lane.b32.xlu0 %v11147_v36, %s10917_s18  ;;  %v975_v13 = vsel %vm16260_vm8, %v11478_v35, %v11555_v11  ;;  %vm16263_vm8 = vcmask 637952  }
 0x1b2   : > { %1433 = vrot.lane.b32.xlu1 %v11098_v24, %s16261_s21  ;;  %3221 = vmatprep.subr.bf16.mxu0 %v975_v13  ;;  %s16314_s21 = smov 26   ;;  %v1026_v42 = vsel %vm16263_vm8, %v1018_v43, %v11510_v38  ;;  %v11624_v43 = vld [vmem:[#allocation2 + $0x8] sm:$0xff] }
 0x1b3   : > { %v1070_v15 = vpop.permute.xlu0 %1069  ;;  %3222 = vmatpush1.bf16.msra.mxu0 %v974_v52 }
 0x1b4   : > { %v994_v18 = vpop.permute.xlu1 %993 }
 0x1b5   : > { %1565 = vrot.lane.b32.xlu0 %v11105_v29, %s10962_s19  ;;  %v1001_v35 = vsel %vm16262_vm9, %v994_v18, %v11495_v28  ;;  %3197 = vmatmul.mubr.bf16.gmra.mrb[8].mxu0 %v11565_v14 }
 0x1b6   : > { %1463 = vrot.lane.b32.xlu1 %v11147_v36, %s10958_s13  ;;  %3223 = vmatprep.subr.bf16.mxu0 %v1001_v35 }
 0x1b7   : > { %v11583_v56 = vpop.permute.xlu0 %1099  ;;  %3206 = vmatprep.mubr.bf16.mxu0 %v11574_v17 }
 0x1b8   : > { %16418 = vst [vmem:[#allocation9_spill] sm:$0xff] %v11583_v56  ;;  %v992_v22 = vpop.permute.xlu1 %991 }
 0x1b9   : > { %1563 = vrot.lane.b32.xlu0 %v11098_v24, %s10962_s19  ;;  %v1000_v23 = vsel %vm16262_vm9, %v992_v22, %v994_v18  ;;  %v11605_v24 = vld [vmem:[#allocation2] sm:$0xff]  ;;  %vm16264_vm9 = vcmask 629760  }
 0x1ba   : > { %1487 = vrot.lane.b32.xlu1 %v11105_v29, %s16312_s11  ;;  %3224 = vmatpush1.bf16.msra.mxu0 %v1000_v23 }
 0x1bb   : > { %v1124_v27 = vpop.permute.xlu0 %1123 }
 0x1bc   : > { %v11601_v33 = vpop.permute.xlu1 %1021 }
 0x1bd   : > { %1591 = vrot.lane.b32.xlu0 %v11105_v29, %s16314_s21  ;;  %v1027_v41 = vsel %vm16263_vm8, %v11510_v38, %v11601_v33  ;;  %3207 = vmatmul.mubr.bf16.gmra.mrb[12].mxu0 %v11592_v26  ;;  %vm16265_vm8 = vcmask 621568  }
 0x1be   : > { %1485 = vrot.lane.b32.xlu1 %v11605_v24, %s16312_s11  ;;  %3225 = vmatprep.subr.bf16.mxu0 %v1027_v41  ;;  %v1078_v35 = vsel %vm16265_vm8, %v1070_v15, %v11552_v50  ;;  %v11650_v15 = vld [vmem:[#allocation2 + $0x18] sm:$0xff] }
 0x1bf   : > { %v1122_v44 = vpop.permute.xlu0 %1121  ;;  %3226 = vmatpush1.bf16.msra.mxu0 %v1026_v42  ;;  %3249 = vmatprep.mubr.bf16.mxu0 %v11599_v32 }
 0x1c0   : > { %v1046_v29 = vpop.permute.xlu1 %1045 }
 0x1c1   : > { %1589 = vrot.lane.b32.xlu0 %v11605_v24, %s16314_s21  ;;  %v1053_v46 = vsel %vm16264_vm9, %v1046_v29, %v11539_v6 }
 0x1c2   : > { %1515 = vrot.lane.b32.xlu1 %v11147_v36, %s10961_s14  ;;  %3227 = vmatprep.subr.bf16.mxu0 %v1053_v46 }
 0x1c3   : > { %v11622_v38 = vpop.permute.xlu0 %1151 }
 0x1c4   : > { %v1044_v9 = vpop.permute.xlu1 %1043 }
 0x1c5   : > { %1617 = vrot.lane.b32.xlu0 %v11624_v43, %s10964_s15  ;;  %v1052_v10 = vsel %vm16264_vm9, %v1044_v9, %v1046_v29  ;;  %vm16266_vm9 = vcmask 613376  }
 0x1c6   : > { %1539 = vrot.lane.b32.xlu1 %v11624_v43, %s10917_s18  ;;  %3228 = vmatpush1.bf16.msra.mxu0 %v1052_v10 }
 0x1c7   : > { %v1176_v13 = vpop.permute.xlu0 %1175 }
 0x1c8   : > { %v11631_v52 = vpop.permute.xlu1 %1073 }
 0x1c9   : > { %16419 = vst [vmem:[#allocation10_spill] sm:$0xff] %v11631_v52  ;;  %1615 = vrot.lane.b32.xlu0 %v11605_v24, %s10964_s15  ;;  %v1079_v18 = vsel %vm16265_vm8, %v11552_v50, %v11631_v52  ;;  %vm16267_vm8 = vcmask 605184  }
 0x1ca   : > { %1537 = vrot.lane.b32.xlu1 %v11605_v24, %s10917_s18  ;;  %3229 = vmatprep.subr.bf16.mxu0 %v1079_v18  ;;  %v1130_v18 = vsel %vm16267_vm8, %v1122_v44, %v1124_v27 }
 0x1cb   : > { %v1174_v22 = vpop.permute.xlu0 %1173  ;;  %3230 = vmatpush1.bf16.msra.mxu0 %v1078_v35 }
 0x1cc   : > { %v1098_v23 = vpop.permute.xlu1 %1097 }
 0x1cd   : > { %1643 = vrot.lane.b32.xlu0 %v11624_v43, %s10965_s22  ;;  %v1105_v41 = vsel %vm16266_vm9, %v1098_v23, %v11583_v56 }
 0x1ce   : > { %1567 = vrot.lane.b32.xlu1 %v11147_v36, %s10962_s19  ;;  %3231 = vmatprep.subr.bf16.mxu0 %v1105_v41 }
 0x1cf   : > { %v11648_v50 = vpop.permute.xlu0 %1203 }
 0x1d0   : > { %v1096_v42 = vpop.permute.xlu1 %1095 }
 0x1d1   : > { %919 = vrot.lane.b32.xlu0 %v11650_v15, %s10939_s16  ;;  %v1104_v29 = vsel %vm16266_vm9, %v1096_v42, %v1098_v23  ;;  %vm16268_vm9 = vcmask 596992   ;;  %s16425_s16 = smov 4  }
 0x1d2   : > { %867 = vrot.lane.b32.xlu1 %v11650_v15, %s10937_s23  ;;  %3232 = vmatpush1.bf16.msra.mxu0 %v1104_v29  ;;  %s10966_s23 = smov 8   ;;  %v11677_v29 = vld [vmem:[#allocation2 + $0x10] sm:$0xff] }
 0x1d3   : > { %v1228_v46 = vpop.permute.xlu0 %1227 }
 0x1d4   : > { %v11657_v9 = vpop.permute.xlu1 %1125 }
 0x1d5   : > { %1153 = vrot.lane.b32.xlu0 %v11650_v15, %s10947_s28  ;;  %v1131_v10 = vsel %vm16267_vm8, %v1124_v27, %v11657_v9  ;;  %vm16271_vm8 = vcmask 588800   ;;  %s10967_s28 = smov 7  }
 0x1d6   : > { %1593 = vrot.lane.b32.xlu1 %v11147_v36, %s16314_s21  ;;  %3233 = vmatprep.subr.bf16.mxu0 %v1131_v10 }
 0x1d7   : > { %v1226_v35 = vpop.permute.xlu0 %1225  ;;  %3234 = vmatpush1.bf16.msra.mxu0 %v1130_v18 }
 0x1d8   : > { %v1150_v23 = vpop.permute.xlu1 %1149 }
 0x1d9   : > { %1671 = vrot.lane.b32.xlu0 %v11147_v36, %s10966_s23  ;;  %v1157_v41 = vsel %vm16268_vm9, %v1150_v23, %v11622_v38 }
 0x1da   : > { %893 = vrot.lane.b32.xlu1 %v11650_v15, %s10938_s8  ;;  %3235 = vmatprep.subr.bf16.mxu0 %v1157_v41  ;;  %v1182_v41 = vsel %vm16271_vm8, %v1174_v22, %v1176_v13  ;;  %s16299_s8 = smov 5  }
 0x1db   : > { %v11672_v27 = vpop.permute.xlu0 %1255 }
 0x1dc   : > { %16420 = vst [vmem:[#allocation11_spill] sm:$0xff] %v11672_v27  ;;  %v1148_v44 = vpop.permute.xlu1 %1147 }
 0x1dd   : > { %1667 = vrot.lane.b32.xlu0 %v11605_v24, %s10966_s23  ;;  %v1156_v42 = vsel %vm16268_vm9, %v1148_v44, %v1150_v23  ;;  %vm16309_vm9 = vcmask 457728  }
 0x1de   : > { %1619 = vrot.lane.b32.xlu1 %v11677_v29, %s10964_s15  ;;  %3236 = vmatpush1.bf16.msra.mxu0 %v1156_v42 }
 0x1df   : > { %v1280_v36 = vpop.permute.xlu0 %1279 }
 0x1e0   : > { %v11681_v10 = vpop.permute.xlu1 %1177 }
 0x1e1   : > { %1695 = vrot.lane.b32.xlu0 %v11624_v43, %s10967_s28  ;;  %v1183_v18 = vsel %vm16271_vm8, %v1176_v13, %v11681_v10  ;;  %vm16275_vm8 = vcmask 449536  }
 0x1e2   : > { %1127 = vrot.lane.b32.xlu1 %v11650_v15, %s10946_s30  ;;  %3237 = vmatprep.subr.bf16.mxu0 %v1183_v18  ;;  %s16300_s30 = smov 6   ;;  %v1234_v56 = vsel %vm16275_vm8, %v1226_v35, %v1228_v46 }
 0x1e3   : > { %v1278_v23 = vpop.permute.xlu0 %1277  ;;  %3238 = vmatpush1.bf16.msra.mxu0 %v1182_v41 }
 0x1e4   : > { %v1202_v44 = vpop.permute.xlu1 %1201 }
 0x1e5   : > { %971 = vrot.lane.b32.xlu0 %v11650_v15, %s16297_s20  ;;  %v1209_v42 = vsel %vm16309_vm9, %v1202_v44, %v11648_v50  ;;  %s16440_s20 = smov 51  }
 0x1e6   : > { %1645 = vrot.lane.b32.xlu1 %v11677_v29, %s10965_s22  ;;  %3239 = vmatprep.subr.bf16.mxu0 %v1209_v42 }
 0x1e7   : > { %v11696_v31 = vpop.permute.xlu0 %1307 }
 0x1e8   : > { %16421 = vst [vmem:[#allocation12_spill] sm:$0xff] %v11696_v31  ;;  %v1200_v13 = vpop.permute.xlu1 %1199 }
 0x1e9   : > { %1205 = vrot.lane.b32.xlu0 %v11650_v15, %s16286_s9  ;;  %v1208_v22 = vsel %vm16309_vm9, %v1200_v13, %v1202_v44  ;;  %s16434_s9 = smov 76  }
 0x1ea   : > { %1641 = vrot.lane.b32.xlu1 %v11605_v24, %s10965_s22  ;;  %3240 = vmatpush1.bf16.msra.mxu0 %v1208_v22 }
 0x1eb   : > { %v1332_v18 = vpop.permute.xlu0 %1331 }
 0x1ec   : > { %v11703_v41 = vpop.permute.xlu1 %1229 }
 0x1ed   : > { %1723 = vrot.lane.b32.xlu0 %v11677_v29, %s16300_s30  ;;  %v1235_v42 = vsel %vm16275_vm8, %v1228_v46, %v11703_v41  ;;  %vm16279_vm8 = vcmask 433152  }
 0x1ee   : > { %1669 = vrot.lane.b32.xlu1 %v11624_v43, %s10966_s23  ;;  %3241 = vmatprep.subr.bf16.mxu0 %v1235_v42  ;;  %v1286_v6 = vsel %vm16279_vm8, %v1278_v23, %v1280_v36 }
 0x1ef   : > { %v1330_v44 = vpop.permute.xlu0 %1329  ;;  %3242 = vmatpush1.bf16.msra.mxu0 %v1234_v56 }
 0x1f0   : > { %v1254_v13 = vpop.permute.xlu1 %1253 }
 0x1f1   : > { %1719 = vrot.lane.b32.xlu0 %v11605_v24, %s16300_s30  ;;  %v1261_v22 = vsel %vm16277_vm1, %v1254_v13, %v11672_v27 }
 0x1f2   : > { %945 = vrot.lane.b32.xlu1 %v11650_v15, %s16284_s12  ;;  %3243 = vmatprep.subr.bf16.mxu0 %v1261_v22  ;;  %s10972_s12 = smov 1  }
 0x1f3   : > { %v11718_v52 = vpop.permute.xlu0 %1359 }
 0x1f4   : > { %16422 = vst [vmem:[#allocation13_spill] sm:$0xff] %v11718_v52  ;;  %v1252_v46 = vpop.permute.xlu1 %1251 }
 0x1f5   : > { %1747 = vrot.lane.b32.xlu0 %v11624_v43, %s16299_s8  ;;  %v1260_v56 = vsel %vm16277_vm1, %v1252_v46, %v1254_v13  ;;  %vm16281_vm1 = vcmask 424960  }
 0x1f6   : > { %1179 = vrot.lane.b32.xlu1 %v11650_v15, %s16285_s29  ;;  %3244 = vmatpush1.bf16.msra.mxu0 %v1260_v56  ;;  %s16436_s29 = smov 52  }
 0x1f7   : > { %v1384_v35 = vpop.permute.xlu0 %1383 }
 0x1f8   : > { %v11725_v42 = vpop.permute.xlu1 %1281 }
 0x1f9   : > { %16423 = vst [vmem:[#allocation14_spill] sm:$0xff] %v11725_v42  ;;  %1023 = vrot.lane.b32.xlu0 %v11650_v15, %s10943_s17  ;;  %v1287_v22 = vsel %vm16279_vm8, %v1280_v36, %v11725_v42  ;;  %vm16288_vm8 = vcmask 416768   ;;  %s16430_s17 = smov 79  }
 0x1fa   : > { %1697 = vrot.lane.b32.xlu1 %v11677_v29, %s10967_s28  ;;  %3245 = vmatprep.subr.bf16.mxu0 %v1287_v22 }
 0x1fb   : > { %v1382_v13 = vpop.permute.xlu0 %1381  ;;  %3246 = vmatpush1.bf16.msra.mxu0 %v1286_v6  ;;  %v11748_v6 = vld [vmem:[%s16416_s1 + $0x8] ss:$44 sps:$4 sm:$0xff]  }
 0x1fc   : > { %v1306_v46 = vpop.permute.xlu1 %1305  ;;  %16426 = vst [vmem:[#allocation16_spill] sm:$0xff] %v11748_v6 }
 0x1fd   : > { %1257 = vrot.lane.b32.xlu0 %v11650_v15, %s10951_s26  ;;  %v1313_v56 = vsel %vm16281_vm1, %v1306_v46, %v11696_v31  ;;  %s16439_s26 = smov 53  }
 0x1fe   : > { %1693 = vrot.lane.b32.xlu1 %v11605_v24, %s10967_s28  ;;  %3247 = vmatprep.subr.bf16.mxu0 %v1313_v56  ;;  %v11757_v56 = vld [vmem:[%s16416_s1 + $0x64] ss:$44 sps:$4 sm:$0xff]  }
 0x1ff   : > { %v11740_v42 = vpop.permute.xlu0 %1411  ;;  %16428 = vst [vmem:[#allocation18_spill] sm:$0xff] %v11757_v56 }
 0x200   : > { %16424 = vst [vmem:[#allocation15_spill] sm:$0xff] %v11740_v42  ;;  %v1304_v36 = vpop.permute.xlu1 %1303 }
 0x201   : > { %1775 = vrot.lane.b32.xlu0 %v11677_v29, %s16425_s16  ;;  %v1312_v23 = vsel %vm16281_vm1, %v1304_v36, %v1306_v46  ;;  %v1338_v36 = vsel %vm16288_vm8, %v1330_v44, %v1332_v18  ;;  %vm16291_vm1 = vcmask 408576  }
 0x202   : > { %1721 = vrot.lane.b32.xlu1 %v11624_v43, %s16300_s30  ;;  %3248 = vmatpush1.bf16.msra.mxu0 %v1312_v23  ;;  %s10976_s30 = smov 109  }
 0x203   : > { %v11752_v22 = vpop.permute.xlu0 %2559 }
 0x204   : > { %16427 = vst [vmem:[#allocation17_spill] sm:$0xff] %v11752_v22  ;;  %v11759_v31 = vpop.permute.xlu1 %1333 }
 0x205   : > { %16429 = vst [vmem:[#allocation19_spill] sm:$0xff] %v11759_v31  ;;  %1771 = vrot.lane.b32.xlu0 %v11605_v24, %s16425_s16  ;;  %v1339_v46 = vsel %vm16288_vm8, %v1332_v18, %v11759_v31  ;;  %3250 = vmatmul.mubr.bf16.vlgmr.msra.gmra.mrb[0].mxu0 %v11748_v6  ;;  %v11777_v18 = vld [vmem:[%s16416_s1 + $0x60] ss:$44 sps:$4 sm:$0xff]   ;;  %vm16303_vm8 = vcmask 400384  }
 0x206   : > { %997 = vrot.lane.b32.xlu1 %v11650_v15, %s16430_s17  ;;  %3290 = vmatprep.subr.bf16.mxu0 %v1339_v46  ;;  %16431 = vst [vmem:[#allocation20_spill] sm:$0xff] %v11777_v18  ;;  %s16432_s17 = smov 55   ;;  %v11786_v46 = vld [vmem:[%s16416_s1 + $0xbc] ss:$44 sps:$4 sm:$0xff]  }
 0x207   : > { %v2556_v23 = vpop.permute.xlu0 %2555  ;;  %3291 = vmatpush1.bf16.msra.mxu0 %v1338_v36  ;;  %3259 = vmatprep.mubr.bf16.mxu0 %v11757_v56  ;;  %16433 = vst [vmem:[#allocation21_spill] sm:$0xff] %v11786_v46 }
 0x208   : > { %v1358_v27 = vpop.permute.xlu1 %1357 }
 0x209   : > { %1799 = vrot.lane.b32.xlu0 %v11624_v43, %s10970_s25  ;;  %v1365_v31 = vsel %vm16291_vm1, %v1358_v27, %v11718_v52 }
 0x20a   : > { %1231 = vrot.lane.b32.xlu1 %v11650_v15, %s16432_s17  ;;  %3292 = vmatprep.subr.bf16.mxu0 %v1365_v31  ;;  %s16317_s17 = smov 112  }
 0x20b   : > { %v11781_v44 = vpop.permute.xlu0 %1437 }
 0x20c   : > { %v1356_v36 = vpop.permute.xlu1 %1355 }
 0x20d   : > { %1075 = vrot.lane.b32.xlu0 %v11650_v15, %s16434_s9  ;;  %v1364_v52 = vsel %vm16291_vm1, %v1356_v36, %v1358_v27  ;;  %3260 = vmatmul.mubr.bf16.gmra.mrb[4].mxu0 %v11777_v18  ;;  %v11806_v27 = vld [vmem:[%s16416_s1 + $0xb8] ss:$44 sps:$4 sm:$0xff]   ;;  %vm16331_vm1 = vcmask 392192   ;;  %s16723_s9 = smov 42  }
 0x20e   : > { %1749 = vrot.lane.b32.xlu1 %v11677_v29, %s16299_s8  ;;  %3293 = vmatpush1.bf16.msra.mxu0 %v1364_v52  ;;  %v1390_v52 = vsel %vm16303_vm8, %v1382_v13, %v1384_v35 }
 0x20f   : > { %v11794_v31 = vpop.permute.xlu0 %1461  ;;  %3269 = vmatprep.mubr.bf16.mxu0 %v11786_v46  ;;  %v11816_v46 = vld [vmem:[%s16416_s1 + $0x114] ss:$44 sps:$4 sm:$0xff]  }
 0x210   : > { %v11797_v56 = vpop.permute.xlu1 %1385  ;;  %16437 = vst [vmem:[#allocation23_spill] sm:$0xff] %v11816_v46 }
 0x211   : > { %16435 = vst [vmem:[#allocation22_spill] sm:$0xff] %v11797_v56  ;;  %1309 = vrot.lane.b32.xlu0 %v11650_v15, %s16436_s29  ;;  %v1391_v6 = vsel %vm16303_vm8, %v1384_v35, %v11797_v56  ;;  %s10971_s29 = smov 2   ;;  %vm16308_vm8 = vcmask 130048  }
 0x212   : > { %1745 = vrot.lane.b32.xlu1 %v11605_v24, %s16299_s8  ;;  %3294 = vmatprep.subr.bf16.mxu0 %v1391_v6  ;;  %s10974_s8 = smov 111  }
 0x213   : > { %v11811_v36 = vpop.permute.xlu0 %1459  ;;  %3295 = vmatpush1.bf16.msra.mxu0 %v1390_v52 }
 0x214   : > { %v1410_v56 = vpop.permute.xlu1 %1409 }
 0x215   : > { %1827 = vrot.lane.b32.xlu0 %v11677_v29, %s10971_s29  ;;  %v1417_v35 = vsel %vm16331_vm1, %v1410_v56, %v11740_v42  ;;  %3270 = vmatmul.mubr.bf16.gmra.mrb[8].mxu0 %v11806_v27  ;;  %v11836_v42 = vld [vmem:[%s16416_s1 + $0x110] ss:$44 sps:$4 sm:$0xff]  }
 0x216   : > { %1773 = vrot.lane.b32.xlu1 %v11624_v43, %s16425_s16  ;;  %3296 = vmatprep.subr.bf16.mxu0 %v1417_v35 }
 0x217   : > { %v11825_v13 = vpop.permute.xlu0 %1489  ;;  %3279 = vmatprep.mubr.bf16.mxu0 %v11816_v46  ;;  %v716_v46 = vsel %vm713_vm10, %v11368_v12, %v11310_v59  ;;  %vm16330_vm10 = vcmask 261120  }
 0x218   : > { %v2558_v6 = vpop.permute.xlu1 %2557 }
 0x219   : > { %1823 = vrot.lane.b32.xlu0 %v11605_v24, %s10971_s29  ;;  %v2564_v52 = vsel %vm16309_vm9, %v2558_v6, %v11752_v22  ;;  %v2563_v18 = vsel %vm16309_vm9, %v2556_v23, %v2558_v6  ;;  %v10795_v23 = vld [vmem:[%s16416_s1 + $0x28] ss:$44 sps:$4 sm:$0xff]  }
 0x21a   : > { %1049 = vrot.lane.b32.xlu1 %v11650_v15, %s16438_s27  ;;  %3509 = vmatprep.subr.bf16.mxu1 %v2564_v52  ;;  %v11851_v6 = vld [vmem:[%s16416_s1 + $0x14] ss:$44 sps:$4 sm:$0xff]   ;;  %s16463_s27 = smov 5  }
 0x21b   : > { %v11840_v35 = vpop.permute.xlu0 %1513  ;;  %3510 = vmatpush1.bf16.msra.mxu1 %v2563_v18 }
 0x21c   : > { %v1408_v22 = vpop.permute.xlu1 %1407  ;;  %10008 = vmatprep.subr.bf16.mxu1 %v716_v46  ;;  %v16441_v46 = vmov 0  }
 0x21d   : > { %1851 = vrot.lane.b32.xlu0 %v11624_v43, %s10972_s12  ;;  %v1416_v18 = vsel %vm16331_vm1, %v1408_v22, %v1410_v56  ;;  %3280 = vmatmul.mubr.bf16.gmra.mrb[12].mxu0 %v11836_v42  ;;  %v742_v22 = vsel %vm16310_vm11, %v11378_v16, %v11318_v61  ;;  %v10796_v61 = vld [vmem:[%s16416_s1 + $0x80] ss:$44 sps:$4 sm:$0xff]   ;;  %vm16460_vm11 = vcmask 637952  }
 0x21e   : > { %1283 = vrot.lane.b32.xlu1 %v11650_v15, %s16439_s26  ;;  %3297 = vmatpush1.bf16.msra.mxu0 %v1416_v18  ;;  %v768_v18 = vsel %vm765_vm12, %v11388_v20, %v11326_v63  ;;  %v794_v20 = vsel %vm791_vm13, %v11398_v25, %v11334_v1  ;;  %vm1493_vm12 = vcmask 244736   ;;  %v586_v1 = vsel %vm16306_vm4, %v11324_v62, %v11270_v49  ;;  %v10797_v25 = vld [vmem:[%s16416_s1 + $0xd8] ss:$44 sps:$4 sm:$0xff]   ;;  %s16442_s26 = smov 75  }
 0x21f   : > { %v11859_v59 = vpop.permute.xlu0 %1511  ;;  %9957 = vmatmul.mubr.msk.bf16.vlgmr.msra.gmra.mrb[0].mxu1 %vm16308_vm8, %v10795_v23  ;;  %3322 = vmatprep.mubr.bf16.mxu0 %v11851_v6  ;;  %v534_v23 = vsel %vm16304_vm2, %v11308_v58, %v11254_v45  ;;  %vm1467_vm2 = vcmask 252928   ;;  %v560_v58 = vsel %vm16307_vm3, %v11316_v60, %v11262_v47  ;;  %v612_v62 = vsel %vm16305_vm5, %v11332_v0, %v11278_v51 }
 0x220   : > { %10009 = vmatpush3.bf16.msra.mxu1 %v11677_v29  ;;  %v1436_v12 = vpop.permute.xlu1 %1435  ;;  %3551 = vmatprep.mubr.bf16.mxu1 %v16441_v46  ;;  %v1468_v47 = vsel %vm1467_vm2, %v11811_v36, %v11794_v31  ;;  %vm16311_vm13 = vcmask 236544   ;;  %v638_v0 = vsel %vm635_vm6, %v11340_v2, %v11286_v53  ;;  %vm1545_vm6 = vcmask 228352  }
 0x221   : > { %1335 = vrot.lane.b32.xlu0 %v11650_v15, %s16440_s20  ;;  %10010 = vmatprep.subr.bf16.mxu1 %v742_v22  ;;  %v1443_v56 = vsel %vm16330_vm10, %v1436_v12, %v11781_v44  ;;  %s10975_s20 = smov 110   ;;  %vm1623_vm5 = vcmask 203776   ;;  %vm1649_vm4 = vcmask 195584   ;;  %vm16451_vm3 = vcmask 596992  }
 0x222   : > { %1801 = vrot.lane.b32.xlu1 %v11677_v29, %s10970_s25  ;;  %3298 = vmatprep.subr.bf16.mxu0 %v1443_v56 }
 0x223   : > { %v11874_v52 = vpop.permute.xlu0 %1541 }
 0x224   : > { %10011 = vmatpush3.bf16.msra.mxu1 %v534_v23  ;;  %v1434_v16 = vpop.permute.xlu1 %1433 }
 0x225   : > { %1569 = vrot.lane.b32.xlu0 %v11650_v15, %s10962_s19  ;;  %v1442_v22 = vsel %vm16330_vm10, %v1434_v16, %v1436_v12  ;;  %10012 = vmatprep.subr.bf16.mxu1 %v768_v18  ;;  %v1520_v16 = vsel %vm16311_vm13, %v11859_v59, %v11840_v35  ;;  %v10889_v18 = vld [vmem:[%s16416_s1 + $0x4] ss:$44 sps:$4 sm:$0xff]   ;;  %s16456_s19 = smov 6  }
 0x226   : > { %1797 = vrot.lane.b32.xlu1 %v11605_v24, %s10970_s25  ;;  %3299 = vmatpush1.bf16.msra.mxu0 %v1442_v22 }
 0x227   : > { %v11890_v45 = vpop.permute.xlu0 %1565  ;;  %9958 = vmatmul.mubr.msk.bf16.gmra.mrb[4].mxu1 %vm16308_vm8, %v10796_v61 }
 0x228   : > { %10013 = vmatpush3.bf16.msra.mxu1 %v560_v58  ;;  %v11896_v63 = vpop.permute.xlu1 %1463  ;;  %3561 = vmatprep.mubr.bf16.mxu1 %v16441_v46 }
 0x229   : > { %1595 = vrot.lane.b32.xlu0 %v11650_v15, %s16314_s21  ;;  %10014 = vmatprep.subr.bf16.mxu1 %v794_v20  ;;  %v1469_v12 = vsel %vm1467_vm2, %v11794_v31, %v11896_v63  ;;  %v820_v31 = vsel %vm817_vm14, %v11408_v30, %v11342_v3  ;;  %v846_v30 = vsel %vm843_vm15, %v11418_v34, %v11472_v19  ;;  %v10798_v34 = vld [vmem:[%s16416_s1 + $0x130] ss:$44 sps:$4 sm:$0xff]   ;;  %vm1571_vm14 = vcmask 220160   ;;  %s16320_s21 = smov 88  }
 0x22a   : > { %1825 = vrot.lane.b32.xlu1 %v11624_v43, %s10971_s29  ;;  %3300 = vmatprep.subr.bf16.mxu0 %v1469_v12  ;;  %vm1597_vm15 = vcmask 211968  }
 0x22b   : > { %v1564_v60 = vpop.permute.xlu0 %1563  ;;  %3301 = vmatpush1.bf16.msra.mxu0 %v1468_v47 }
 0x22c   : > { %10015 = vmatpush3.bf16.msra.mxu1 %v586_v1  ;;  %v1488_v56 = vpop.permute.xlu1 %1487  ;;  %v1572_v47 = vsel %vm1571_vm14, %v1564_v60, %v11890_v45 }
 0x22d   : > { %1885 = vrot.lane.b32.xlu0 %v11650_v15, %s16317_s17  ;;  %10016 = vmatprep.subr.bf16.mxu1 %v820_v31  ;;  %v1495_v36 = vsel %vm1493_vm12, %v1488_v56, %v11825_v13 }
 0x22e   : > { %1101 = vrot.lane.b32.xlu1 %v11650_v15, %s16442_s26  ;;  %3302 = vmatprep.subr.bf16.mxu0 %v1495_v36  ;;  %s16444_s26 = smov 50  }
 0x22f   : > { %v11927_v49 = vpop.permute.xlu0 %1591  ;;  %9959 = vmatmul.mubr.msk.bf16.gmra.mrb[8].mxu1 %vm16308_vm8, %v10797_v25 }
 0x230   : > { %10017 = vmatpush3.bf16.msra.mxu1 %v612_v62  ;;  %v1486_v3 = vpop.permute.xlu1 %1485  ;;  %3571 = vmatprep.mubr.bf16.mxu1 %v16441_v46 }
 0x231   : > { %1881 = vrot.lane.b32.xlu0 %v11624_v43, %s16317_s17  ;;  %v1494_v23 = vsel %vm1493_vm12, %v1486_v3, %v1488_v56  ;;  %10018 = vmatprep.subr.bf16.mxu1 %v846_v30 }
 0x232   : > { %1543 = vrot.lane.b32.xlu1 %v11650_v15, %s10917_s18  ;;  %3303 = vmatpush1.bf16.msra.mxu0 %v1494_v23  ;;  %s16443_s18 = smov 48  }
 0x233   : > { %v1590_v51 = vpop.permute.xlu0 %1589 }
 0x234   : > { %10019 = vmatpush3.bf16.msra.mxu1 %v638_v0  ;;  %v11948_v19 = vpop.permute.xlu1 %1515  ;;  %v1598_v36 = vsel %vm1597_vm15, %v1590_v51, %v11927_v49 }
 0x235   : > { %1909 = vrot.lane.b32.xlu0 %v11677_v29, %s10974_s8  ;;  %v1521_v61 = vsel %vm16311_vm13, %v11840_v35, %v11948_v19  ;;  %vm16462_vm13 = vcmask 441344  }
 0x236   : > { %1853 = vrot.lane.b32.xlu1 %v11677_v29, %s10972_s12  ;;  %3304 = vmatprep.subr.bf16.mxu0 %v1521_v61 }
 0x237   : > { %v1618_v53 = vpop.permute.xlu0 %1617  ;;  %3305 = vmatpush1.bf16.msra.mxu0 %v1520_v16  ;;  %9960 = vmatmul.mubr.msk.bf16.gmra.mrb[12].mxu1 %vm16308_vm8, %v10798_v34  ;;  %vm16455_vm8 = vcmask 654336  }
 0x238   : > { %v1540_v2 = vpop.permute.xlu1 %1539  ;;  %3614 = vmatprep.mubr.bf16.mxu1 %v10889_v18 }
 0x239   : > { %1413 = vrot.lane.b32.xlu0 %v11650_v15, %s16443_s18  ;;  %v1547_v35 = vsel %vm1545_vm6, %v1540_v2, %v11874_v52 }
 0x23a   : > { %1849 = vrot.lane.b32.xlu1 %v11605_v24, %s10972_s12  ;;  %3306 = vmatprep.subr.bf16.mxu0 %v1547_v35 }
 0x23b   : > { %v1616_v59 = vpop.permute.xlu0 %1615 }
 0x23c   : > { %v1538_v22 = vpop.permute.xlu1 %1537 }
 0x23d   : > { %1647 = vrot.lane.b32.xlu0 %v11650_v15, %s10965_s22  ;;  %v1546_v58 = vsel %vm1545_vm6, %v1538_v22, %v1540_v2  ;;  %s16445_s22 = smov 49  }
 0x23e   : > { %1361 = vrot.lane.b32.xlu1 %v11650_v15, %s16444_s26  ;;  %3307 = vmatpush1.bf16.msra.mxu0 %v1546_v58  ;;  %s10986_s26 = smov 82  }
 0x23f   : > { %v11975_v20 = vpop.permute.xlu0 %1643 }
 0x240   : > { %v11977_v12 = vpop.permute.xlu1 %1567 }
 0x241   : > { %1937 = vrot.lane.b32.xlu0 %v11650_v15, %s10975_s20  ;;  %v1573_v24 = vsel %vm1571_vm14, %v11890_v45, %v11977_v12  ;;  %v664_v45 = vsel %vm661_vm7, %v11348_v4, %v11294_v55  ;;  %vm16446_vm7 = vcmask 801792  }
 0x242   : > { %1883 = vrot.lane.b32.xlu1 %v11677_v29, %s16317_s17  ;;  %3308 = vmatprep.subr.bf16.mxu0 %v1573_v24 }
 0x243   : > { %v920_v1 = vpop.permute.xlu0 %919  ;;  %3309 = vmatpush1.bf16.msra.mxu0 %v1572_v47 }
 0x244   : > { %v868_v25 = vpop.permute.xlu1 %867 }
 0x245   : > { %1933 = vrot.lane.b32.xlu0 %v11624_v43, %s10975_s20  ;;  %v872_v56 = vsel %vm869_vm0, %v11480_v21, %v868_v25  ;;  %vm16447_vm0 = vcmask 990208  }
 0x246   : > { %1387 = vrot.lane.b32.xlu1 %v11650_v15, %s16445_s22  ;;  %10020 = vmatprep.subr.bf16.mxu1 %v872_v56  ;;  %v12119_v56 = vld [vmem:[%s16416_s1 + $0x10] ss:$44 sps:$4 sm:$0xff]   ;;  %s16480_s22 = smov 84  }
 0x247   : > { %v1154_v60 = vpop.permute.xlu0 %1153  ;;  %10021 = vmatpush3.bf16.msra.mxu1 %v664_v45 }
 0x248   : > { %v11997_v31 = vpop.permute.xlu1 %1593 }
 0x249   : > { %1961 = vrot.lane.b32.xlu0 %v11677_v29, %s10976_s30  ;;  %v1599_v21 = vsel %vm1597_vm15, %v11927_v49, %v11997_v31  ;;  %v690_v49 = vsel %vm16447_vm0, %v11358_v8, %v11302_v57  ;;  %vm16450_vm0 = vcmask 793600  }
 0x24a   : > { %1621 = vrot.lane.b32.xlu1 %v11650_v15, %s10964_s15  ;;  %3310 = vmatprep.subr.bf16.mxu0 %v1599_v21  ;;  %v924_v0 = vsel %vm16450_vm0, %v11517_v40, %v920_v1  ;;  %s16452_s15 = smov 32   ;;  %vm16454_vm0 = vcmask 588800   ;;  %v12125_v21 = vld [vmem:[#allocation2 + $0x8] sm:$0xff] }
 0x24b   : > { %v12008_v55 = vpop.permute.xlu0 %1671  ;;  %3311 = vmatpush1.bf16.msra.mxu0 %v1598_v36 }
 0x24c   : > { %v894_v4 = vpop.permute.xlu1 %893 }
 0x24d   : > { %1465 = vrot.lane.b32.xlu0 %v11650_v15, %s10958_s13  ;;  %v898_v62 = vsel %vm16446_vm7, %v11444_v48, %v894_v4  ;;  %v1624_v48 = vsel %vm1623_vm5, %v1616_v59, %v1618_v53  ;;  %s16448_s13 = smov 108   ;;  %vm16449_vm7 = vcmask 605184  }
 0x24e   : > { %1911 = vrot.lane.b32.xlu1 %v11650_v15, %s10974_s8  ;;  %10022 = vmatprep.subr.bf16.mxu1 %v898_v62 }
 0x24f   : > { %v1668_v3 = vpop.permute.xlu0 %1667  ;;  %10023 = vmatpush3.bf16.msra.mxu1 %v690_v49 }
 0x250   : > { %v12019_v30 = vpop.permute.xlu1 %1619 }
 0x251   : > { %1699 = vrot.lane.b32.xlu0 %v11650_v15, %s10967_s28  ;;  %v1625_v23 = vsel %vm1623_vm5, %v1618_v53, %v12019_v30  ;;  %s16363_s28 = smov 107  }
 0x252   : > { %1907 = vrot.lane.b32.xlu1 %v11624_v43, %s10974_s8  ;;  %3312 = vmatprep.subr.bf16.mxu0 %v1625_v23 }
 0x253   : > { %v12028_v51 = vpop.permute.xlu0 %1695  ;;  %3313 = vmatpush1.bf16.msra.mxu0 %v1624_v48  ;;  %3615 = vmatmul.mubr.bf16.vlgmr.msra.gmra.mrb[16].mxu1 %v11505_v37  ;;  %v1158_v37 = vsel %vm16451_vm3, %v11622_v38, %v1154_v60  ;;  %vm1675_vm3 = vcmask 64512  }
 0x254   : > { %v1128_v57 = vpop.permute.xlu1 %1127  ;;  %3622 = vmatprep.mubr.bf16.mxu1 %v11515_v39 }
 0x255   : > { %1989 = vrot.lane.b32.xlu0 %v11650_v15, %s16448_s13  ;;  %v1132_v8 = vsel %vm16449_vm7, %v11657_v9, %v1128_v57  ;;  %vm16453_vm7 = vcmask 785408   ;;  %v12161_v57 = vld [vmem:[%s16416_s1 + $0x68] ss:$44 sps:$4 sm:$0xff]  }
 0x256   : > { %1935 = vrot.lane.b32.xlu1 %v11677_v29, %s10975_s20  ;;  %10048 = vmatprep.subr.bf16.mxu1 %v1132_v8 }
 0x257   : > { %v972_v34 = vpop.permute.xlu0 %971  ;;  %10049 = vmatpush3.bf16.msra.mxu1 %v924_v0 }
 0x258   : > { %v12042_v61 = vpop.permute.xlu1 %1645  ;;  %10050 = vmatprep.subr.bf16.mxu1 %v1158_v37 }
 0x259   : > { %1985 = vrot.lane.b32.xlu0 %v11624_v43, %s16448_s13  ;;  %v1651_v39 = vsel %vm1649_vm4, %v11975_v20, %v12042_v61 }
 0x25a   : > { %1439 = vrot.lane.b32.xlu1 %v11650_v15, %s16452_s15  ;;  %3314 = vmatprep.subr.bf16.mxu0 %v1651_v39  ;;  %s16328_s15 = smov 86  }
 0x25b   : > { %v1206_v40 = vpop.permute.xlu0 %1205  ;;  %3623 = vmatmul.mubr.bf16.gmra.mrb[20].mxu1 %v11535_v5 }
 0x25c   : > { %v1642_v9 = vpop.permute.xlu1 %1641  ;;  %3630 = vmatprep.mubr.bf16.mxu1 %v11544_v7  ;;  %v12066_v7 = vld [vmem:[#allocation2 + $0x20] sm:$0xff] }
 0x25d   : > { %2013 = vrot.lane.b32.xlu0 %v11677_v29, %s16363_s28  ;;  %v1650_v38 = vsel %vm1649_vm4, %v1642_v9, %v11975_v20  ;;  %v1210_v20 = vsel %vm16309_vm9, %v11648_v50, %v1206_v40  ;;  %vm16459_vm9 = vcmask 449536   ;;  %v12181_v40 = vld [vmem:[%s16416_s1 + $0xc4] ss:$44 sps:$4 sm:$0xff]  }
 0x25e   : > { %1673 = vrot.lane.b32.xlu1 %v11650_v15, %s10966_s23  ;;  %3315 = vmatpush1.bf16.msra.mxu0 %v1650_v38  ;;  %s16322_s23 = smov 105   ;;  %v12188_v38 = vld [vmem:[%s16416_s1 + $0xc0] ss:$44 sps:$4 sm:$0xff]  }
 0x25f   : > { %v12059_v16 = vpop.permute.xlu0 %1723 }
 0x260   : > { %v1670_v53 = vpop.permute.xlu1 %1669 }
 0x261   : > { %1517 = vrot.lane.b32.xlu0 %v11650_v15, %s10961_s14  ;;  %v1677_v5 = vsel %vm1675_vm3, %v1670_v53, %v12008_v55  ;;  %v1676_v2 = vsel %vm1675_vm3, %v1668_v3, %v1670_v53  ;;  %s16334_s14 = smov 106   ;;  %v16461_v3 = vld [vmem:[#allocation11_spill] sm:$0xff] }
 0x262   : > { %1963 = vrot.lane.b32.xlu1 %v11650_v15, %s10976_s30  ;;  %3316 = vmatprep.subr.bf16.mxu0 %v1677_v5  ;;  %v16466_v5 = vld [vmem:[#allocation8_spill] sm:$0xff] }
 0x263   : > { %v1720_v18 = vpop.permute.xlu0 %1719  ;;  %3317 = vmatpush1.bf16.msra.mxu0 %v1676_v2  ;;  %3631 = vmatmul.mubr.bf16.gmra.mrb[24].mxu1 %v11565_v14 }
 0x264   : > { %v946_v35 = vpop.permute.xlu1 %945  ;;  %3638 = vmatprep.mubr.bf16.mxu1 %v11574_v17  ;;  %v976_v17 = vsel %vm16455_vm8, %v11555_v11, %v972_v34  ;;  %vm1727_vm8 = vcmask 48128  }
 0x265   : > { %1939 = vrot.lane.b32.xlu0 %v12066_v7, %s10975_s20  ;;  %v950_v59 = vsel %vm16453_vm7, %v11470_v54, %v946_v35  ;;  %vm1701_vm7 = vcmask 56320  }
 0x266   : > { %1959 = vrot.lane.b32.xlu1 %v11624_v43, %s10976_s30  ;;  %10051 = vmatpush3.bf16.msra.mxu1 %v950_v59  ;;  %v12202_v59 = vld [vmem:[#allocation2 + $0x10] sm:$0xff] }
 0x267   : > { %v12078_v22 = vpop.permute.xlu0 %1747 }
 0x268   : > { %v1180_v58 = vpop.permute.xlu1 %1179 }
 0x269   : > { %2041 = vrot.lane.b32.xlu0 %v11650_v15, %s16334_s14  ;;  %v1184_v14 = vsel %vm16454_vm0, %v11681_v10, %v1180_v58  ;;  %vm16457_vm0 = vcmask 646144  }
 0x26a   : > { %1987 = vrot.lane.b32.xlu1 %v11677_v29, %s16448_s13  ;;  %10052 = vmatprep.subr.bf16.mxu1 %v1184_v14  ;;  %v12209_v14 = vld [vmem:[%s16416_s1 + $0x11c] ss:$44 sps:$4 sm:$0xff]  }
 0x26b   : > { %v1024_v54 = vpop.permute.xlu0 %1023  ;;  %10053 = vmatpush3.bf16.msra.mxu1 %v976_v17  ;;  %v16470_v17 = vld [vmem:[#allocation10_spill] sm:$0xff] }
 0x26c   : > { %v12090_v24 = vpop.permute.xlu1 %1697  ;;  %10054 = vmatprep.subr.bf16.mxu1 %v1210_v20  ;;  %3639 = vmatmul.mubr.bf16.gmra.mrb[28].mxu1 %v11592_v26 }
 0x26d   : > { %2037 = vrot.lane.b32.xlu0 %v11624_v43, %s16334_s14  ;;  %v1703_v11 = vsel %vm1701_vm7, %v12028_v51, %v12090_v24  ;;  %3679 = vmatprep.mubr.bf16.mxu1 %v11599_v32 }
 0x26e   : > { %1491 = vrot.lane.b32.xlu1 %v11650_v15, %s16312_s11  ;;  %3318 = vmatprep.subr.bf16.mxu0 %v1703_v11  ;;  %v12218_v11 = vld [vmem:[%s16416_s1 + $0x118] ss:$44 sps:$4 sm:$0xff]   ;;  %s10987_s11 = smov 63  }
 0x26f   : > { %v1258_v10 = vpop.permute.xlu0 %1257 }
 0x270   : > { %v1694_v50 = vpop.permute.xlu1 %1693  ;;  %v1262_v23 = vsel %vm16462_vm13, %v16461_v3, %v1258_v10  ;;  %vm16467_vm13 = vcmask 629760   ;;  %v16472_v10 = vld [vmem:[#allocation12_spill] sm:$0xff]  ;;  %v16474_v3 = vld [vmem:[#allocation9_spill] sm:$0xff] }
 0x271   : > { %2065 = vrot.lane.b32.xlu0 %v11677_v29, %s16322_s23  ;;  %v1702_v43 = vsel %vm1701_vm7, %v1694_v50, %v12028_v51 }
 0x272   : > { %1725 = vrot.lane.b32.xlu1 %v11650_v15, %s16456_s19  ;;  %3319 = vmatpush1.bf16.msra.mxu0 %v1702_v43 }
 0x273   : > { %v12107_v26 = vpop.permute.xlu0 %1775 }
 0x274   : > { %v1722_v47 = vpop.permute.xlu1 %1721 }
 0x275   : > { %1777 = vrot.lane.b32.xlu0 %v11650_v15, %s16425_s16  ;;  %v1729_v32 = vsel %vm1727_vm8, %v1722_v47, %v12059_v16  ;;  %v1728_v1 = vsel %vm1727_vm8, %v1720_v18, %v1722_v47  ;;  %s16458_s16 = smov 104  }
 0x276   : > { %2015 = vrot.lane.b32.xlu1 %v11650_v15, %s16363_s28  ;;  %3320 = vmatprep.subr.bf16.mxu0 %v1729_v32 }
 0x277   : > { %v1772_v25 = vpop.permute.xlu0 %1771  ;;  %3321 = vmatpush1.bf16.msra.mxu0 %v1728_v1 }
 0x278   : > { %v998_v45 = vpop.permute.xlu1 %997 }
 0x279   : > { %1991 = vrot.lane.b32.xlu0 %v12066_v7, %s16448_s13  ;;  %v1002_v60 = vsel %vm16457_vm0, %v11495_v28, %v998_v45  ;;  %v1028_v28 = vsel %vm16460_vm11, %v11601_v33, %v1024_v54  ;;  %vm1753_vm0 = vcmask 39936   ;;  %v12240_v45 = vld [vmem:[%s16416_s1 + $0x1c] ss:$44 sps:$4 sm:$0xff]  }
 0x27a   : > { %2011 = vrot.lane.b32.xlu1 %v12125_v21, %s16363_s28  ;;  %10055 = vmatpush3.bf16.msra.mxu1 %v1002_v60 }
 0x27b   : > { %v12129_v36 = vpop.permute.xlu0 %1799  ;;  %3323 = vmatmul.mubr.bf16.vlgmr.msra.gmra.mrb[0].mxu0 %v12119_v56 }
 0x27c   : > { %v1232_v4 = vpop.permute.xlu1 %1231 }
 0x27d   : > { %2093 = vrot.lane.b32.xlu0 %v11650_v15, %s16458_s16  ;;  %v1236_v62 = vsel %vm16459_vm9, %v11703_v41, %v1232_v4  ;;  %v12146_v15 = vld [vmem:[#allocation2 + $0x18] sm:$0xff]  ;;  %vm16464_vm9 = vcmask 31744  }
 0x27e   : > { %2039 = vrot.lane.b32.xlu1 %v11677_v29, %s16334_s14  ;;  %10056 = vmatprep.subr.bf16.mxu1 %v1236_v62  ;;  %v12154_v41 = vld [vmem:[%s16416_s1 + $0x6c] ss:$44 sps:$4 sm:$0xff]   ;;  %vm16465_vm11 = vmmov %vm16464_vm9 }
 0x27f   : > { %v1076_v49 = vpop.permute.xlu0 %1075  ;;  %10057 = vmatpush3.bf16.msra.mxu1 %v1028_v28  ;;  %3332 = vmatprep.mubr.bf16.mxu0 %v12154_v41 }
 0x280   : > { %v12142_v48 = vpop.permute.xlu1 %1749  ;;  %10058 = vmatprep.subr.bf16.mxu1 %v1262_v23 }
 0x281   : > { %2089 = vrot.lane.b32.xlu0 %v12125_v21, %s16458_s16  ;;  %v1755_v33 = vsel %vm1753_vm0, %v12078_v22, %v12142_v48 }
 0x282   : > { %1751 = vrot.lane.b32.xlu1 %v12146_v15, %s16463_s27  ;;  %3363 = vmatprep.subr.bf16.mxu0 %v1755_v33  ;;  %s16318_s27 = smov 87  }
 0x283   : > { %v1310_v51 = vpop.permute.xlu0 %1309  ;;  %3333 = vmatmul.mubr.bf16.gmra.mrb[4].mxu0 %v12161_v57 }
 0x284   : > { %v1746_v8 = vpop.permute.xlu1 %1745  ;;  %3342 = vmatprep.mubr.bf16.mxu0 %v12181_v40 }
 0x285   : > { %2116 = vrot.lane.b32.xlu0 %v11677_v29, %s16320_s21  ;;  %v1754_v0 = vsel %vm1753_vm0, %v1746_v8, %v12078_v22  ;;  %v16468_v22 = vld [vmem:[#allocation14_spill] sm:$0xff] }
 0x286   : > { %1965 = vrot.lane.b32.xlu1 %v12066_v7, %s10976_s30  ;;  %3364 = vmatpush1.bf16.msra.mxu0 %v1754_v0  ;;  %v16476_v0 = vld [vmem:[#allocation16_spill] sm:$0xff]  ;;  %s16326_s30 = smov 64  }
 0x287   : > { %v12171_v34 = vpop.permute.xlu0 %1827 }
 0x288   : > { %v1774_v37 = vpop.permute.xlu1 %1773 }
 0x289   : > { %1829 = vrot.lane.b32.xlu0 %v12146_v15, %s10971_s29  ;;  %v1781_v39 = vsel %vm16464_vm9, %v1774_v37, %v12107_v26  ;;  %v1780_v29 = vsel %vm16465_vm11, %v1772_v25, %v1774_v37  ;;  %vm16469_vm9 = vcmask 433152   ;;  %vm16471_vm11 = vcmask 621568   ;;  %v16477_v37 = vld [vmem:[#allocation19_spill] sm:$0xff] }
 0x28a   : > { %2067 = vrot.lane.b32.xlu1 %v12146_v15, %s16322_s23  ;;  %3365 = vmatprep.subr.bf16.mxu0 %v1781_v39  ;;  %v1080_v54 = vsel %vm16471_vm11, %v16470_v17, %v1076_v49  ;;  %vm16316_vm11 = vcmask 15360   ;;  %v16482_v17 = vld [vmem:[#allocation21_spill] sm:$0xff] }
 0x28b   : > { %v1824_v9 = vpop.permute.xlu0 %1823  ;;  %3366 = vmatpush1.bf16.msra.mxu0 %v1780_v29 }
 0x28c   : > { %v1050_v53 = vpop.permute.xlu1 %1049  ;;  %3343 = vmatmul.mubr.bf16.gmra.mrb[8].mxu0 %v12188_v38 }
 0x28d   : > { %2043 = vrot.lane.b32.xlu0 %v12066_v7, %s16334_s14  ;;  %v1054_v2 = vsel %vm16467_vm13, %v16466_v5, %v1050_v53  ;;  %vm1805_vm13 = vcmask 23552   ;;  %3352 = vmatprep.mubr.bf16.mxu0 %v12209_v14  ;;  %v16479_v53 = vld [vmem:[#allocation18_spill] sm:$0xff]  ;;  %s11002_s14 = smov 10  }
 0x28e   : > { %2063 = vrot.lane.b32.xlu1 %v12125_v21, %s16322_s23  ;;  %10059 = vmatpush3.bf16.msra.mxu1 %v1054_v2 }
 0x28f   : > { %v12198_v18 = vpop.permute.xlu0 %1851 }
 0x290   : > { %v1284_v35 = vpop.permute.xlu1 %1283 }
 0x291   : > { %2144 = vrot.lane.b32.xlu0 %v12146_v15, %s16318_s27  ;;  %v1288_v58 = vsel %vm16469_vm9, %v16468_v22, %v1284_v35  ;;  %vm16473_vm9 = vcmask 424960   ;;  %v16481_v22 = vld [vmem:[#allocation20_spill] sm:$0xff] }
 0x292   : > { %2091 = vrot.lane.b32.xlu1 %v12202_v59, %s16458_s16  ;;  %10060 = vmatprep.subr.bf16.mxu1 %v1288_v58  ;;  %v1314_v50 = vsel %vm16473_vm9, %v16472_v10, %v1310_v51  ;;  %vm16475_vm9 = vcmask 613376  }
 0x293   : > { %v1336_v20 = vpop.permute.xlu0 %1335  ;;  %10061 = vmatpush3.bf16.msra.mxu1 %v1080_v54 }
 0x294   : > { %v12223_v43 = vpop.permute.xlu1 %1801  ;;  %10062 = vmatprep.subr.bf16.mxu1 %v1314_v50  ;;  %3353 = vmatmul.mubr.bf16.gmra.mrb[12].mxu0 %v12218_v11 }
 0x295   : > { %2140 = vrot.lane.b32.xlu0 %v12125_v21, %s16318_s27  ;;  %v1807_v47 = vsel %vm1805_vm13, %v12129_v36, %v12223_v43  ;;  %3395 = vmatprep.mubr.bf16.mxu0 %v12240_v45 }
 0x296   : > { %1803 = vrot.lane.b32.xlu1 %v12146_v15, %s10970_s25  ;;  %3367 = vmatprep.subr.bf16.mxu0 %v1807_v47  ;;  %s16324_s25 = smov 85  }
 0x297   : > { %v1570_v32 = vpop.permute.xlu0 %1569 }
 0x298   : > { %v1798_v1 = vpop.permute.xlu1 %1797 }
 0x299   : > { %2168 = vrot.lane.b32.xlu0 %v12202_v59, %s16328_s15  ;;  %v1806_v25 = vsel %vm1805_vm13, %v1798_v1, %v12129_v36 }
 0x29a   : > { %2017 = vrot.lane.b32.xlu1 %v12066_v7, %s16363_s28  ;;  %3368 = vmatpush1.bf16.msra.mxu0 %v1806_v25 }
 0x29b   : > { %v1596_v60 = vpop.permute.xlu0 %1595 }
 0x29c   : > { %v1826_v4 = vpop.permute.xlu1 %1825  ;;  %v1600_v50 = vsel %vm1597_vm15, %v11997_v31, %v1596_v60  ;;  %v16485_v31 = vld [vmem:[#allocation23_spill] sm:$0xff]  ;;  %vm16487_vm15 = vcmask 400384  }
 0x29d   : > { %2166 = vrot.lane.b32.xlu0 %v12125_v21, %s16328_s15  ;;  %v1833_v36 = vsel %vm16316_vm11, %v1826_v4, %v12171_v34  ;;  %v1832_v62 = vsel %vm16316_vm11, %v1824_v9, %v1826_v4  ;;  %vm16478_vm11 = vcmask 416768   ;;  %v1574_v9 = vsel %vm1571_vm14, %v11977_v12, %v1570_v32  ;;  %v16486_v4 = vld [vmem:[#allocation22_spill] sm:$0xff] }
 0x29e   : > { %2118 = vrot.lane.b32.xlu1 %v12146_v15, %s16320_s21  ;;  %3369 = vmatprep.subr.bf16.mxu0 %v1833_v36  ;;  %v1340_v39 = vsel %vm16478_vm11, %v16477_v37, %v1336_v20  ;;  %v16483_v20 = vld [vmem:[#allocation13_spill] sm:$0xff]  ;;  %vm1889_vm14 = vcmask 916480   ;;  %vm1915_vm11 = vcmask 908288  }
 0x29f   : > { %v12252_v28 = vpop.permute.xlu0 %1885  ;;  %3370 = vmatpush1.bf16.msra.mxu0 %v1832_v62 }
 0x2a0   : > { %v1102_v49 = vpop.permute.xlu1 %1101 }
 0x2a1   : > { %2194 = vrot.lane.b32.xlu0 %v12202_v59, %s16324_s25  ;;  %v1106_v23 = vsel %vm16475_vm9, %v16474_v3, %v1102_v49  ;;  %vm1857_vm9 = vcmask 7168   ;;  %v16488_v3 = vld [vmem:[#allocation15_spill] sm:$0xff] }
 0x2a2   : > { %2114 = vrot.lane.b32.xlu1 %v12125_v21, %s16320_s21  ;;  %10063 = vmatpush3.bf16.msra.mxu1 %v1106_v23 }
 0x2a3   : > { %v1882_v33 = vpop.permute.xlu0 %1881 }
 0x2a4   : > { %v1544_v51 = vpop.permute.xlu1 %1543 }
 0x2a5   : > { %1887 = vrot.lane.b32.xlu0 %v12066_v7, %s16317_s17  ;;  %v1548_v8 = vsel %vm1545_vm6, %v11874_v52, %v1544_v51  ;;  %3680 = vmatmul.mubr.bf16.vlgmr.msra.gmra.mrb[32].mxu1 %v16476_v0  ;;  %vm16484_vm6 = vcmask 408576   ;;  %s10989_s17 = smov 62  }
 0x2a6   : > { %2142 = vrot.lane.b32.xlu1 %v12202_v59, %s16318_s27  ;;  %10088 = vmatprep.subr.bf16.mxu1 %v1548_v8 }
 0x2a7   : > { %v12269_v29 = vpop.permute.xlu0 %1909  ;;  %10089 = vmatpush3.bf16.msra.mxu1 %v1340_v39  ;;  %3687 = vmatprep.mubr.bf16.mxu1 %v16479_v53 }
 0x2a8   : > { %v12274_v5 = vpop.permute.xlu1 %1853  ;;  %10090 = vmatprep.subr.bf16.mxu1 %v1574_v9 }
 0x2a9   : > { %2120 = vrot.lane.b32.xlu0 %v12066_v7, %s16320_s21  ;;  %v1859_v52 = vsel %vm1857_vm9, %v12198_v18, %v12274_v5  ;;  %s10990_s21 = smov 61  }
 0x2aa   : > { %1855 = vrot.lane.b32.xlu1 %v12146_v15, %s10972_s12  ;;  %3371 = vmatprep.subr.bf16.mxu0 %v1859_v52  ;;  %s10984_s12 = smov 83  }
 0x2ab   : > { %v1414_v2 = vpop.permute.xlu0 %1413 }
 0x2ac   : > { %v1850_v35 = vpop.permute.xlu1 %1849  ;;  %v1418_v23 = vsel %vm16331_vm1, %v16488_v3, %v1414_v2  ;;  %vm16499_vm1 = vcmask 654336  }
 0x2ad   : > { %2222 = vrot.lane.b32.xlu0 %v12146_v15, %s16480_s22  ;;  %v1858_v12 = vsel %vm1857_vm9, %v1850_v35, %v12198_v18  ;;  %3688 = vmatmul.mubr.bf16.gmra.mrb[36].mxu1 %v16481_v22 }
 0x2ae   : > { %2069 = vrot.lane.b32.xlu1 %v12066_v7, %s16322_s23  ;;  %3372 = vmatpush1.bf16.msra.mxu0 %v1858_v12  ;;  %s16490_s23 = smov 60  }
 0x2af   : > { %v1648_v58 = vpop.permute.xlu0 %1647  ;;  %3373 = vmatprep.subr.bf16.mxu0 %v12202_v59  ;;  %3695 = vmatprep.mubr.bf16.mxu1 %v16482_v17 }
 0x2b0   : > { %v1362_v54 = vpop.permute.xlu1 %1361  ;;  %v1652_v51 = vsel %vm1649_vm4, %v12042_v61, %v1648_v58  ;;  %vm1941_vm4 = vcmask 900096  }
 0x2b1   : > { %2218 = vrot.lane.b32.xlu0 %v12125_v21, %s16480_s22  ;;  %v1366_v10 = vsel %vm16484_vm6, %v16483_v20, %v1362_v54  ;;  %vm16493_vm6 = vcmask 850944  }
 0x2b2   : > { %2170 = vrot.lane.b32.xlu1 %v12146_v15, %s16328_s15  ;;  %3374 = vmatpush1.bf16.msra.mxu0 %v12125_v21 }
 0x2b3   : > { %v12299_v18 = vpop.permute.xlu0 %1937  ;;  %10091 = vmatpush3.bf16.msra.mxu1 %v1366_v10 }
 0x2b4   : > { %10092 = vmatprep.subr.bf16.mxu1 %v1600_v50  ;;  %v1884_v47 = vpop.permute.xlu1 %1883 }
 0x2b5   : > { %2248 = vrot.lane.b32.xlu0 %v12146_v15, %s10984_s12  ;;  %v1891_v32 = vsel %vm1889_vm14, %v1884_v47, %v12252_v28  ;;  %v1890_v1 = vsel %vm1889_vm14, %v1882_v33, %v1884_v47  ;;  %3696 = vmatmul.mubr.bf16.gmra.mrb[40].mxu1 %v11806_v27 }
 0x2b6   : > { %2095 = vrot.lane.b32.xlu1 %v12066_v7, %s16458_s16  ;;  %3375 = vmatprep.subr.bf16.mxu0 %v1891_v32 }
 0x2b7   : > { %v1934_v25 = vpop.permute.xlu0 %1933  ;;  %3376 = vmatpush1.bf16.msra.mxu0 %v1890_v1  ;;  %3703 = vmatprep.mubr.bf16.mxu1 %v16485_v31 }
 0x2b8   : > { %v1388_v60 = vpop.permute.xlu1 %1387 }
 0x2b9   : > { %2353 = vrot.lane.b32.xlu0 %v12066_v7, %s16326_s30  ;;  %v1392_v36 = vsel %vm16487_vm15, %v16486_v4, %v1388_v60  ;;  %vm16494_vm15 = vmmov %vm16493_vm6 }
 0x2ba   : > { %2196 = vrot.lane.b32.xlu1 %v12146_v15, %s16324_s25  ;;  %10093 = vmatpush3.bf16.msra.mxu1 %v1392_v36 }
 0x2bb   : > { %v12318_v27 = vpop.permute.xlu0 %1961 }
 0x2bc   : > { %v1622_v62 = vpop.permute.xlu1 %1621 }
 0x2bd   : > { %2244 = vrot.lane.b32.xlu0 %v12125_v21, %s10984_s12  ;;  %v1626_v49 = vsel %vm1623_vm5, %v12019_v30, %v1622_v62  ;;  %3704 = vmatmul.mubr.bf16.gmra.mrb[44].mxu1 %v11836_v42  ;;  %vm1967_vm5 = vcmask 891904  }
 0x2be   : > { %2192 = vrot.lane.b32.xlu1 %v12125_v21, %s16324_s25  ;;  %10094 = vmatprep.subr.bf16.mxu1 %v1626_v49 }
 0x2bf   : > { %v1466_v33 = vpop.permute.xlu0 %1465  ;;  %10095 = vmatpush3.bf16.msra.mxu1 %v1418_v23  ;;  %3744 = vmatprep.mubr.bf16.mxu1 %v11851_v6 }
 0x2c0   : > { %v12332_v8 = vpop.permute.xlu1 %1911  ;;  %10096 = vmatprep.subr.bf16.mxu1 %v1652_v51  ;;  %v1470_v22 = vsel %vm1467_vm2, %v11896_v63, %v1466_v33  ;;  %vm16343_vm2 = vcmask 883712  }
 0x2c1   : > { %2274 = vrot.lane.b32.xlu0 %v12146_v15, %s10986_s26  ;;  %v1917_v42 = vsel %vm1915_vm11, %v12269_v29, %v12332_v8 }
 0x2c2   : > { %2220 = vrot.lane.b32.xlu1 %v12202_v59, %s16480_s22  ;;  %3377 = vmatprep.subr.bf16.mxu0 %v1917_v42 }
 0x2c3   : > { %v1700_v30 = vpop.permute.xlu0 %1699 }
 0x2c4   : > { %v1908_v0 = vpop.permute.xlu1 %1907  ;;  %v1704_v58 = vsel %vm1701_vm7, %v12090_v24, %v1700_v30  ;;  %vm16341_vm7 = vcmask 867328  }
 0x2c5   : > { %2379 = vrot.lane.b32.xlu0 %v12066_v7, %s10987_s11  ;;  %v1916_v6 = vsel %vm1915_vm11, %v1908_v0, %v12269_v29 }
 0x2c6   : > { %1913 = vrot.lane.b32.xlu1 %v12066_v7, %s10974_s8  ;;  %3378 = vmatpush1.bf16.msra.mxu0 %v1916_v6  ;;  %s10988_s8 = smov 81  }
 0x2c7   : > { %v12347_v61 = vpop.permute.xlu0 %1989 }
 0x2c8   : > { %v1936_v37 = vpop.permute.xlu1 %1935 }
 0x2c9   : > { %2270 = vrot.lane.b32.xlu0 %v12125_v21, %s10986_s26  ;;  %v1943_v39 = vsel %vm1941_vm4, %v1936_v37, %v12299_v18  ;;  %v1942_v9 = vsel %vm1941_vm4, %v1934_v25, %v1936_v37 }
 0x2ca   : > { %2246 = vrot.lane.b32.xlu1 %v12202_v59, %s10984_s12  ;;  %3379 = vmatprep.subr.bf16.mxu0 %v1943_v39 }
 0x2cb   : > { %v1986_v29 = vpop.permute.xlu0 %1985  ;;  %3380 = vmatpush1.bf16.msra.mxu0 %v1942_v9 }
 0x2cc   : > { %v1440_v53 = vpop.permute.xlu1 %1439 }
 0x2cd   : > { %2300 = vrot.lane.b32.xlu0 %v12146_v15, %s10988_s8  ;;  %v1444_v52 = vsel %vm16330_vm10, %v11781_v44, %v1440_v53  ;;  %vm2407_vm10 = vcmask 506880  }
 0x2ce   : > { %2351 = vrot.lane.b32.xlu1 %v12146_v15, %s16326_s30  ;;  %10097 = vmatpush3.bf16.msra.mxu1 %v1444_v52 }
 0x2cf   : > { %v12362_v2 = vpop.permute.xlu0 %2013 }
 0x2d0   : > { %v1674_v35 = vpop.permute.xlu1 %1673 }
 0x2d1   : > { %2405 = vrot.lane.b32.xlu0 %v12066_v7, %s10989_s17  ;;  %v1678_v12 = vsel %vm1675_vm3, %v12008_v55, %v1674_v35  ;;  %vm16491_vm3 = vcmask 236544  }
 0x2d2   : > { %2146 = vrot.lane.b32.xlu1 %v12066_v7, %s16318_s27  ;;  %10098 = vmatprep.subr.bf16.mxu1 %v1678_v12  ;;  %s16489_s27 = smov 80  }
 0x2d3   : > { %v1518_v44 = vpop.permute.xlu0 %1517  ;;  %10099 = vmatpush3.bf16.msra.mxu1 %v1470_v22 }
 0x2d4   : > { %v12374_v17 = vpop.permute.xlu1 %1963  ;;  %10100 = vmatprep.subr.bf16.mxu1 %v1704_v58  ;;  %v1522_v36 = vsel %vm16491_vm3, %v11948_v19, %v1518_v44  ;;  %vm16497_vm3 = vmmov %vm16493_vm6 }
 0x2d5   : > { %2296 = vrot.lane.b32.xlu0 %v12125_v21, %s10988_s8  ;;  %v1969_v63 = vsel %vm1967_vm5, %v12318_v27, %v12374_v17 }
 0x2d6   : > { %2272 = vrot.lane.b32.xlu1 %v12202_v59, %s10986_s26  ;;  %3381 = vmatprep.subr.bf16.mxu0 %v1969_v63 }
 0x2d7   : > { %v1940_v55 = vpop.permute.xlu0 %1939 }
 0x2d8   : > { %v1960_v54 = vpop.permute.xlu1 %1959 }
 0x2d9   : > { %2326 = vrot.lane.b32.xlu0 %v12146_v15, %s16489_s27  ;;  %v1968_v24 = vsel %vm1967_vm5, %v1960_v54, %v12318_v27  ;;  %v1944_v27 = vsel %vm1941_vm4, %v12299_v18, %v1940_v55  ;;  %vm16495_vm4 = vcmask 15360   ;;  %v12526_v54 = vld [vmem:[%s16416_s1 + $0x18] ss:$44 sps:$4 sm:$0xff]  }
 0x2da   : > { %2377 = vrot.lane.b32.xlu1 %v12146_v15, %s10987_s11  ;;  %3382 = vmatpush1.bf16.msra.mxu0 %v1968_v24 }
 0x2db   : > { %v12389_v20 = vpop.permute.xlu0 %2041 }
 0x2dc   : > { %v1988_v10 = vpop.permute.xlu1 %1987 }
 0x2dd   : > { %2431 = vrot.lane.b32.xlu0 %v12066_v7, %s10990_s21  ;;  %v1995_v50 = vsel %vm16343_vm2, %v1988_v10, %v12347_v61  ;;  %v1994_v47 = vsel %vm16343_vm2, %v1986_v29, %v1988_v10 }
 0x2de   : > { %2172 = vrot.lane.b32.xlu1 %v12066_v7, %s16328_s15  ;;  %3383 = vmatprep.subr.bf16.mxu0 %v1995_v50  ;;  %v12539_v50 = vld [vmem:[%s16416_s1 + $0x74] ss:$44 sps:$4 sm:$0xff]   ;;  %s16353_s15 = smov 42  }
 0x2df   : > { %v2038_v32 = vpop.permute.xlu0 %2037  ;;  %3384 = vmatpush1.bf16.msra.mxu0 %v1994_v47  ;;  %v2863_v47 = vld [vmem:[%s16496_s2] sm:$0xff] }
 0x2e0   : > { %v1492_v1 = vpop.permute.xlu1 %1491 }
 0x2e1   : > { %2322 = vrot.lane.b32.xlu0 %v12125_v21, %s16489_s27  ;;  %v1496_v25 = vsel %vm1493_vm12, %v11825_v13, %v1492_v1  ;;  %vm16342_vm12 = vcmask 875520  }
 0x2e2   : > { %2298 = vrot.lane.b32.xlu1 %v12202_v59, %s10988_s8  ;;  %10101 = vmatpush3.bf16.msra.mxu1 %v1496_v25 }
 0x2e3   : > { %v12404_v31 = vpop.permute.xlu0 %2065 }
 0x2e4   : > { %v1726_v60 = vpop.permute.xlu1 %1725 }
 0x2e5   : > { %2455 = vrot.lane.b32.xlu0 %v12146_v15, %s16490_s23  ;;  %v1730_v4 = vsel %vm1727_vm8, %v12059_v16, %v1726_v60  ;;  %vm16492_vm8 = vcmask 31744  }
 0x2e6   : > { %2403 = vrot.lane.b32.xlu1 %v12146_v15, %s10989_s17  ;;  %10102 = vmatprep.subr.bf16.mxu1 %v1730_v4  ;;  %v12558_v4 = vld [vmem:[%s16416_s1 + $0x70] ss:$44 sps:$4 sm:$0xff]  }
 0x2e7   : > { %v1778_v13 = vpop.permute.xlu0 %1777  ;;  %10103 = vmatpush3.bf16.msra.mxu1 %v1522_v36 }
 0x2e8   : > { %v12416_v62 = vpop.permute.xlu1 %2015  ;;  %10128 = vmatprep.subr.bf16.mxu1 %v1944_v27  ;;  %v2868_v27 = vld [vmem:[%s16496_s2 + $0x28] sm:$0xff] }
 0x2e9   : > { %2250 = vrot.lane.b32.xlu0 %v12066_v7, %s10984_s12  ;;  %v2021_v19 = vsel %vm16342_vm12, %v12362_v2, %v12416_v62  ;;  %s10991_s12 = smov 59  }
 0x2ea   : > { %2198 = vrot.lane.b32.xlu1 %v12066_v7, %s16324_s25  ;;  %3385 = vmatprep.subr.bf16.mxu0 %v2021_v19  ;;  %s10992_s25 = smov 58  }
 0x2eb   : > { %v1992_v16 = vpop.permute.xlu0 %1991  ;;  %3745 = vmatmul.mubr.bf16.vlgmr.msra.gmra.mrb[48].mxu1 %v12119_v56 }
 0x2ec   : > { %v2012_v49 = vpop.permute.xlu1 %2011  ;;  %3752 = vmatprep.mubr.bf16.mxu1 %v12154_v41  ;;  %v1996_v6 = vsel %vm16343_vm2, %v12347_v61, %v1992_v16  ;;  %vm4161_vm2 = vcmask 572848  }
 0x2ed   : > { %2375 = vrot.lane.b32.xlu0 %v12202_v59, %s10987_s11  ;;  %v2020_v18 = vsel %vm16342_vm12, %v2012_v49, %v12362_v2  ;;  %v2870_v49 = vld [vmem:[%s16496_s2 + $0x38] sm:$0xff] }
 0x2ee   : > { %2324 = vrot.lane.b32.xlu1 %v12202_v59, %s16489_s27  ;;  %3386 = vmatpush1.bf16.msra.mxu0 %v2020_v18 }
 0x2ef   : > { %v12433_v3 = vpop.permute.xlu0 %2093 }
 0x2f0   : > { %v2040_v23 = vpop.permute.xlu1 %2039 }
 0x2f1   : > { %2483 = vrot.lane.b32.xlu0 %v12066_v7, %s10991_s12  ;;  %v2047_v56 = vsel %vm16341_vm7, %v2040_v23, %v12389_v20  ;;  %v2046_v41 = vsel %vm16341_vm7, %v2038_v32, %v2040_v23  ;;  %v2317_v32 = vld [vmem:[#allocation2 + $0x20] sm:$0xff]  ;;  %v12592_v23 = vld [vmem:[%s16416_s1 + $0xc8] ss:$44 sps:$4 sm:$0xff]  }
 0x2f2   : > { %2429 = vrot.lane.b32.xlu1 %v12146_v15, %s10990_s21  ;;  %3387 = vmatprep.subr.bf16.mxu0 %v2047_v56 }
 0x2f3   : > { %v2090_v33 = vpop.permute.xlu0 %2089  ;;  %3388 = vmatpush1.bf16.msra.mxu0 %v2046_v41  ;;  %3753 = vmatmul.mubr.bf16.gmra.mrb[52].mxu1 %v12161_v57 }
 0x2f4   : > { %v1752_v51 = vpop.permute.xlu1 %1751  ;;  %3760 = vmatprep.mubr.bf16.mxu1 %v12181_v40  ;;  %v1782_v40 = vsel %vm16492_vm8, %v12107_v26, %v1778_v13  ;;  %vm16338_vm8 = vcmask 695296  }
 0x2f5   : > { %2373 = vrot.lane.b32.xlu0 %v12125_v21, %s10987_s11  ;;  %v1756_v42 = vsel %vm1753_vm0, %v12142_v48, %v1752_v51  ;;  %vm16340_vm0 = vcmask 859136   ;;  %s10993_s11 = smov 57  }
 0x2f6   : > { %2224 = vrot.lane.b32.xlu1 %v12066_v7, %s16480_s22  ;;  %10129 = vmatpush3.bf16.msra.mxu1 %v1756_v42 }
 0x2f7   : > { %v12450_v30 = vpop.permute.xlu0 %2116 }
 0x2f8   : > { %v1966_v0 = vpop.permute.xlu1 %1965 }
 0x2f9   : > { %2507 = vrot.lane.b32.xlu0 %v12146_v15, %s10992_s25  ;;  %v1970_v57 = vsel %vm1967_vm5, %v12374_v17, %v1966_v0  ;;  %vm16333_vm5 = vcmask 711680  }
 0x2fa   : > { %2349 = vrot.lane.b32.xlu1 %v12202_v59, %s16326_s30  ;;  %10130 = vmatprep.subr.bf16.mxu1 %v1970_v57  ;;  %v12619_v57 = vld [vmem:[%s16416_s1 + $0x120] ss:$44 sps:$4 sm:$0xff]  }
 0x2fb   : > { %v1830_v48 = vpop.permute.xlu0 %1829  ;;  %10131 = vmatpush3.bf16.msra.mxu1 %v1782_v40 }
 0x2fc   : > { %v12462_v37 = vpop.permute.xlu1 %2067  ;;  %10132 = vmatprep.subr.bf16.mxu1 %v1996_v6  ;;  %3761 = vmatmul.mubr.bf16.gmra.mrb[56].mxu1 %v12188_v38  ;;  %v1834_v22 = vsel %vm16495_vm4, %v12171_v34, %v1830_v48  ;;  %v12626_v6 = vld [vmem:[%s16416_s1 + $0x24] ss:$44 sps:$4 sm:$0xff]   ;;  %vm2381_vm4 = vcmask 515072  }
 0x2fd   : > { %2302 = vrot.lane.b32.xlu0 %v12066_v7, %s10988_s8  ;;  %v2073_v26 = vsel %vm16340_vm0, %v12404_v31, %v12462_v37  ;;  %3768 = vmatprep.mubr.bf16.mxu1 %v12209_v14  ;;  %s10996_s8 = smov 22  }
 0x2fe   : > { %2457 = vrot.lane.b32.xlu1 %v12066_v7, %s16490_s23  ;;  %3389 = vmatprep.subr.bf16.mxu0 %v2073_v26 }
 0x2ff   : > { %v2044_v39 = vpop.permute.xlu0 %2043 }
 0x300   : > { %v2064_v61 = vpop.permute.xlu1 %2063  ;;  %v2048_v44 = vsel %vm16341_vm7, %v12389_v20, %v2044_v39  ;;  %vm4144_vm7 = vcmask 408848  }
 0x301   : > { %2427 = vrot.lane.b32.xlu0 %v12202_v59, %s10990_s21  ;;  %v2072_v9 = vsel %vm16340_vm0, %v2064_v61, %v12404_v31  ;;  %v2866_v31 = vld [vmem:[%s16496_s2 + $0x18] sm:$0xff] }
 0x302   : > { %2347 = vrot.lane.b32.xlu1 %v12125_v21, %s16326_s30  ;;  %3390 = vmatpush1.bf16.msra.mxu0 %v2072_v9  ;;  %s16498_s30 = smov 56  }
 0x303   : > { %v12479_v29 = vpop.permute.xlu0 %2144 }
 0x304   : > { %v2092_v38 = vpop.permute.xlu1 %2091  ;;  %3769 = vmatmul.mubr.bf16.gmra.mrb[60].mxu1 %v12218_v11 }
 0x305   : > { %2535 = vrot.lane.b32.xlu0 %v12066_v7, %s10993_s11  ;;  %v2098_v14 = vsel %vm16493_vm6, %v2092_v38, %v12433_v3  ;;  %v2097_v53 = vsel %vm16494_vm15, %v2090_v33, %v2092_v38  ;;  %3809 = vmatprep.mubr.bf16.mxu1 %v12240_v45  ;;  %v12599_v33 = vld [vmem:[%s16416_s1 + $0x124] ss:$44 sps:$4 sm:$0xff]   ;;  %vm2252_vm6 = vcmask 678912   ;;  %vm2278_vm15 = vcmask 670720  }
 0x306   : > { %2481 = vrot.lane.b32.xlu1 %v12146_v15, %s10991_s12  ;;  %3391 = vmatprep.subr.bf16.mxu0 %v2098_v14  ;;  %v2865_v38 = vld [vmem:[%s16496_s2 + $0x10] sm:$0xff] }
 0x307   : > { %v2141_v52 = vpop.permute.xlu0 %2140  ;;  %3392 = vmatpush1.bf16.msra.mxu0 %v2097_v53 }
 0x308   : > { %v1804_v2 = vpop.permute.xlu1 %1803 }
 0x309   : > { %2425 = vrot.lane.b32.xlu0 %v12125_v21, %s10990_s21  ;;  %v1808_v35 = vsel %vm1805_vm13, %v12223_v43, %v1804_v2  ;;  %vm16339_vm13 = vcmask 719872   ;;  %v12646_v2 = vpop.f32.mrb[0].mxu1  ;;  %s10998_s21 = smov 34  }
 0x30a   : > { %2276 = vrot.lane.b32.xlu1 %v12066_v7, %s10986_s26  ;;  %10133 = vmatpush3.bf16.msra.mxu1 %v1808_v35  ;;  %v12648_v35 = vpop.f32.mrb[1].mxu1  ;;  %s10995_s26 = smov 114  }
 0x30b   : > { %v12496_v11 = vpop.permute.xlu0 %2168 }
 0x30c   : > { %v2018_v12 = vpop.permute.xlu1 %2017 }
 0x30d   : > { %2451 = vrot.lane.b32.xlu0 %v12125_v21, %s16490_s23  ;;  %v2022_v45 = vsel %vm16342_vm12, %v12416_v62, %v2018_v12  ;;  %v2867_v12 = vld [vmem:[%s16496_s2 + $0x20] sm:$0xff]  ;;  %vm16362_vm12 = vcmask 835248  }
 0x30e   : > { %2401 = vrot.lane.b32.xlu1 %v12202_v59, %s10989_s17  ;;  %10134 = vmatprep.subr.bf16.mxu1 %v2022_v45  ;;  %v12653_v45 = vpop.f32.mrb[2].mxu1 }
 0x30f   : > { %v2167_v43 = vpop.permute.xlu0 %2166  ;;  %10135 = vmatpush3.bf16.msra.mxu1 %v1834_v22 }
 0x310   : > { %v12508_v58 = vpop.permute.xlu1 %2118  ;;  %10136 = vmatprep.subr.bf16.mxu1 %v2048_v44 }
 0x311   : > { %2477 = vrot.lane.b32.xlu0 %v12125_v21, %s10991_s12  ;;  %v2124_v34 = vsel %vm16339_vm13, %v12450_v30, %v12508_v58 }
 0x312   : > { %2509 = vrot.lane.b32.xlu1 %v12066_v7, %s10992_s25  ;;  %3393 = vmatprep.subr.bf16.mxu0 %v2124_v34 }
 0x313   : > { %v12517_v17 = vpop.permute.xlu0 %2194 }
 0x314   : > { %v2115_v63 = vpop.permute.xlu1 %2114 }
 0x315   : > { %2503 = vrot.lane.b32.xlu0 %v12125_v21, %s10992_s25  ;;  %v2123_v55 = vsel %vm16339_vm13, %v2115_v63, %v12450_v30  ;;  %v2869_v63 = vld [vmem:[%s16496_s2 + $0x30] sm:$0xff] }
 0x316   : > { %2399 = vrot.lane.b32.xlu1 %v12125_v21, %s10989_s17  ;;  %3394 = vmatpush1.bf16.msra.mxu0 %v2123_v55  ;;  %s10994_s17 = smov 118  }
 0x317   : > { %v1888_v7 = vpop.permute.xlu0 %1887 }
 0x318   : > { %v2143_v24 = vpop.permute.xlu1 %2142  ;;  %v1892_v51 = vsel %vm1889_vm14, %v12252_v28, %v1888_v7  ;;  %vm16337_vm14 = vcmask 687104  }
 0x319   : > { %2529 = vrot.lane.b32.xlu0 %v12125_v21, %s10993_s11  ;;  %v2150_v20 = vsel %vm16333_vm5, %v2143_v24, %v12479_v29  ;;  %3396 = vmatmul.mubr.bf16.vlgmr.msra.gmra.mrb[0].mxu0 %v12526_v54  ;;  %v2149_v10 = vsel %vm16333_vm5, %v2141_v52, %v2143_v24 }
 0x31a   : > { %2533 = vrot.lane.b32.xlu1 %v12146_v15, %s10993_s11  ;;  %3436 = vmatprep.subr.bf16.mxu0 %v2150_v20 }
 0x31b   : > { %v2121_v21 = vpop.permute.xlu0 %2120  ;;  %3437 = vmatpush1.bf16.msra.mxu0 %v2149_v10  ;;  %3405 = vmatprep.mubr.bf16.mxu0 %v12539_v50 }
 0x31c   : > { %v1856_v1 = vpop.permute.xlu1 %1855 }
 0x31d   : > { %2873 = vperm.xlu0 %10762, %v2863_v47   ;;  %v1860_v25 = vsel %vm1857_vm9, %v12274_v5, %v1856_v1  ;;  %v12565_v5 = vld [vmem:[%s16416_s1 + $0xcc] ss:$44 sps:$4 sm:$0xff]   ;;  %vm16332_vm9 = vcmask 703488  }
 0x31e   : > { %2328 = vrot.lane.b32.xlu1 %v2317_v32, %s16489_s27  ;;  %10137 = vmatpush3.bf16.msra.mxu1 %v1860_v25  ;;  %v2175_v18 = vsel %vm16332_vm9, %v2167_v43, %v12496_v11  ;;  %v12659_v43 = vpop.f32.mrb[3].mxu1 }
 0x31f   : > { %v12553_v60 = vpop.permute.xlu0 %2222 }
 0x320   : > { %v2070_v36 = vpop.permute.xlu1 %2069 }
 0x321   : > { %2888 = vperm.xlu0 %10762, %v2866_v31   ;;  %v2074_v13 = vsel %vm16340_vm0, %v12462_v37, %v2070_v36  ;;  %3406 = vmatmul.mubr.bf16.gmra.mrb[4].mxu0 %v12558_v4  ;;  %v2864_v37 = vld [vmem:[%s16496_s2 + $0x8] sm:$0xff]  ;;  %vm16347_vm0 = vcmask 671248   ;;  %s16693_s2 = smov 66  }
 0x322   : > { %2453 = vrot.lane.b32.xlu1 %v12202_v59, %s16490_s23  ;;  %10138 = vmatprep.subr.bf16.mxu1 %v2074_v13  ;;  %s16509_s23 = smov 126  }
 0x323   : > { %v2219_v62 = vpop.permute.xlu0 %2218  ;;  %10139 = vmatpush3.bf16.msra.mxu1 %v12146_v15  ;;  %3415 = vmatprep.mubr.bf16.mxu0 %v12565_v5 }
 0x324   : > { %v12575_v19 = vpop.permute.xlu1 %2170 }
 0x325   : > { %2898 = vperm.xlu0 %10762, %v2868_v27   ;;  %v2176_v16 = vsel %vm16332_vm9, %v12496_v11, %v12575_v19 }
 0x326   : > { %2479 = vrot.lane.b32.xlu1 %v12202_v59, %s10991_s12  ;;  %3438 = vmatprep.subr.bf16.mxu0 %v2176_v16  ;;  %s16510_s12 = smov 26  }
 0x327   : > { %v12587_v15 = vpop.permute.xlu0 %2248  ;;  %3439 = vmatpush1.bf16.msra.mxu0 %v2175_v18 }
 0x328   : > { %v2096_v56 = vpop.permute.xlu1 %2095 }
 0x329   : > { %2908 = vperm.xlu0 %10762, %v2870_v49   ;;  %v2099_v41 = vsel %vm16497_vm3, %v12433_v3, %v2096_v56  ;;  %3416 = vmatmul.mubr.bf16.gmra.mrb[8].mxu0 %v12592_v23  ;;  %v2125_v3 = vsel %vm16339_vm13, %v12508_v58, %v2121_v21  ;;  %v12664_v58 = vpop.f32.mrb[4].mxu1  ;;  %vm2304_vm3 = vcmask 662528   ;;  %vm16512_vm13 = vcmask 15360  }
 0x32a   : > { %2505 = vrot.lane.b32.xlu1 %v12202_v59, %s10992_s25  ;;  %10140 = vmatprep.subr.bf16.mxu1 %v2099_v41  ;;  %v12666_v34 = vpop.f32.mrb[5].mxu1  ;;  %s10997_s25 = smov 38  }
 0x32b   : > { %v2354_v42 = vpop.permute.xlu0 %2353  ;;  %10141 = vmatpush3.bf16.msra.mxu1 %v1892_v51  ;;  %3425 = vmatprep.mubr.bf16.mxu0 %v12599_v33  ;;  %v12673_v55 = vpop.f32.mrb[6].mxu1 }
 0x32c   : > { %v12609_v30 = vpop.permute.xlu1 %2196  ;;  %10142 = vmatprep.subr.bf16.mxu1 %v2125_v3  ;;  %v12677_v7 = vpop.f32.mrb[7].mxu1 }
 0x32d   : > { %v2202_v0 = vsel %vm16338_vm8, %v12517_v17, %v12609_v30  ;;  %v12681_v20 = vpop.f32.mrb[8].mxu1 }
 0x32e   : > { %2531 = vrot.lane.b32.xlu1 %v12202_v59, %s10993_s11  ;;  %3440 = vmatprep.subr.bf16.mxu0 %v2202_v0  ;;  %v12683_v10 = vpop.f32.mrb[9].mxu1  ;;  %s16508_s11 = smov 122  }
 0x32f   : > { %v2245_v28 = vpop.permute.xlu0 %2244  ;;  %v12685_v47 = vpop.f32.mrb[10].mxu1 }
 0x330   : > { %v2193_v40 = vpop.permute.xlu1 %2192 }
 0x331   : > { %v2201_v48 = vsel %vm16338_vm8, %v2193_v40, %v12517_v17  ;;  %3426 = vmatmul.mubr.bf16.gmra.mrb[12].mxu0 %v12619_v57 }
 0x332   : > { %2561 = vrot.lane.b32.xlu1 %v2317_v32, %s16498_s30  ;;  %3441 = vmatpush1.bf16.msra.mxu0 %v2201_v48  ;;  %v12690_v32 = vpop.f32.mrb[11].mxu1  ;;  %s16511_s30 = smov 30  }
 0x333   : > { %v12630_v59 = vpop.permute.xlu0 %2274  ;;  %3468 = vmatprep.mubr.bf16.mxu0 %v12626_v6  ;;  %v12693_v25 = vpop.f32.mrb[12].mxu1 }
 0x334   : > { %v2221_v26 = vpop.permute.xlu1 %2220  ;;  %v12695_v31 = vpop.f32.mrb[13].mxu1 }
 0x335   : > { %v2228_v39 = vsel %vm16337_vm14, %v2221_v26, %v12553_v60  ;;  %v2227_v61 = vsel %vm16337_vm14, %v2219_v62, %v2221_v26  ;;  %v12697_v13 = vpop.f32.mrb[14].mxu1 }
 0x336   : > { %3442 = vmatprep.subr.bf16.mxu0 %v2228_v39  ;;  %2878 = vperm.xlu1 %10763, %v2864_v37  }
 0x337   : > { %v12639_v9 = vpop.permute.xlu0 %2379  ;;  %3443 = vmatpush1.bf16.msra.mxu0 %v2227_v61 }
 0x338   : > { %v1914_v14 = vpop.permute.xlu1 %1913 }
 0x339   : > { %v1918_v53 = vsel %vm1915_vm11, %v12332_v8, %v1914_v14  ;;  %vm16336_vm11 = vcmask 523264  }
 0x33a   : > { %10143 = vmatpush3.bf16.msra.mxu1 %v1918_v53  ;;  %2883 = vperm.xlu1 %10763, %v2865_v38  }
 0x33b   : > { %v2271_v52 = vpop.permute.xlu0 %2270 }
 0x33c   : > { %v2247_v11 = vpop.permute.xlu1 %2246 }
 0x33d   : > { %3810 = vmatmul.mubr.bf16.vlgmr.msra.gmra.mrb[64].mxu1 %v12526_v54  ;;  %v2254_v8 = vsel %vm2252_vm6, %v2247_v11, %v12587_v15  ;;  %v2253_v22 = vsel %vm2252_vm6, %v2245_v28, %v2247_v11 }
 0x33e   : > { %3444 = vmatprep.subr.bf16.mxu0 %v2254_v8  ;;  %3817 = vmatprep.mubr.bf16.mxu1 %v12539_v50 }
 0x33f   : > { %v12661_v44 = vpop.permute.xlu0 %2300  ;;  %3445 = vmatpush1.bf16.msra.mxu0 %v2253_v22  ;;  %2893 = vperm.xlu1 %10763, %v2867_v12  }
 0x340   : > { %v12668_v17 = vpop.permute.xlu1 %2351 }
 0x341   : > { %v2358_v54 = vsel %vm16336_vm11, %v12668_v17, %v2354_v42 }
 0x342   : > { %10168 = vmatprep.subr.bf16.mxu1 %v2358_v54 }
 0x343   : > { %v12679_v24 = vpop.permute.xlu0 %2405  ;;  %2903 = vperm.xlu1 %10763, %v2869_v63  }
 0x344   : > { %v2147_v50 = vpop.permute.xlu1 %2146 }
 0x345   : > { %v2151_v21 = vsel %vm16333_vm5, %v12479_v29, %v2147_v50  ;;  %3818 = vmatmul.mubr.bf16.gmra.mrb[68].mxu1 %v12558_v4  ;;  %v12702_v4 = vpop.f32.mrb[15].mxu1  ;;  %vm2433_vm5 = vcmask 498688  }
 0x346   : > { %10169 = vmatpush3.bf16.msra.mxu1 %v2151_v21  ;;  %3825 = vmatprep.mubr.bf16.mxu1 %v12565_v5  ;;  %v10024_v16 = vpop.f32.mrb[16].mxu1 }
 0x347   : > { %v2297_v1 = vpop.permute.xlu0 %2296  ;;  %v10025_v5 = vpop.f32.mrb[17].mxu1 }
 0x348   : > { %v2273_v36 = vpop.permute.xlu1 %2272  ;;  %v12708_v18 = vadd.f32 %v10025_v5, %v10024_v16  ;;  %v10027_v56 = vpop.f32.mrb[18].mxu1 }
 0x349   : > { %v2280_v27 = vsel %vm2278_vm15, %v2273_v36, %v12630_v59  ;;  %v2279_v29 = vsel %vm2278_vm15, %v2271_v52, %v2273_v36  ;;  %v10028_v51 = vpop.f32.mrb[19].mxu1 }
 0x34a   : > { %3446 = vmatprep.subr.bf16.mxu0 %v2280_v27  ;;  %v12715_v3 = vadd.f32 %v10028_v51, %v10027_v56  ;;  %v10030_v0 = vpop.f32.mrb[20].mxu1 }
 0x34b   : > { %v12704_v62 = vpop.permute.xlu0 %2326  ;;  %3447 = vmatpush1.bf16.msra.mxu0 %v2279_v29  ;;  %v10031_v28 = vpop.f32.mrb[21].mxu1 }
 0x34c   : > { %v12706_v49 = vpop.permute.xlu1 %2377  ;;  %v12717_v48 = vadd.f32 %v10031_v28, %v10030_v0  ;;  %v10033_v37 = vpop.f32.mrb[22].mxu1 }
 0x34d   : > { %3826 = vmatmul.mubr.bf16.gmra.mrb[72].mxu1 %v12592_v23  ;;  %v2384_v41 = vsel %vm2381_vm4, %v12706_v49, %v12639_v9  ;;  %v10034_v26 = vpop.f32.mrb[23].mxu1 }
 0x34e   : > { %10170 = vmatprep.subr.bf16.mxu1 %v2384_v41  ;;  %3833 = vmatprep.mubr.bf16.mxu1 %v12599_v33  ;;  %v12721_v61 = vadd.f32 %v10034_v26, %v10033_v37  ;;  %v10036_v9 = vpop.f32.mrb[24].mxu1 }
 0x34f   : > { %v2432_v42 = vpop.permute.xlu0 %2431  ;;  %v10037_v38 = vpop.f32.mrb[25].mxu1 }
 0x350   : > { %v2173_v40 = vpop.permute.xlu1 %2172  ;;  %v12723_v14 = vadd.f32 %v10037_v38, %v10036_v9  ;;  %v10039_v53 = vpop.f32.mrb[26].mxu1 }
 0x351   : > { %v2177_v23 = vsel %vm16332_vm9, %v12575_v19, %v2173_v40  ;;  %v10040_v19 = vpop.f32.mrb[27].mxu1  ;;  %vm16500_vm9 = vmmov %vm16499_vm1 }
 0x352   : > { %10171 = vmatpush3.bf16.msra.mxu1 %v2177_v23  ;;  %v12732_v8 = vadd.f32 %v10040_v19, %v10039_v53  ;;  %v10042_v22 = vpop.f32.mrb[28].mxu1 }
 0x353   : > { %v2323_v39 = vpop.permute.xlu0 %2322  ;;  %v10043_v63 = vpop.f32.mrb[29].mxu1 }
 0x354   : > { %v2299_v33 = vpop.permute.xlu1 %2298  ;;  %v10045_v50 = vpop.f32.mrb[30].mxu1 }
 0x355   : > { %3834 = vmatmul.mubr.bf16.gmra.mrb[76].mxu1 %v12619_v57  ;;  %v2306_v52 = vsel %vm2304_vm3, %v2299_v33, %v12661_v44  ;;  %v2305_v11 = vsel %vm2304_vm3, %v2297_v1, %v2299_v33  ;;  %v12736_v57 = vadd.f32 %v10043_v63, %v10042_v22  ;;  %v10046_v1 = vpop.f32.mrb[31].mxu1 }
 0x356   : > { %3448 = vmatprep.subr.bf16.mxu0 %v2306_v52  ;;  %3874 = vmatprep.mubr.bf16.mxu1 %v12626_v6  ;;  %v12741_v27 = vadd.f32 %v10046_v1, %v10045_v50 }
 0x357   : > { %v12729_v12 = vpop.permute.xlu0 %2455  ;;  %3449 = vmatpush1.bf16.msra.mxu0 %v2305_v11 }
 0x358   : > { %v12734_v54 = vpop.permute.xlu1 %2403 }
 0x359   : > { %v2410_v21 = vsel %vm2407_vm10, %v12734_v54, %v12679_v24 }
 0x35a   : > { %10172 = vmatprep.subr.bf16.mxu1 %v2410_v21 }
 0x35b   : > { %v2251_v36 = vpop.permute.xlu0 %2250 }
 0x35c   : > { %v2199_v6 = vpop.permute.xlu1 %2198  ;;  %v2255_v38 = vsel %vm2252_vm6, %v12587_v15, %v2251_v36  ;;  %vm2511_vm6 = vcmask 474112  }
 0x35d   : > { %v2203_v29 = vsel %vm16338_vm8, %v12609_v30, %v2199_v6  ;;  %vm16375_vm8 = vcmask 507248  }
 0x35e   : > { %10173 = vmatpush3.bf16.msra.mxu1 %v2203_v29 }
 0x35f   : > { %v2376_v16 = vpop.permute.xlu0 %2375 }
 0x360   : > { %v2325_v5 = vpop.permute.xlu1 %2324 }
 0x361   : > { %v2331_v56 = vsel %vm16499_vm1, %v2325_v5, %v12704_v62  ;;  %v2330_v41 = vsel %vm16500_vm9, %v2323_v39, %v2325_v5  ;;  %vm2459_vm1 = vcmask 490496   ;;  %vm2485_vm9 = vcmask 482304  }
 0x362   : > { %3450 = vmatprep.subr.bf16.mxu0 %v2331_v56 }
 0x363   : > { %v2484_v51 = vpop.permute.xlu0 %2483  ;;  %3451 = vmatpush1.bf16.msra.mxu0 %v2330_v41 }
 0x364   : > { %v12748_v24 = vpop.permute.xlu1 %2429 }
 0x365   : > { %v2436_v0 = vsel %vm2433_vm5, %v12748_v24, %v2432_v42 }
 0x366   : > { %10174 = vmatprep.subr.bf16.mxu1 %v2436_v0 }
 0x367   : > { %v2374_v28 = vpop.permute.xlu0 %2373 }
 0x368   : > { %v2225_v30 = vpop.permute.xlu1 %2224  ;;  %v2382_v19 = vsel %vm2381_vm4, %v2374_v28, %v2376_v16 }
 0x369   : > { %v2229_v40 = vsel %vm16337_vm14, %v12553_v60, %v2225_v30  ;;  %vm4259_vm14 = vcmask 343248  }
 0x36a   : > { %10175 = vmatpush3.bf16.msra.mxu1 %v2229_v40 }
 0x36b   : > { %v12754_v37 = vpop.permute.xlu0 %2507 }
 0x36c   : > { %v2350_v23 = vpop.permute.xlu1 %2349 }
 0x36d   : > { %v2357_v26 = vsel %vm16336_vm11, %v2350_v23, %v12668_v17  ;;  %v2383_v17 = vsel %vm2381_vm4, %v2376_v16, %v12706_v49  ;;  %vm16504_vm4 = vcmask 130048  }
 0x36e   : > { %3452 = vmatprep.subr.bf16.mxu0 %v2357_v26 }
 0x36f   : > { %v2303_v39 = vpop.permute.xlu0 %2302 }
 0x370   : > { %v2458_v9 = vpop.permute.xlu1 %2457  ;;  %v2307_v26 = vsel %vm2304_vm3, %v12661_v44, %v2303_v39  ;;  %vm16505_vm3 = vmmov %vm16504_vm4 }
 0x371   : > { %v2462_v42 = vsel %vm2459_vm1, %v12729_v12, %v2458_v9 }
 0x372   : > { %10176 = vmatprep.subr.bf16.mxu1 %v2462_v42 }
 0x373   : > { %10177 = vmatpush3.bf16.msra.mxu1 %v2255_v38  ;;  %v2428_v60 = vpop.permute.xlu0 %2427 }
 0x374   : > { %v2348_v33 = vpop.permute.xlu1 %2347 }
 0x375   : > { %v2356_v53 = vsel %vm16336_vm11, %v2348_v33, %v2350_v23  ;;  %v2435_v33 = vsel %vm2433_vm5, %v2428_v60, %v12748_v24  ;;  %vm16345_vm11 = vcmask 244848  }
 0x376   : > { %3453 = vmatpush1.bf16.msra.mxu0 %v2356_v53 }
 0x377   : > { %3454 = vmatprep.subr.bf16.mxu0 %v2383_v17  ;;  %v2536_v22 = vpop.permute.xlu0 %2535 }
 0x378   : > { %v12765_v52 = vpop.permute.xlu1 %2481  ;;  %v10064_v11 = vpop.f32.mrb[32].mxu1 }
 0x379   : > { %v2488_v15 = vsel %vm2485_vm9, %v12765_v52, %v2484_v51  ;;  %v10065_v63 = vpop.f32.mrb[33].mxu1 }
 0x37a   : > { %3455 = vmatpush1.bf16.msra.mxu0 %v2382_v19  ;;  %10178 = vmatprep.subr.bf16.mxu1 %v2488_v15  ;;  %v12770_v50 = vadd.f32 %v10065_v63, %v10064_v11  ;;  %v10067_v21 = vpop.f32.mrb[34].mxu1 }
 0x37b   : > { %v10068_v1 = vpop.f32.mrb[35].mxu1  ;;  %v2426_v29 = vpop.permute.xlu0 %2425 }
 0x37c   : > { %v2277_v36 = vpop.permute.xlu1 %2276  ;;  %v12772_v49 = vadd.f32 %v10068_v1, %v10067_v21  ;;  %v2434_v39 = vsel %vm2433_vm5, %v2426_v29, %v2428_v60  ;;  %v10835_v60 = vld [vmem:[%s16416_s1 + $0x7c] ss:$44 sps:$4 sm:$0xff]   ;;  %vm16503_vm5 = vcmask 457728  }
 0x37d   : > { %v2281_v6 = vsel %vm2278_vm15, %v12630_v59, %v2277_v36  ;;  %vm2537_vm15 = vcmask 465920  }
 0x37e   : > { %10179 = vmatpush3.bf16.msra.mxu1 %v2281_v6  ;;  %v10832_v6 = vld [vmem:[%s16416_s1 + $0x20] ss:$44 sps:$4 sm:$0xff]  }
 0x37f   : > { %v2452_v23 = vpop.permute.xlu0 %2451 }
 0x380   : > { %v2402_v16 = vpop.permute.xlu1 %2401  ;;  %v10070_v5 = vpop.f32.mrb[36].mxu1 }
 0x381   : > { %v2409_v56 = vsel %vm2407_vm10, %v2402_v16, %v12734_v54  ;;  %v10071_v41 = vpop.f32.mrb[37].mxu1 }
 0x382   : > { %3456 = vmatprep.subr.bf16.mxu0 %v2409_v56  ;;  %v12778_v51 = vadd.f32 %v10071_v41, %v10070_v5  ;;  %v10073_v0 = vpop.f32.mrb[38].mxu1 }
 0x383   : > { %v10074_v28 = vpop.f32.mrb[39].mxu1  ;;  %v2478_v11 = vpop.permute.xlu0 %2477 }
 0x384   : > { %v2510_v30 = vpop.permute.xlu1 %2509  ;;  %v12780_v40 = vadd.f32 %v10074_v28, %v10073_v0 }
 0x385   : > { %v2514_v59 = vsel %vm2511_vm6, %v12754_v37, %v2510_v30 }
 0x386   : > { %10180 = vmatprep.subr.bf16.mxu1 %v2514_v59 }
 0x387   : > { %10181 = vmatpush3.bf16.msra.mxu1 %v2307_v26  ;;  %v2504_v36 = vpop.permute.xlu0 %2503 }
 0x388   : > { %v2400_v54 = vpop.permute.xlu1 %2399  ;;  %v10076_v9 = vpop.f32.mrb[40].mxu1 }
 0x389   : > { %v2408_v42 = vsel %vm2407_vm10, %v2400_v54, %v2402_v16  ;;  %v10077_v38 = vpop.f32.mrb[41].mxu1  ;;  %vm16501_vm10 = vcmask 654336   ;;  %v10837_v54 = vld [vmem:[%s16416_s1 + $0x78] ss:$44 sps:$4 sm:$0xff]  }
 0x38a   : > { %3457 = vmatpush1.bf16.msra.mxu0 %v2408_v42  ;;  %v12789_v53 = vadd.f32 %v10077_v38, %v10076_v9  ;;  %v10079_v17 = vpop.f32.mrb[42].mxu1 }
 0x38b   : > { %3458 = vmatprep.subr.bf16.mxu0 %v2435_v33  ;;  %v10080_v19 = vpop.f32.mrb[43].mxu1  ;;  %v2530_v28 = vpop.permute.xlu0 %2529 }
 0x38c   : > { %v2534_v15 = vpop.permute.xlu1 %2533  ;;  %v10081_v44 = vadd.f32 %v10080_v19, %v10079_v17 }
 0x38d   : > { %v2540_v63 = vsel %vm2537_vm15, %v2534_v15, %v2536_v22 }
 0x38e   : > { %3459 = vmatpush1.bf16.msra.mxu0 %v2434_v39  ;;  %10182 = vmatprep.subr.bf16.mxu1 %v2540_v63 }
 0x390   : > { %v2329_v21 = vpop.permute.xlu1 %2328  ;;  %v10082_v1 = vpop.f32.mrb[44].mxu1 }
 0x391   : > { %v2332_v24 = vsel %vm16501_vm10, %v12704_v62, %v2329_v21  ;;  %v10083_v16 = vpop.f32.mrb[45].mxu1  ;;  %vm4033_vm10 = vcmask 638448  }
 0x392   : > { %10183 = vmatpush3.bf16.msra.mxu1 %v2332_v24  ;;  %v12801_v29 = vadd.f32 %v10083_v16, %v10082_v1  ;;  %v10085_v22 = vpop.f32.mrb[46].mxu1 }
 0x393   : > { %v10086_v5 = vpop.f32.mrb[47].mxu1 }
 0x394   : > { %v2454_v56 = vpop.permute.xlu1 %2453  ;;  %v10087_v41 = vadd.f32 %v10086_v5, %v10085_v22  ;;  %v10843_v22 = vld [vmem:[%s16416_s1 + $0x128] ss:$44 sps:$4 sm:$0xff]  }
 0x395   : > { %3875 = vmatmul.mubr.bf16.vlgmr.msra.gmra.mrb[80].mxu1 %v10832_v6  ;;  %v2461_v62 = vsel %vm2459_vm1, %v2454_v56, %v12729_v12  ;;  %v2460_v0 = vsel %vm2459_vm1, %v2452_v23, %v2454_v56  ;;  %v10838_v12 = vld [vmem:[%s16416_s1 + $0xd4] ss:$44 sps:$4 sm:$0xff]   ;;  %vm16506_vm1 = vmmov %vm16505_vm3 }
 0x396   : > { %3460 = vmatprep.subr.bf16.mxu0 %v2461_v62  ;;  %3882 = vmatprep.mubr.bf16.mxu1 %v10835_v60 }
 0x397   : > { %3461 = vmatpush1.bf16.msra.mxu0 %v2460_v0 }
 0x398   : > { %v2480_v30 = vpop.permute.xlu1 %2479 }
 0x399   : > { %v2487_v59 = vsel %vm2485_vm9, %v2480_v30, %v12765_v52  ;;  %v2486_v26 = vsel %vm2485_vm9, %v2478_v11, %v2480_v30  ;;  %vm16507_vm9 = vmmov %vm16506_vm1 }
 0x39a   : > { %3462 = vmatprep.subr.bf16.mxu0 %v2487_v59 }
 0x39b   : > { %3463 = vmatpush1.bf16.msra.mxu0 %v2486_v26 }
 0x39c   : > { %v12815_v23 = vpop.permute.xlu0 %2873  ;;  %v2506_v9 = vpop.permute.xlu1 %2505 }
 0x39d   : > { %v3617_v42 = vadd.f32 %v12708_v18, %v12815_v23  ;;  %3883 = vmatmul.mubr.bf16.gmra.mrb[84].mxu1 %v10837_v54  ;;  %v2513_v52 = vsel %vm2511_vm6, %v2506_v9, %v12754_v37  ;;  %v2512_v38 = vsel %vm2511_vm6, %v2504_v36, %v2506_v9  ;;  %v10840_v37 = vld [vmem:[%s16416_s1 + $0xd0] ss:$44 sps:$4 sm:$0xff]   ;;  %vm16348_vm6 = vcmask 80896  }
 0x39e   : > { %3464 = vmatprep.subr.bf16.mxu0 %v2513_v52  ;;  %3890 = vmatprep.mubr.bf16.mxu1 %v10838_v12 }
 0x39f   : > { %v3682_v33 = vadd.f32 %v12770_v50, %v3617_v42  ;;  %3465 = vmatpush1.bf16.msra.mxu0 %v2512_v38  ;;  %v10841_v50 = vld [vmem:[%s16416_s1 + $0x12c] ss:$44 sps:$4 sm:$0xff]  }
 0x3a0   : > { %v12823_v17 = vpop.permute.xlu0 %2888  ;;  %v2532_v11 = vpop.permute.xlu1 %2531 }
 0x3a1   : > { %v3628_v19 = vadd.f32 %v12721_v61, %v12823_v17  ;;  %v2539_v39 = vsel %vm2537_vm15, %v2532_v11, %v2534_v15  ;;  %v2538_v18 = vsel %vm2537_vm15, %v2530_v28, %v2532_v11  ;;  %v16502_v15 = vld [vmem:[#allocation17_spill] sm:$0xff]  ;;  %vm4016_vm15 = vcmask 474448  }
 0x3a2   : > { %3466 = vmatprep.subr.bf16.mxu0 %v2539_v39  ;;  %v10893_v28 = vld [vmem:[%s16416_s1 + $0x130] ss:$44 sps:$4 sm:$0xff]  }
 0x3a3   : > { %v3693_v63 = vadd.f32 %v12780_v40, %v3628_v19  ;;  %3467 = vmatpush1.bf16.msra.mxu0 %v2538_v18 }
 0x3a4   : > { %v12836_v21 = vpop.permute.xlu0 %2898  ;;  %v2562_v1 = vpop.permute.xlu1 %2561 }
 0x3a5   : > { %v3636_v61 = vadd.f32 %v12732_v8, %v12836_v21  ;;  %3891 = vmatmul.mubr.bf16.gmra.mrb[88].mxu1 %v10840_v37  ;;  %v2565_v36 = vsel %vm16503_vm5, %v16502_v15, %v2562_v1  ;;  %vm4050_vm5 = vcmask 802448  }
 0x3a6   : > { %3469 = vmatmul.mubr.bf16.vlgmr.msra.gmra.mrb[0].mxu0 %v10832_v6  ;;  %10456 = vmatprep.subr.bf16.mxu1 %v2565_v36  ;;  %v10890_v6 = vld [vmem:[%s16416_s1 + $0x28] ss:$44 sps:$4 sm:$0xff]  }
 0x3a7   : > { %v3701_v24 = vadd.f32 %v10081_v44, %v3636_v61  ;;  %10457 = vmatpush3.bf16.msra.mxu1 %v2565_v36  ;;  %3898 = vmatprep.mubr.bf16.mxu1 %v10841_v50  ;;  %v10891_v44 = vld [vmem:[%s16416_s1 + $0x80] ss:$44 sps:$4 sm:$0xff]  }
 0x3a8   : > { %v12842_v40 = vpop.permute.xlu0 %2908  ;;  %3478 = vmatprep.mubr.bf16.mxu0 %v10835_v60  ;;  %v10892_v60 = vld [vmem:[%s16416_s1 + $0xd8] ss:$44 sps:$4 sm:$0xff]   ;;  %s16378_s1 = smov 47  }
 0x3a9   : > { %v3644_v16 = vadd.f32 %v12741_v27, %v12842_v40 }
 0x3ab   : > { %v3709_v8 = vadd.f32 %v10087_v41, %v3644_v16 }
 0x3ad   : > { %3899 = vmatmul.mubr.bf16.gmra.mrb[92].mxu1 %v10843_v22 }
 0x3ae   : > { %3479 = vmatmul.mubr.bf16.gmra.mrb[4].mxu0 %v10837_v54  ;;  %10458 = vmatprep.mubr.msk.bf16.mxu1 %vm16504_vm4, %v10890_v6  ;;  %vm4067_vm4 = vcmask 966448  }
 0x3af   : > { %3488 = vmatprep.mubr.bf16.mxu0 %v10838_v12 }
 0x3b5   : > { %10459 = vmatmul.mubr.msk.bf16.vlgmr.msra.gmra.mrb[96].mxu1 %vm16505_vm3, %v10891_v44  ;;  %v12857_v27 = vpop.permute.xlu1 %2878  ;;  %vm16381_vm3 = vcmask 1048528  }
 0x3b6   : > { %3489 = vmatmul.mubr.bf16.gmra.mrb[8].mxu0 %v10840_v37  ;;  %10462 = vmatprep.mubr.msk.bf16.mxu1 %vm16506_vm1, %v10892_v60  ;;  %v3620_v5 = vadd.f32 %v12715_v3, %v12857_v27  ;;  %vm16344_vm1 = vcmask 179200  }
 0x3b7   : > { %3498 = vmatprep.mubr.bf16.mxu0 %v10841_v50 }
 0x3b8   : > { %v3685_v56 = vadd.f32 %v12772_v49, %v3620_v5 }
 0x3b9   : > { %v12866_v41 = vpop.permute.xlu1 %2883 }
 0x3ba   : > { %v3625_v62 = vadd.f32 %v12717_v48, %v12866_v41 }
 0x3bc   : > { %v3690_v0 = vadd.f32 %v12778_v51, %v3625_v62 }
 0x3bd   : > { %10463 = vmatmul.mubr.msk.bf16.gmra.mrb[100].mxu1 %vm16507_vm9, %v10893_v28  ;;  %vm4242_vm9 = vcmask 179248  }
 0x3be   : > { %3499 = vmatmul.mubr.bf16.gmra.mrb[12].mxu0 %v10843_v22  ;;  %v10104_v30 = vpop.f32.mrb[48].mxu1  ;;  %v12875_v59 = vpop.permute.xlu1 %2893 }
 0x3bf   : > { %v10105_v3 = vpop.f32.mrb[49].mxu1  ;;  %v3633_v49 = vadd.f32 %v12723_v14, %v12875_v59 }
 0x3c0   : > { %v10106_v26 = vadd.f32 %v10105_v3, %v10104_v30  ;;  %v10107_v54 = vpop.f32.mrb[50].mxu1 }
 0x3c1   : > { %v10108_v12 = vpop.f32.mrb[51].mxu1  ;;  %v3698_v48 = vadd.f32 %v12789_v53, %v3633_v49 }
 0x3c2   : > { %v10109_v51 = vadd.f32 %v10108_v12, %v10107_v54  ;;  %v3747_v9 = vadd.f32 %v10106_v26, %v3682_v33  ;;  %v12880_v42 = vpop.permute.xlu1 %2903 }
 0x3c3   : > { %v3641_v52 = vadd.f32 %v12736_v57, %v12880_v42 }
 0x3c4   : > { %v3750_v38 = vadd.f32 %v10109_v51, %v3685_v56 }
 0x3c5   : > { %v3706_v11 = vadd.f32 %v12801_v29, %v3641_v52 }
 0x3c6   : > { %v10110_v19 = vpop.f32.mrb[52].mxu1 }
 0x3c7   : > { %v10111_v39 = vpop.f32.mrb[53].mxu1 }
 0x3c8   : > { %v10112_v18 = vadd.f32 %v10111_v39, %v10110_v19  ;;  %v10113_v37 = vpop.f32.mrb[54].mxu1 }
 0x3c9   : > { %v10114_v14 = vpop.f32.mrb[55].mxu1 }
 0x3ca   : > { %v3755_v50 = vadd.f32 %v10112_v18, %v3690_v0  ;;  %v10115_v1 = vadd.f32 %v10114_v14, %v10113_v37 }
 0x3cc   : > { %v3758_v61 = vadd.f32 %v10115_v1, %v3693_v63 }
 0x3cf   : > { %v10116_v15 = vpop.f32.mrb[56].mxu1 }
 0x3d0   : > { %v10117_v53 = vpop.f32.mrb[57].mxu1 }
 0x3d1   : > { %v10118_v36 = vadd.f32 %v10117_v53, %v10116_v15  ;;  %v10119_v33 = vpop.f32.mrb[58].mxu1 }
 0x3d2   : > { %v10120_v16 = vpop.f32.mrb[59].mxu1 }
 0x3d3   : > { %v10121_v22 = vadd.f32 %v10120_v16, %v10119_v33  ;;  %v3763_v6 = vadd.f32 %v10118_v36, %v3698_v48 }
 0x3d5   : > { %v3766_v44 = vadd.f32 %v10121_v22, %v3701_v24 }
 0x3d7   : > { %v10122_v57 = vpop.f32.mrb[60].mxu1 }
 0x3d8   : > { %v10123_v60 = vpop.f32.mrb[61].mxu1 }
 0x3d9   : > { %v10124_v5 = vadd.f32 %v10123_v60, %v10122_v57  ;;  %v10125_v29 = vpop.f32.mrb[62].mxu1 }
 0x3da   : > { %v10126_v56 = vpop.f32.mrb[63].mxu1 }
 0x3db   : > { %v10127_v62 = vadd.f32 %v10126_v56, %v10125_v29  ;;  %v3771_v28 = vadd.f32 %v10124_v5, %v3706_v11 }
 0x3dd   : > { %v3774_v30 = vadd.f32 %v10127_v62, %v3709_v8 }
 0x410   : > { %v10144_v3 = vpop.f32.mrb[64].mxu1 }
 0x411   : > { %v10145_v0 = vpop.f32.mrb[65].mxu1 }
 0x412   : > { %v10146_v49 = vadd.f32 %v10145_v0, %v10144_v3  ;;  %v10147_v63 = vpop.f32.mrb[66].mxu1 }
 0x413   : > { %v10148_v26 = vpop.f32.mrb[67].mxu1 }
 0x414   : > { %v3812_v54 = vadd.f32 %v10146_v49, %v3747_v9  ;;  %v10149_v12 = vadd.f32 %v10148_v26, %v10147_v63 }
 0x416   : > { %v3815_v51 = vadd.f32 %v10149_v12, %v3750_v38 }
 0x418   : > { %v10150_v52 = vpop.f32.mrb[68].mxu1 }
 0x419   : > { %v10151_v19 = vpop.f32.mrb[69].mxu1 }
 0x41a   : > { %v10152_v48 = vadd.f32 %v10151_v19, %v10150_v52  ;;  %v10153_v24 = vpop.f32.mrb[70].mxu1 }
 0x41b   : > { %v10154_v39 = vpop.f32.mrb[71].mxu1 }
 0x41c   : > { %v3820_v18 = vadd.f32 %v10152_v48, %v3755_v50  ;;  %v10155_v37 = vadd.f32 %v10154_v39, %v10153_v24 }
 0x41e   : > { %v3823_v14 = vadd.f32 %v10155_v37, %v3758_v61 }
 0x420   : > { %v10156_v1 = vpop.f32.mrb[72].mxu1 }
 0x421   : > { %v10157_v15 = vpop.f32.mrb[73].mxu1 }
 0x422   : > { %v10158_v11 = vadd.f32 %v10157_v15, %v10156_v1  ;;  %v10159_v8 = vpop.f32.mrb[74].mxu1 }
 0x423   : > { %v10160_v53 = vpop.f32.mrb[75].mxu1 }
 0x424   : > { %v3828_v36 = vadd.f32 %v10158_v11, %v3763_v6  ;;  %v10161_v33 = vadd.f32 %v10160_v53, %v10159_v8 }
 0x426   : > { %v3831_v16 = vadd.f32 %v10161_v33, %v3766_v44 }
 0x428   : > { %v10162_v22 = vpop.f32.mrb[76].mxu1 }
 0x429   : > { %v10163_v9 = vpop.f32.mrb[77].mxu1 }
 0x42a   : > { %v10164_v57 = vadd.f32 %v10163_v9, %v10162_v22  ;;  %v10165_v38 = vpop.f32.mrb[78].mxu1 }
 0x42b   : > { %v10166_v60 = vpop.f32.mrb[79].mxu1 }
 0x42c   : > { %v3836_v5 = vadd.f32 %v10164_v57, %v3771_v28  ;;  %v10167_v29 = vadd.f32 %v10166_v60, %v10165_v38 }
 0x42e   : > { %v3839_v56 = vadd.f32 %v10167_v29, %v3774_v30 }
 0x468   : > { %v10184_v62 = vpop.f32.mrb[80].mxu1 }
 0x469   : > { %v10185_v50 = vpop.f32.mrb[81].mxu1 }
 0x46a   : > { %v10186_v3 = vadd.f32 %v10185_v50, %v10184_v62  ;;  %v10187_v61 = vpop.f32.mrb[82].mxu1 }
 0x46b   : > { %v10188_v0 = vpop.f32.mrb[83].mxu1 }
 0x46c   : > { %v10189_v49 = vadd.f32 %v10188_v0, %v10187_v61  ;;  %v12885_v63 = vadd.f32 %v10186_v3, %v3812_v54 }
 0x46e   : > { %v12887_v26 = vadd.f32 %v10189_v49, %v3815_v51 }
 0x470   : > { %v10190_v6 = vpop.f32.mrb[84].mxu1 }
 0x471   : > { %v10191_v44 = vpop.f32.mrb[85].mxu1 }
 0x472   : > { %v10192_v12 = vadd.f32 %v10191_v44, %v10190_v6  ;;  %v10193_v52 = vpop.f32.mrb[86].mxu1 }
 0x473   : > { %v10194_v19 = vpop.f32.mrb[87].mxu1 }
 0x474   : > { %v10195_v48 = vadd.f32 %v10194_v19, %v10193_v52  ;;  %v3885_v24 = vadd.f32 %v10192_v12, %v3820_v18 }
 0x476   : > { %v3888_v28 = vadd.f32 %v10195_v48, %v3823_v14 }
 0x478   : > { %v10196_v39 = vpop.f32.mrb[88].mxu1 }
 0x479   : > { %v3470_v30 = vpop.f32.mrb[0].mxu0  ;;  %v10197_v37 = vpop.f32.mrb[89].mxu1 }
 0x47a   : > { %v10486_v1 = vadd.f32 %v3470_v30, %v12815_v23  ;;  %v10198_v15 = vadd.f32 %v10197_v37, %v10196_v39  ;;  %v3472_v11 = vpop.f32.mrb[1].mxu0  ;;  %v10199_v8 = vpop.f32.mrb[90].mxu1 }
 0x47b   : > { %v10488_v54 = vadd.f32 %v3472_v11, %v12815_v23  ;;  %v3474_v51 = vpop.f32.mrb[2].mxu0  ;;  %v10200_v53 = vpop.f32.mrb[91].mxu1 }
 0x47c   : > { %v10487_v33 = vadd.f32 %v10486_v1, %v12646_v2  ;;  %v10490_v22 = vadd.f32 %v3474_v51, %v12857_v27  ;;  %v10201_v9 = vadd.f32 %v10200_v53, %v10199_v8  ;;  %v3476_v57 = vpop.f32.mrb[3].mxu0  ;;  %v12893_v18 = vadd.f32 %v10198_v15, %v3828_v36 }
 0x47d   : > { %v10489_v14 = vadd.f32 %v10488_v54, %v12648_v35  ;;  %v10492_v38 = vadd.f32 %v3476_v57, %v12857_v27 }
 0x47e   : > { %v10491_v60 = vadd.f32 %v10490_v22, %v12653_v45  ;;  %v12898_v29 = vadd.f32 %v10201_v9, %v3831_v16  ;;  %v3972_v62 = vmax.f32 %v10487_v33, 0.0 }
 0x47f   : > { %v10493_v23 = vadd.f32 %v10492_v38, %v12659_v43  ;;  %v3973_v2 = vmax.f32 %v10489_v14, 0.0 }
 0x480   : > { %v3975_v50 = vmax.f32 %v10491_v60, 0.0  ;;  %v10202_v3 = vpop.f32.mrb[92].mxu1 }
 0x481   : > { %v3976_v61 = vmax.f32 %v10493_v23, 0.0  ;;  %v3480_v0 = vpop.f32.mrb[4].mxu0  ;;  %v10203_v49 = vpop.f32.mrb[93].mxu1 }
 0x482   : > { %v12901_v6 = vpack.c.bf16 %v3975_v50, %v3972_v62  ;;  %v10494_v36 = vadd.f32 %v3480_v0, %v12866_v41  ;;  %v10204_v35 = vadd.f32 %v10203_v49, %v10202_v3  ;;  %v3482_v44 = vpop.f32.mrb[5].mxu0  ;;  %v10205_v27 = vpop.f32.mrb[94].mxu1 }
 0x483   : > { %v12904_v12 = vpack.c.bf16 %v3976_v61, %v3973_v2  ;;  %v10496_v45 = vadd.f32 %v3482_v44, %v12866_v41  ;;  %v3484_v16 = vpop.f32.mrb[6].mxu0  ;;  %v10206_v43 = vpop.f32.mrb[95].mxu1 }
 0x484   : > { %v10495_v52 = vadd.f32 %v10494_v36, %v12664_v58  ;;  %v10498_v19 = vadd.f32 %v3484_v16, %v12823_v17  ;;  %v10207_v48 = vadd.f32 %v10206_v43, %v10205_v27  ;;  %v3486_v39 = vpop.f32.mrb[7].mxu0  ;;  %v3901_v30 = vadd.f32 %v10204_v35, %v3836_v5 }
 0x485   : > { %v10497_v37 = vadd.f32 %v10496_v45, %v12666_v34  ;;  %v10500_v1 = vadd.f32 %v3486_v39, %v12823_v17 }
 0x486   : > { %v10499_v15 = vadd.f32 %v10498_v19, %v12673_v55  ;;  %v3904_v11 = vadd.f32 %v10207_v48, %v3839_v56  ;;  %v3978_v54 = vmax.f32 %v10495_v52, 0.0 }
 0x487   : > { %v10501_v8 = vadd.f32 %v10500_v1, %v12677_v7  ;;  %v3979_v53 = vmax.f32 %v10497_v37, 0.0 }
 0x488   : > { %v3981_v41 = vmax.f32 %v10499_v15, 0.0  ;;  %v10460_v51 = vpop.f32.mrb[96].mxu1 }
 0x489   : > { %v3982_v33 = vmax.f32 %v10501_v8, 0.0  ;;  %v3950_v58 = vadd.f32 %v10460_v51, %v3885_v24  ;;  %v3490_v22 = vpop.f32.mrb[8].mxu0  ;;  %v3941_v9 = vpop.f32.mrb[97].mxu1 }
 0x48a   : > { %v12913_v57 = vpack.c.bf16 %v3981_v41, %v3978_v54  ;;  %v10502_v5 = vadd.f32 %v3490_v22, %v12875_v59  ;;  %v3942_v34 = vadd.f32 %v3941_v9, %v12885_v63  ;;  %v3492_v17 = vpop.f32.mrb[9].mxu0  ;;  %v10461_v14 = vpop.f32.mrb[98].mxu1 }
 0x48b   : > { %v12917_v55 = vpack.c.bf16 %v3982_v33, %v3979_v53  ;;  %v10504_v7 = vadd.f32 %v3492_v17, %v12875_v59  ;;  %v3953_v56 = vadd.f32 %v10461_v14, %v3888_v28  ;;  %v3494_v38 = vpop.f32.mrb[10].mxu0  ;;  %v3944_v60 = vpop.f32.mrb[99].mxu1  ;;  %v3980_v3 = vmax.f32 %v3950_v58, 0.0 }
 0x48c   : > { %v10503_v23 = vadd.f32 %v10502_v5, %v12681_v20  ;;  %v10506_v24 = vadd.f32 %v3494_v38, %v12836_v21  ;;  %v3945_v62 = vadd.f32 %v3944_v60, %v12887_v26  ;;  %v3496_v50 = vpop.f32.mrb[11].mxu0  ;;  %v3974_v0 = vmax.f32 %v3942_v34, 0.0 }
 0x48d   : > { %v10505_v2 = vadd.f32 %v10504_v7, %v12683_v10  ;;  %v3983_v63 = vmax.f32 %v3953_v56, 0.0  ;;  %v10508_v61 = vadd.f32 %v3496_v50, %v12836_v21 }
 0x48e   : > { %v10507_v49 = vadd.f32 %v10506_v24, %v12685_v47  ;;  %v3977_v59 = vmax.f32 %v3945_v62, 0.0  ;;  %v3984_v35 = vmax.f32 %v10503_v23, 0.0 }
 0x48f   : > { %v4223_v28 = vpack.c.bf16 %v3983_v63, %v3980_v3  ;;  %v10509_v36 = vadd.f32 %v10508_v61, %v12690_v32  ;;  %v3985_v45 = vmax.f32 %v10505_v2, 0.0 }
 0x490   : > { %v3987_v20 = vmax.f32 %v10507_v49, 0.0  ;;  %v4222_v44 = vpack.c.bf16 %v3977_v59, %v3974_v0  ;;  %v10464_v27 = vpop.f32.mrb[100].mxu1 }
 0x491   : > { %v3988_v26 = vmax.f32 %v10509_v36, 0.0  ;;  %v3966_v16 = vadd.f32 %v10464_v27, %v3901_v30  ;;  %v3500_v43 = vpop.f32.mrb[12].mxu0  ;;  %v3957_v52 = vpop.f32.mrb[101].mxu1 }
 0x492   : > { %v12927_v10 = vpack.c.bf16 %v3987_v20, %v3984_v35  ;;  %v10510_v21 = vadd.f32 %v3500_v43, %v12880_v42  ;;  %v3958_v19 = vadd.f32 %v3957_v52, %v12893_v18  ;;  %v3502_v47 = vpop.f32.mrb[13].mxu0  ;;  %v10465_v48 = vpop.f32.mrb[102].mxu1  ;;  %4247 = vrot.lane.b32.xlu1 %v4222_v44, %s16508_s11  ;;  %4230 = vrot.lane.b32.xlu0 %v4222_v44, %s16509_s23 }
 0x493   : > { %v12933_v32 = vpack.c.bf16 %v3988_v26, %v3985_v45  ;;  %v10512_v39 = vadd.f32 %v3502_v47, %v12880_v42  ;;  %v3969_v37 = vadd.f32 %v10465_v48, %v3904_v11  ;;  %v3504_v30 = vpop.f32.mrb[14].mxu0  ;;  %v3960_v1 = vpop.f32.mrb[103].mxu1  ;;  %v3992_v41 = vmax.f32 %v3966_v16, 0.0 }
 0x494   : > { %v10511_v15 = vadd.f32 %v10510_v21, %v12693_v25  ;;  %v10514_v8 = vadd.f32 %v3504_v30, %v12842_v40  ;;  %v3961_v54 = vadd.f32 %v3960_v1, %v12898_v29  ;;  %v3506_v18 = vpop.f32.mrb[15].mxu0  ;;  %v3986_v58 = vmax.f32 %v3958_v19, 0.0 }
 0x495   : > { %v10513_v51 = vadd.f32 %v10512_v39, %v12695_v31  ;;  %v3995_v53 = vmax.f32 %v3969_v37, 0.0  ;;  %v10516_v33 = vadd.f32 %v3506_v18, %v12842_v40 }
 0x496   : > { %v10515_v22 = vadd.f32 %v10514_v8, %v12697_v13  ;;  %v3989_v42 = vmax.f32 %v3961_v54, 0.0  ;;  %4264 = vrot.lane.b32.xlu1 %v4222_v44, %s10994_s17  ;;  %4232 = vrot.lane.b32.xlu0 %v4223_v28, %s16509_s23  ;;  %v3990_v29 = vmax.f32 %v10511_v15, 0.0 }
 0x497   : > { %v12943_v25 = vpack.c.bf16 %v3995_v53, %v3992_v41  ;;  %v10517_v11 = vadd.f32 %v10516_v33, %v12702_v4  ;;  %v3991_v34 = vmax.f32 %v10513_v51, 0.0 }
 0x498   : > { %v3993_v9 = vmax.f32 %v10515_v22, 0.0  ;;  %v4224_v5 = vpack.c.bf16 %v3989_v42, %v3986_v58 }
 0x499   : > { %v3994_v31 = vmax.f32 %v10517_v11, 0.0 }
 0x49a   : > { %v12946_v17 = vpack.c.bf16 %v3993_v9, %v3990_v29  ;;  %4281 = vrot.lane.b32.xlu1 %v4222_v44, %s10995_s26  ;;  %4249 = vrot.lane.b32.xlu0 %v4223_v28, %s16508_s11 }
 0x49b   : > { %v12950_v13 = vpack.c.bf16 %v3994_v31, %v3991_v34 }
 0x49e   : > { %4298 = vrot.lane.b32.xlu1 %v4222_v44, %s10975_s20  ;;  %4266 = vrot.lane.b32.xlu0 %v4223_v28, %s10994_s17 }
 0x4a2   : > { %4283 = vrot.lane.b32.xlu0 %v4223_v28, %s10995_s26  ;;  %4234 = vrot.lane.b32.xlu1 %v4224_v5, %s16509_s23 }
 0x4a6   : > { %4300 = vrot.lane.b32.xlu0 %v4223_v28, %s10975_s20  ;;  %4251 = vrot.lane.b32.xlu1 %v4224_v5, %s16508_s11 }
 0x4aa   : > { %4268 = vrot.lane.b32.xlu1 %v4224_v5, %s10994_s17  ;;  %4236 = vrot.lane.b32.xlu0 %v12943_v25, %s16509_s23 }
 0x4ae   : > { %4285 = vrot.lane.b32.xlu1 %v4224_v5, %s10995_s26  ;;  %4253 = vrot.lane.b32.xlu0 %v12943_v25, %s16508_s11  ;;  %s11000_s11 = smov 18  }
 0x4b2   : > { %4302 = vrot.lane.b32.xlu1 %v4224_v5, %s10975_s20  ;;  %4102 = vrot.lane.b32.xlu0 %v12901_v6, %s10996_s8 }
 0x4b6   : > { %4270 = vrot.lane.b32.xlu1 %v12943_v25, %s10994_s17  ;;  %4021 = vrot.lane.b32.xlu0 %v12901_v6, %s10997_s25  ;;  %s11001_s17 = smov 14  }
 0x4ba   : > { %4072 = vrot.lane.b32.xlu1 %v12901_v6, %s16510_s12  ;;  %4038 = vrot.lane.b32.xlu0 %v12901_v6, %s10998_s21 }
 0x4be   : > { %4004 = vrot.lane.b32.xlu1 %v12901_v6, %s16353_s15  ;;  %4055 = vrot.lane.b32.xlu0 %v12901_v6, %s16511_s30 }
 0x4c2   : > { %4104 = vrot.lane.b32.xlu1 %v12904_v12, %s10996_s8  ;;  %4200 = vrot.lane.b32.xlu0 %v12904_v12, %s10971_s29 }
 0x4c6   : > { %4132 = vrot.lane.b32.xlu1 %v12904_v12, %s11000_s11  ;;  %4149 = vrot.lane.b32.xlu0 %v12904_v12, %s11001_s17 }
 0x4ca   : > { %4183 = vrot.lane.b32.xlu1 %v12904_v12, %s16456_s19  ;;  %4166 = vrot.lane.b32.xlu0 %v12904_v12, %s11002_s14 }
 0x4ce   : > { %4074 = vrot.lane.b32.xlu1 %v12913_v57, %s16510_s12  ;;  %4106 = vrot.lane.b32.xlu0 %v12913_v57, %s10996_s8 }
 0x4d2   : > { %4023 = vrot.lane.b32.xlu1 %v12913_v57, %s10997_s25  ;;  %4006 = vrot.lane.b32.xlu0 %v12913_v57, %s16353_s15 }
 0x4d6   : > { %4040 = vrot.lane.b32.xlu1 %v12913_v57, %s10998_s21  ;;  %4202 = vrot.lane.b32.xlu0 %v12917_v55, %s10971_s29 }
 0x4da   : > { %4057 = vrot.lane.b32.xlu1 %v12913_v57, %s16511_s30  ;;  %4185 = vrot.lane.b32.xlu0 %v12917_v55, %s16456_s19 }
 0x4de   : > { %4108 = vrot.lane.b32.xlu1 %v12917_v55, %s10996_s8  ;;  %4076 = vrot.lane.b32.xlu0 %v12927_v10, %s16510_s12 }
 0x4e2   : > { %4134 = vrot.lane.b32.xlu1 %v12917_v55, %s11000_s11  ;;  %4025 = vrot.lane.b32.xlu0 %v12927_v10, %s10997_s25 }
 0x4e6   : > { %4151 = vrot.lane.b32.xlu1 %v12917_v55, %s11001_s17  ;;  %4042 = vrot.lane.b32.xlu0 %v12927_v10, %s10998_s21 }
 0x4ea   : > { %4168 = vrot.lane.b32.xlu1 %v12917_v55, %s11002_s14  ;;  %4059 = vrot.lane.b32.xlu0 %v12927_v10, %s16511_s30 }
 0x4ee   : > { %4110 = vrot.lane.b32.xlu1 %v12927_v10, %s10996_s8  ;;  %4112 = vrot.lane.b32.xlu0 %v12933_v32, %s10996_s8 }
 0x4f2   : > { %4008 = vrot.lane.b32.xlu1 %v12927_v10, %s16353_s15  ;;  %4136 = vrot.lane.b32.xlu0 %v12933_v32, %s11000_s11 }
 0x4f6   : > { %4204 = vrot.lane.b32.xlu1 %v12933_v32, %s10971_s29  ;;  %4153 = vrot.lane.b32.xlu0 %v12933_v32, %s11001_s17 }
 0x4fa   : > { %4187 = vrot.lane.b32.xlu1 %v12933_v32, %s16456_s19  ;;  %4170 = vrot.lane.b32.xlu0 %v12933_v32, %s11002_s14 }
 0x4fe   : > { %4078 = vrot.lane.b32.xlu1 %v12946_v17, %s16510_s12  ;;  %4114 = vrot.lane.b32.xlu0 %v12946_v17, %s10996_s8  ;;  %s16537_s12 = smov 88  }
 0x502   : > { %4027 = vrot.lane.b32.xlu1 %v12946_v17, %s10997_s25  ;;  %4010 = vrot.lane.b32.xlu0 %v12946_v17, %s16353_s15  ;;  %s16535_s25 = smov 105   ;;  %s16606_s15 = smov 68  }
 0x504   : > { %v4248_v4 = vpop.permute.xlu1 %4247  ;;  %v4231_v40 = vpop.permute.xlu0 %4230 }
 0x506   : > { %4116 = vrot.lane.b32.xlu1 %v12950_v13, %s10996_s8  ;;  %4044 = vrot.lane.b32.xlu0 %v12946_v17, %s10998_s21  ;;  %s16532_s8 = smov 106   ;;  %s16550_s21 = smov 87  }
 0x508   : > { %v4265_v6 = vpop.permute.xlu1 %4264  ;;  %v13048_v12 = vpop.permute.xlu0 %4232 }
 0x50a   : > { %4138 = vrot.lane.b32.xlu1 %v12950_v13, %s11000_s11  ;;  %4206 = vrot.lane.b32.xlu0 %v12950_v13, %s10971_s29  ;;  %s16513_s29 = smov 127   ;;  %s16373_s11 = smov 65  }
 0x50c   : > { %v4282_v57 = vpop.permute.xlu1 %4281  ;;  %v13054_v14 = vpop.permute.xlu0 %4249 }
 0x50e   : > { %4155 = vrot.lane.b32.xlu1 %v12950_v13, %s11001_s17  ;;  %4172 = vrot.lane.b32.xlu0 %v12950_v13, %s11002_s14  ;;  %s16516_s14 = smov 124   ;;  %s16382_s17 = smov 46  }
 0x510   : > { %v4299_v55 = vpop.permute.xlu1 %4298  ;;  %v13060_v7 = vpop.permute.xlu0 %4266 }
 0x512   : > { %4189 = vrot.lane.b32.xlu1 %v12950_v13, %s16456_s19  ;;  %4287 = vrot.lane.b32.xlu0 %v12943_v25, %s10995_s26  ;;  %s16560_s19 = smov 86   ;;  %s16571_s26 = smov 85  }
 0x514   : > { %v13066_v56 = vpop.permute.xlu1 %4234  ;;  %v13068_v38 = vpop.permute.xlu0 %4283 }
 0x516   : > { %4061 = vrot.lane.b32.xlu1 %v12946_v17, %s16511_s30  ;;  %4304 = vrot.lane.b32.xlu0 %v12943_v25, %s10975_s20  ;;  %s16514_s20 = smov 125   ;;  %s16369_s30 = smov 66  }
 0x518   : > { %v13074_v60 = vpop.permute.xlu1 %4251  ;;  %v13076_v23 = vpop.permute.xlu0 %4300 }
 0x51c   : > { %v13078_v24 = vpop.permute.xlu1 %4268  ;;  %v13080_v62 = vpop.permute.xlu0 %4236 }
 0x520   : > { %v13082_v50 = vpop.permute.xlu1 %4285  ;;  %v13084_v3 = vpop.permute.xlu0 %4253 }
 0x524   : > { %v13086_v2 = vpop.permute.xlu1 %4302  ;;  %v4103_v63 = vpop.permute.xlu0 %4102 }
 0x528   : > { %v13088_v61 = vpop.permute.xlu1 %4270  ;;  %v4022_v0 = vpop.permute.xlu0 %4021 }
 0x52c   : > { %v4073_v49 = vpop.permute.xlu1 %4072  ;;  %v4039_v59 = vpop.permute.xlu0 %4038 }
 0x52d   : > { %4087 = vst.msk [vmem:[#allocation3 + $0x8] sm:$0xff] %vm16348_vm6, %v4073_v49 }
 0x530   : > { %v4005_v28 = vpop.permute.xlu1 %4004  ;;  %v4056_v36 = vpop.permute.xlu0 %4055 }
 0x531   : > { %4017 = vst.msk [vmem:[#allocation3] sm:$0xff] %vm4016_vm15, %v4005_v28 }
 0x532   : > { %4034 = vst.msk [vmem:[#allocation3] sm:$0xff] %vm4033_vm10, %v4022_v0 }
 0x533   : > { %4051 = vst.msk [vmem:[#allocation3] sm:$0xff] %vm4050_vm5, %v4039_v59 }
 0x534   : > { %4068 = vst.msk [vmem:[#allocation3] sm:$0xff] %vm4067_vm4, %v4056_v36  ;;  %v4105_v35 = vpop.permute.xlu1 %4104  ;;  %v4201_v20 = vpop.permute.xlu0 %4200 }
 0x535   : > { %4085 = vst.msk [vmem:[#allocation3] sm:$0xff] %vm16381_vm3, %v4073_v49  ;;  %v4119_v44 = vsel %vm16344_vm1, %v4103_v63, %v4105_v35  ;;  %vm16376_vm1 = vcmask 900848  }
 0x536   : > { %4215 = vst.msk [vmem:[#allocation3 + $0x10] sm:$0xff] %vm16512_vm13, %v4201_v20  ;;  %vm16377_vm13 = vcmask 736848  }
 0x537   : > { %4243 = vst.msk [vmem:[#allocation3 + $0x10] sm:$0xff] %vm4242_vm9, %v4231_v40 }
 0x538   : > { %4128 = vst.msk [vmem:[#allocation3 + $0x8] sm:$0xff] %vm16345_vm11, %v4119_v44  ;;  %v4133_v27 = vpop.permute.xlu1 %4132  ;;  %v4150_v45 = vpop.permute.xlu0 %4149  ;;  %vm16346_vm11 = vcmask 1048464  }
 0x539   : > { %4260 = vst.msk [vmem:[#allocation3 + $0x10] sm:$0xff] %vm4259_vm14, %v4248_v4 }
 0x53a   : > { %4277 = vst.msk [vmem:[#allocation3 + $0x10] sm:$0xff] %vm16375_vm8, %v4265_v6 }
 0x53b   : > { %4294 = vst.msk [vmem:[#allocation3 + $0x10] sm:$0xff] %vm16347_vm0, %v4282_v57 }
 0x53c   : > { %4145 = vst.msk [vmem:[#allocation3 + $0x8] sm:$0xff] %vm4144_vm7, %v4133_v27  ;;  %v4184_v26 = vpop.permute.xlu1 %4183  ;;  %v4167_v16 = vpop.permute.xlu0 %4166  ;;  %v13106_v43 = vld [vmem:[#allocation3] sm:$0xff] }
 0x53d   : > { %4311 = vst.msk [vmem:[#allocation3 + $0x10] sm:$0xff] %vm16362_vm12, %v4299_v55  ;;  %4371 = vrot.lane.b32.xlu1 %v13106_v43, %s16513_s29 }
 0x53e   : > { %4162 = vst.msk [vmem:[#allocation3 + $0x8] sm:$0xff] %vm4161_vm2, %v4150_v45  ;;  %v10846_v45 = vld [vmem:[%s16210_s3 + $0x4] ss:$52 sps:$4 sm:$0xff]  }
 0x53f   : > { %4179 = vst.msk [vmem:[#allocation3 + $0x8] sm:$0xff] %vm16377_vm13, %v4167_v16  ;;  %7268 = vmatprep.mubr.bf16.mxu1 %v10846_v45  ;;  %7639 = vmatprep.mubr.bf16.mxu0 %v10846_v45 }
 0x540   : > { %4196 = vst.msk [vmem:[#allocation3 + $0x8] sm:$0xff] %vm16376_vm1, %v4184_v26  ;;  %v4075_v52 = vpop.permute.xlu1 %4074  ;;  %v4107_v10 = vpop.permute.xlu0 %4106 }
 0x541   : > { %4213 = vst.msk [vmem:[#allocation3 + $0x8] sm:$0xff] %vm16346_vm11, %v4201_v20  ;;  %4471 = vrot.lane.b32.xlu1 %v13106_v43, %s16509_s23  ;;  %vm16515_vm11 = vcmask 15360  }
 0x542   : > { %4089 = vst.msk [vmem:[#allocation3 + $0x28] sm:$0xff] %vm16348_vm6, %v4075_v52 }
 0x544   : > { %v13116_v21 = vld [vmem:[#allocation3 + $0x10] sm:$0xff]  ;;  %v4024_v19 = vpop.permute.xlu1 %4023  ;;  %v4007_v47 = vpop.permute.xlu0 %4006 }
 0x545   : > { %4375 = vrot.lane.b32.xlu0 %v13116_v21, %s16513_s29  ;;  %4018 = vst.msk [vmem:[#allocation3 + $0x20] sm:$0xff] %vm4016_vm15, %v4007_v47  ;;  %4571 = vrot.lane.b32.xlu1 %v13106_v43, %s16514_s20 }
 0x546   : > { %4035 = vst.msk [vmem:[#allocation3 + $0x20] sm:$0xff] %vm4033_vm10, %v4024_v19 }
 0x548   : > { %v13126_v48 = vld [vmem:[#allocation3 + $0x8] sm:$0xff]  ;;  %v4041_v32 = vpop.permute.xlu1 %4040  ;;  %v4203_v39 = vpop.permute.xlu0 %4202 }
 0x549   : > { %4475 = vrot.lane.b32.xlu0 %v13116_v21, %s16509_s23  ;;  %7236 = vmatprep.subr.bf16.mxu1 %v13126_v48  ;;  %4052 = vst.msk [vmem:[#allocation3 + $0x20] sm:$0xff] %vm4050_vm5, %v4041_v32 }
 0x54a   : > { %7237 = vmatpush1.bf16.msra.mxu1 %v13106_v43  ;;  %4217 = vst.msk [vmem:[#allocation3 + $0x30] sm:$0xff] %vm16515_vm11, %v4203_v39  ;;  %4671 = vrot.lane.b32.xlu1 %v13106_v43, %s16516_s14  ;;  %vm16517_vm11 = vcmask 179200  }
 0x54b   : > { %4244 = vst.msk [vmem:[#allocation3 + $0x30] sm:$0xff] %vm4242_vm9, %v13048_v12 }
 0x54c   : > { %4261 = vst.msk [vmem:[#allocation3 + $0x30] sm:$0xff] %vm4259_vm14, %v13054_v14  ;;  %v4058_v37 = vpop.permute.xlu1 %4057  ;;  %v4186_v30 = vpop.permute.xlu0 %4185 }
 0x54d   : > { %4575 = vrot.lane.b32.xlu0 %v13116_v21, %s16514_s20  ;;  %4278 = vst.msk [vmem:[#allocation3 + $0x30] sm:$0xff] %vm16375_vm8, %v13060_v7 }
 0x54e   : > { %4295 = vst.msk [vmem:[#allocation3 + $0x30] sm:$0xff] %vm16347_vm0, %v13068_v38  ;;  %4771 = vrot.lane.b32.xlu1 %v13106_v43, %s16448_s13  ;;  %vm16518_vm0 = vcmask 244848  }
 0x54f   : > { %4069 = vst.msk [vmem:[#allocation3 + $0x20] sm:$0xff] %vm4067_vm4, %v4058_v37 }
 0x550   : > { %4312 = vst.msk [vmem:[#allocation3 + $0x30] sm:$0xff] %vm16362_vm12, %v13076_v23  ;;  %v4109_v1 = vpop.permute.xlu1 %4108  ;;  %v4077_v15 = vpop.permute.xlu0 %4076 }
 0x551   : > { %4088 = vst.msk [vmem:[#allocation3 + $0x20] sm:$0xff] %vm16381_vm3, %v4075_v52  ;;  %4675 = vrot.lane.b32.xlu0 %v13116_v21, %s16516_s14  ;;  %v4120_v8 = vsel %vm16517_vm11, %v4107_v10, %v4109_v1 }
 0x552   : > { %4091 = vst.msk [vmem:[#allocation3 + $0x48] sm:$0xff] %vm16348_vm6, %v4077_v15  ;;  %4373 = vrot.lane.b32.xlu1 %v13126_v48, %s16513_s29  ;;  %vm16520_vm6 = vcmask 244848  }
 0x553   : > { %4129 = vst.msk [vmem:[#allocation3 + $0x28] sm:$0xff] %vm16518_vm0, %v4120_v8  ;;  %vm16519_vm0 = vcmask 1048464  }
 0x554   : > { %v4135_v54 = vpop.permute.xlu1 %4134  ;;  %v4026_v18 = vpop.permute.xlu0 %4025 }
 0x555   : > { %4775 = vrot.lane.b32.xlu0 %v13116_v21, %s16448_s13  ;;  %4146 = vst.msk [vmem:[#allocation3 + $0x28] sm:$0xff] %vm4144_vm7, %v4135_v54 }
 0x556   : > { %4473 = vrot.lane.b32.xlu1 %v13126_v48, %s16509_s23 }
 0x557   : > { %v13197_v31 = vld [vmem:[#allocation3 + $0x30] sm:$0xff] }
 0x558   : > { %v13162_v41 = vld [vmem:[#allocation3 + $0x20] sm:$0xff]  ;;  %v4152_v51 = vpop.permute.xlu1 %4151  ;;  %v4043_v53 = vpop.permute.xlu0 %4042 }
 0x559   : > { %4379 = vrot.lane.b32.xlu0 %v13162_v41, %s16513_s29  ;;  %4163 = vst.msk [vmem:[#allocation3 + $0x28] sm:$0xff] %vm4161_vm2, %v4152_v51 }
 0x55a   : > { %4573 = vrot.lane.b32.xlu1 %v13126_v48, %s16514_s20 }
 0x55c   : > { %v4169_v33 = vpop.permute.xlu1 %4168  ;;  %v4060_v58 = vpop.permute.xlu0 %4059 }
 0x55d   : > { %4479 = vrot.lane.b32.xlu0 %v13162_v41, %s16509_s23  ;;  %4180 = vst.msk [vmem:[#allocation3 + $0x28] sm:$0xff] %vm16377_vm13, %v4169_v33 }
 0x55e   : > { %4673 = vrot.lane.b32.xlu1 %v13126_v48, %s16516_s14  ;;  %4197 = vst.msk [vmem:[#allocation3 + $0x28] sm:$0xff] %vm16376_vm1, %v4186_v30 }
 0x55f   : > { %4216 = vst.msk [vmem:[#allocation3 + $0x28] sm:$0xff] %vm16519_vm0, %v4203_v39  ;;  %vm16522_vm0 = vcmask 671248  }
 0x560   : > { %v4111_v22 = vpop.permute.xlu1 %4110  ;;  %v4113_v42 = vpop.permute.xlu0 %4112 }
 0x561   : > { %4579 = vrot.lane.b32.xlu0 %v13162_v41, %s16514_s20  ;;  %v4121_v25 = vsel %vm16517_vm11, %v4111_v22, %v4113_v42  ;;  %vm16523_vm11 = vcmask 1048464  }
 0x562   : > { %4773 = vrot.lane.b32.xlu1 %v13126_v48, %s16448_s13  ;;  %4130 = vst.msk [vmem:[#allocation3 + $0x48] sm:$0xff] %vm16520_vm6, %v4121_v25  ;;  %vm16521_vm6 = vcmask 15360  }
 0x564   : > { %v4009_v11 = vpop.permute.xlu1 %4008  ;;  %v4137_v29 = vpop.permute.xlu0 %4136 }
 0x565   : > { %4679 = vrot.lane.b32.xlu0 %v13162_v41, %s16516_s14  ;;  %4019 = vst.msk [vmem:[#allocation3 + $0x40] sm:$0xff] %vm4016_vm15, %v4009_v11 }
 0x566   : > { %4147 = vst.msk [vmem:[#allocation3 + $0x48] sm:$0xff] %vm4144_vm7, %v4137_v29  ;;  %4873 = vrot.lane.b32.xlu1 %v13126_v48, %s16363_s28  ;;  %v13191_v9 = vld [vmem:[#allocation3 + $0x28] sm:$0xff] }
 0x567   : > { %4036 = vst.msk [vmem:[#allocation3 + $0x40] sm:$0xff] %vm4033_vm10, %v4026_v18  ;;  %7238 = vmatprep.subr.bf16.mxu1 %v13191_v9 }
 0x568   : > { %4053 = vst.msk [vmem:[#allocation3 + $0x40] sm:$0xff] %vm4050_vm5, %v4043_v53  ;;  %v4205_v5 = vpop.permute.xlu1 %4204  ;;  %7239 = vmatpush1.bf16.msra.mxu1 %v13162_v41  ;;  %v4154_v34 = vpop.permute.xlu0 %4153 }
 0x569   : > { %4779 = vrot.lane.b32.xlu0 %v13162_v41, %s16448_s13  ;;  %4070 = vst.msk [vmem:[#allocation3 + $0x40] sm:$0xff] %vm4067_vm4, %v4060_v58 }
 0x56a   : > { %4090 = vst.msk [vmem:[#allocation3 + $0x40] sm:$0xff] %vm16381_vm3, %v4077_v15  ;;  %4383 = vrot.lane.b32.xlu1 %v13197_v31, %s16513_s29 }
 0x56b   : > { %4219 = vst.msk [vmem:[#allocation3 + $0x50] sm:$0xff] %vm16521_vm6, %v4205_v5  ;;  %vm16524_vm6 = vcmask 80896  }
 0x56c   : > { %4164 = vst.msk [vmem:[#allocation3 + $0x48] sm:$0xff] %vm4161_vm2, %v4154_v34  ;;  %v4188_v17 = vpop.permute.xlu1 %4187  ;;  %v4171_v13 = vpop.permute.xlu0 %4170 }
 0x56d   : > { %4245 = vst.msk [vmem:[#allocation3 + $0x50] sm:$0xff] %vm4242_vm9, %v13066_v56  ;;  %4381 = vrot.lane.b32.xlu0 %v13191_v9, %s16513_s29 }
 0x56e   : > { %4262 = vst.msk [vmem:[#allocation3 + $0x50] sm:$0xff] %vm4259_vm14, %v13074_v60  ;;  %4483 = vrot.lane.b32.xlu1 %v13197_v31, %s16509_s23 }
 0x56f   : > { %4279 = vst.msk [vmem:[#allocation3 + $0x50] sm:$0xff] %vm16375_vm8, %v13078_v24 }
 0x570   : > { %4296 = vst.msk [vmem:[#allocation3 + $0x50] sm:$0xff] %vm16522_vm0, %v13082_v50  ;;  %v4079_v4 = vpop.permute.xlu1 %4078  ;;  %v4115_v40 = vpop.permute.xlu0 %4114  ;;  %vm16525_vm0 = vcmask 179200  }
 0x571   : > { %4181 = vst.msk [vmem:[#allocation3 + $0x48] sm:$0xff] %vm16377_vm13, %v4171_v13  ;;  %4481 = vrot.lane.b32.xlu0 %v13191_v9, %s16509_s23  ;;  %v13237_v14 = vld [vmem:[#allocation3 + $0x40] sm:$0xff] }
 0x572   : > { %4313 = vst.msk [vmem:[#allocation3 + $0x50] sm:$0xff] %vm16362_vm12, %v13086_v2  ;;  %4583 = vrot.lane.b32.xlu1 %v13197_v31, %s16514_s20 }
 0x573   : > { %4198 = vst.msk [vmem:[#allocation3 + $0x48] sm:$0xff] %vm16376_vm1, %v4188_v17 }
 0x574   : > { %4218 = vst.msk [vmem:[#allocation3 + $0x48] sm:$0xff] %vm16523_vm11, %v4205_v5  ;;  %v4028_v6 = vpop.permute.xlu1 %4027  ;;  %v4011_v12 = vpop.permute.xlu0 %4010  ;;  %vm16526_vm11 = vcmask 244848  }
 0x575   : > { %4093 = vst.msk [vmem:[#allocation3 + $0x68] sm:$0xff] %vm16524_vm6, %v4079_v4  ;;  %4581 = vrot.lane.b32.xlu0 %v13191_v9, %s16514_s20  ;;  %vm16527_vm6 = vcmask 15360  }
 0x576   : > { %4020 = vst.msk [vmem:[#allocation3 + $0x60] sm:$0xff] %vm4016_vm15, %v4011_v12  ;;  %4683 = vrot.lane.b32.xlu1 %v13197_v31, %s16516_s14 }
 0x577   : > { %4037 = vst.msk [vmem:[#allocation3 + $0x60] sm:$0xff] %vm4033_vm10, %v4028_v6 }
 0x578   : > { %v4117_v55 = vpop.permute.xlu1 %4116  ;;  %v4045_v7 = vpop.permute.xlu0 %4044 }
 0x579   : > { %4681 = vrot.lane.b32.xlu0 %v13191_v9, %s16516_s14  ;;  %v4122_v56 = vsel %vm16525_vm0, %v4115_v40, %v4117_v55  ;;  %4054 = vst.msk [vmem:[#allocation3 + $0x60] sm:$0xff] %vm4050_vm5, %v4045_v7  ;;  %v13251_v23 = vld [vmem:[#allocation3 + $0x50] sm:$0xff]  ;;  %vm16528_vm0 = vcmask 671248  }
 0x57a   : > { %4783 = vrot.lane.b32.xlu1 %v13197_v31, %s16448_s13  ;;  %4131 = vst.msk [vmem:[#allocation3 + $0x68] sm:$0xff] %vm16526_vm11, %v4122_v56  ;;  %vm16529_vm11 = vcmask 1048464  }
 0x57b   : > { %v13234_v57 = vld [vmem:[#allocation3 + $0x48] sm:$0xff] }
 0x57c   : > { %7240 = vmatprep.subr.bf16.mxu1 %v13234_v57  ;;  %v4139_v38 = vpop.permute.xlu1 %4138  ;;  %v4207_v60 = vpop.permute.xlu0 %4206 }
 0x57d   : > { %7241 = vmatpush1.bf16.msra.mxu1 %v13237_v14  ;;  %4781 = vrot.lane.b32.xlu0 %v13191_v9, %s16448_s13  ;;  %4148 = vst.msk [vmem:[#allocation3 + $0x68] sm:$0xff] %vm4144_vm7, %v4139_v38 }
 0x57e   : > { %4221 = vst.msk [vmem:[#allocation3 + $0x70] sm:$0xff] %vm16527_vm6, %v4207_v60  ;;  %4387 = vrot.lane.b32.xlu1 %v13237_v14, %s16513_s29  ;;  %vm16530_vm6 = vcmask 1039360  }
 0x57f   : > { %4246 = vst.msk [vmem:[#allocation3 + $0x70] sm:$0xff] %vm4242_vm9, %v13080_v62 }
 0x580   : > { %4263 = vst.msk [vmem:[#allocation3 + $0x70] sm:$0xff] %vm4259_vm14, %v13084_v3  ;;  %v4156_v24 = vpop.permute.xlu1 %4155  ;;  %v4173_v50 = vpop.permute.xlu0 %4172 }
 0x581   : > { %4391 = vrot.lane.b32.xlu0 %v13251_v23, %s16513_s29  ;;  %4280 = vst.msk [vmem:[#allocation3 + $0x70] sm:$0xff] %vm16375_vm8, %v13088_v61  ;;  %vm16665_vm8 = vcmask 867328  }
 0x582   : > { %4165 = vst.msk [vmem:[#allocation3 + $0x68] sm:$0xff] %vm4161_vm2, %v4156_v24  ;;  %4487 = vrot.lane.b32.xlu1 %v13237_v14, %s16509_s23 }
 0x583   : > { %4182 = vst.msk [vmem:[#allocation3 + $0x68] sm:$0xff] %vm16377_vm13, %v4173_v50  ;;  %vm16683_vm13 = vcmask 850944  }
 0x584   : > { %v4190_v62 = vpop.permute.xlu1 %4189  ;;  %v4288_v2 = vpop.permute.xlu0 %4287 }
 0x585   : > { %4491 = vrot.lane.b32.xlu0 %v13251_v23, %s16509_s23  ;;  %4199 = vst.msk [vmem:[#allocation3 + $0x68] sm:$0xff] %vm16376_vm1, %v4190_v62  ;;  %vm16672_vm1 = vcmask 719872  }
 0x586   : > { %4297 = vst.msk [vmem:[#allocation3 + $0x70] sm:$0xff] %vm16528_vm0, %v4288_v2  ;;  %4587 = vrot.lane.b32.xlu1 %v13237_v14, %s16514_s20  ;;  %vm16531_vm0 = vmmov %vm16530_vm6 }
 0x587   : > { %4220 = vst.msk [vmem:[#allocation3 + $0x68] sm:$0xff] %vm16529_vm11, %v4207_v60  ;;  %vm16533_vm11 = vmmov %vm16531_vm0 }
 0x588   : > { %v4062_v3 = vpop.permute.xlu1 %4061  ;;  %v4305_v63 = vpop.permute.xlu0 %4304 }
 0x589   : > { %4591 = vrot.lane.b32.xlu0 %v13251_v23, %s16514_s20  ;;  %4071 = vst.msk [vmem:[#allocation3 + $0x60] sm:$0xff] %vm4067_vm4, %v4062_v3 }
 0x58a   : > { %4314 = vst.msk [vmem:[#allocation3 + $0x70] sm:$0xff] %vm16362_vm12, %v4305_v63  ;;  %4687 = vrot.lane.b32.xlu1 %v13237_v14, %s16516_s14 }
 0x58b   : > { %4092 = vst.msk [vmem:[#allocation3 + $0x60] sm:$0xff] %vm16381_vm3, %v4079_v4 }
 0x58d   : > { %4691 = vrot.lane.b32.xlu0 %v13251_v23, %s16516_s14 }
 0x58e   : > { %4787 = vrot.lane.b32.xlu1 %v13237_v14, %s16448_s13  ;;  %v13283_v61 = vld [vmem:[#allocation3 + $0x68] sm:$0xff] }
 0x58f   : > { %7242 = vmatprep.subr.bf16.mxu1 %v13283_v61 }
 0x591   : > { %4791 = vrot.lane.b32.xlu0 %v13251_v23, %s16448_s13  ;;  %v13311_v49 = vld [vmem:[#allocation3 + $0x70] sm:$0xff] }
 0x592   : > { %4389 = vrot.lane.b32.xlu1 %v13234_v57, %s16513_s29  ;;  %v13290_v0 = vld [vmem:[#allocation3 + $0x60] sm:$0xff] }
 0x593   : > { %7243 = vmatpush1.bf16.msra.mxu1 %v13290_v0 }
 0x595   : > { %4395 = vrot.lane.b32.xlu0 %v13290_v0, %s16513_s29 }
 0x596   : > { %4489 = vrot.lane.b32.xlu1 %v13234_v57, %s16509_s23 }
 0x599   : > { %4495 = vrot.lane.b32.xlu0 %v13290_v0, %s16509_s23 }
 0x59a   : > { %4589 = vrot.lane.b32.xlu1 %v13234_v57, %s16514_s20 }
 0x59d   : > { %4595 = vrot.lane.b32.xlu0 %v13290_v0, %s16514_s20 }
 0x59e   : > { %4689 = vrot.lane.b32.xlu1 %v13234_v57, %s16516_s14 }
 0x5a1   : > { %4695 = vrot.lane.b32.xlu0 %v13290_v0, %s16516_s14 }
 0x5a2   : > { %4789 = vrot.lane.b32.xlu1 %v13234_v57, %s16448_s13 }
 0x5a5   : > { %4795 = vrot.lane.b32.xlu0 %v13290_v0, %s16448_s13 }
 0x5a6   : > { %4399 = vrot.lane.b32.xlu1 %v13311_v49, %s16513_s29 }
 0x5a9   : > { %4397 = vrot.lane.b32.xlu0 %v13283_v61, %s16513_s29 }
 0x5aa   : > { %4499 = vrot.lane.b32.xlu1 %v13311_v49, %s16509_s23 }
 0x5ad   : > { %4497 = vrot.lane.b32.xlu0 %v13283_v61, %s16509_s23 }
 0x5ae   : > { %4599 = vrot.lane.b32.xlu1 %v13311_v49, %s16514_s20 }
 0x5af   : > { %v4372_v59 = vpop.permute.xlu1 %4371 }
 0x5b1   : > { %4597 = vrot.lane.b32.xlu0 %v13283_v61, %s16514_s20 }
 0x5b2   : > { %4699 = vrot.lane.b32.xlu1 %v13311_v49, %s16516_s14 }
 0x5b3   : > { %v13329_v28 = vpop.permute.xlu1 %4471 }
 0x5b5   : > { %4697 = vrot.lane.b32.xlu0 %v13283_v61, %s16516_s14 }
 0x5b6   : > { %4799 = vrot.lane.b32.xlu1 %v13311_v49, %s16448_s13 }
 0x5b7   : > { %v13331_v36 = vpop.permute.xlu0 %4375  ;;  %v13337_v35 = vpop.permute.xlu1 %4571 }
 0x5b9   : > { %4797 = vrot.lane.b32.xlu0 %v13283_v61, %s16448_s13 }
 0x5ba   : > { %4871 = vrot.lane.b32.xlu1 %v13106_v43, %s16363_s28 }
 0x5bb   : > { %v13339_v20 = vpop.permute.xlu0 %4475 }
 0x5bc   : > { %v13345_v44 = vpop.permute.xlu1 %4671 }
 0x5bd   : > { %4875 = vrot.lane.b32.xlu0 %v13116_v21, %s16363_s28 }
 0x5be   : > { %4883 = vrot.lane.b32.xlu1 %v13197_v31, %s16363_s28 }
 0x5bf   : > { %v13347_v27 = vpop.permute.xlu0 %4575 }
 0x5c0   : > { %v13356_v26 = vpop.permute.xlu1 %4771 }
 0x5c1   : > { %4881 = vrot.lane.b32.xlu0 %v13191_v9, %s16363_s28 }
 0x5c2   : > { %4889 = vrot.lane.b32.xlu1 %v13234_v57, %s16363_s28 }
 0x5c3   : > { %v13358_v16 = vpop.permute.xlu0 %4675 }
 0x5c4   : > { %v4374_v52 = vpop.permute.xlu1 %4373 }
 0x5c5   : > { %4879 = vrot.lane.b32.xlu0 %v13162_v41, %s16363_s28  ;;  %v4404_v19 = vsel %vm16530_vm6, %v4374_v52, %v13331_v36  ;;  %v4403_v47 = vsel %vm16531_vm0, %v4372_v59, %v4374_v52  ;;  %vm16534_vm6 = vmmov %vm16531_vm0 }
 0x5c6   : > { %4887 = vrot.lane.b32.xlu1 %v13237_v14, %s16363_s28  ;;  %7244 = vmatprep.subr.bf16.mxu1 %v4404_v19 }
 0x5c7   : > { %v13364_v10 = vpop.permute.xlu0 %4775  ;;  %7245 = vmatpush1.bf16.msra.mxu1 %v4403_v47 }
 0x5c8   : > { %v13373_v32 = vpop.permute.xlu1 %4473 }
 0x5c9   : > { %4891 = vrot.lane.b32.xlu0 %v13251_v23, %s16363_s28 }
 0x5ca   : > { %4899 = vrot.lane.b32.xlu1 %v13311_v49, %s16363_s28 }
 0x5cb   : > { %v4380_v39 = vpop.permute.xlu0 %4379 }
 0x5cc   : > { %v13379_v37 = vpop.permute.xlu1 %4573 }
 0x5cd   : > { %4897 = vrot.lane.b32.xlu0 %v13283_v61, %s16363_s28 }
 0x5ce   : > { %4973 = vrot.lane.b32.xlu1 %v13126_v48, %s16532_s8 }
 0x5cf   : > { %v13381_v30 = vpop.permute.xlu0 %4479 }
 0x5d0   : > { %v13387_v1 = vpop.permute.xlu1 %4673 }
 0x5d1   : > { %4895 = vrot.lane.b32.xlu0 %v13290_v0, %s16363_s28 }
 0x5d2   : > { %4971 = vrot.lane.b32.xlu1 %v13106_v43, %s16532_s8 }
 0x5d3   : > { %v13389_v15 = vpop.permute.xlu0 %4579 }
 0x5d4   : > { %v13395_v8 = vpop.permute.xlu1 %4773 }
 0x5d5   : > { %4975 = vrot.lane.b32.xlu0 %v13116_v21, %s16532_s8 }
 0x5d6   : > { %4983 = vrot.lane.b32.xlu1 %v13197_v31, %s16532_s8 }
 0x5d7   : > { %v13397_v54 = vpop.permute.xlu0 %4679 }
 0x5d8   : > { %v13403_v18 = vpop.permute.xlu1 %4873 }
 0x5d9   : > { %4981 = vrot.lane.b32.xlu0 %v13191_v9, %s16532_s8 }
 0x5da   : > { %4989 = vrot.lane.b32.xlu1 %v13234_v57, %s16532_s8 }
 0x5db   : > { %v13405_v51 = vpop.permute.xlu0 %4779 }
 0x5dc   : > { %v13411_v53 = vpop.permute.xlu1 %4383 }
 0x5dd   : > { %4979 = vrot.lane.b32.xlu0 %v13162_v41, %s16532_s8 }
 0x5de   : > { %4987 = vrot.lane.b32.xlu1 %v13237_v14, %s16532_s8 }
 0x5df   : > { %v4382_v33 = vpop.permute.xlu0 %4381 }
 0x5e0   : > { %v4407_v58 = vsel %vm16533_vm11, %v4382_v33, %v13411_v53  ;;  %v4406_v22 = vsel %vm16534_vm6, %v4380_v39, %v4382_v33  ;;  %v13420_v42 = vpop.permute.xlu1 %4483  ;;  %vm16536_vm11 = vmmov %vm16531_vm0 }
 0x5e1   : > { %4991 = vrot.lane.b32.xlu0 %v13251_v23, %s16532_s8  ;;  %7246 = vmatprep.subr.bf16.mxu1 %v4407_v58  ;;  %vm16539_vm6 = vmmov %vm16531_vm0 }
 0x5e2   : > { %7247 = vmatpush1.bf16.msra.mxu1 %v4406_v22  ;;  %4999 = vrot.lane.b32.xlu1 %v13311_v49, %s16532_s8 }
 0x5e3   : > { %v13422_v25 = vpop.permute.xlu0 %4481 }
 0x5e4   : > { %v13428_v11 = vpop.permute.xlu1 %4583 }
 0x5e5   : > { %4997 = vrot.lane.b32.xlu0 %v13283_v61, %s16532_s8 }
 0x5e6   : > { %5073 = vrot.lane.b32.xlu1 %v13126_v48, %s16535_s25 }
 0x5e7   : > { %v13430_v29 = vpop.permute.xlu0 %4581 }
 0x5e8   : > { %v13436_v5 = vpop.permute.xlu1 %4683 }
 0x5e9   : > { %4995 = vrot.lane.b32.xlu0 %v13290_v0, %s16532_s8 }
 0x5ea   : > { %5071 = vrot.lane.b32.xlu1 %v13106_v43, %s16535_s25 }
 0x5eb   : > { %v13438_v34 = vpop.permute.xlu0 %4681 }
 0x5ec   : > { %v13444_v17 = vpop.permute.xlu1 %4783 }
 0x5ed   : > { %5075 = vrot.lane.b32.xlu0 %v13116_v21, %s16535_s25 }
 0x5ee   : > { %5083 = vrot.lane.b32.xlu1 %v13197_v31, %s16535_s25 }
 0x5ef   : > { %v13446_v13 = vpop.permute.xlu0 %4781 }
 0x5f0   : > { %v4388_v4 = vpop.permute.xlu1 %4387 }
 0x5f1   : > { %5081 = vrot.lane.b32.xlu0 %v13191_v9, %s16535_s25 }
 0x5f2   : > { %5089 = vrot.lane.b32.xlu1 %v13234_v57, %s16535_s25 }
 0x5f3   : > { %v13452_v40 = vpop.permute.xlu0 %4391 }
 0x5f4   : > { %v13458_v6 = vpop.permute.xlu1 %4487 }
 0x5f5   : > { %5079 = vrot.lane.b32.xlu0 %v13162_v41, %s16535_s25 }
 0x5f6   : > { %5087 = vrot.lane.b32.xlu1 %v13237_v14, %s16535_s25 }
 0x5f7   : > { %v13460_v12 = vpop.permute.xlu0 %4491 }
 0x5f8   : > { %v13466_v55 = vpop.permute.xlu1 %4587 }
 0x5f9   : > { %5091 = vrot.lane.b32.xlu0 %v13251_v23, %s16535_s25 }
 0x5fa   : > { %5099 = vrot.lane.b32.xlu1 %v13311_v49, %s16535_s25 }
 0x5fb   : > { %v13468_v7 = vpop.permute.xlu0 %4591 }
 0x5fc   : > { %v13474_v56 = vpop.permute.xlu1 %4687 }
 0x5fd   : > { %5097 = vrot.lane.b32.xlu0 %v13283_v61, %s16535_s25 }
 0x5fe   : > { %5173 = vrot.lane.b32.xlu1 %v13126_v48, %s16458_s16 }
 0x5ff   : > { %v13476_v38 = vpop.permute.xlu0 %4691 }
 0x600   : > { %v13482_v60 = vpop.permute.xlu1 %4787 }
 0x601   : > { %5095 = vrot.lane.b32.xlu0 %v13290_v0, %s16535_s25 }
 0x602   : > { %5171 = vrot.lane.b32.xlu1 %v13106_v43, %s16458_s16 }
 0x603   : > { %v13484_v24 = vpop.permute.xlu0 %4791 }
 0x604   : > { %v4390_v50 = vpop.permute.xlu1 %4389 }
 0x605   : > { %5175 = vrot.lane.b32.xlu0 %v13116_v21, %s16458_s16  ;;  %v4410_v2 = vsel %vm16531_vm0, %v4390_v50, %v13452_v40  ;;  %v4409_v3 = vsel %vm16536_vm11, %v4388_v4, %v4390_v50  ;;  %vm16540_vm11 = vcmask 1031168  }
 0x606   : > { %5183 = vrot.lane.b32.xlu1 %v13197_v31, %s16458_s16  ;;  %7248 = vmatprep.subr.bf16.mxu1 %v4410_v2 }
 0x607   : > { %v4396_v62 = vpop.permute.xlu0 %4395  ;;  %7249 = vmatpush1.bf16.msra.mxu1 %v4409_v3  ;;  %v4504_v3 = vsel %vm16540_vm11, %v13373_v32, %v13339_v20 }
 0x608   : > { %v4490_v63 = vpop.permute.xlu1 %4489 }
 0x609   : > { %5181 = vrot.lane.b32.xlu0 %v13191_v9, %s16458_s16 }
 0x60a   : > { %5189 = vrot.lane.b32.xlu1 %v13234_v57, %s16458_s16 }
 0x60b   : > { %v4496_v59 = vpop.permute.xlu0 %4495 }
 0x60c   : > { %v13501_v45 = vpop.permute.xlu1 %4589 }
 0x60d   : > { %5179 = vrot.lane.b32.xlu0 %v13162_v41, %s16458_s16 }
 0x60e   : > { %5187 = vrot.lane.b32.xlu1 %v13237_v14, %s16458_s16 }
 0x60f   : > { %v13503_v52 = vpop.permute.xlu0 %4595 }
 0x610   : > { %v13509_v19 = vpop.permute.xlu1 %4689 }
 0x611   : > { %5191 = vrot.lane.b32.xlu0 %v13251_v23, %s16458_s16 }
 0x612   : > { %5199 = vrot.lane.b32.xlu1 %v13311_v49, %s16458_s16 }
 0x613   : > { %v13511_v47 = vpop.permute.xlu0 %4695 }
 0x614   : > { %v13517_v39 = vpop.permute.xlu1 %4789 }
 0x615   : > { %5197 = vrot.lane.b32.xlu0 %v13283_v61, %s16458_s16 }
 0x616   : > { %5273 = vrot.lane.b32.xlu1 %v13126_v48, %s16537_s12 }
 0x617   : > { %v13519_v33 = vpop.permute.xlu0 %4795 }
 0x618   : > { %v13525_v58 = vpop.permute.xlu1 %4399 }
 0x619   : > { %5195 = vrot.lane.b32.xlu0 %v13290_v0, %s16458_s16  ;;  %16538 = vst [vmem:[#allocation11_spill] sm:$0xff] %v13525_v58 }
 0x61a   : > { %5271 = vrot.lane.b32.xlu1 %v13106_v43, %s16537_s12 }
 0x61b   : > { %v4398_v22 = vpop.permute.xlu0 %4397 }
 0x61c   : > { %v4413_v4 = vsel %vm16539_vm6, %v4398_v22, %v13525_v58  ;;  %v4412_v50 = vsel %vm16531_vm0, %v4396_v62, %v4398_v22  ;;  %v13534_v2 = vpop.permute.xlu1 %4499  ;;  %vm16541_vm6 = vmmov %vm16540_vm11 }
 0x61d   : > { %5275 = vrot.lane.b32.xlu0 %v13116_v21, %s16537_s12  ;;  %7250 = vmatprep.subr.bf16.mxu1 %v4413_v4  ;;  %v4503_v62 = vsel %vm16541_vm6, %v13329_v28, %v13373_v32  ;;  %vm16542_vm0 = vmmov %vm16541_vm6 }
 0x61e   : > { %7251 = vmatpush1.bf16.msra.mxu1 %v4412_v50  ;;  %5283 = vrot.lane.b32.xlu1 %v13197_v31, %s16537_s12  ;;  %v4507_v4 = vsel %vm16542_vm0, %v13422_v25, %v13420_v42  ;;  %vm16543_vm11 = vmmov %vm16542_vm0 }
 0x61f   : > { %7252 = vmatprep.subr.bf16.mxu1 %v4504_v3  ;;  %v4498_v46 = vpop.permute.xlu0 %4497  ;;  %v4506_v3 = vsel %vm16543_vm11, %v13381_v30, %v13422_v25  ;;  %vm16545_vm6 = vmmov %vm16542_vm0 }
 0x620   : > { %v13546_v22 = vpop.permute.xlu1 %4599  ;;  %v4510_v32 = vsel %vm16545_vm6, %v4490_v63, %v13460_v12  ;;  %vm16547_vm11 = vmmov %vm16542_vm0 }
 0x621   : > { %5281 = vrot.lane.b32.xlu0 %v13191_v9, %s16537_s12  ;;  %v4513_v30 = vsel %vm16547_vm11, %v4498_v46, %v13534_v2  ;;  %vm16548_vm6 = vmmov %vm16542_vm0 }
 0x622   : > { %7253 = vmatpush1.bf16.msra.mxu1 %v4503_v62  ;;  %5289 = vrot.lane.b32.xlu1 %v13234_v57, %s16537_s12 }
 0x623   : > { %7254 = vmatprep.subr.bf16.mxu1 %v4507_v4  ;;  %v4598_v50 = vpop.permute.xlu0 %4597  ;;  %v4509_v4 = vsel %vm16542_vm0, %v13458_v6, %v4490_v63  ;;  %vm16549_vm0 = vcmask 1022976  }
 0x624   : > { %v13558_v28 = vpop.permute.xlu1 %4699  ;;  %v4604_v6 = vsel %vm16549_vm0, %v13379_v37, %v13347_v27  ;;  %vm16551_vm11 = vmmov %vm16549_vm0 }
 0x625   : > { %5279 = vrot.lane.b32.xlu0 %v13162_v41, %s16537_s12  ;;  %16544 = vst [vmem:[#allocation8_spill] sm:$0xff] %v13558_v28 }
 0x626   : > { %7255 = vmatpush1.bf16.msra.mxu1 %v4506_v3  ;;  %5287 = vrot.lane.b32.xlu1 %v13237_v14, %s16537_s12  ;;  %v4512_v3 = vsel %vm16548_vm6, %v4496_v59, %v4498_v46  ;;  %v4603_v46 = vsel %vm16551_vm11, %v13337_v35, %v13379_v37  ;;  %vm16552_vm6 = vmmov %vm16549_vm0  ;;  %v4606_v35 = vsel %vm16549_vm0, %v13389_v15, %v13430_v29 }
 0x627   : > { %7256 = vmatprep.subr.bf16.mxu1 %v4510_v32  ;;  %v13562_v62 = vpop.permute.xlu0 %4697  ;;  %vm16553_vm11 = vmmov %vm16549_vm0  ;;  %v4613_v15 = vsel %vm16549_vm0, %v4598_v50, %v13546_v22 }
 0x628   : > { %v13570_v58 = vpop.permute.xlu1 %4799 }
 0x629   : > { %5291 = vrot.lane.b32.xlu0 %v13251_v23, %s16537_s12  ;;  %16546 = vst [vmem:[#allocation14_spill] sm:$0xff] %v13570_v58 }
 0x62a   : > { %7257 = vmatpush1.bf16.msra.mxu1 %v4509_v4  ;;  %5299 = vrot.lane.b32.xlu1 %v13311_v49, %s16537_s12  ;;  %v4607_v4 = vsel %vm16552_vm6, %v13430_v29, %v13428_v11  ;;  %vm16554_vm6 = vmmov %vm16549_vm0 }
 0x62b   : > { %7258 = vmatprep.subr.bf16.mxu1 %v4513_v30  ;;  %v13574_v25 = vpop.permute.xlu0 %4797 }
 0x62c   : > { %v13581_v32 = vpop.permute.xlu1 %4871 }
 0x62d   : > { %5297 = vrot.lane.b32.xlu0 %v13283_v61, %s16537_s12 }
 0x62e   : > { %7259 = vmatpush1.bf16.msra.mxu1 %v4512_v3  ;;  %5373 = vrot.lane.b32.xlu1 %v13126_v48, %s16550_s21  ;;  %v4610_v3 = vsel %vm16553_vm11, %v13501_v45, %v13468_v7  ;;  %vm16555_vm11 = vmmov %vm16549_vm0 }
 0x62f   : > { %7260 = vmatprep.subr.bf16.mxu1 %v4604_v6  ;;  %v13586_v63 = vpop.permute.xlu0 %4875 }
 0x630   : > { %v13595_v59 = vpop.permute.xlu1 %4883 }
 0x631   : > { %5295 = vrot.lane.b32.xlu0 %v13290_v0, %s16537_s12 }
 0x632   : > { %7261 = vmatpush1.bf16.msra.mxu1 %v4603_v46  ;;  %5371 = vrot.lane.b32.xlu1 %v13106_v43, %s16550_s21  ;;  %v4609_v43 = vsel %vm16554_vm6, %v13466_v55, %v13501_v45  ;;  %v4612_v46 = vsel %vm16555_vm11, %v13503_v52, %v4598_v50  ;;  %v13638_v55 = vld [vmem:[%s16210_s3] ss:$52 sps:$4 sm:$0xff]   ;;  %vm16556_vm6 = vcmask 1014784  }
 0x633   : > { %7262 = vmatprep.subr.bf16.mxu1 %v4607_v4  ;;  %v13600_v30 = vpop.permute.xlu0 %4881  ;;  %v4704_v4 = vsel %vm16556_vm6, %v13387_v1, %v13358_v16  ;;  %vm16557_vm0 = vmmov %vm16556_vm6 }
 0x634   : > { %v13609_v37 = vpop.permute.xlu1 %4889  ;;  %v4703_v52 = vsel %vm16557_vm0, %v13345_v44, %v13387_v1  ;;  %vm16558_vm11 = vmmov %vm16557_vm0  ;;  %v13678_v1 = vld [vmem:[%s16210_s3 + $0x68] ss:$52 sps:$4 sm:$0xff]  }
 0x635   : > { %5375 = vrot.lane.b32.xlu0 %v13116_v21, %s16550_s21  ;;  %vm16559_vm6 = vmmov %vm16557_vm0 }
 0x636   : > { %7263 = vmatpush1.bf16.msra.mxu1 %v4606_v35  ;;  %5383 = vrot.lane.b32.xlu1 %v13197_v31, %s16550_s21  ;;  %v13648_v35 = vld [vmem:[%s16210_s3 + $0x6c] ss:$52 sps:$4 sm:$0xff]   ;;  %v4706_v44 = vsel %vm16559_vm6, %v13397_v54, %v13438_v34  ;;  %vm16562_vm6 = vmmov %vm16557_vm0 }
 0x637   : > { %7264 = vmatprep.subr.bf16.mxu1 %v4610_v3  ;;  %v13614_v6 = vpop.permute.xlu0 %4879 }
 0x638   : > { %v13623_v21 = vpop.permute.xlu1 %4887 }
 0x639   : > { %5381 = vrot.lane.b32.xlu0 %v13191_v9, %s16550_s21 }
 0x63a   : > { %7265 = vmatpush1.bf16.msra.mxu1 %v4609_v43  ;;  %5389 = vrot.lane.b32.xlu1 %v13234_v57, %s16550_s21  ;;  %v4707_v43 = vsel %vm16558_vm11, %v13438_v34, %v13436_v5  ;;  %vm16561_vm11 = vmmov %vm16557_vm0 }
 0x63b   : > { %7266 = vmatprep.subr.bf16.mxu1 %v4613_v15  ;;  %v13627_v29 = vpop.permute.xlu0 %4891  ;;  %v4709_v54 = vsel %vm16561_vm11, %v13474_v56, %v13509_v19  ;;  %v13712_v56 = vld [vmem:[#allocation3 + $0x10] sm:$0xff]  ;;  %vm16563_vm11 = vcmask 883712  }
 0x63c   : > { %v13640_v45 = vpop.permute.xlu1 %4899 }
 0x63d   : > { %5379 = vrot.lane.b32.xlu0 %v13162_v41, %s16550_s21 }
 0x63e   : > { %7267 = vmatpush1.bf16.msra.mxu1 %v4612_v46  ;;  %5387 = vrot.lane.b32.xlu1 %v13237_v14, %s16550_s21 }
 0x63f   : > { %7289 = vmatprep.subr.bf16.mxu1 %v4704_v4  ;;  %v13650_v3 = vpop.permute.xlu0 %4897  ;;  %v4710_v4 = vsel %vm16557_vm0, %v13509_v19, %v13476_v38  ;;  %v4712_v19 = vsel %vm16557_vm0, %v13511_v47, %v13562_v62 }
 0x640   : > { %v13660_v50 = vpop.permute.xlu1 %4973 }
 0x641   : > { %5391 = vrot.lane.b32.xlu0 %v13251_v23, %s16550_s21  ;;  %7269 = vmatmul.mubr.bf16.vlgmr.msra.gmra.mrb[104].mxu1 %v13638_v55 }
 0x642   : > { %7290 = vmatpush1.bf16.msra.mxu1 %v4703_v52  ;;  %7278 = vmatprep.mubr.bf16.mxu1 %v13648_v35  ;;  %v13688_v52 = vld [vmem:[%s16210_s3 + $0xc] ss:$52 sps:$4 sm:$0xff]  }
 0x643   : > { %7291 = vmatprep.subr.bf16.mxu1 %v4707_v43  ;;  %v13666_v15 = vpop.permute.xlu0 %4895  ;;  %5399 = vrot.lane.b32.xlu1 %v13311_v49, %s16550_s21 }
 0x644   : > { %v13680_v46 = vpop.permute.xlu1 %4971 }
 0x645   : > { %5397 = vrot.lane.b32.xlu0 %v13283_v61, %s16550_s21 }
 0x646   : > { %7292 = vmatpush1.bf16.msra.mxu1 %v4706_v44  ;;  %v4713_v44 = vsel %vm16562_vm6, %v13562_v62, %v13558_v28  ;;  %vm16564_vm6 = vmmov %vm16563_vm11 }
 0x647   : > { %7293 = vmatprep.subr.bf16.mxu1 %v4710_v4  ;;  %v13690_v43 = vpop.permute.xlu0 %4975  ;;  %5473 = vrot.lane.b32.xlu1 %v13126_v48, %s16560_s19  ;;  %v13708_v4 = vld [vmem:[#allocation3] sm:$0xff]  ;;  %v4803_v47 = vsel %vm16564_vm6, %v13356_v26, %v13395_v8  ;;  %vm16565_vm0 = vmmov %vm16564_vm6 }
 0x648   : > { %v13700_v34 = vpop.permute.xlu1 %4983  ;;  %vm16567_vm6 = vmmov %vm16565_vm0 }
 0x649   : > { %5395 = vrot.lane.b32.xlu0 %v13290_v0, %s16550_s21  ;;  %7279 = vmatmul.mubr.bf16.gmra.mrb[108].mxu1 %v13678_v1 }
 0x64a   : > { %7294 = vmatpush1.bf16.msra.mxu1 %v4709_v54  ;;  %7321 = vmatprep.mubr.bf16.mxu1 %v13688_v52 }
 0x64b   : > { %7295 = vmatprep.subr.bf16.mxu1 %v4713_v44  ;;  %v13706_v48 = vpop.permute.xlu0 %4981  ;;  %5471 = vrot.lane.b32.xlu1 %v13708_v4, %s16560_s19  ;;  %v4804_v44 = vsel %vm16563_vm11, %v13395_v8, %v13364_v10  ;;  %vm16566_vm11 = vmmov %vm16565_vm0 }
 0x64c   : > { %v13719_v54 = vpop.permute.xlu1 %4989  ;;  %v4806_v26 = vsel %vm16566_vm11, %v13405_v51, %v13446_v13  ;;  %vm16568_vm11 = vmmov %vm16565_vm0 }
 0x64d   : > { %5475 = vrot.lane.b32.xlu0 %v13712_v56, %s16560_s19 }
 0x64e   : > { %7296 = vmatpush1.bf16.msra.mxu1 %v4712_v19  ;;  %v4807_v19 = vsel %vm16565_vm0, %v13446_v13, %v13444_v17  ;;  %v4813_v13 = vsel %vm16568_vm11, %v13574_v25, %v13570_v58 }
 0x64f   : > { %7297 = vmatprep.subr.bf16.mxu1 %v4804_v44  ;;  %v13724_v28 = vpop.permute.xlu0 %4979  ;;  %5483 = vrot.lane.b32.xlu1 %v13197_v31, %s16560_s19 }
 0x650   : > { %v13733_v62 = vpop.permute.xlu1 %4987 }
 0x651   : > { %5481 = vrot.lane.b32.xlu0 %v13191_v9, %s16560_s19 }
 0x652   : > { %7298 = vmatpush1.bf16.msra.mxu1 %v4803_v47  ;;  %v4810_v47 = vsel %vm16567_vm6, %v13517_v39, %v13484_v24  ;;  %vm16569_vm6 = vmmov %vm16565_vm0 }
 0x653   : > { %7299 = vmatprep.subr.bf16.mxu1 %v4807_v19  ;;  %v13738_v44 = vpop.permute.xlu0 %4991  ;;  %5489 = vrot.lane.b32.xlu1 %v13234_v57, %s16560_s19 }
 0x654   : > { %v13747_v8 = vpop.permute.xlu1 %4999 }
 0x655   : > { %5479 = vrot.lane.b32.xlu0 %v13162_v41, %s16560_s19  ;;  %v4809_v41 = vsel %vm16565_vm0, %v13482_v60, %v13517_v39  ;;  %v4812_v60 = vsel %vm16569_vm6, %v13519_v33, %v13574_v25  ;;  %vm16570_vm0 = vcmask 875520  }
 0x656   : > { %7300 = vmatpush1.bf16.msra.mxu1 %v4806_v26  ;;  %vm16572_vm11 = vmmov %vm16570_vm0 }
 0x657   : > { %7301 = vmatprep.subr.bf16.mxu1 %v4810_v47  ;;  %v13752_v19 = vpop.permute.xlu0 %4997  ;;  %5487 = vrot.lane.b32.xlu1 %v13237_v14, %s16560_s19  ;;  %v4904_v47 = vsel %vm16570_vm0, %v13403_v18, %v13586_v63  ;;  %v4903_v58 = vsel %vm16572_vm11, %v13581_v32, %v13403_v18  ;;  %vm16574_vm6 = vmmov %vm16570_vm0  ;;  %v4906_v18 = vsel %vm16570_vm0, %v13614_v6, %v13600_v30  ;;  %v13819_v6 = vld [vmem:[#allocation3 + $0x18] sm:$0xff] }
 0x658   : > { %v13761_v51 = vpop.permute.xlu1 %5073  ;;  %v4907_v25 = vsel %vm16574_vm6, %v13600_v30, %v13595_v59  ;;  %vm16575_vm11 = vmmov %vm16570_vm0 }
 0x659   : > { %5491 = vrot.lane.b32.xlu0 %v13251_v23, %s16560_s19  ;;  %vm16576_vm6 = vmmov %vm16570_vm0 }
 0x65a   : > { %7302 = vmatpush1.bf16.msra.mxu1 %v4809_v41  ;;  %v4909_v30 = vsel %vm16576_vm6, %v13623_v21, %v13609_v37  ;;  %vm16580_vm6 = vcmask 867328  }
 0x65b   : > { %7303 = vmatprep.subr.bf16.mxu1 %v4813_v13  ;;  %v13766_v26 = vpop.permute.xlu0 %4995  ;;  %5499 = vrot.lane.b32.xlu1 %v13311_v49, %s16560_s19  ;;  %v13782_v13 = vld [vmem:[#allocation3 + $0x8] sm:$0xff]  ;;  %v5004_v21 = vsel %vm16580_vm6, %v13660_v50, %v13690_v43 }
 0x65c   : > { %v13775_v39 = vpop.permute.xlu1 %5071 }
 0x65d   : > { %5497 = vrot.lane.b32.xlu0 %v13283_v61, %s16560_s19 }
 0x65e   : > { %7304 = vmatpush1.bf16.msra.mxu1 %v4812_v60 }
 0x65f   : > { %7305 = vmatprep.subr.bf16.mxu1 %v4904_v47  ;;  %v13780_v41 = vpop.permute.xlu0 %5075  ;;  %5573 = vrot.lane.b32.xlu1 %v13782_v13, %s16571_s26 }
 0x660   : > { %v13791_v33 = vpop.permute.xlu1 %5083 }
 0x661   : > { %5495 = vrot.lane.b32.xlu0 %v13290_v0, %s16560_s19  ;;  %16573 = vst [vmem:[#allocation10_spill] sm:$0xff] %v13791_v33 }
 0x662   : > { %7306 = vmatpush1.bf16.msra.mxu1 %v4903_v58  ;;  %v4910_v58 = vsel %vm16575_vm11, %v13609_v37, %v13627_v29  ;;  %vm16578_vm11 = vmmov %vm16570_vm0 }
 0x663   : > { %7307 = vmatprep.subr.bf16.mxu1 %v4907_v25  ;;  %v13796_v60 = vpop.permute.xlu0 %5081  ;;  %5571 = vrot.lane.b32.xlu1 %v13708_v4, %s16571_s26 }
 0x664   : > { %v13805_v32 = vpop.permute.xlu1 %5089 }
 0x665   : > { %5575 = vrot.lane.b32.xlu0 %v13712_v56, %s16571_s26 }
 0x666   : > { %7308 = vmatpush1.bf16.msra.mxu1 %v4906_v18  ;;  %v4913_v18 = vsel %vm16570_vm0, %v13650_v3, %v13640_v45  ;;  %vm16581_vm0 = vmmov %vm16580_vm6 }
 0x667   : > { %7309 = vmatprep.subr.bf16.mxu1 %v4910_v58  ;;  %v13810_v47 = vpop.permute.xlu0 %5079  ;;  %5583 = vrot.lane.b32.xlu1 %v13197_v31, %s16571_s26  ;;  %v13830_v31 = vld [vmem:[#allocation3 + $0x20] sm:$0xff]  ;;  %vm16583_vm6 = vmmov %vm16581_vm0 }
 0x668   : > { %v13821_v25 = vpop.permute.xlu1 %5087 }
 0x669   : > { %5581 = vrot.lane.b32.xlu0 %v13191_v9, %s16571_s26  ;;  %v4912_v9 = vsel %vm16578_vm11, %v13666_v15, %v13650_v3  ;;  %v5003_v3 = vsel %vm16581_vm0, %v13680_v46, %v13660_v50  ;;  %v13851_v15 = vld [vmem:[#allocation3 + $0x38] sm:$0xff]  ;;  %vm16582_vm11 = vmmov %vm16581_vm0  ;;  %v5010_v50 = vsel %vm16581_vm0, %v13719_v54, %v13738_v44 }
 0x66a   : > { %7310 = vmatpush1.bf16.msra.mxu1 %v4909_v30 }
 0x66b   : > { %7311 = vmatprep.subr.bf16.mxu1 %v4913_v18  ;;  %v13826_v58 = vpop.permute.xlu0 %5091  ;;  %4477 = vrot.lane.b32.xlu1 %v13819_v6, %s16509_s23 }
 0x66c   : > { %16577 = vst [vmem:[#allocation12_spill] sm:$0xff] %v13826_v58  ;;  %v13837_v37 = vpop.permute.xlu1 %5099 }
 0x66d   : > { %5579 = vrot.lane.b32.xlu0 %v13830_v31, %s16571_s26  ;;  %16579 = vst [vmem:[#allocation9_spill] sm:$0xff] %v13837_v37 }
 0x66e   : > { %7312 = vmatpush1.bf16.msra.mxu1 %v4912_v9  ;;  %v5007_v9 = vsel %vm16582_vm11, %v13706_v48, %v13700_v34  ;;  %vm16585_vm11 = vmmov %vm16581_vm0 }
 0x66f   : > { %7313 = vmatprep.subr.bf16.mxu1 %v5004_v21  ;;  %v13842_v30 = vpop.permute.xlu0 %5097  ;;  %5591 = vrot.lane.b32.xlu1 %v13251_v23, %s16571_s26  ;;  %v5006_v23 = vsel %vm16583_vm6, %v13724_v28, %v13706_v48  ;;  %v5009_v28 = vsel %vm16585_vm11, %v13733_v62, %v13719_v54  ;;  %vm16587_vm6 = vmmov %vm16581_vm0  ;;  %vm16588_vm11 = vcmask 859136  }
 0x670   : > { %v13853_v18 = vpop.permute.xlu1 %5173  ;;  %v5104_v62 = vsel %vm16588_vm11, %v13761_v51, %v13780_v41 }
 0x671   : > { %5589 = vrot.lane.b32.xlu0 %v13234_v57, %s16571_s26 }
 0x672   : > { %7314 = vmatpush1.bf16.msra.mxu1 %v5003_v3  ;;  %v5013_v3 = vsel %vm16587_vm6, %v13752_v19, %v13747_v8  ;;  %vm16589_vm6 = vmmov %vm16588_vm11 }
 0x673   : > { %7315 = vmatprep.subr.bf16.mxu1 %v5007_v9  ;;  %v13858_v21 = vpop.permute.xlu0 %5095  ;;  %4485 = vrot.lane.b32.xlu1 %v13851_v15, %s16509_s23 }
 0x674   : > { %v13867_v57 = vpop.permute.xlu1 %5171 }
 0x675   : > { %5587 = vrot.lane.b32.xlu0 %v13237_v14, %s16571_s26  ;;  %v13881_v14 = vld [vmem:[#allocation3 + $0x58] sm:$0xff] }
 0x676   : > { %7316 = vmatpush1.bf16.msra.mxu1 %v5006_v23  ;;  %v10853_v23 = vld [vmem:[%s16210_s3 + $0x74] ss:$52 sps:$4 sm:$0xff]  }
 0x677   : > { %7317 = vmatprep.subr.bf16.mxu1 %v5010_v50  ;;  %v13872_v46 = vpop.permute.xlu0 %5175  ;;  %5599 = vrot.lane.b32.xlu1 %v13311_v49, %s16571_s26  ;;  %v5012_v49 = vsel %vm16581_vm0, %v13766_v26, %v13752_v19  ;;  %v13915_v26 = vld [vmem:[#allocation3 + $0x78] sm:$0xff]  ;;  %vm16590_vm0 = vmmov %vm16589_vm6 }
 0x678   : > { %16584 = vst [vmem:[#allocation16_spill] sm:$0xff] %v13872_v46  ;;  %v13883_v48 = vpop.permute.xlu1 %5183  ;;  %vm16592_vm11 = vmmov %vm16590_vm0 }
 0x679   : > { %5597 = vrot.lane.b32.xlu0 %v13283_v61, %s16571_s26  ;;  %16586 = vst [vmem:[#allocation19_spill] sm:$0xff] %v13883_v48  ;;  %v10850_v61 = vld [vmem:[%s16210_s3 + $0x8] ss:$52 sps:$4 sm:$0xff]  }
 0x67a   : > { %7318 = vmatpush1.bf16.msra.mxu1 %v5009_v28  ;;  %v5107_v28 = vsel %vm16590_vm0, %v13796_v60, %v13791_v33 }
 0x67b   : > { %7319 = vmatprep.subr.bf16.mxu1 %v5013_v3  ;;  %v13888_v9 = vpop.permute.xlu0 %5181  ;;  %4493 = vrot.lane.b32.xlu1 %v13881_v14, %s16509_s23 }
 0x67c   : > { %v13900_v54 = vpop.permute.xlu1 %5189 }
 0x67d   : > { %5595 = vrot.lane.b32.xlu0 %v13290_v0, %s16571_s26  ;;  %v5103_v0 = vsel %vm16589_vm6, %v13775_v39, %v13761_v51  ;;  %v5106_v51 = vsel %vm16592_vm11, %v13810_v47, %v13796_v60  ;;  %v13932_v39 = vld [vmem:[%s16210_s3 + $0x70] ss:$52 sps:$4 sm:$0xff]   ;;  %vm16594_vm6 = vmmov %vm16590_vm0  ;;  %v13942_v47 = vld [vmem:[#allocation3 + $0x30] sm:$0xff] }
 0x67e   : > { %7320 = vmatpush1.bf16.msra.mxu1 %v5012_v49  ;;  %vm16595_vm11 = vmmov %vm16590_vm0 }
 0x67f   : > { %7342 = vmatprep.subr.bf16.mxu1 %v5104_v62  ;;  %v5180_v19 = vpop.permute.xlu0 %5179  ;;  %5675 = vrot.lane.b32.xlu1 %v13712_v56, %s16480_s22  ;;  %v10858_v62 = vld [vmem:[%s16210_s3 + $0x14] ss:$52 sps:$4 sm:$0xff]  }
 0x680   : > { %v5188_v50 = vpop.permute.xlu1 %5187 }
 0x681   : > { %5673 = vrot.lane.b32.xlu0 %v13782_v13, %s16480_s22  ;;  %7322 = vmatmul.mubr.bf16.vlgmr.msra.gmra.mrb[104].mxu1 %v10850_v61  ;;  %v5110_v61 = vsel %vm16594_vm6, %v13805_v32, %v13826_v58  ;;  %vm16596_vm6 = vmmov %vm16590_vm0 }
 0x682   : > { %7343 = vmatpush1.bf16.msra.mxu1 %v5103_v0  ;;  %7331 = vmatprep.mubr.bf16.mxu1 %v10853_v23  ;;  %v13946_v23 = vld [vmem:[#allocation3 + $0x28] sm:$0xff]  ;;  %v5109_v0 = vsel %vm16590_vm0, %v13821_v25, %v13805_v32  ;;  %v5112_v32 = vsel %vm16596_vm6, %v13858_v21, %v13842_v30  ;;  %vm16597_vm0 = vcmask 850944  }
 0x683   : > { %7344 = vmatprep.subr.bf16.mxu1 %v5107_v28  ;;  %v13920_v3 = vpop.permute.xlu0 %5191  ;;  %4501 = vrot.lane.b32.xlu1 %v13915_v26, %s16509_s23  ;;  %vm16599_vm6 = vmmov %vm16597_vm0 }
 0x684   : > { %16591 = vst [vmem:[#allocation18_spill] sm:$0xff] %v13920_v3  ;;  %v13934_v49 = vpop.permute.xlu1 %5199 }
 0x685   : > { %5671 = vrot.lane.b32.xlu0 %v13708_v4, %s16480_s22  ;;  %16593 = vst [vmem:[#allocation20_spill] sm:$0xff] %v13934_v49 }
 0x686   : > { %7345 = vmatpush1.bf16.msra.mxu1 %v5106_v51  ;;  %v5113_v51 = vsel %vm16595_vm11, %v13842_v30, %v13837_v37  ;;  %v13973_v37 = vld [vmem:[#allocation3 + $0x48] sm:$0xff]  ;;  %vm16598_vm11 = vmmov %vm16597_vm0 }
 0x687   : > { %7346 = vmatprep.subr.bf16.mxu1 %v5110_v61  ;;  %v5198_v60 = vpop.permute.xlu0 %5197  ;;  %5683 = vrot.lane.b32.xlu1 %v13942_v47, %s16480_s22  ;;  %v5203_v30 = vsel %vm16598_vm11, %v13867_v57, %v13853_v18  ;;  %vm16600_vm11 = vmmov %vm16597_vm0 }
 0x688   : > { %v5274_v28 = vpop.permute.xlu1 %5273 }
 0x689   : > { %5681 = vrot.lane.b32.xlu0 %v13946_v23, %s16480_s22  ;;  %7332 = vmatmul.mubr.bf16.gmra.mrb[108].mxu1 %v13932_v39 }
 0x68a   : > { %7347 = vmatpush1.bf16.msra.mxu1 %v5109_v0  ;;  %7374 = vmatprep.mubr.bf16.mxu1 %v10858_v62  ;;  %v5204_v0 = vsel %vm16597_vm0, %v13853_v18, %v13872_v46  ;;  %v13985_v46 = vld [vmem:[#allocation3 + $0x40] sm:$0xff]  ;;  %v5206_v18 = vsel %vm16597_vm0, %v5180_v19, %v13888_v9  ;;  %v5213_v19 = vsel %vm16597_vm0, %v5198_v60, %v13934_v49 }
 0x68b   : > { %7348 = vmatprep.subr.bf16.mxu1 %v5113_v51  ;;  %v5196_v61 = vpop.permute.xlu0 %5195  ;;  %4577 = vrot.lane.b32.xlu1 %v13819_v6, %s16514_s20  ;;  %v13969_v51 = vld [vmem:[#allocation3 + $0x50] sm:$0xff] }
 0x68c   : > { %v5272_v25 = vpop.permute.xlu1 %5271 }
 0x68d   : > { %5679 = vrot.lane.b32.xlu0 %v13830_v31, %s16480_s22 }
 0x68e   : > { %7349 = vmatpush1.bf16.msra.mxu1 %v5112_v32  ;;  %v5207_v32 = vsel %vm16599_vm6, %v13888_v9, %v13883_v48  ;;  %v13996_v48 = vld [vmem:[#allocation3 + $0x68] sm:$0xff]  ;;  %vm16601_vm6 = vmmov %vm16597_vm0 }
 0x68f   : > { %7350 = vmatprep.subr.bf16.mxu1 %v5204_v0  ;;  %v13967_v62 = vpop.permute.xlu0 %5275  ;;  %5691 = vrot.lane.b32.xlu1 %v13969_v51, %s16480_s22  ;;  %v5209_v58 = vsel %vm16601_vm6, %v5188_v50, %v13900_v54  ;;  %vm16603_vm6 = vcmask 719872  }
 0x690   : > { %v13980_v21 = vpop.permute.xlu1 %5283 }
 0x691   : > { %5689 = vrot.lane.b32.xlu0 %v13973_v37, %s16480_s22 }
 0x692   : > { %7351 = vmatpush1.bf16.msra.mxu1 %v5203_v30  ;;  %v5210_v30 = vsel %vm16600_vm11, %v13900_v54, %v13920_v3  ;;  %vm16602_vm11 = vmmov %vm16597_vm0 }
 0x693   : > { %7352 = vmatprep.subr.bf16.mxu1 %v5207_v32  ;;  %v5282_v0 = vpop.permute.xlu0 %5281  ;;  %5687 = vrot.lane.b32.xlu1 %v13985_v46, %s16480_s22  ;;  %v5212_v3 = vsel %vm16602_vm11, %v5196_v61, %v5198_v60  ;;  %vm16604_vm0 = vmmov %vm16603_vm6 }
 0x694   : > { %v5290_v57 = vpop.permute.xlu1 %5289  ;;  %v5303_v49 = vsel %vm16604_vm0, %v5272_v25, %v5274_v28  ;;  %vm16605_vm11 = vmmov %vm16604_vm0 }
 0x695   : > { %4377 = vrot.lane.b32.xlu0 %v13819_v6, %s16513_s29 }
 0x696   : > { %7353 = vmatpush1.bf16.msra.mxu1 %v5206_v18 }
 0x697   : > { %7354 = vmatprep.subr.bf16.mxu1 %v5210_v30  ;;  %v5280_v32 = vpop.permute.xlu0 %5279  ;;  %5697 = vrot.lane.b32.xlu1 %v13996_v48, %s16480_s22  ;;  %v14010_v30 = vld [vmem:[#allocation3 + $0x70] sm:$0xff] }
 0x698   : > { %v5288_v9 = vpop.permute.xlu1 %5287 }
 0x699   : > { %4585 = vrot.lane.b32.xlu0 %v13851_v15, %s16514_s20 }
 0x69a   : > { %7355 = vmatpush1.bf16.msra.mxu1 %v5209_v58  ;;  %v5304_v58 = vsel %vm16603_vm6, %v5274_v28, %v13967_v62  ;;  %vm16607_vm6 = vmmov %vm16604_vm0 }
 0x69b   : > { %7356 = vmatprep.subr.bf16.mxu1 %v5213_v19  ;;  %v14006_v18 = vpop.permute.xlu0 %5291  ;;  %4385 = vrot.lane.b32.xlu1 %v13851_v15, %s16513_s29  ;;  %v14021_v19 = vld [vmem:[#allocation3 + $0x60] sm:$0xff] }
 0x69c   : > { %v14015_v54 = vpop.permute.xlu1 %5299  ;;  %v5310_v28 = vsel %vm16604_vm0, %v5290_v57, %v14006_v18 }
 0x69d   : > { %5699 = vrot.lane.b32.xlu0 %v14010_v30, %s16480_s22 }
 0x69e   : > { %7357 = vmatpush1.bf16.msra.mxu1 %v5212_v3  ;;  %v5307_v3 = vsel %vm16605_vm11, %v5282_v0, %v13980_v21  ;;  %vm16608_vm11 = vmmov %vm16604_vm0 }
 0x69f   : > { %7358 = vmatprep.subr.bf16.mxu1 %v5304_v58  ;;  %v5298_v50 = vpop.permute.xlu0 %5297  ;;  %4593 = vrot.lane.b32.xlu1 %v13881_v14, %s16514_s20  ;;  %v5306_v58 = vsel %vm16607_vm6, %v5280_v32, %v5282_v0  ;;  %v5309_v25 = vsel %vm16608_vm11, %v5288_v9, %v5290_v57  ;;  %vm16609_vm6 = vmmov %vm16604_vm0  ;;  %vm16610_vm11 = vcmask 711680  }
 0x6a0   : > { %v5374_v60 = vpop.permute.xlu1 %5373  ;;  %v5313_v32 = vsel %vm16609_vm6, %v5298_v50, %v14015_v54  ;;  %vm16611_vm6 = vmmov %vm16610_vm11 }
 0x6a1   : > { %5695 = vrot.lane.b32.xlu0 %v14021_v19, %s16480_s22 }
 0x6a2   : > { %7359 = vmatpush1.bf16.msra.mxu1 %v5303_v49 }
 0x6a3   : > { %7360 = vmatprep.subr.bf16.mxu1 %v5307_v3  ;;  %v5296_v61 = vpop.permute.xlu0 %5295  ;;  %5775 = vrot.lane.b32.xlu1 %v13712_v56, %s16606_s15 }
 0x6a4   : > { %v5372_v33 = vpop.permute.xlu1 %5371 }
 0x6a5   : > { %5773 = vrot.lane.b32.xlu0 %v13782_v13, %s16606_s15 }
 0x6a6   : > { %7361 = vmatpush1.bf16.msra.mxu1 %v5306_v58  ;;  %v5312_v58 = vsel %vm16604_vm0, %v5296_v61, %v5298_v50  ;;  %vm16612_vm0 = vmmov %vm16611_vm6 }
 0x6a7   : > { %7362 = vmatprep.subr.bf16.mxu1 %v5310_v28  ;;  %v14035_v49 = vpop.permute.xlu0 %5375  ;;  %5771 = vrot.lane.b32.xlu1 %v13708_v4, %s16606_s15  ;;  %vm16617_vm12 = vmmov %vm16612_vm0 }
 0x6a8   : > { %v14042_v0 = vpop.permute.xlu1 %5383  ;;  %v5404_v9 = vsel %vm16610_vm11, %v5374_v60, %v14035_v49  ;;  %vm16613_vm11 = vmmov %vm16612_vm0 }
 0x6a9   : > { %4393 = vrot.lane.b32.xlu0 %v13881_v14, %s16513_s29 }
 0x6aa   : > { %7363 = vmatpush1.bf16.msra.mxu1 %v5309_v25  ;;  %v5403_v25 = vsel %vm16611_vm6, %v5372_v33, %v5374_v60  ;;  %vm16615_vm6 = vmmov %vm16612_vm0 }
 0x6ab   : > { %7364 = vmatprep.subr.bf16.mxu1 %v5313_v32  ;;  %v5382_v3 = vpop.permute.xlu0 %5381  ;;  %5781 = vrot.lane.b32.xlu1 %v13946_v23, %s16606_s15 }
 0x6ac   : > { %v5390_v57 = vpop.permute.xlu1 %5389  ;;  %v5407_v50 = vsel %vm16612_vm0, %v5382_v3, %v14042_v0 }
 0x6ad   : > { %4601 = vrot.lane.b32.xlu0 %v13915_v26, %s16514_s20 }
 0x6ae   : > { %7365 = vmatpush1.bf16.msra.mxu1 %v5312_v58 }
 0x6af   : > { %7366 = vmatprep.subr.bf16.mxu1 %v5404_v9  ;;  %v5380_v28 = vpop.permute.xlu0 %5379  ;;  %4401 = vrot.lane.b32.xlu1 %v13915_v26, %s16513_s29 }
 0x6b0   : > { %v5388_v32 = vpop.permute.xlu1 %5387  ;;  %v5406_v58 = vsel %vm16613_vm11, %v5380_v28, %v5382_v3  ;;  %vm16616_vm11 = vmmov %vm16612_vm0 }
 0x6b1   : > { %5783 = vrot.lane.b32.xlu0 %v13942_v47, %s16606_s15 }
 0x6b2   : > { %7367 = vmatpush1.bf16.msra.mxu1 %v5403_v25  ;;  %v5409_v25 = vsel %vm16612_vm0, %v5388_v32, %v5390_v57 }
 0x6b3   : > { %7368 = vmatprep.subr.bf16.mxu1 %v5407_v50  ;;  %v14060_v61 = vpop.permute.xlu0 %5391  ;;  %4877 = vrot.lane.b32.xlu1 %v13819_v6, %s16363_s28  ;;  %s16371_s28 = smov 67  }
 0x6b4   : > { %v5410_v60 = vsel %vm16615_vm6, %v5390_v57, %v14060_v61  ;;  %v10856_v57 = vld [vmem:[%s16210_s3 + $0x10] ss:$52 sps:$4 sm:$0xff]  }
 0x6b5   : > { %5779 = vrot.lane.b32.xlu0 %v13830_v31, %s16606_s15  ;;  %v14067_v33 = vpop.permute.xlu1 %5399 }
 0x6b6   : > { %16614 = vst [vmem:[#allocation21_spill] sm:$0xff] %v14067_v33  ;;  %7369 = vmatpush1.bf16.msra.mxu1 %v5406_v58 }
 0x6b7   : > { %7370 = vmatprep.subr.bf16.mxu1 %v5410_v60  ;;  %v5398_v9 = vpop.permute.xlu0 %5397  ;;  %5791 = vrot.lane.b32.xlu1 %v13969_v51, %s16606_s15 }
 0x6b8   : > { %v5413_v28 = vsel %vm16616_vm11, %v5398_v9, %v14067_v33 }
 0x6b9   : > { %5789 = vrot.lane.b32.xlu0 %v13973_v37, %s16606_s15  ;;  %v5474_v3 = vpop.permute.xlu1 %5473 }
 0x6ba   : > { %7371 = vmatpush1.bf16.msra.mxu1 %v5409_v25  ;;  %v10859_v25 = vld [vmem:[%s16210_s3 + $0x7c] ss:$52 sps:$4 sm:$0xff]  }
 0x6bb   : > { %7372 = vmatprep.subr.bf16.mxu1 %v5413_v28  ;;  %v5396_v50 = vpop.permute.xlu0 %5395  ;;  %5787 = vrot.lane.b32.xlu1 %v13985_v46, %s16606_s15 }
 0x6bc   : > { %v5412_v58 = vsel %vm16617_vm12, %v5396_v50, %v5398_v9  ;;  %vm16619_vm12 = vcmask 703488  }
 0x6bd   : > { %4677 = vrot.lane.b32.xlu0 %v13819_v6, %s16516_s14  ;;  %v5472_v60 = vpop.permute.xlu1 %5471  ;;  %vm16621_vm6 = vmmov %vm16619_vm12 }
 0x6be   : > { %7373 = vmatpush1.bf16.msra.mxu1 %v5412_v58  ;;  %v5503_v28 = vsel %vm16621_vm6, %v5472_v60, %v5474_v3  ;;  %vm16622_vm0 = vmmov %vm16621_vm6 }
 0x6bf   : > { %v14086_v32 = vpop.permute.xlu0 %5475  ;;  %5797 = vrot.lane.b32.xlu1 %v13996_v48, %s16606_s15  ;;  %vm16623_vm11 = vmmov %vm16622_vm0 }
 0x6c0   : > { %16618 = vst [vmem:[#allocation13_spill] sm:$0xff] %v14086_v32  ;;  %v5504_v9 = vsel %vm16619_vm12, %v5474_v3, %v14086_v32  ;;  %v10861_v3 = vld [vmem:[%s16210_s3 + $0x78] ss:$52 sps:$4 sm:$0xff]   ;;  %vm16624_vm12 = vmmov %vm16622_vm0 }
 0x6c1   : > { %4885 = vrot.lane.b32.xlu0 %v13851_v15, %s16620_s0  ;;  %7395 = vmatprep.subr.bf16.mxu1 %v5504_v9  ;;  %v14098_v50 = vpop.permute.xlu1 %5483  ;;  %vm16625_vm6 = vmmov %vm16622_vm0 }
 0x6c2   : > { %7375 = vmatmul.mubr.bf16.vlgmr.msra.gmra.mrb[104].mxu1 %v10856_v57  ;;  %v10864_v57 = vld [vmem:[%s16210_s3 + $0x1c] ss:$52 sps:$4 sm:$0xff]  }
 0x6c3   : > { %7396 = vmatpush1.bf16.msra.mxu1 %v5503_v28  ;;  %v5482_v58 = vpop.permute.xlu0 %5481  ;;  %7384 = vmatprep.mubr.bf16.mxu1 %v10859_v25 }
 0x6c4   : > { %4685 = vrot.lane.b32.xlu1 %v13851_v15, %s16516_s14  ;;  %v5507_v33 = vsel %vm16622_vm0, %v5482_v58, %v14098_v50 }
 0x6c5   : > { %5799 = vrot.lane.b32.xlu0 %v14010_v30, %s16606_s15  ;;  %7397 = vmatprep.subr.bf16.mxu1 %v5507_v33  ;;  %v5490_v32 = vpop.permute.xlu1 %5489 }
 0x6c7   : > { %v5480_v60 = vpop.permute.xlu0 %5479 }
 0x6c8   : > { %v5506_v25 = vsel %vm16623_vm11, %v5480_v60, %v5482_v58  ;;  %4893 = vrot.lane.b32.xlu1 %v13881_v14, %s16620_s0  ;;  %vm16627_vm11 = vmmov %vm16622_vm0 }
 0x6c9   : > { %5795 = vrot.lane.b32.xlu0 %v14021_v19, %s16606_s15  ;;  %7398 = vmatpush1.bf16.msra.mxu1 %v5506_v25  ;;  %v5488_v33 = vpop.permute.xlu1 %5487 }
 0x6ca   : > { %7385 = vmatmul.mubr.bf16.gmra.mrb[108].mxu1 %v10861_v3  ;;  %v5509_v58 = vsel %vm16625_vm6, %v5488_v33, %v5490_v32 }
 0x6cb   : > { %v14117_v9 = vpop.permute.xlu0 %5491  ;;  %7427 = vmatprep.mubr.bf16.mxu1 %v10864_v57 }
 0x6cc   : > { %5876 = vrot.lane.b32.xlu1 %v13712_v56, %s16371_s28  ;;  %v5510_v28 = vsel %vm16624_vm12, %v5490_v32, %v14117_v9  ;;  %vm16629_vm12 = vcmask 695296  }
 0x6cd   : > { %5874 = vrot.lane.b32.xlu0 %v13782_v13, %s16371_s28  ;;  %7399 = vmatprep.subr.bf16.mxu1 %v5510_v28  ;;  %v14126_v60 = vpop.permute.xlu1 %5499  ;;  %vm16630_vm6 = vmmov %vm16629_vm12 }
 0x6ce   : > { %16626 = vst [vmem:[#allocation23_spill] sm:$0xff] %v14126_v60  ;;  %7400 = vmatpush1.bf16.msra.mxu1 %v5509_v58 }
 0x6cf   : > { %v5498_v3 = vpop.permute.xlu0 %5497 }
 0x6d0   : > { %5872 = vrot.lane.b32.xlu1 %v13708_v4, %s16371_s28  ;;  %v5513_v57 = vsel %vm16622_vm0, %v5498_v3, %v14126_v60  ;;  %vm16631_vm0 = vmmov %vm16630_vm6 }
 0x6d1   : > { %4693 = vrot.lane.b32.xlu0 %v13881_v14, %s16516_s14  ;;  %7401 = vmatprep.subr.bf16.mxu1 %v5513_v57  ;;  %v5574_v25 = vpop.permute.xlu1 %5573 }
 0x6d3   : > { %v5496_v32 = vpop.permute.xlu0 %5495 }
 0x6d4   : > { %v5512_v33 = vsel %vm16627_vm11, %v5496_v32, %v5498_v3  ;;  %5882 = vrot.lane.b32.xlu1 %v13946_v23, %s16371_s28  ;;  %vm16632_vm11 = vcmask 1031168  }
 0x6d5   : > { %4901 = vrot.lane.b32.xlu0 %v13915_v26, %s16620_s0  ;;  %7402 = vmatpush1.bf16.msra.mxu1 %v5512_v33  ;;  %v5572_v28 = vpop.permute.xlu1 %5571 }
 0x6d6   : > { %v5603_v60 = vsel %vm16630_vm6, %v5572_v28, %v5574_v25  ;;  %vm16634_vm6 = vmmov %vm16631_vm0 }
 0x6d7   : > { %v14139_v58 = vpop.permute.xlu0 %5575 }
 0x6d8   : > { %16628 = vst [vmem:[#allocation22_spill] sm:$0xff] %v14139_v58  ;;  %4701 = vrot.lane.b32.xlu1 %v13915_v26, %s16516_s14  ;;  %v5604_v57 = vsel %vm16629_vm12, %v5574_v25, %v14139_v58  ;;  %vm16633_vm12 = vmmov %vm16631_vm0 }
 0x6d9   : > { %5884 = vrot.lane.b32.xlu0 %v13942_v47, %s16371_s28  ;;  %7403 = vmatprep.subr.bf16.mxu1 %v5604_v57  ;;  %v14148_v3 = vpop.permute.xlu1 %5583 }
 0x6da   : > { %7404 = vmatpush1.bf16.msra.mxu1 %v5603_v60 }
 0x6db   : > { %v5582_v32 = vpop.permute.xlu0 %5581 }
 0x6dc   : > { %4977 = vrot.lane.b32.xlu1 %v13819_v6, %s16532_s8  ;;  %v5607_v33 = vsel %vm16631_vm0, %v5582_v32, %v14148_v3  ;;  %vm16635_vm0 = vmmov %vm16632_vm11 }
 0x6dd   : > { %5880 = vrot.lane.b32.xlu0 %v13830_v31, %s16371_s28  ;;  %7405 = vmatprep.subr.bf16.mxu1 %v5607_v33  ;;  %v4478_v58 = vpop.permute.xlu1 %4477 }
 0x6de   : > { %v4505_v28 = vsel %vm16632_vm11, %v13339_v20, %v4478_v58  ;;  %vm16636_vm11 = vmmov %vm16634_vm6 }
 0x6df   : > { %v5580_v25 = vpop.permute.xlu0 %5579  ;;  %10213 = vmatprep.subr.bf16.mxu0 %v4505_v28 }
 0x6e0   : > { %v5606_v57 = vsel %vm16633_vm12, %v5580_v25, %v5582_v32  ;;  %5892 = vrot.lane.b32.xlu1 %v13969_v51, %s16371_s28  ;;  %10214 = vmatpush3.bf16.msra.mxu0 %v13712_v56  ;;  %vm16637_vm12 = vmmov %vm16634_vm6 }
 0x6e1   : > { %5890 = vrot.lane.b32.xlu0 %v13973_v37, %s16371_s28  ;;  %7406 = vmatpush1.bf16.msra.mxu1 %v5606_v57  ;;  %v14164_v60 = vpop.permute.xlu1 %5591 }
 0x6e3   : > { %v5590_v33 = vpop.permute.xlu0 %5589 }
 0x6e4   : > { %5888 = vrot.lane.b32.xlu1 %v13985_v46, %s16371_s28  ;;  %v5610_v20 = vsel %vm16634_vm6, %v5590_v33, %v14164_v60  ;;  %vm16638_vm6 = vmmov %vm16635_vm0 }
 0x6e5   : > { %4777 = vrot.lane.b32.xlu0 %v13819_v6, %s16448_s13  ;;  %7407 = vmatprep.subr.bf16.mxu1 %v5610_v20  ;;  %v4486_v58 = vpop.permute.xlu1 %4485 }
 0x6e6   : > { %v4508_v25 = vsel %vm16635_vm0, %v13420_v42, %v4486_v58  ;;  %vm16639_vm0 = vmmov %vm16636_vm11 }
 0x6e7   : > { %v5588_v32 = vpop.permute.xlu0 %5587  ;;  %10215 = vmatprep.subr.bf16.mxu0 %v4508_v25 }
 0x6e8   : > { %v5609_v28 = vsel %vm16636_vm11, %v5588_v32, %v5590_v33  ;;  %5898 = vrot.lane.b32.xlu1 %v13996_v48, %s16371_s28  ;;  %10216 = vmatpush3.bf16.msra.mxu0 %v13942_v47  ;;  %vm16640_vm11 = vcmask 687104  }
 0x6e9   : > { %4985 = vrot.lane.b32.xlu0 %v13851_v15, %s16532_s8  ;;  %7408 = vmatpush1.bf16.msra.mxu1 %v5609_v28  ;;  %v14180_v57 = vpop.permute.xlu1 %5599 }
 0x6eb   : > { %v5598_v20 = vpop.permute.xlu0 %5597 }
 0x6ec   : > { %4785 = vrot.lane.b32.xlu1 %v13851_v15, %s16448_s13  ;;  %v5613_v42 = vsel %vm16637_vm12, %v5598_v20, %v14180_v57  ;;  %vm16641_vm12 = vmmov %vm16638_vm6 }
 0x6ed   : > { %5900 = vrot.lane.b32.xlu0 %v14010_v30, %s16371_s28  ;;  %7409 = vmatprep.subr.bf16.mxu1 %v5613_v42  ;;  %v4494_v33 = vpop.permute.xlu1 %4493 }
 0x6ee   : > { %v4511_v32 = vsel %vm16638_vm6, %v13460_v12, %v4494_v33  ;;  %vm16642_vm6 = vmmov %vm16640_vm11 }
 0x6ef   : > { %v5596_v58 = vpop.permute.xlu0 %5595  ;;  %10217 = vmatprep.subr.bf16.mxu0 %v4511_v32 }
 0x6f0   : > { %v5612_v25 = vsel %vm16639_vm0, %v5596_v58, %v5598_v20  ;;  %4993 = vrot.lane.b32.xlu1 %v13881_v14, %s16532_s8  ;;  %10218 = vmatpush3.bf16.msra.mxu0 %v13969_v51  ;;  %vm16643_vm0 = vmmov %vm16642_vm6 }
 0x6f1   : > { %5896 = vrot.lane.b32.xlu0 %v14021_v19, %s16371_s28  ;;  %7410 = vmatpush1.bf16.msra.mxu1 %v5612_v25  ;;  %v14196_v28 = vpop.permute.xlu1 %5675  ;;  %s16675_s28 = smov 65  }
 0x6f3   : > { %v5674_v42 = vpop.permute.xlu0 %5673 }
 0x6f4   : > { %5977 = vrot.lane.b32.xlu1 %v13712_v56, %s16369_s30  ;;  %v5704_v12 = vsel %vm16640_vm11, %v5674_v42, %v14196_v28  ;;  %vm16644_vm11 = vcmask 1022976  }
 0x6f5   : > { %5975 = vrot.lane.b32.xlu0 %v13782_v13, %s16369_s30  ;;  %7411 = vmatprep.subr.bf16.mxu1 %v5704_v12  ;;  %v4502_v20 = vpop.permute.xlu1 %4501 }
 0x6f6   : > { %v4514_v58 = vsel %vm16641_vm12, %v13534_v2, %v4502_v20  ;;  %vm16645_vm12 = vmmov %vm16643_vm0 }
 0x6f7   : > { %v5672_v33 = vpop.permute.xlu0 %5671  ;;  %10219 = vmatprep.subr.bf16.mxu0 %v4514_v58 }
 0x6f8   : > { %v5703_v32 = vsel %vm16642_vm6, %v5672_v33, %v5674_v42  ;;  %5973 = vrot.lane.b32.xlu1 %v13708_v4, %s16369_s30  ;;  %10220 = vmatpush3.bf16.msra.mxu0 %v14010_v30  ;;  %vm16646_vm6 = vmmov %vm16643_vm0 }
 0x6f9   : > { %4793 = vrot.lane.b32.xlu0 %v13881_v14, %s16448_s13  ;;  %7412 = vmatpush1.bf16.msra.mxu1 %v5703_v32  ;;  %v14212_v56 = vpop.permute.xlu1 %5683 }
 0x6fb   : > { %v5682_v25 = vpop.permute.xlu0 %5681 }
 0x6fc   : > { %5983 = vrot.lane.b32.xlu1 %v13946_v23, %s16369_s30  ;;  %v5707_v2 = vsel %vm16643_vm0, %v5682_v25, %v14212_v56 }
 0x6fd   : > { %5001 = vrot.lane.b32.xlu0 %v13915_v26, %s16532_s8  ;;  %7413 = vmatprep.subr.bf16.mxu1 %v5707_v2  ;;  %v4578_v4 = vpop.permute.xlu1 %4577 }
 0x6fe   : > { %v4605_v12 = vsel %vm16644_vm11, %v13347_v27, %v4578_v4  ;;  %vm16647_vm11 = vcmask 1039360  }
 0x6ff   : > { %v5680_v42 = vpop.permute.xlu0 %5679  ;;  %10221 = vmatprep.subr.bf16.mxu0 %v4605_v12 }
 0x700   : > { %v5706_v20 = vsel %vm16645_vm12, %v5680_v42, %v5682_v25  ;;  %4801 = vrot.lane.b32.xlu1 %v13915_v26, %s16448_s13  ;;  %vm16648_vm12 = vcmask 1022976  }
 0x701   : > { %5985 = vrot.lane.b32.xlu0 %v13942_v47, %s16369_s30  ;;  %7414 = vmatpush1.bf16.msra.mxu1 %v5706_v20  ;;  %v14227_v33 = vpop.permute.xlu1 %5691 }
 0x703   : > { %v5690_v58 = vpop.permute.xlu0 %5689 }
 0x704   : > { %5277 = vrot.lane.b32.xlu1 %v13819_v6, %s16537_s12  ;;  %v5710_v32 = vsel %vm16646_vm6, %v5690_v58, %v14227_v33  ;;  %vm16649_vm6 = vmmov %vm16647_vm11 }
 0x705   : > { %5981 = vrot.lane.b32.xlu0 %v13830_v31, %s16369_s30  ;;  %7415 = vmatprep.subr.bf16.mxu1 %v5710_v32  ;;  %v5688_v27 = vpop.permute.xlu1 %5687 }
 0x706   : > { %v5709_v25 = vsel %vm16643_vm0, %v5688_v27, %v5690_v58 }
 0x707   : > { %v4378_v2 = vpop.permute.xlu0 %4377  ;;  %7416 = vmatpush1.bf16.msra.mxu1 %v5709_v25 }
 0x708   : > { %v4405_v4 = vsel %vm16647_vm11, %v13331_v36, %v4378_v2  ;;  %5993 = vrot.lane.b32.xlu1 %v13969_v51, %s16369_s30  ;;  %vm16650_vm11 = vmmov %vm16648_vm12 }
 0x709   : > { %5991 = vrot.lane.b32.xlu0 %v13973_v37, %s16369_s30  ;;  %10222 = vmatpush3.bf16.msra.mxu0 %v4405_v4  ;;  %v5698_v42 = vpop.permute.xlu1 %5697 }
 0x70b   : > { %v4586_v12 = vpop.permute.xlu0 %4585 }
 0x70c   : > { %5989 = vrot.lane.b32.xlu1 %v13985_v46, %s16369_s30  ;;  %v4608_v20 = vsel %vm16648_vm12, %v13428_v11, %v4586_v12  ;;  %vm16651_vm12 = vmmov %vm16643_vm0 }
 0x70d   : > { %5077 = vrot.lane.b32.xlu0 %v13819_v6, %s16535_s25  ;;  %10223 = vmatprep.subr.bf16.mxu0 %v4608_v20  ;;  %v4386_v36 = vpop.permute.xlu1 %4385 }
 0x70e   : > { %v4408_v58 = vsel %vm16649_vm6, %v13411_v53, %v4386_v36  ;;  %vm5803_vm6 = vcmask 556032  }
 0x70f   : > { %v14250_v32 = vpop.permute.xlu0 %5699  ;;  %10224 = vmatpush3.bf16.msra.mxu0 %v4408_v58  ;;  %v14274_v58 = vld [vmem:[#allocation3 + $0x10] sm:$0xff] }
 0x710   : > { %5999 = vrot.lane.b32.xlu1 %v13996_v48, %s16369_s30  ;;  %v5713_v27 = vsel %vm16643_vm0, %v5698_v42, %v14250_v32  ;;  %vm16652_vm0 = vcmask 1039360  }
 0x711   : > { %5285 = vrot.lane.b32.xlu0 %v13851_v15, %s16537_s12  ;;  %7417 = vmatprep.subr.bf16.mxu1 %v5713_v27  ;;  %v4594_v11 = vpop.permute.xlu1 %4593 }
 0x712   : > { %v4611_v2 = vsel %vm16650_vm11, %v13468_v7, %v4594_v11 }
 0x713   : > { %v5696_v25 = vpop.permute.xlu0 %5695  ;;  %10225 = vmatprep.subr.bf16.mxu0 %v4611_v2  ;;  %v14282_v2 = vld [vmem:[#allocation3] sm:$0xff] }
 0x714   : > { %v5712_v53 = vsel %vm16651_vm12, %v5696_v25, %v5698_v42  ;;  %5085 = vrot.lane.b32.xlu1 %v13851_v15, %s16535_s25  ;;  %vm16654_vm12 = vmmov %vm16652_vm0 }
 0x715   : > { %6001 = vrot.lane.b32.xlu0 %v14010_v30, %s16369_s30  ;;  %7418 = vmatpush1.bf16.msra.mxu1 %v5712_v53  ;;  %v14265_v4 = vpop.permute.xlu1 %5775 }
 0x717   : > { %v5774_v12 = vpop.permute.xlu0 %5773 }
 0x718   : > { %5293 = vrot.lane.b32.xlu1 %v13881_v14, %s16537_s12  ;;  %v5805_v7 = vsel %vm5803_vm6, %v5774_v12, %v14265_v4 }
 0x719   : > { %5997 = vrot.lane.b32.xlu0 %v14021_v19, %s16369_s30  ;;  %7419 = vmatprep.subr.bf16.mxu1 %v5805_v7  ;;  %v5772_v42 = vpop.permute.xlu1 %5771  ;;  %s16660_s30 = smov 64  }
 0x71a   : > { %v5804_v20 = vsel %vm5803_vm6, %v5772_v42, %v5774_v12  ;;  %v16653_v12 = vld [vmem:[#allocation11_spill] sm:$0xff] }
 0x71b   : > { %v4394_v36 = vpop.permute.xlu0 %4393  ;;  %7420 = vmatpush1.bf16.msra.mxu1 %v5804_v20 }
 0x71c   : > { %v4411_v27 = vsel %vm16652_vm0, %v13452_v40, %v4394_v36  ;;  %6078 = vrot.lane.b32.xlu1 %v14274_v58, %s16373_s11  ;;  %vm16655_vm0 = vcmask 875520  }
 0x71d   : > { %6076 = vrot.lane.b32.xlu0 %v13782_v13, %s16373_s11  ;;  %10226 = vmatpush3.bf16.msra.mxu0 %v4411_v27  ;;  %v5782_v11 = vpop.permute.xlu1 %5781 }
 0x71f   : > { %v4602_v25 = vpop.permute.xlu0 %4601 }
 0x720   : > { %6074 = vrot.lane.b32.xlu1 %v14282_v2, %s16373_s11  ;;  %v4614_v53 = vsel %vm16650_vm11, %v13546_v22, %v4602_v25  ;;  %vm16656_vm11 = vcmask 1014784  }
 0x721   : > { %5093 = vrot.lane.b32.xlu0 %v13881_v14, %s16535_s25  ;;  %10227 = vmatprep.subr.bf16.mxu0 %v4614_v53  ;;  %v4402_v40 = vpop.permute.xlu1 %4401 }
 0x722   : > { %v4414_v7 = vsel %vm16654_vm12, %v16653_v12, %v4402_v40  ;;  %vm16657_vm12 = vmmov %vm16655_vm0 }
 0x723   : > { %v14292_v13 = vpop.permute.xlu0 %5783  ;;  %10228 = vmatpush3.bf16.msra.mxu0 %v4414_v7 }
 0x724   : > { %6084 = vrot.lane.b32.xlu1 %v13946_v23, %s16373_s11  ;;  %v5808_v42 = vsel %vm5803_vm6, %v5782_v11, %v14292_v13 }
 0x725   : > { %5301 = vrot.lane.b32.xlu0 %v13915_v26, %s16537_s12  ;;  %7421 = vmatprep.subr.bf16.mxu1 %v5808_v42  ;;  %v4878_v22 = vpop.permute.xlu1 %4877 }
 0x726   : > { %v4905_v36 = vsel %vm16655_vm0, %v13586_v63, %v4878_v22  ;;  %7640 = vmatmul.mubr.bf16.vlgmr.msra.gmra.mrb[16].mxu0 %v13638_v55  ;;  %vm16658_vm0 = vmmov %vm16656_vm11 }
 0x727   : > { %v5780_v20 = vpop.permute.xlu0 %5779  ;;  %10241 = vmatprep.subr.bf16.mxu0 %v4905_v36  ;;  %7647 = vmatprep.mubr.bf16.mxu0 %v13648_v35 }
 0x728   : > { %v5807_v27 = vsel %vm5803_vm6, %v5780_v20, %v5782_v11  ;;  %5101 = vrot.lane.b32.xlu1 %v13915_v26, %s16535_s25  ;;  %v14350_v20 = vld [vmem:[%s16210_s3 + $0x18] ss:$52 sps:$4 sm:$0xff]  }
 0x729   : > { %6086 = vrot.lane.b32.xlu0 %v13942_v47, %s16373_s11  ;;  %7422 = vmatpush1.bf16.msra.mxu1 %v5807_v27  ;;  %v14308_v25 = vpop.permute.xlu1 %5791 }
 0x72b   : > { %v5790_v53 = vpop.permute.xlu0 %5789 }
 0x72c   : > { %5377 = vrot.lane.b32.xlu1 %v13819_v6, %s16550_s21  ;;  %v5811_v63 = vsel %vm5803_vm6, %v5790_v53, %v14308_v25 }
 0x72d   : > { %6082 = vrot.lane.b32.xlu0 %v13830_v31, %s16373_s11  ;;  %7423 = vmatprep.subr.bf16.mxu1 %v5811_v63  ;;  %v5788_v55 = vpop.permute.xlu1 %5787 }
 0x72e   : > { %v5810_v11 = vsel %vm5803_vm6, %v5788_v55, %v5790_v53  ;;  %7648 = vmatmul.mubr.bf16.gmra.mrb[20].mxu0 %v13678_v1 }
 0x72f   : > { %v4678_v40 = vpop.permute.xlu0 %4677  ;;  %7424 = vmatpush1.bf16.msra.mxu1 %v5810_v11  ;;  %7688 = vmatprep.mubr.bf16.mxu0 %v13688_v52 }
 0x730   : > { %v4705_v35 = vsel %vm16656_vm11, %v13358_v16, %v4678_v40  ;;  %6094 = vrot.lane.b32.xlu1 %v13969_v51, %s16373_s11  ;;  %vm16659_vm11 = vmmov %vm16657_vm12  ;;  %v14372_v40 = vld [vmem:[#allocation3 + $0x58] sm:$0xff] }
 0x731   : > { %6092 = vrot.lane.b32.xlu0 %v13973_v37, %s16373_s11  ;;  %10242 = vmatpush3.bf16.msra.mxu0 %v4705_v35  ;;  %v5798_v12 = vpop.permute.xlu1 %5797 }
 0x733   : > { %v4886_v31 = vpop.permute.xlu0 %4885 }
 0x734   : > { %6090 = vrot.lane.b32.xlu1 %v13985_v46, %s16373_s11  ;;  %v4908_v1 = vsel %vm16657_vm12, %v13595_v59, %v4886_v31  ;;  %vm16396_vm12 = vcmask 547840   ;;  %v16661_v31 = vld [vmem:[#allocation8_spill] sm:$0xff] }
 0x735   : > { %5177 = vrot.lane.b32.xlu0 %v13819_v6, %s16458_s16  ;;  %10243 = vmatprep.subr.bf16.mxu0 %v4908_v1 }
 0x736   : > { %v4686_v16 = vpop.permute.xlu1 %4685 }
 0x737   : > { %v4708_v7 = vsel %vm16658_vm0, %v13436_v5, %v4686_v16  ;;  %v14334_v42 = vpop.permute.xlu0 %5799 }
 0x738   : > { %6100 = vrot.lane.b32.xlu1 %v13996_v48, %s16373_s11  ;;  %10244 = vmatpush3.bf16.msra.mxu0 %v4708_v7  ;;  %v5814_v52 = vsel %vm5803_vm6, %v5798_v12, %v14334_v42 }
 0x739   : > { %5385 = vrot.lane.b32.xlu0 %v13851_v15, %s16550_s21  ;;  %7425 = vmatprep.subr.bf16.mxu1 %v5814_v52 }
 0x73a   : > { %v4894_v59 = vpop.permute.xlu1 %4893 }
 0x73b   : > { %v5796_v6 = vpop.permute.xlu0 %5795  ;;  %v4911_v22 = vsel %vm16659_vm11, %v13627_v29, %v4894_v59 }
 0x73c   : > { %v5813_v5 = vsel %vm5803_vm6, %v5796_v6, %v5798_v12  ;;  %5185 = vrot.lane.b32.xlu1 %v13851_v15, %s16458_s16  ;;  %10245 = vmatprep.subr.bf16.mxu0 %v4911_v22 }
 0x73d   : > { %6102 = vrot.lane.b32.xlu0 %v14010_v30, %s16373_s11  ;;  %7426 = vmatpush1.bf16.msra.mxu1 %v5813_v5 }
 0x73e   : > { %v14354_v36 = vpop.permute.xlu1 %5876 }
 0x73f   : > { %v5875_v27 = vpop.permute.xlu0 %5874 }
 0x740   : > { %5393 = vrot.lane.b32.xlu1 %v13881_v14, %s16550_s21  ;;  %v5906_v29 = vsel %vm16396_vm12, %v5875_v27, %v14354_v36  ;;  %7428 = vmatmul.mubr.bf16.vlgmr.msra.gmra.mrb[104].mxu1 %v14350_v20  ;;  %v14368_v14 = vld [vmem:[#allocation3 + $0x8] sm:$0xff] }
 0x741   : > { %6098 = vrot.lane.b32.xlu0 %v14021_v19, %s16373_s11  ;;  %7448 = vmatprep.subr.bf16.mxu1 %v5906_v29  ;;  %s16678_s11 = smov 67  }
 0x742   : > { %v5873_v15 = vpop.permute.xlu1 %5872 }
 0x743   : > { %v5905_v53 = vsel %vm16396_vm12, %v5873_v15, %v5875_v27  ;;  %v4694_v63 = vpop.permute.xlu0 %4693  ;;  %v14403_v27 = vld [vmem:[#allocation3 + $0x20] sm:$0xff] }
 0x744   : > { %v4711_v55 = vsel %vm16658_vm0, %v13476_v38, %v4694_v63  ;;  %6179 = vrot.lane.b32.xlu1 %v14274_v58, %s16660_s30  ;;  %7449 = vmatpush1.bf16.msra.mxu1 %v5905_v53  ;;  %v14419_v63 = vld [vmem:[%s16210_s3 + $0x84] ss:$52 sps:$4 sm:$0xff]  }
 0x745   : > { %6177 = vrot.lane.b32.xlu0 %v14368_v14, %s16660_s30  ;;  %10246 = vmatpush3.bf16.msra.mxu0 %v4711_v55 }
 0x746   : > { %v5883_v11 = vpop.permute.xlu1 %5882  ;;  %7437 = vmatprep.mubr.bf16.mxu1 %v14419_v63 }
 0x747   : > { %v4902_v35 = vpop.permute.xlu0 %4901 }
 0x748   : > { %6175 = vrot.lane.b32.xlu1 %v14282_v2, %s16660_s30  ;;  %v4914_v38 = vsel %vm16659_vm11, %v13640_v45, %v4902_v35  ;;  %vm16662_vm11 = vcmask 867328  }
 0x749   : > { %5193 = vrot.lane.b32.xlu0 %v14372_v40, %s16458_s16  ;;  %10247 = vmatprep.subr.bf16.mxu0 %v4914_v38 }
 0x74a   : > { %v4702_v12 = vpop.permute.xlu1 %4701 }
 0x74b   : > { %v4714_v1 = vsel %vm16658_vm0, %v16661_v31, %v4702_v12  ;;  %v14382_v16 = vpop.permute.xlu0 %5884  ;;  %vm16663_vm0 = vcmask 883712   ;;  %v14449_v12 = vld [vmem:[%s16210_s3 + $0x24] ss:$52 sps:$4 sm:$0xff]  }
 0x74c   : > { %6185 = vrot.lane.b32.xlu1 %v13946_v23, %s16660_s30  ;;  %10248 = vmatpush3.bf16.msra.mxu0 %v4714_v1  ;;  %v5909_v7 = vsel %vm16396_vm12, %v5883_v11, %v14382_v16  ;;  %v14397_v23 = vld [vmem:[#allocation3 + $0x18] sm:$0xff] }
 0x74d   : > { %5401 = vrot.lane.b32.xlu0 %v13915_v26, %s16550_s21  ;;  %7450 = vmatprep.subr.bf16.mxu1 %v5909_v7 }
 0x74e   : > { %v4978_v45 = vpop.permute.xlu1 %4977 }
 0x74f   : > { %v5881_v52 = vpop.permute.xlu0 %5880  ;;  %v5005_v59 = vsel %vm16662_vm11, %v13690_v43, %v4978_v45 }
 0x750   : > { %v5908_v6 = vsel %vm16396_vm12, %v5881_v52, %v5883_v11  ;;  %5201 = vrot.lane.b32.xlu1 %v13915_v26, %s16458_s16  ;;  %10249 = vmatprep.subr.bf16.mxu0 %v5005_v59  ;;  %v14424_v11 = vld [vmem:[%s16210_s3 + $0x80] ss:$52 sps:$4 sm:$0xff]  }
 0x751   : > { %6187 = vrot.lane.b32.xlu0 %v13942_v47, %s16660_s30  ;;  %7451 = vmatpush1.bf16.msra.mxu1 %v5908_v6 }
 0x752   : > { %v14399_v22 = vpop.permute.xlu1 %5892  ;;  %7438 = vmatmul.mubr.bf16.gmra.mrb[108].mxu1 %v14424_v11 }
 0x753   : > { %v5891_v5 = vpop.permute.xlu0 %5890  ;;  %7480 = vmatprep.mubr.bf16.mxu1 %v14449_v12 }
 0x754   : > { %5677 = vrot.lane.b32.xlu1 %v14397_v23, %s16480_s22  ;;  %v5912_v43 = vsel %vm16396_vm12, %v5891_v5, %v14399_v22 }
 0x755   : > { %6183 = vrot.lane.b32.xlu0 %v14403_v27, %s16660_s30  ;;  %7452 = vmatprep.subr.bf16.mxu1 %v5912_v43  ;;  %v14480_v43 = vld [vmem:[#allocation3 + $0x78] sm:$0xff] }
 0x756   : > { %v5889_v26 = vpop.permute.xlu1 %5888 }
 0x757   : > { %v5911_v47 = vsel %vm16396_vm12, %v5889_v26, %v5891_v5  ;;  %v4778_v29 = vpop.permute.xlu0 %4777  ;;  %v16666_v26 = vld [vmem:[#allocation14_spill] sm:$0xff] }
 0x758   : > { %v4805_v15 = vsel %vm16663_vm0, %v13364_v10, %v4778_v29  ;;  %6195 = vrot.lane.b32.xlu1 %v13969_v51, %s16660_s30  ;;  %7453 = vmatpush1.bf16.msra.mxu1 %v5911_v47  ;;  %v14433_v51 = vld [vmem:[#allocation3 + $0x38] sm:$0xff] }
 0x759   : > { %6193 = vrot.lane.b32.xlu0 %v13973_v37, %s16660_s30  ;;  %10250 = vmatpush3.bf16.msra.mxu0 %v4805_v15  ;;  %v14486_v15 = vld [vmem:[#allocation3 + $0x28] sm:$0xff] }
 0x75a   : > { %v5899_v53 = vpop.permute.xlu1 %5898 }
 0x75b   : > { %v4986_v55 = vpop.permute.xlu0 %4985 }
 0x75c   : > { %6191 = vrot.lane.b32.xlu1 %v13985_v46, %s16660_s30  ;;  %v5008_v10 = vsel %vm16662_vm11, %v13700_v34, %v4986_v55 }
 0x75d   : > { %5477 = vrot.lane.b32.xlu0 %v14397_v23, %s16560_s19  ;;  %10251 = vmatprep.subr.bf16.mxu0 %v5008_v10 }
 0x75e   : > { %v4786_v37 = vpop.permute.xlu1 %4785 }
 0x75f   : > { %v4808_v35 = vsel %vm16663_vm0, %v13444_v17, %v4786_v37  ;;  %v14438_v38 = vpop.permute.xlu0 %5900  ;;  %vm16395_vm0 = vcmask 539648   ;;  %v10894_v37 = vld [vmem:[%s16210_s3 + $0x8] ss:$52 sps:$4 sm:$0xff]  }
 0x760   : > { %6201 = vrot.lane.b32.xlu1 %v13996_v48, %s16660_s30  ;;  %10252 = vmatpush3.bf16.msra.mxu0 %v4808_v35  ;;  %v5915_v34 = vsel %vm16396_vm12, %v5899_v53, %v14438_v38 }
 0x761   : > { %5685 = vrot.lane.b32.xlu0 %v14433_v51, %s16480_s22  ;;  %7454 = vmatprep.subr.bf16.mxu1 %v5915_v34  ;;  %v14502_v34 = vld [vmem:[#allocation3 + $0x30] sm:$0xff] }
 0x762   : > { %v4994_v46 = vpop.permute.xlu1 %4993 }
 0x763   : > { %v5897_v17 = vpop.permute.xlu0 %5896  ;;  %v5011_v31 = vsel %vm16662_vm11, %v13738_v44, %v4994_v46  ;;  %vm16664_vm11 = vcmask 883712  }
 0x764   : > { %v5914_v48 = vsel %vm16396_vm12, %v5897_v17, %v5899_v53  ;;  %5485 = vrot.lane.b32.xlu1 %v14433_v51, %s16560_s19  ;;  %10253 = vmatprep.subr.bf16.mxu0 %v5011_v31 }
 0x765   : > { %6203 = vrot.lane.b32.xlu0 %v14010_v30, %s16660_s30  ;;  %7455 = vmatpush1.bf16.msra.mxu1 %v5914_v48 }
 0x766   : > { %v14458_v1 = vpop.permute.xlu1 %5977 }
 0x767   : > { %v5976_v7 = vpop.permute.xlu0 %5975 }
 0x768   : > { %5693 = vrot.lane.b32.xlu1 %v14372_v40, %s16480_s22  ;;  %v6007_v44 = vsel %vm16395_vm0, %v5976_v7, %v14458_v1 }
 0x769   : > { %6199 = vrot.lane.b32.xlu0 %v14021_v19, %s16660_s30  ;;  %7456 = vmatprep.subr.bf16.mxu1 %v6007_v44 }
 0x76a   : > { %v5974_v45 = vpop.permute.xlu1 %5973 }
 0x76b   : > { %v6006_v30 = vsel %vm16395_vm0, %v5974_v45, %v5976_v7  ;;  %v4794_v52 = vpop.permute.xlu0 %4793  ;;  %v14518_v45 = vld [vmem:[#allocation3 + $0x50] sm:$0xff] }
 0x76c   : > { %v4811_v59 = vsel %vm16664_vm11, %v13484_v24, %v4794_v52  ;;  %6279 = vrot.lane.b32.xlu1 %v14274_v58, %s16443_s18  ;;  %7457 = vmatpush1.bf16.msra.mxu1 %v6006_v30  ;;  %v14525_v52 = vld [vmem:[#allocation3 + $0x48] sm:$0xff] }
 0x76d   : > { %6277 = vrot.lane.b32.xlu0 %v14368_v14, %s16443_s18  ;;  %10254 = vmatpush3.bf16.msra.mxu0 %v4811_v59 }
 0x76e   : > { %v5984_v6 = vpop.permute.xlu1 %5983 }
 0x76f   : > { %v5002_v5 = vpop.permute.xlu0 %5001 }
 0x770   : > { %6275 = vrot.lane.b32.xlu1 %v14282_v2, %s16443_s18  ;;  %v5014_v19 = vsel %vm16665_vm8, %v13747_v8, %v5002_v5  ;;  %vm16667_vm8 = vcmask 719872   ;;  %v14532_v5 = vld [vmem:[#allocation3 + $0x40] sm:$0xff] }
 0x771   : > { %5493 = vrot.lane.b32.xlu0 %v14372_v40, %s16560_s19  ;;  %10255 = vmatprep.subr.bf16.mxu0 %v5014_v19 }
 0x772   : > { %v4802_v24 = vpop.permute.xlu1 %4801 }
 0x773   : > { %v4814_v47 = vsel %vm16664_vm11, %v16666_v26, %v4802_v24  ;;  %v14484_v29 = vpop.permute.xlu0 %5985  ;;  %vm16668_vm11 = vcmask 859136   ;;  %v16669_v24 = vld [vmem:[#allocation10_spill] sm:$0xff] }
 0x774   : > { %6285 = vrot.lane.b32.xlu1 %v14486_v15, %s16443_s18  ;;  %10256 = vmatpush3.bf16.msra.mxu0 %v4814_v47  ;;  %v6010_v8 = vsel %vm16395_vm0, %v5984_v6, %v14484_v29 }
 0x775   : > { %5701 = vrot.lane.b32.xlu0 %v14480_v43, %s16480_s22  ;;  %7458 = vmatprep.subr.bf16.mxu1 %v6010_v8  ;;  %v14544_v8 = vld [vmem:[#allocation3 + $0x68] sm:$0xff] }
 0x776   : > { %v5278_v53 = vpop.permute.xlu1 %5277 }
 0x777   : > { %v5982_v55 = vpop.permute.xlu0 %5981  ;;  %v5305_v10 = vsel %vm16667_vm8, %v13967_v62, %v5278_v53  ;;  %7689 = vmatmul.mubr.bf16.vlgmr.msra.gmra.mrb[24].mxu0 %v10894_v37  ;;  %v10895_v62 = vld [vmem:[%s16210_s3 + $0x74] ss:$52 sps:$4 sm:$0xff]  }
 0x778   : > { %v6009_v35 = vsel %vm16395_vm0, %v5982_v55, %v5984_v6  ;;  %5501 = vrot.lane.b32.xlu1 %v14480_v43, %s16560_s19  ;;  %10269 = vmatprep.subr.bf16.mxu0 %v5305_v10  ;;  %v10896_v6 = vld [vmem:[%s16210_s3 + $0x14] ss:$52 sps:$4 sm:$0xff]  }
 0x779   : > { %6287 = vrot.lane.b32.xlu0 %v14502_v34, %s16443_s18  ;;  %7459 = vmatpush1.bf16.msra.mxu1 %v6009_v35  ;;  %v14557_v35 = vld [vmem:[#allocation3 + $0x70] sm:$0xff] }
 0x77a   : > { %v14506_v46 = vpop.permute.xlu1 %5993  ;;  %7696 = vmatprep.mubr.bf16.mxu0 %v10895_v62 }
 0x77b   : > { %v5992_v17 = vpop.permute.xlu0 %5991 }
 0x77c   : > { %5777 = vrot.lane.b32.xlu1 %v14397_v23, %s16606_s15  ;;  %v6013_v31 = vsel %vm16395_vm0, %v5992_v17, %v14506_v46 }
 0x77d   : > { %6283 = vrot.lane.b32.xlu0 %v14403_v27, %s16443_s18  ;;  %7460 = vmatprep.subr.bf16.mxu1 %v6013_v31 }
 0x77e   : > { %v5990_v48 = vpop.permute.xlu1 %5989 }
 0x77f   : > { %v6012_v7 = vsel %vm16395_vm0, %v5990_v48, %v5992_v17  ;;  %v5078_v44 = vpop.permute.xlu0 %5077  ;;  %7697 = vmatmul.mubr.bf16.gmra.mrb[28].mxu0 %v13932_v39 }
 0x780   : > { %v5105_v30 = vsel %vm16668_vm11, %v13780_v41, %v5078_v44  ;;  %6295 = vrot.lane.b32.xlu1 %v14518_v45, %s16443_s18  ;;  %7461 = vmatpush1.bf16.msra.mxu1 %v6012_v7 }
 0x781   : > { %6293 = vrot.lane.b32.xlu0 %v14525_v52, %s16443_s18  ;;  %10270 = vmatpush3.bf16.msra.mxu0 %v5105_v30  ;;  %v16670_v30 = vld [vmem:[#allocation12_spill] sm:$0xff] }
 0x782   : > { %v6000_v59 = vpop.permute.xlu1 %5999  ;;  %7737 = vmatprep.mubr.bf16.mxu0 %v10896_v6 }
 0x783   : > { %v5286_v39 = vpop.permute.xlu0 %5285 }
 0x784   : > { %6291 = vrot.lane.b32.xlu1 %v14532_v5, %s16443_s18  ;;  %v5308_v41 = vsel %vm16667_vm8, %v13980_v21, %v5286_v39 }
 0x785   : > { %5577 = vrot.lane.b32.xlu0 %v14397_v23, %s16571_s26  ;;  %10271 = vmatprep.subr.bf16.mxu0 %v5308_v41 }
 0x786   : > { %v5086_v19 = vpop.permute.xlu1 %5085 }
 0x787   : > { %v5108_v26 = vsel %vm16668_vm11, %v16669_v24, %v5086_v19  ;;  %v14542_v47 = vpop.permute.xlu0 %6001  ;;  %vm16390_vm11 = vcmask 531456   ;;  %v16673_v24 = vld [vmem:[#allocation9_spill] sm:$0xff] }
 0x788   : > { %6301 = vrot.lane.b32.xlu1 %v14544_v8, %s16443_s18  ;;  %10272 = vmatpush3.bf16.msra.mxu0 %v5108_v26  ;;  %v6016_v53 = vsel %vm16395_vm0, %v6000_v59, %v14542_v47 }
 0x789   : > { %5785 = vrot.lane.b32.xlu0 %v14433_v51, %s16606_s15  ;;  %7462 = vmatprep.subr.bf16.mxu1 %v6016_v53 }
 0x78a   : > { %v5294_v21 = vpop.permute.xlu1 %5293 }
 0x78b   : > { %v5998_v55 = vpop.permute.xlu0 %5997  ;;  %v5311_v10 = vsel %vm16667_vm8, %v14006_v18, %v5294_v21  ;;  %v14565_v18 = vld [vmem:[#allocation3 + $0x60] sm:$0xff]  ;;  %vm16671_vm8 = vcmask 859136  }
 0x78c   : > { %v6015_v37 = vsel %vm16395_vm0, %v5998_v55, %v6000_v59  ;;  %5585 = vrot.lane.b32.xlu1 %v14433_v51, %s16571_s26  ;;  %10273 = vmatprep.subr.bf16.mxu0 %v5311_v10 }
 0x78d   : > { %6303 = vrot.lane.b32.xlu0 %v14557_v35, %s16443_s18  ;;  %7463 = vmatpush1.bf16.msra.mxu1 %v6015_v37 }
 0x78e   : > { %v14561_v62 = vpop.permute.xlu1 %6078 }
 0x78f   : > { %v6077_v17 = vpop.permute.xlu0 %6076 }
 0x790   : > { %5793 = vrot.lane.b32.xlu1 %v14372_v40, %s16606_s15  ;;  %v6108_v31 = vsel %vm16390_vm11, %v6077_v17, %v14561_v62 }
 0x791   : > { %6299 = vrot.lane.b32.xlu0 %v14565_v18, %s16443_s18  ;;  %7464 = vmatprep.subr.bf16.mxu1 %v6108_v31 }
 0x792   : > { %v6075_v48 = vpop.permute.xlu1 %6074 }
 0x793   : > { %v6107_v7 = vsel %vm16390_vm11, %v6075_v48, %v6077_v17  ;;  %v5094_v44 = vpop.permute.xlu0 %5093 }
 0x794   : > { %v5111_v59 = vsel %vm16671_vm8, %v16670_v30, %v5094_v44  ;;  %6379 = vrot.lane.b32.xlu1 %v14274_v58, %s16378_s1  ;;  %7465 = vmatpush1.bf16.msra.mxu1 %v6107_v7  ;;  %v16676_v30 = vld [vmem:[#allocation16_spill] sm:$0xff] }
 0x795   : > { %6377 = vrot.lane.b32.xlu0 %v14368_v14, %s16378_s1  ;;  %10274 = vmatpush3.bf16.msra.mxu0 %v5111_v59 }
 0x796   : > { %v6085_v6 = vpop.permute.xlu1 %6084 }
 0x797   : > { %v5302_v39 = vpop.permute.xlu0 %5301 }
 0x798   : > { %6375 = vrot.lane.b32.xlu1 %v14282_v2, %s16378_s1  ;;  %v5314_v41 = vsel %vm16672_vm1, %v14015_v54, %v5302_v39  ;;  %vm16674_vm1 = vcmask 711680  }
 0x799   : > { %5593 = vrot.lane.b32.xlu0 %v14372_v40, %s16571_s26  ;;  %10275 = vmatprep.subr.bf16.mxu0 %v5314_v41 }
 0x79a   : > { %v5102_v19 = vpop.permute.xlu1 %5101 }
 0x79b   : > { %v5114_v26 = vsel %vm16671_vm8, %v16673_v24, %v5102_v19  ;;  %v14586_v53 = vpop.permute.xlu0 %6086  ;;  %vm16677_vm8 = vcmask 850944   ;;  %v16679_v24 = vld [vmem:[#allocation19_spill] sm:$0xff] }
 0x79c   : > { %6385 = vrot.lane.b32.xlu1 %v14486_v15, %s16378_s1  ;;  %10276 = vmatpush3.bf16.msra.mxu0 %v5114_v26  ;;  %v6111_v21 = vsel %vm16390_vm11, %v6085_v6, %v14586_v53 }
 0x79d   : > { %5801 = vrot.lane.b32.xlu0 %v14480_v43, %s16606_s15  ;;  %7466 = vmatprep.subr.bf16.mxu1 %v6111_v21 }
 0x79e   : > { %v5378_v54 = vpop.permute.xlu1 %5377 }
 0x79f   : > { %v6083_v55 = vpop.permute.xlu0 %6082  ;;  %v5405_v10 = vsel %vm16674_vm1, %v14035_v49, %v5378_v54 }
 0x7a0   : > { %v6110_v37 = vsel %vm16390_vm11, %v6083_v55, %v6085_v6  ;;  %5601 = vrot.lane.b32.xlu1 %v14480_v43, %s16571_s26  ;;  %10277 = vmatprep.subr.bf16.mxu0 %v5405_v10 }
 0x7a1   : > { %6387 = vrot.lane.b32.xlu0 %v14502_v34, %s16378_s1  ;;  %7467 = vmatpush1.bf16.msra.mxu1 %v6110_v37 }
 0x7a2   : > { %v14601_v17 = vpop.permute.xlu1 %6094 }
 0x7a3   : > { %v6093_v31 = vpop.permute.xlu0 %6092 }
 0x7a4   : > { %6080 = vrot.lane.b32.xlu1 %v14397_v23, %s16675_s28  ;;  %v6114_v48 = vsel %vm16390_vm11, %v6093_v31, %v14601_v17 }
 0x7a5   : > { %6383 = vrot.lane.b32.xlu0 %v14403_v27, %s16378_s1  ;;  %7468 = vmatprep.subr.bf16.mxu1 %v6114_v48 }
 0x7a6   : > { %v6091_v49 = vpop.permute.xlu1 %6090 }
 0x7a7   : > { %v6113_v7 = vsel %vm16390_vm11, %v6091_v49, %v6093_v31  ;;  %v5178_v44 = vpop.permute.xlu0 %5177 }
 0x7a8   : > { %v5205_v59 = vsel %vm16677_vm8, %v16676_v30, %v5178_v44  ;;  %6395 = vrot.lane.b32.xlu1 %v14518_v45, %s16378_s1  ;;  %7469 = vmatpush1.bf16.msra.mxu1 %v6113_v7  ;;  %v16682_v30 = vld [vmem:[#allocation18_spill] sm:$0xff] }
 0x7a9   : > { %6393 = vrot.lane.b32.xlu0 %v14525_v52, %s16378_s1  ;;  %10278 = vmatpush3.bf16.msra.mxu0 %v5205_v59 }
 0x7aa   : > { %v6101_v6 = vpop.permute.xlu1 %6100 }
 0x7ab   : > { %v5386_v39 = vpop.permute.xlu0 %5385 }
 0x7ac   : > { %6391 = vrot.lane.b32.xlu1 %v14532_v5, %s16378_s1  ;;  %v5408_v41 = vsel %vm16674_vm1, %v14042_v0, %v5386_v39 }
 0x7ad   : > { %5878 = vrot.lane.b32.xlu0 %v14397_v23, %s16678_s11  ;;  %10279 = vmatprep.subr.bf16.mxu0 %v5408_v41  ;;  %v16684_v41 = vld [vmem:[#allocation21_spill] sm:$0xff] }
 0x7ae   : > { %v5186_v19 = vpop.permute.xlu1 %5185 }
 0x7af   : > { %v5208_v26 = vsel %vm16677_vm8, %v16679_v24, %v5186_v19  ;;  %v14624_v21 = vpop.permute.xlu0 %6102  ;;  %vm16680_vm8 = vcmask 523264  }
 0x7b0   : > { %6401 = vrot.lane.b32.xlu1 %v14544_v8, %s16378_s1  ;;  %10280 = vmatpush3.bf16.msra.mxu0 %v5208_v26  ;;  %v6117_v54 = vsel %vm16390_vm11, %v6101_v6, %v14624_v21  ;;  %v16686_v26 = vld [vmem:[#allocation20_spill] sm:$0xff] }
 0x7b1   : > { %6088 = vrot.lane.b32.xlu0 %v14433_v51, %s16675_s28  ;;  %7470 = vmatprep.subr.bf16.mxu1 %v6117_v54 }
 0x7b2   : > { %v5394_v0 = vpop.permute.xlu1 %5393 }
 0x7b3   : > { %v6099_v55 = vpop.permute.xlu0 %6098  ;;  %v5411_v10 = vsel %vm16674_vm1, %v14060_v61, %v5394_v0  ;;  %vm16681_vm1 = vmmov %vm16680_vm8 }
 0x7b4   : > { %v6116_v37 = vsel %vm16390_vm11, %v6099_v55, %v6101_v6  ;;  %5886 = vrot.lane.b32.xlu1 %v14433_v51, %s16678_s11  ;;  %10281 = vmatprep.subr.bf16.mxu0 %v5411_v10 }
 0x7b5   : > { %6403 = vrot.lane.b32.xlu0 %v14557_v35, %s16378_s1  ;;  %7471 = vmatpush1.bf16.msra.mxu1 %v6116_v37 }
 0x7b6   : > { %v14639_v31 = vpop.permute.xlu1 %6179 }
 0x7b7   : > { %v6178_v48 = vpop.permute.xlu0 %6177 }
 0x7b8   : > { %6096 = vrot.lane.b32.xlu1 %v14372_v40, %s16675_s28  ;;  %v6208_v49 = vsel %vm16680_vm8, %v6178_v48, %v14639_v31  ;;  %vm16685_vm8 = vcmask 711680  }
 0x7b9   : > { %6399 = vrot.lane.b32.xlu0 %v14565_v18, %s16378_s1  ;;  %7472 = vmatprep.subr.bf16.mxu1 %v6208_v49  ;;  %v10897_v49 = vld [vmem:[%s16210_s3 + $0x10] ss:$52 sps:$4 sm:$0xff]   ;;  %s16703_s1 = smov 45  }
 0x7ba   : > { %v6176_v61 = vpop.permute.xlu1 %6175 }
 0x7bb   : > { %v6207_v7 = vsel %vm16681_vm1, %v6176_v61, %v6178_v48  ;;  %v5194_v44 = vpop.permute.xlu0 %5193 }
 0x7bc   : > { %v5211_v59 = vsel %vm16683_vm13, %v16682_v30, %v5194_v44  ;;  %6480 = vrot.lane.b32.xlu1 %v14274_v58, %s16382_s17  ;;  %7473 = vmatpush1.bf16.msra.mxu1 %v6207_v7 }
 0x7bd   : > { %6478 = vrot.lane.b32.xlu0 %v14368_v14, %s16382_s17  ;;  %10282 = vmatpush3.bf16.msra.mxu0 %v5211_v59 }
 0x7be   : > { %v6186_v6 = vpop.permute.xlu1 %6185 }
 0x7bf   : > { %v5402_v39 = vpop.permute.xlu0 %5401 }
 0x7c0   : > { %6476 = vrot.lane.b32.xlu1 %v14282_v2, %s16382_s17  ;;  %v5414_v19 = vsel %vm16685_vm8, %v16684_v41, %v5402_v39  ;;  %vm16687_vm8 = vcmask 687104   ;;  %v10899_v41 = vld [vmem:[%s16210_s3 + $0x78] ss:$52 sps:$4 sm:$0xff]  }
 0x7c1   : > { %5894 = vrot.lane.b32.xlu0 %v14372_v40, %s16678_s11  ;;  %10283 = vmatprep.subr.bf16.mxu0 %v5414_v19  ;;  %v16690_v19 = vld [vmem:[#allocation13_spill] sm:$0xff] }
 0x7c2   : > { %v5202_v24 = vpop.permute.xlu1 %5201 }
 0x7c3   : > { %v5214_v54 = vsel %vm16683_vm13, %v16686_v26, %v5202_v24  ;;  %v14662_v0 = vpop.permute.xlu0 %6187  ;;  %vm16688_vm13 = vmmov %vm16681_vm1 }
 0x7c4   : > { %6486 = vrot.lane.b32.xlu1 %v14486_v15, %s16382_s17  ;;  %10284 = vmatpush3.bf16.msra.mxu0 %v5214_v54  ;;  %v6211_v55 = vsel %vm16681_vm1, %v6186_v6, %v14662_v0  ;;  %v10900_v54 = vld [vmem:[%s16210_s3 + $0x1c] ss:$52 sps:$4 sm:$0xff]  }
 0x7c5   : > { %6104 = vrot.lane.b32.xlu0 %v14480_v43, %s16675_s28  ;;  %7474 = vmatprep.subr.bf16.mxu1 %v6211_v55 }
 0x7c6   : > { %v5678_v10 = vpop.permute.xlu1 %5677 }
 0x7c7   : > { %v6184_v37 = vpop.permute.xlu0 %6183  ;;  %v5705_v48 = vsel %vm16687_vm8, %v14196_v28, %v5678_v10  ;;  %7738 = vmatmul.mubr.bf16.vlgmr.msra.gmra.mrb[32].mxu0 %v10897_v49  ;;  %v10898_v28 = vld [vmem:[%s16210_s3 + $0x7c] ss:$52 sps:$4 sm:$0xff]   ;;  %vm16689_vm8 = vmmov %vm16681_vm1 }
 0x7c8   : > { %v6210_v61 = vsel %vm16688_vm13, %v6184_v37, %v6186_v6  ;;  %5902 = vrot.lane.b32.xlu1 %v14480_v43, %s16678_s11  ;;  %10297 = vmatprep.subr.bf16.mxu0 %v5705_v48  ;;  %vm16691_vm13 = vcmask 703488  }
 0x7c9   : > { %6488 = vrot.lane.b32.xlu0 %v14502_v34, %s16382_s17  ;;  %7475 = vmatpush1.bf16.msra.mxu1 %v6210_v61 }
 0x7ca   : > { %v14680_v7 = vpop.permute.xlu1 %6195  ;;  %7745 = vmatprep.mubr.bf16.mxu0 %v10898_v28 }
 0x7cb   : > { %v6194_v44 = vpop.permute.xlu0 %6193 }
 0x7cc   : > { %6181 = vrot.lane.b32.xlu1 %v14397_v23, %s16660_s30  ;;  %v6214_v30 = vsel %vm16681_vm1, %v6194_v44, %v14680_v7  ;;  %vm16692_vm1 = vcmask 687104  }
 0x7cd   : > { %6484 = vrot.lane.b32.xlu0 %v14403_v27, %s16382_s17  ;;  %7476 = vmatprep.subr.bf16.mxu1 %v6214_v30  ;;  %v14728_v30 = vld [vmem:[%s16210_s3 + $0x20] ss:$52 sps:$4 sm:$0xff]  }
 0x7ce   : > { %v6192_v59 = vpop.permute.xlu1 %6191 }
 0x7cf   : > { %v6213_v6 = vsel %vm16689_vm8, %v6192_v59, %v6194_v44  ;;  %v5478_v39 = vpop.permute.xlu0 %5477  ;;  %7746 = vmatmul.mubr.bf16.gmra.mrb[36].mxu0 %v10899_v41  ;;  %vm16694_vm8 = vmmov %vm16691_vm13 }
 0x7d0   : > { %v5505_v24 = vsel %vm16691_vm13, %v16690_v19, %v5478_v39  ;;  %6496 = vrot.lane.b32.xlu1 %v14518_v45, %s16382_s17  ;;  %7477 = vmatpush1.bf16.msra.mxu1 %v6213_v6  ;;  %vm16695_vm13 = vcmask 523264  }
 0x7d1   : > { %6494 = vrot.lane.b32.xlu0 %v14525_v52, %s16382_s17  ;;  %10298 = vmatpush3.bf16.msra.mxu0 %v5505_v24  ;;  %vm16696_vm3 = vmmov %vm16695_vm13 }
 0x7d2   : > { %v6202_v26 = vpop.permute.xlu1 %6201  ;;  %7786 = vmatprep.mubr.bf16.mxu0 %v10900_v54 }
 0x7d3   : > { %v5686_v55 = vpop.permute.xlu0 %5685 }
 0x7d4   : > { %6492 = vrot.lane.b32.xlu1 %v14532_v5, %s16382_s17  ;;  %v5708_v10 = vsel %vm16692_vm1, %v14212_v56, %v5686_v55 }
 0x7d5   : > { %5979 = vrot.lane.b32.xlu0 %v14397_v23, %s16693_s2  ;;  %10299 = vmatprep.subr.bf16.mxu0 %v5708_v10  ;;  %v16700_v10 = vld [vmem:[#allocation23_spill] sm:$0xff] }
 0x7d6   : > { %v5486_v37 = vpop.permute.xlu1 %5485 }
 0x7d7   : > { %v5508_v48 = vsel %vm16694_vm8, %v14098_v50, %v5486_v37  ;;  %v14712_v49 = vpop.permute.xlu0 %6203 }
 0x7d8   : > { %6502 = vrot.lane.b32.xlu1 %v14544_v8, %s16382_s17  ;;  %10300 = vmatpush3.bf16.msra.mxu0 %v5508_v48  ;;  %v6217_v61 = vsel %vm16695_vm13, %v6202_v26, %v14712_v49  ;;  %vm16699_vm13 = vcmask 703488  }
 0x7d9   : > { %6189 = vrot.lane.b32.xlu0 %v14433_v51, %s16660_s30  ;;  %7478 = vmatprep.subr.bf16.mxu1 %v6217_v61 }
 0x7da   : > { %v5694_v56 = vpop.permute.xlu1 %5693 }
 0x7db   : > { %v6200_v28 = vpop.permute.xlu0 %6199  ;;  %v5711_v44 = vsel %vm16692_vm1, %v14227_v33, %v5694_v56 }
 0x7dc   : > { %v6216_v50 = vsel %vm16696_vm3, %v6200_v28, %v6202_v26  ;;  %5987 = vrot.lane.b32.xlu1 %v14433_v51, %s16693_s2  ;;  %10301 = vmatprep.subr.bf16.mxu0 %v5711_v44  ;;  %vm16697_vm3 = vcmask 392192   ;;  %v14778_v44 = vld [vmem:[%s16210_s3 + $0x88] ss:$52 sps:$4 sm:$0xff]  }
 0x7dd   : > { %6504 = vrot.lane.b32.xlu0 %v14557_v35, %s16382_s17  ;;  %7479 = vmatpush1.bf16.msra.mxu1 %v6216_v50  ;;  %vm16698_vm8 = vmmov %vm16697_vm3 }
 0x7de   : > { %v14732_v59 = vpop.permute.xlu1 %6279 }
 0x7df   : > { %v6278_v6 = vpop.permute.xlu0 %6277 }
 0x7e0   : > { %6197 = vrot.lane.b32.xlu1 %v14372_v40, %s16660_s30  ;;  %v6308_v33 = vsel %vm16697_vm3, %v6278_v6, %v14732_v59  ;;  %7481 = vmatmul.mubr.bf16.vlgmr.msra.gmra.mrb[104].mxu1 %v14728_v30  ;;  %vm16701_vm3 = vmmov %vm16699_vm13 }
 0x7e1   : > { %6500 = vrot.lane.b32.xlu0 %v14565_v18, %s16382_s17  ;;  %7501 = vmatprep.subr.bf16.mxu1 %v6308_v33  ;;  %s16711_s17 = smov 44  }
 0x7e2   : > { %v6276_v39 = vpop.permute.xlu1 %6275 }
 0x7e3   : > { %v6307_v41 = vsel %vm16698_vm8, %v6276_v39, %v6278_v6  ;;  %v5494_v19 = vpop.permute.xlu0 %5493 }
 0x7e4   : > { %v5511_v24 = vsel %vm16699_vm13, %v14117_v9, %v5494_v19  ;;  %6581 = vrot.lane.b32.xlu1 %v14274_v58, %s16384_s24  ;;  %7502 = vmatpush1.bf16.msra.mxu1 %v6307_v41  ;;  %vm16702_vm13 = vmmov %vm16698_vm8  ;;  %v16707_v19 = vld [vmem:[#allocation22_spill] sm:$0xff] }
 0x7e5   : > { %6579 = vrot.lane.b32.xlu0 %v14368_v14, %s16384_s24  ;;  %10302 = vmatpush3.bf16.msra.mxu0 %v5511_v24 }
 0x7e6   : > { %v6286_v26 = vpop.permute.xlu1 %6285 }
 0x7e7   : > { %v5702_v54 = vpop.permute.xlu0 %5701 }
 0x7e8   : > { %6577 = vrot.lane.b32.xlu1 %v14282_v2, %s16384_s24  ;;  %v5714_v55 = vsel %vm16692_vm1, %v14250_v32, %v5702_v54  ;;  %v14767_v32 = vld [vmem:[%s16210_s3 + $0x8c] ss:$52 sps:$4 sm:$0xff]   ;;  %vm16705_vm1 = vmmov %vm16698_vm8 }
 0x7e9   : > { %5995 = vrot.lane.b32.xlu0 %v14372_v40, %s16693_s2  ;;  %10303 = vmatprep.subr.bf16.mxu0 %v5714_v55 }
 0x7ea   : > { %v5502_v9 = vpop.permute.xlu1 %5501  ;;  %7490 = vmatprep.mubr.bf16.mxu1 %v14767_v32 }
 0x7eb   : > { %v5514_v58 = vsel %vm16701_vm3, %v16700_v10, %v5502_v9  ;;  %v14756_v37 = vpop.permute.xlu0 %6287  ;;  %7491 = vmatmul.mubr.bf16.gmra.mrb[108].mxu1 %v14778_v44  ;;  %vm16706_vm3 = vmmov %vm16705_vm1 }
 0x7ec   : > { %6587 = vrot.lane.b32.xlu1 %v14486_v15, %s16384_s24  ;;  %10304 = vmatpush3.bf16.msra.mxu0 %v5514_v58  ;;  %v6311_v2 = vsel %vm16698_vm8, %v6286_v26, %v14756_v37  ;;  %vm16708_vm8 = vcmask 695296   ;;  %s16713_s24 = smov 47  }
 0x7ed   : > { %6205 = vrot.lane.b32.xlu0 %v14480_v43, %s16660_s30  ;;  %7503 = vmatprep.subr.bf16.mxu1 %v6311_v2 }
 0x7ee   : > { %v5778_v48 = vpop.permute.xlu1 %5777 }
 0x7ef   : > { %v6284_v61 = vpop.permute.xlu0 %6283  ;;  %v5806_v56 = vsel %vm5803_vm6, %v14265_v4, %v5778_v48  ;;  %v14817_v48 = vld [vmem:[%s16210_s3 + $0x2c] ss:$52 sps:$4 sm:$0xff]  }
 0x7f0   : > { %v6310_v28 = vsel %vm16702_vm13, %v6284_v61, %v6286_v26  ;;  %6003 = vrot.lane.b32.xlu1 %v14480_v43, %s16693_s2  ;;  %10305 = vmatprep.subr.bf16.mxu0 %v5806_v56  ;;  %vm16709_vm13 = vmmov %vm16708_vm8 }
 0x7f1   : > { %6589 = vrot.lane.b32.xlu0 %v14502_v34, %s16703_s1  ;;  %7504 = vmatpush1.bf16.msra.mxu1 %v6310_v28 }
 0x7f2   : > { %v14782_v50 = vpop.permute.xlu1 %6295  ;;  %7533 = vmatprep.mubr.bf16.mxu1 %v14817_v48 }
 0x7f3   : > { %v6294_v4 = vpop.permute.xlu0 %6293 }
 0x7f4   : > { %6482 = vrot.lane.b32.xlu1 %v14397_v23, %s16704_s7  ;;  %v6314_v6 = vsel %vm16705_vm1, %v6294_v4, %v14782_v50 }
 0x7f5   : > { %6585 = vrot.lane.b32.xlu0 %v14403_v27, %s16703_s1  ;;  %7505 = vmatprep.subr.bf16.mxu1 %v6314_v6 }
 0x7f6   : > { %v6292_v33 = vpop.permute.xlu1 %6291 }
 0x7f7   : > { %v6313_v39 = vsel %vm16706_vm3, %v6292_v33, %v6294_v4  ;;  %v5578_v41 = vpop.permute.xlu0 %5577  ;;  %vm16710_vm3 = vmmov %vm16705_vm1 }
 0x7f8   : > { %v5605_v24 = vsel %vm16708_vm8, %v16707_v19, %v5578_v41  ;;  %6597 = vrot.lane.b32.xlu1 %v14518_v45, %s16703_s1  ;;  %7506 = vmatpush1.bf16.msra.mxu1 %v6313_v39  ;;  %vm16394_vm8 = vcmask 384000   ;;  %v6648_v41 = vld [vmem:[#allocation3 + $0x10] sm:$0xff] }
 0x7f9   : > { %6595 = vrot.lane.b32.xlu0 %v14525_v52, %s16703_s1  ;;  %10306 = vmatpush3.bf16.msra.mxu0 %v5605_v24 }
 0x7fa   : > { %v6302_v26 = vpop.permute.xlu1 %6301 }
 0x7fb   : > { %v5786_v54 = vpop.permute.xlu0 %5785 }
 0x7fc   : > { %6593 = vrot.lane.b32.xlu1 %v14532_v5, %s16703_s1  ;;  %v5809_v55 = vsel %vm5803_vm6, %v14292_v13, %v5786_v54  ;;  %v6646_v54 = vld [vmem:[#allocation3] sm:$0xff] }
 0x7fd   : > { %6281 = vrot.lane.b32.xlu0 %v14397_v23, %s16443_s18  ;;  %10307 = vmatprep.subr.bf16.mxu0 %v5809_v55 }
 0x7fe   : > { %v5586_v9 = vpop.permute.xlu1 %5585 }
 0x7ff   : > { %v5608_v10 = vsel %vm16709_vm13, %v14148_v3, %v5586_v9  ;;  %v14806_v58 = vpop.permute.xlu0 %6303 }
 0x800   : > { %6603 = vrot.lane.b32.xlu1 %v14544_v8, %s16703_s1  ;;  %10308 = vmatpush3.bf16.msra.mxu0 %v5608_v10  ;;  %v6317_v2 = vsel %vm16705_vm1, %v6302_v26, %v14806_v58  ;;  %vm16712_vm1 = vmmov %vm16709_vm13 }
 0x801   : > { %6490 = vrot.lane.b32.xlu0 %v14433_v51, %s16704_s7  ;;  %7507 = vmatprep.subr.bf16.mxu1 %v6317_v2 }
 0x802   : > { %v5794_v13 = vpop.permute.xlu1 %5793 }
 0x803   : > { %v6300_v3 = vpop.permute.xlu0 %6299  ;;  %v5812_v61 = vsel %vm5803_vm6, %v14308_v25, %v5794_v13 }
 0x804   : > { %v6316_v56 = vsel %vm16710_vm3, %v6300_v3, %v6302_v26  ;;  %6289 = vrot.lane.b32.xlu1 %v14433_v51, %s16443_s18  ;;  %10309 = vmatprep.subr.bf16.mxu0 %v5812_v61  ;;  %vm16391_vm3 = vcmask 375808  }
 0x805   : > { %6605 = vrot.lane.b32.xlu0 %v14557_v35, %s16703_s1  ;;  %7508 = vmatpush1.bf16.msra.mxu1 %v6316_v56 }
 0x806   : > { %v14826_v28 = vpop.permute.xlu1 %6379 }
 0x807   : > { %v6378_v4 = vpop.permute.xlu0 %6377 }
 0x808   : > { %6498 = vrot.lane.b32.xlu1 %v14372_v40, %s16704_s7  ;;  %v6409_v25 = vsel %vm16394_vm8, %v6378_v4, %v14826_v28 }
 0x809   : > { %6601 = vrot.lane.b32.xlu0 %v14565_v18, %s16703_s1  ;;  %7509 = vmatprep.subr.bf16.mxu1 %v6409_v25  ;;  %v10229_v25 = vpop.f32.mrb[16].mxu0 }
 0x80a   : > { %v6376_v6 = vpop.permute.xlu1 %6375 }
 0x80b   : > { %v6408_v33 = vsel %vm16394_vm8, %v6376_v6, %v6378_v4  ;;  %v5594_v39 = vpop.permute.xlu0 %5593 }
 0x80c   : > { %v5611_v19 = vsel %vm16709_vm13, %v14164_v60, %v5594_v39  ;;  %6682 = vrot.lane.b32.xlu1 %v6648_v41, %s16711_s17  ;;  %7510 = vmatpush1.bf16.msra.mxu1 %v6408_v33  ;;  %v6649_v33 = vld [vmem:[#allocation3 + $0x18] sm:$0xff]  ;;  %vm16714_vm13 = vcmask 523264  }
 0x80d   : > { %6680 = vrot.lane.b32.xlu0 %v14368_v14, %s16711_s17  ;;  %10310 = vmatpush3.bf16.msra.mxu0 %v5611_v19 }
 0x80e   : > { %v6386_v24 = vpop.permute.xlu1 %6385 }
 0x80f   : > { %v5802_v26 = vpop.permute.xlu0 %5801 }
 0x810   : > { %6678 = vrot.lane.b32.xlu1 %v6646_v54, %s16711_s17  ;;  %v5815_v55 = vsel %vm5803_vm6, %v14334_v42, %v5802_v26 }
 0x811   : > { %6297 = vrot.lane.b32.xlu0 %v14372_v40, %s16443_s18  ;;  %10311 = vmatprep.subr.bf16.mxu0 %v5815_v55  ;;  %v6653_v55 = vld [vmem:[#allocation3 + $0x38] sm:$0xff] }
 0x812   : > { %v5602_v60 = vpop.permute.xlu1 %5601 }
 0x813   : > { %v5614_v9 = vsel %vm16712_vm1, %v14180_v57, %v5602_v60  ;;  %v14848_v10 = vpop.permute.xlu0 %6387  ;;  %vm16715_vm1 = vmmov %vm16714_vm13 }
 0x814   : > { %6688 = vrot.lane.b32.xlu1 %v14486_v15, %s16711_s17  ;;  %10312 = vmatpush3.bf16.msra.mxu0 %v5614_v9  ;;  %v6412_v14 = vsel %vm16394_vm8, %v6386_v24, %v14848_v10 }
 0x815   : > { %6506 = vrot.lane.b32.xlu0 %v14480_v43, %s16704_s7  ;;  %7511 = vmatprep.subr.bf16.mxu1 %v6412_v14 }
 0x816   : > { %v6081_v42 = vpop.permute.xlu1 %6080 }
 0x817   : > { %7787 = vmatmul.mubr.bf16.vlgmr.msra.gmra.mrb[40].mxu0 %v14350_v20  ;;  %v6384_v40 = vpop.permute.xlu0 %6383  ;;  %v6109_v57 = vsel %vm16390_vm11, %v14561_v62, %v6081_v42 }
 0x818   : > { %v6411_v2 = vsel %vm16394_vm8, %v6384_v40, %v6386_v24  ;;  %6305 = vrot.lane.b32.xlu1 %v14480_v43, %s16443_s18  ;;  %10325 = vmatprep.subr.bf16.mxu0 %v6109_v57 }
 0x819   : > { %6690 = vrot.lane.b32.xlu0 %v14502_v34, %s16711_s17  ;;  %7512 = vmatpush1.bf16.msra.mxu1 %v6411_v2 }
 0x81a   : > { %v14864_v15 = vpop.permute.xlu1 %6395  ;;  %7794 = vmatprep.mubr.bf16.mxu0 %v14419_v63 }
 0x81b   : > { %v6394_v13 = vpop.permute.xlu0 %6393 }
 0x81c   : > { %6583 = vrot.lane.b32.xlu1 %v14397_v23, %s16703_s1  ;;  %v6415_v20 = vsel %vm16394_vm8, %v6394_v13, %v14864_v15 }
 0x81d   : > { %6686 = vrot.lane.b32.xlu0 %v14403_v27, %s16711_s17  ;;  %7513 = vmatprep.subr.bf16.mxu1 %v6415_v20 }
 0x81e   : > { %v6392_v62 = vpop.permute.xlu1 %6391 }
 0x81f   : > { %v6414_v3 = vsel %vm16394_vm8, %v6392_v62, %v6394_v13  ;;  %7795 = vmatmul.mubr.bf16.gmra.mrb[44].mxu0 %v14424_v11  ;;  %v5879_v34 = vpop.permute.xlu0 %5878 }
 0x820   : > { %v5907_v63 = vsel %vm16396_vm12, %v14354_v36, %v5879_v34  ;;  %6698 = vrot.lane.b32.xlu1 %v14518_v45, %s16711_s17  ;;  %7514 = vmatpush1.bf16.msra.mxu1 %v6414_v3 }
 0x821   : > { %6696 = vrot.lane.b32.xlu0 %v14525_v52, %s16711_s17  ;;  %10326 = vmatpush3.bf16.msra.mxu0 %v5907_v63 }
 0x822   : > { %v6402_v61 = vpop.permute.xlu1 %6401  ;;  %7835 = vmatprep.mubr.bf16.mxu0 %v14449_v12 }
 0x823   : > { %v6089_v27 = vpop.permute.xlu0 %6088 }
 0x824   : > { %6694 = vrot.lane.b32.xlu1 %v14532_v5, %s16711_s17  ;;  %v6112_v11 = vsel %vm16390_vm11, %v14586_v53, %v6089_v27  ;;  %v7077_v27 = vld [vmem:[%s16211_s4 + $0x10] sm:$0xff] }
 0x825   : > { %6381 = vrot.lane.b32.xlu0 %v14397_v23, %s16713_s24  ;;  %10327 = vmatprep.subr.bf16.mxu0 %v6112_v11 }
 0x826   : > { %v5887_v36 = vpop.permute.xlu1 %5886 }
 0x827   : > { %v5910_v45 = vsel %vm16396_vm12, %v14382_v16, %v5887_v36  ;;  %v14890_v52 = vpop.permute.xlu0 %6403  ;;  %v7076_v36 = vld [vmem:[%s16211_s4 + $0x8] sm:$0xff] }
 0x828   : > { %6704 = vrot.lane.b32.xlu1 %v14544_v8, %s16711_s17  ;;  %10328 = vmatpush3.bf16.msra.mxu0 %v5910_v45  ;;  %v6418_v12 = vsel %vm16394_vm8, %v6402_v61, %v14890_v52  ;;  %v6556_v8 = vld [vmem:[#allocation3 + $0x58] sm:$0xff] }
 0x829   : > { %6591 = vrot.lane.b32.xlu0 %v14433_v51, %s16703_s1  ;;  %7515 = vmatprep.subr.bf16.mxu1 %v6418_v12 }
 0x82a   : > { %v6097_v5 = vpop.permute.xlu1 %6096 }
 0x82b   : > { %v6400_v23 = vpop.permute.xlu0 %6399  ;;  %v6115_v53 = vsel %vm16390_vm11, %v14601_v17, %v6097_v5 }
 0x82c   : > { %v6417_v16 = vsel %vm16394_vm8, %v6400_v23, %v6402_v61  ;;  %6389 = vrot.lane.b32.xlu1 %v14433_v51, %s16713_s24  ;;  %10329 = vmatprep.subr.bf16.mxu0 %v6115_v53  ;;  %v10230_v51 = vpop.f32.mrb[17].mxu0 }
 0x82d   : > { %6706 = vrot.lane.b32.xlu0 %v14557_v35, %s16711_s17  ;;  %7516 = vmatpush1.bf16.msra.mxu1 %v6417_v16  ;;  %v14912_v35 = vadd.f32 %v10230_v51, %v10229_v25  ;;  %v10232_v39 = vpop.f32.mrb[18].mxu0 }
 0x82e   : > { %v14905_v56 = vpop.permute.xlu1 %6480  ;;  %v10233_v24 = vpop.f32.mrb[19].mxu0 }
 0x82f   : > { %v6479_v4 = vpop.permute.xlu0 %6478  ;;  %v14918_v54 = vadd.f32 %v10233_v24, %v10232_v39 }
 0x830   : > { %6599 = vrot.lane.b32.xlu1 %v6556_v8, %s16703_s1  ;;  %v6510_v17 = vsel %vm16391_vm3, %v6479_v4, %v14905_v56 }
 0x831   : > { %6702 = vrot.lane.b32.xlu0 %v14565_v18, %s16711_s17  ;;  %7517 = vmatprep.subr.bf16.mxu1 %v6510_v17  ;;  %v10235_v18 = vpop.f32.mrb[20].mxu0 }
 0x832   : > { %v6477_v6 = vpop.permute.xlu1 %6476  ;;  %v10236_v60 = vpop.f32.mrb[21].mxu0 }
 0x833   : > { %v6509_v41 = vsel %vm16391_vm3, %v6477_v6, %v6479_v4  ;;  %v5895_v19 = vpop.permute.xlu0 %5894  ;;  %v14921_v14 = vadd.f32 %v10236_v60, %v10235_v18  ;;  %v10238_v42 = vpop.f32.mrb[22].mxu0 }
 0x834   : > { %v5913_v26 = vsel %vm16396_vm12, %v14399_v22, %v5895_v19  ;;  %6397 = vrot.lane.b32.xlu1 %v6556_v8, %s16713_s24  ;;  %7518 = vmatpush1.bf16.msra.mxu1 %v6509_v41  ;;  %v10239_v57 = vpop.f32.mrb[23].mxu0 }
 0x835   : > { %6684 = vrot.lane.b32.xlu0 %v6649_v33, %s16711_s17  ;;  %10330 = vmatpush3.bf16.msra.mxu0 %v5913_v26  ;;  %v14926_v2 = vadd.f32 %v10239_v57, %v10238_v42 }
 0x836   : > { %v6487_v9 = vpop.permute.xlu1 %6486 }
 0x837   : > { %v6105_v40 = vpop.permute.xlu0 %6104 }
 0x838   : > { %6692 = vrot.lane.b32.xlu1 %v6653_v55, %s16711_s17  ;;  %v6118_v22 = vsel %vm16390_vm11, %v14624_v21, %v6105_v40  ;;  %v7075_v21 = vld [vmem:[%s16211_s4] sm:$0xff] }
 0x839   : > { %6607 = vrot.lane.b32.xlu0 %v14480_v43, %s16703_s1  ;;  %10331 = vmatprep.subr.bf16.mxu0 %v6118_v22  ;;  %s16929_s1 = smov 92  }
 0x83a   : > { %v5903_v13 = vpop.permute.xlu1 %5902 }
 0x83b   : > { %v5916_v20 = vsel %vm16396_vm12, %v14438_v38, %v5903_v13  ;;  %v14932_v62 = vpop.permute.xlu0 %6488  ;;  %vm16732_vm12 = vcmask 244848  }
 0x83c   : > { %6700 = vrot.lane.b32.xlu1 %v6556_v8, %s16711_s17  ;;  %10332 = vmatpush3.bf16.msra.mxu0 %v5916_v20  ;;  %v6513_v3 = vsel %vm16391_vm3, %v6487_v9, %v14932_v62 }
 0x83d   : > { %6405 = vrot.lane.b32.xlu0 %v14480_v43, %s16713_s24  ;;  %7519 = vmatprep.subr.bf16.mxu1 %v6513_v3 }
 0x83e   : > { %v6182_v34 = vpop.permute.xlu1 %6181 }
 0x83f   : > { %v6485_v63 = vpop.permute.xlu0 %6484  ;;  %v6209_v38 = vsel %vm16714_vm13, %v14639_v31, %v6182_v34  ;;  %vm16716_vm13 = vmmov %vm16715_vm1 }
 0x840   : > { %v6512_v61 = vsel %vm16391_vm3, %v6485_v63, %v6487_v9  ;;  %7081 = vperm.xlu1 %10763, %v7075_v21   ;;  %10333 = vmatprep.subr.bf16.mxu0 %v6209_v38 }
 0x841   : > { %6708 = vrot.lane.b32.xlu0 %v14480_v43, %s16711_s17  ;;  %7520 = vmatpush1.bf16.msra.mxu1 %v6512_v61  ;;  %v7078_v43 = vld [vmem:[%s16211_s4 + $0x18] sm:$0xff]  ;;  %s16930_s17 = smov 112  }
 0x842   : > { %v14950_v11 = vpop.permute.xlu1 %6496 }
 0x843   : > { %v6495_v45 = vpop.permute.xlu0 %6494 }
 0x844   : > { %7091 = vperm.xlu1 %10763, %v7077_v27   ;;  %v6516_v31 = vsel %vm16391_vm3, %v6495_v45, %v14950_v11 }
 0x845   : > { %7086 = vperm.xlu0 %10762, %v7076_v36   ;;  %7521 = vmatprep.subr.bf16.mxu1 %v6516_v31 }
 0x846   : > { %v6493_v12 = vpop.permute.xlu1 %6492 }
 0x847   : > { %v6515_v5 = vsel %vm16391_vm3, %v6493_v12, %v6495_v45  ;;  %v5980_v23 = vpop.permute.xlu0 %5979 }
 0x848   : > { %v6008_v53 = vsel %vm16395_vm0, %v14458_v1, %v5980_v23  ;;  %7522 = vmatpush1.bf16.msra.mxu1 %v6515_v5 }
 0x849   : > { %7096 = vperm.xlu0 %10762, %v7078_v43   ;;  %10334 = vmatpush3.bf16.msra.mxu0 %v6008_v53 }
 0x84a   : > { %v6503_v16 = vpop.permute.xlu1 %6502  ;;  %v10257_v8 = vpop.f32.mrb[24].mxu0 }
 0x84b   : > { %v6190_v4 = vpop.permute.xlu0 %6189  ;;  %v10258_v17 = vpop.f32.mrb[25].mxu0 }
 0x84c   : > { %v6212_v25 = vsel %vm16715_vm1, %v14662_v0, %v6190_v4  ;;  %v14965_v51 = vadd.f32 %v10258_v17, %v10257_v8  ;;  %v10260_v6 = vpop.f32.mrb[26].mxu0  ;;  %vm16392_vm1 = vcmask 367616  }
 0x84d   : > { %10335 = vmatprep.subr.bf16.mxu0 %v6212_v25  ;;  %v10261_v33 = vpop.f32.mrb[27].mxu0 }
 0x84e   : > { %v5988_v39 = vpop.permute.xlu1 %5987  ;;  %v14967_v41 = vadd.f32 %v10261_v33, %v10260_v6 }
 0x84f   : > { %v6011_v1 = vsel %vm16395_vm0, %v14484_v29, %v5988_v39  ;;  %v14971_v19 = vpop.permute.xlu0 %6504 }
 0x850   : > { %10336 = vmatpush3.bf16.msra.mxu0 %v6011_v1  ;;  %v6519_v24 = vsel %vm16391_vm3, %v6503_v16, %v14971_v19 }
 0x851   : > { %7523 = vmatprep.subr.bf16.mxu1 %v6519_v24 }
 0x852   : > { %v6198_v26 = vpop.permute.xlu1 %6197  ;;  %v10263_v0 = vpop.f32.mrb[28].mxu0 }
 0x853   : > { %v6501_v18 = vpop.permute.xlu0 %6500  ;;  %v6215_v55 = vsel %vm16716_vm13, %v14680_v7, %v6198_v26  ;;  %v10264_v60 = vpop.f32.mrb[29].mxu0 }
 0x854   : > { %v6518_v9 = vsel %vm16391_vm3, %v6501_v18, %v6503_v16  ;;  %10337 = vmatprep.subr.bf16.mxu0 %v6215_v55  ;;  %v14978_v42 = vadd.f32 %v10264_v60, %v10263_v0  ;;  %v10266_v29 = vpop.f32.mrb[30].mxu0  ;;  %v15044_v60 = vld [vmem:[%s16210_s3 + $0x90] ss:$52 sps:$4 sm:$0xff]  }
 0x855   : > { %7524 = vmatpush1.bf16.msra.mxu1 %v6518_v9  ;;  %v10267_v40 = vpop.f32.mrb[31].mxu0 }
 0x856   : > { %v14980_v57 = vpop.permute.xlu1 %6581  ;;  %v14982_v22 = vadd.f32 %v10267_v40, %v10266_v29 }
 0x857   : > { %v6580_v13 = vpop.permute.xlu0 %6579 }
 0x858   : > { %v6611_v20 = vsel %vm16392_vm1, %v6580_v13, %v14980_v57 }
 0x859   : > { %7525 = vmatprep.subr.bf16.mxu1 %v6611_v20 }
 0x85a   : > { %v6578_v7 = vpop.permute.xlu1 %6577 }
 0x85b   : > { %v6610_v3 = vsel %vm16392_vm1, %v6578_v7, %v6580_v13  ;;  %v5996_v21 = vpop.permute.xlu0 %5995  ;;  %v16719_v13 = vmov 0  }
 0x85c   : > { %v6014_v34 = vsel %vm16395_vm0, %v14506_v46, %v5996_v21  ;;  %7526 = vmatpush1.bf16.msra.mxu1 %v6610_v3 }
 0x85d   : > { %10338 = vmatpush3.bf16.msra.mxu0 %v6014_v34 }
 0x85e   : > { %v6588_v63 = vpop.permute.xlu1 %6587 }
 0x85f   : > { %v6206_v38 = vpop.permute.xlu0 %6205 }
 0x860   : > { %v6218_v61 = vsel %vm16716_vm13, %v14712_v49, %v6206_v38  ;;  %vm16717_vm13 = vcmask 392192  }
 0x861   : > { %10339 = vmatprep.subr.bf16.mxu0 %v6218_v61  ;;  %vm16718_vm11 = vmmov %vm16717_vm13 }
 0x862   : > { %v6004_v27 = vpop.permute.xlu1 %6003 }
 0x863   : > { %v6017_v36 = vsel %vm16395_vm0, %v14542_v47, %v6004_v27  ;;  %v14993_v45 = vpop.permute.xlu0 %6589  ;;  %vm16730_vm0 = vcmask 1048464  }
 0x864   : > { %10340 = vmatpush3.bf16.msra.mxu0 %v6017_v36  ;;  %v6614_v31 = vsel %vm16392_vm1, %v6588_v63, %v14993_v45 }
 0x865   : > { %7527 = vmatprep.subr.bf16.mxu1 %v6614_v31 }
 0x866   : > { %v6483_v46 = vpop.permute.xlu1 %6482 }
 0x867   : > { %7836 = vmatmul.mubr.bf16.vlgmr.msra.gmra.mrb[48].mxu0 %v14728_v30  ;;  %v6586_v12 = vpop.permute.xlu0 %6585  ;;  %v6511_v43 = vsel %vm16391_vm3, %v14905_v56, %v6483_v46 }
 0x868   : > { %v6613_v49 = vsel %vm16392_vm1, %v6586_v12, %v6588_v63  ;;  %10353 = vmatprep.subr.bf16.mxu0 %v6511_v43  ;;  %7843 = vmatprep.mubr.bf16.mxu0 %v14767_v32 }
 0x869   : > { %7528 = vmatpush1.bf16.msra.mxu1 %v6613_v49 }
 0x86a   : > { %v15002_v47 = vpop.permute.xlu1 %6597 }
 0x86b   : > { %v6596_v5 = vpop.permute.xlu0 %6595 }
 0x86c   : > { %v6617_v23 = vsel %vm16392_vm1, %v6596_v5, %v15002_v47 }
 0x86d   : > { %7529 = vmatprep.subr.bf16.mxu1 %v6617_v23 }
 0x86e   : > { %v6594_v53 = vpop.permute.xlu1 %6593 }
 0x86f   : > { %v6616_v30 = vsel %vm16392_vm1, %v6594_v53, %v6596_v5  ;;  %7844 = vmatmul.mubr.bf16.gmra.mrb[52].mxu0 %v14778_v44  ;;  %v6282_v16 = vpop.permute.xlu0 %6281 }
 0x870   : > { %v6309_v56 = vsel %vm16717_vm13, %v14732_v59, %v6282_v16  ;;  %7530 = vmatpush1.bf16.msra.mxu1 %v6616_v30  ;;  %7884 = vmatprep.mubr.bf16.mxu0 %v14817_v48 }
 0x871   : > { %10354 = vmatpush3.bf16.msra.mxu0 %v6309_v56 }
 0x872   : > { %v6604_v32 = vpop.permute.xlu1 %6603 }
 0x873   : > { %v6491_v8 = vpop.permute.xlu0 %6490 }
 0x874   : > { %v6514_v4 = vsel %vm16391_vm3, %v14932_v62, %v6491_v8  ;;  %v15025_v62 = vld [vmem:[%s16210_s3 + $0x28] ss:$52 sps:$4 sm:$0xff]  }
 0x875   : > { %10355 = vmatprep.subr.bf16.mxu0 %v6514_v4 }
 0x876   : > { %v6290_v17 = vpop.permute.xlu1 %6289 }
 0x877   : > { %v6312_v25 = vsel %vm16718_vm11, %v14756_v37, %v6290_v17  ;;  %v15015_v6 = vpop.permute.xlu0 %6605  ;;  %vm16393_vm11 = vcmask 359424   ;;  %v15030_v37 = vld [vmem:[%s16210_s3 + $0x94] ss:$52 sps:$4 sm:$0xff]  }
 0x878   : > { %10356 = vmatpush3.bf16.msra.mxu0 %v6312_v25  ;;  %v6620_v59 = vsel %vm16392_vm1, %v6604_v32, %v15015_v6 }
 0x879   : > { %7531 = vmatprep.subr.bf16.mxu1 %v6620_v59 }
 0x87a   : > { %v6499_v44 = vpop.permute.xlu1 %6498 }
 0x87b   : > { %v6602_v48 = vpop.permute.xlu0 %6601  ;;  %v6517_v33 = vsel %vm16391_vm3, %v14950_v11, %v6499_v44 }
 0x87c   : > { %v6619_v39 = vsel %vm16392_vm1, %v6602_v48, %v6604_v32  ;;  %10357 = vmatprep.subr.bf16.mxu0 %v6517_v33  ;;  %v10880_v48 = vld [vmem:[%s16210_s3 + $0x30] ss:$52 sps:$4 sm:$0xff]  }
 0x87d   : > { %7532 = vmatpush1.bf16.msra.mxu1 %v6619_v39 }
 0x87e   : > { %v15032_v1 = vpop.permute.xlu1 %6682 }
 0x87f   : > { %v6681_v24 = vpop.permute.xlu0 %6680 }
 0x880   : > { %v6712_v11 = vsel %vm16393_vm11, %v6681_v24, %v15032_v1  ;;  %7534 = vmatmul.mubr.bf16.vlgmr.msra.gmra.mrb[104].mxu1 %v15025_v62 }
 0x881   : > { %7554 = vmatprep.subr.bf16.mxu1 %v6712_v11  ;;  %7543 = vmatprep.mubr.bf16.mxu1 %v15030_v37 }
 0x882   : > { %v6679_v26 = vpop.permute.xlu1 %6678 }
 0x883   : > { %v6711_v0 = vsel %vm16393_vm11, %v6679_v26, %v6681_v24  ;;  %v6298_v18 = vpop.permute.xlu0 %6297 }
 0x884   : > { %v6315_v55 = vsel %vm16717_vm13, %v14782_v50, %v6298_v18  ;;  %7555 = vmatpush1.bf16.msra.mxu1 %v6711_v0 }
 0x885   : > { %10358 = vmatpush3.bf16.msra.mxu0 %v6315_v55 }
 0x886   : > { %v6689_v9 = vpop.permute.xlu1 %6688 }
 0x887   : > { %v6507_v29 = vpop.permute.xlu0 %6506 }
 0x888   : > { %v6520_v40 = vsel %vm16391_vm3, %v14971_v19, %v6507_v29  ;;  %7544 = vmatmul.mubr.bf16.gmra.mrb[108].mxu1 %v15044_v60 }
 0x889   : > { %10359 = vmatprep.subr.bf16.mxu0 %v6520_v40  ;;  %7586 = vmatprep.mubr.bf16.mxu1 %v16719_v13 }
 0x88a   : > { %v6306_v20 = vpop.permute.xlu1 %6305 }
 0x88b   : > { %v6318_v50 = vsel %vm16717_vm13, %v14806_v58, %v6306_v20  ;;  %v6691_v7 = vpop.permute.xlu0 %6690  ;;  %vm16720_vm13 = vcmask 523264  }
 0x88c   : > { %10360 = vmatpush3.bf16.msra.mxu0 %v6318_v50  ;;  %v6715_v3 = vsel %vm16393_vm11, %v6689_v9, %v6691_v7  ;;  %vm16721_vm3 = vmmov %vm16720_vm13 }
 0x88d   : > { %7556 = vmatprep.subr.bf16.mxu1 %v6715_v3 }
 0x88e   : > { %v6584_v21 = vpop.permute.xlu1 %6583 }
 0x88f   : > { %v6687_v34 = vpop.permute.xlu0 %6686  ;;  %v6612_v63 = vsel %vm16392_vm1, %v14980_v57, %v6584_v21 }
 0x890   : > { %v6714_v19 = vsel %vm16393_vm11, %v6687_v34, %v6689_v9  ;;  %10361 = vmatprep.subr.bf16.mxu0 %v6612_v63 }
 0x891   : > { %7557 = vmatpush1.bf16.msra.mxu1 %v6714_v19 }
 0x892   : > { %v6699_v38 = vpop.permute.xlu1 %6698 }
 0x893   : > { %v6697_v61 = vpop.permute.xlu0 %6696 }
 0x894   : > { %v6718_v27 = vsel %vm16393_vm11, %v6697_v61, %v6699_v38 }
 0x895   : > { %7558 = vmatprep.subr.bf16.mxu1 %v6718_v27 }
 0x896   : > { %v6695_v58 = vpop.permute.xlu1 %6694 }
 0x897   : > { %v6717_v36 = vsel %vm16393_vm11, %v6695_v58, %v6697_v61  ;;  %v6382_v31 = vpop.permute.xlu0 %6381  ;;  %v15106_v58 = vld [vmem:[#allocation4 + $0x18] sm:$0xff] }
 0x898   : > { %v6410_v46 = vsel %vm16394_vm8, %v14826_v28, %v6382_v31  ;;  %7559 = vmatpush1.bf16.msra.mxu1 %v6717_v36  ;;  %8217 = vrot.lane.b32.xlu0 %v15106_v58, %s16516_s14 }
 0x899   : > { %10362 = vmatpush3.bf16.msra.mxu0 %v6410_v46  ;;  %8067 = vrot.lane.b32.xlu1 %v15106_v58, %s16513_s29 }
 0x89a   : > { %v6705_v12 = vpop.permute.xlu1 %6704  ;;  %v10285_v57 = vpop.f32.mrb[32].mxu0 }
 0x89b   : > { %v6592_v43 = vpop.permute.xlu0 %6591  ;;  %v10286_v49 = vpop.f32.mrb[33].mxu0 }
 0x89c   : > { %v6615_v5 = vsel %vm16392_vm1, %v14993_v45, %v6592_v43  ;;  %v10287_v23 = vadd.f32 %v10286_v49, %v10285_v57  ;;  %v10288_v53 = vpop.f32.mrb[34].mxu0 }
 0x89d   : > { %10363 = vmatprep.subr.bf16.mxu0 %v6615_v5  ;;  %v10289_v30 = vpop.f32.mrb[35].mxu0 }
 0x89e   : > { %v6390_v16 = vpop.permute.xlu1 %6389  ;;  %v15062_v56 = vadd.f32 %v10289_v30, %v10288_v53 }
 0x89f   : > { %v6413_v32 = vsel %vm16394_vm8, %v14848_v10, %v6390_v16  ;;  %v6707_v28 = vpop.permute.xlu0 %6706 }
 0x8a0   : > { %10364 = vmatpush3.bf16.msra.mxu0 %v6413_v32  ;;  %v6721_v8 = vsel %vm16393_vm11, %v6705_v12, %v6707_v28 }
 0x8a1   : > { %7560 = vmatprep.subr.bf16.mxu1 %v6721_v8 }
 0x8a2   : > { %v6600_v4 = vpop.permute.xlu1 %6599  ;;  %v10291_v17 = vpop.f32.mrb[36].mxu0 }
 0x8a3   : > { %v6703_v25 = vpop.permute.xlu0 %6702  ;;  %v6618_v45 = vsel %vm16392_vm1, %v15002_v47, %v6600_v4  ;;  %v10292_v59 = vpop.f32.mrb[37].mxu0 }
 0x8a4   : > { %v6720_v44 = vsel %vm16393_vm11, %v6703_v25, %v6705_v12  ;;  %10365 = vmatprep.subr.bf16.mxu0 %v6618_v45  ;;  %v10293_v10 = vadd.f32 %v10292_v59, %v10291_v17  ;;  %v10294_v33 = vpop.f32.mrb[38].mxu0 }
 0x8a5   : > { %7561 = vmatpush1.bf16.msra.mxu1 %v6720_v44  ;;  %v10295_v39 = vpop.f32.mrb[39].mxu0 }
 0x8a6   : > { %v6398_v24 = vpop.permute.xlu1 %6397  ;;  %v10296_v11 = vadd.f32 %v10295_v39, %v10294_v33 }
 0x8a7   : > { %v6416_v26 = vsel %vm16394_vm8, %v14864_v15, %v6398_v24  ;;  %v6685_v0 = vpop.permute.xlu0 %6684  ;;  %v10881_v15 = vld [vmem:[%s16210_s3 + $0x98] ss:$52 sps:$4 sm:$0xff]  }
 0x8a8   : > { %9991 = vmatmul.mubr.msk.bf16.vlgmr.msra.gmra.mrb[104].mxu1 %vm16720_vm13, %v10880_v48  ;;  %10366 = vmatpush3.bf16.msra.mxu0 %v6416_v26  ;;  %v6713_v47 = vsel %vm16393_vm11, %v15032_v1, %v6685_v0 }
 0x8a9   : > { %10466 = vmatprep.subr.bf16.mxu1 %v6713_v47  ;;  %7596 = vmatprep.mubr.bf16.mxu1 %v16719_v13 }
 0x8aa   : > { %v6693_v18 = vpop.permute.xlu1 %6692  ;;  %10467 = vmatpush3.bf16.msra.mxu1 %v6713_v47 }
 0x8ab   : > { %v6608_v55 = vpop.permute.xlu0 %6607  ;;  %v6716_v9 = vsel %vm16393_vm11, %v6691_v7, %v6693_v18 }
 0x8ac   : > { %10468 = vmatprep.subr.bf16.mxu1 %v6716_v9  ;;  %v6621_v29 = vsel %vm16392_vm1, %v15015_v6, %v6608_v55  ;;  %vm16722_vm1 = vmmov %vm16721_vm3 }
 0x8ad   : > { %10367 = vmatprep.subr.bf16.mxu0 %v6621_v29 }
 0x8ae   : > { %v6701_v40 = vpop.permute.xlu1 %6700  ;;  %10469 = vmatpush3.bf16.msra.mxu1 %v6716_v9 }
 0x8af   : > { %v6406_v1 = vpop.permute.xlu0 %6405  ;;  %v6719_v20 = vsel %vm16393_vm11, %v6699_v38, %v6701_v40 }
 0x8b0   : > { %v6419_v50 = vsel %vm16394_vm8, %v14890_v52, %v6406_v1  ;;  %9992 = vmatmul.mubr.msk.bf16.gmra.mrb[108].mxu1 %vm16720_vm13, %v10881_v15  ;;  %10470 = vmatprep.subr.bf16.mxu1 %v6719_v20  ;;  %vm16725_vm13 = vcmask 244848   ;;  %vm16728_vm8 = vcmask 736848  }
 0x8b1   : > { %10368 = vmatpush3.bf16.msra.mxu0 %v6419_v50  ;;  %10474 = vmatprep.mubr.msk.bf16.mxu1 %vm16721_vm3, %v10880_v48  ;;  %vm7994_vm3 = vcmask 343040  }
 0x8b2   : > { %10471 = vmatpush3.bf16.msra.mxu1 %v6719_v20 }
 0x8b3   : > { %v6709_v6 = vpop.permute.xlu0 %6708 }
 0x8b4   : > { %7885 = vmatmul.mubr.bf16.vlgmr.msra.gmra.mrb[56].mxu0 %v15025_v62  ;;  %v6722_v7 = vsel %vm16393_vm11, %v6707_v28, %v6709_v6  ;;  %vm16726_vm11 = vcmask 15360  }
 0x8b5   : > { %10472 = vmatprep.subr.bf16.mxu1 %v6722_v7  ;;  %7892 = vmatprep.mubr.bf16.mxu0 %v15030_v37 }
 0x8b6   : > { %10473 = vmatpush3.bf16.msra.mxu1 %v6722_v7 }
 0x8b9   : > { %10475 = vmatmul.mubr.msk.bf16.vlgmr.msra.gmra.mrb[112].mxu1 %vm16722_vm1, %v10881_v15  ;;  %vm16724_vm1 = vcmask 80896  }
 0x8bc   : > { %7893 = vmatmul.mubr.bf16.gmra.mrb[60].mxu0 %v15044_v60 }
 0x8bf   : > { %v7082_v52 = vpop.permute.xlu1 %7081 }
 0x8c0   : > { %v7642_v3 = vadd.f32 %v14912_v35, %v7082_v52 }
 0x8c2   : > { %v7691_v21 = vadd.f32 %v14965_v51, %v7642_v3 }
 0x8c3   : > { %v15097_v34 = vpop.permute.xlu1 %7091 }
 0x8c4   : > { %v7740_v63 = vadd.f32 %v10287_v23, %v7691_v21  ;;  %v7650_v62 = vadd.f32 %v14921_v14, %v15097_v34  ;;  %v7087_v19 = vpop.permute.xlu0 %7086 }
 0x8c5   : > { %v7645_v38 = vadd.f32 %v14918_v54, %v7087_v19  ;;  %v15115_v54 = vld [vmem:[#allocation4 + $0x38] sm:$0xff] }
 0x8c6   : > { %v7699_v37 = vadd.f32 %v14978_v42, %v7650_v62  ;;  %8225 = vrot.lane.b32.xlu0 %v15115_v54, %s16516_s14  ;;  %8275 = vrot.lane.b32.xlu1 %v15115_v54, %s16448_s13 }
 0x8c7   : > { %v7694_v61 = vadd.f32 %v14967_v41, %v7645_v38 }
 0x8c8   : > { %v7748_v27 = vadd.f32 %v10293_v10, %v7699_v37  ;;  %v15104_v60 = vpop.permute.xlu0 %7096 }
 0x8c9   : > { %v7653_v35 = vadd.f32 %v14926_v2, %v15104_v60  ;;  %v7743_v51 = vadd.f32 %v15062_v56, %v7694_v61 }
 0x8ca   : > { %8267 = vrot.lane.b32.xlu0 %v15106_v58, %s16448_s13 }
 0x8cb   : > { %v7702_v14 = vadd.f32 %v14982_v22, %v7653_v35 }
 0x8cd   : > { %v7751_v41 = vadd.f32 %v10296_v11, %v7702_v14 }
 0x8ce   : > { %8075 = vrot.lane.b32.xlu0 %v15115_v54, %s16513_s29 }
 0x8ea   : > { %v10313_v2 = vpop.f32.mrb[40].mxu0 }
 0x8eb   : > { %v10314_v42 = vpop.f32.mrb[41].mxu0 }
 0x8ec   : > { %v10315_v36 = vadd.f32 %v10314_v42, %v10313_v2  ;;  %v10316_v31 = vpop.f32.mrb[42].mxu0 }
 0x8ed   : > { %v10317_v46 = vpop.f32.mrb[43].mxu0 }
 0x8ee   : > { %v7789_v12 = vadd.f32 %v10315_v36, %v7740_v63  ;;  %v10318_v22 = vadd.f32 %v10317_v46, %v10316_v31 }
 0x8f0   : > { %v7792_v57 = vadd.f32 %v10318_v22, %v7743_v51 }
 0x8f2   : > { %v10319_v43 = vpop.f32.mrb[44].mxu0 }
 0x8f3   : > { %v10320_v49 = vpop.f32.mrb[45].mxu0 }
 0x8f4   : > { %v10321_v5 = vadd.f32 %v10320_v49, %v10319_v43  ;;  %v10322_v23 = vpop.f32.mrb[46].mxu0 }
 0x8f5   : > { %v10323_v53 = vpop.f32.mrb[47].mxu0 }
 0x8f6   : > { %v7797_v30 = vadd.f32 %v10321_v5, %v7748_v27  ;;  %v10324_v16 = vadd.f32 %v10323_v53, %v10322_v23 }
 0x8f8   : > { %v7800_v56 = vadd.f32 %v10324_v16, %v7751_v41 }
 0x93a   : > { %v10341_v32 = vpop.f32.mrb[48].mxu0 }
 0x93b   : > { %v10342_v28 = vpop.f32.mrb[49].mxu0 }
 0x93c   : > { %v10343_v8 = vadd.f32 %v10342_v28, %v10341_v32  ;;  %v10344_v4 = vpop.f32.mrb[50].mxu0 }
 0x93d   : > { %v10345_v17 = vpop.f32.mrb[51].mxu0 }
 0x93e   : > { %v7838_v25 = vadd.f32 %v10343_v8, %v7789_v12  ;;  %v10346_v45 = vadd.f32 %v10345_v17, %v10344_v4 }
 0x940   : > { %v7841_v59 = vadd.f32 %v10346_v45, %v7792_v57 }
 0x942   : > { %v10347_v44 = vpop.f32.mrb[52].mxu0 }
 0x943   : > { %v10348_v48 = vpop.f32.mrb[53].mxu0 }
 0x944   : > { %v10349_v10 = vadd.f32 %v10348_v48, %v10347_v44  ;;  %v10350_v33 = vpop.f32.mrb[54].mxu0 }
 0x945   : > { %v10351_v39 = vpop.f32.mrb[55].mxu0 }
 0x946   : > { %v7846_v24 = vadd.f32 %v10349_v10, %v7797_v30  ;;  %v10352_v11 = vadd.f32 %v10351_v39, %v10350_v33 }
 0x948   : > { %v7849_v26 = vadd.f32 %v10352_v11, %v7800_v56  ;;  %v15136_v11 = vpop.permute.xlu0 %8217 }
 0x97b   : > { %v7588_v0 = vpop.f32.mrb[104].mxu1 }
 0x97c   : > { %v10518_v47 = vadd.f32 %v7588_v0, %v7082_v52  ;;  %v7590_v18 = vpop.f32.mrb[105].mxu1  ;;  %v15138_v0 = vpop.permute.xlu0 %8225 }
 0x97d   : > { %v10519_v55 = vadd.f32 %v7590_v18, %v7082_v52  ;;  %v7592_v9 = vpop.f32.mrb[106].mxu1 }
 0x97e   : > { %v10520_v29 = vadd.f32 %v7592_v9, %v7087_v19  ;;  %v7594_v15 = vpop.f32.mrb[107].mxu1  ;;  %v7950_v1 = vmax.f32 %v10518_v47, 0.0  ;;  %v15140_v47 = vpop.permute.xlu1 %8067 }
 0x97f   : > { %v10521_v40 = vadd.f32 %v7594_v15, %v7087_v19  ;;  %v7951_v50 = vmax.f32 %v10519_v55, 0.0 }
 0x980   : > { %v7953_v20 = vmax.f32 %v10520_v29, 0.0  ;;  %v15142_v18 = vpop.permute.xlu0 %8267 }
 0x981   : > { %v7954_v6 = vmax.f32 %v10521_v40, 0.0 }
 0x982   : > { %v7962_v7 = vpack.c.bf16 %v7953_v20, %v7950_v1 }
 0x983   : > { %v7986_v3 = vpack.c.bf16 %v7954_v6, %v7951_v50  ;;  %v7598_v21 = vpop.f32.mrb[108].mxu1 }
 0x984   : > { %v10522_v63 = vadd.f32 %v7598_v21, %v15097_v34  ;;  %v7600_v62 = vpop.f32.mrb[109].mxu1  ;;  %7966 = vrot.lane.b32.xlu1 %v7962_v7, %s16723_s9  ;;  %v15146_v55 = vpop.permute.xlu0 %8075 }
 0x985   : > { %v10523_v38 = vadd.f32 %v7600_v62, %v15097_v34  ;;  %v7602_v37 = vpop.f32.mrb[110].mxu1  ;;  %7990 = vrot.lane.b32.xlu0 %v7986_v3, %s16723_s9 }
 0x986   : > { %v10524_v52 = vadd.f32 %v7602_v37, %v15104_v60  ;;  %v7604_v19 = vpop.f32.mrb[111].mxu1  ;;  %v7956_v35 = vmax.f32 %v10522_v63, 0.0 }
 0x987   : > { %v10525_v61 = vadd.f32 %v7604_v19, %v15104_v60  ;;  %v10369_v27 = vpop.f32.mrb[56].mxu0  ;;  %v7957_v41 = vmax.f32 %v10523_v38, 0.0 }
 0x988   : > { %v7959_v51 = vmax.f32 %v10524_v52, 0.0  ;;  %v10370_v14 = vpop.f32.mrb[57].mxu0 }
 0x989   : > { %v7960_v2 = vmax.f32 %v10525_v61, 0.0  ;;  %v10371_v42 = vadd.f32 %v10370_v14, %v10369_v27  ;;  %v10372_v36 = vpop.f32.mrb[58].mxu0 }
 0x98a   : > { %v7963_v31 = vpack.c.bf16 %v7959_v51, %v7956_v35  ;;  %v10373_v46 = vpop.f32.mrb[59].mxu0 }
 0x98b   : > { %v7987_v12 = vpack.c.bf16 %v7960_v2, %v7957_v41  ;;  %v10374_v34 = vadd.f32 %v10373_v46, %v10372_v36  ;;  %v7887_v22 = vadd.f32 %v10371_v42, %v7838_v25 }
 0x98c   : > { %v10476_v57 = vpop.f32.mrb[112].mxu1  ;;  %7968 = vrot.lane.b32.xlu1 %v7963_v31, %s16723_s9 }
 0x98d   : > { %v7935_v43 = vpop.f32.mrb[113].mxu1  ;;  %v7890_v49 = vadd.f32 %v10374_v34, %v7841_v59 }
 0x98e   : > { %v7936_v5 = vadd.f32 %v7935_v43, %v7887_v22  ;;  %v10477_v60 = vpop.f32.mrb[114].mxu1 }
 0x98f   : > { %v10375_v23 = vpop.f32.mrb[60].mxu0  ;;  %v7938_v53 = vpop.f32.mrb[115].mxu1 }
 0x990   : > { %v7939_v30 = vadd.f32 %v7938_v53, %v7890_v49  ;;  %v10376_v16 = vpop.f32.mrb[61].mxu0  ;;  %7992 = vrot.lane.b32.xlu1 %v7987_v12, %s16723_s9  ;;  %v7952_v28 = vmax.f32 %v7936_v5, 0.0 }
 0x991   : > { %v10377_v56 = vadd.f32 %v10376_v16, %v10375_v23  ;;  %v10378_v32 = vpop.f32.mrb[62].mxu0  ;;  %v15421_v16 = vld [vmem:[%s16212_s5] sm:$0xff] }
 0x992   : > { %v7955_v8 = vmax.f32 %v7939_v30, 0.0  ;;  %v10379_v4 = vpop.f32.mrb[63].mxu0 }
 0x993   : > { %v7895_v17 = vadd.f32 %v10377_v56, %v7846_v24  ;;  %v10380_v25 = vadd.f32 %v10379_v4, %v10378_v32  ;;  %v15144_v24 = vpop.permute.xlu1 %8275  ;;  %v9996_v56 = vcombine.high %v15421_v16, %v15421_v16 }
 0x994   : > { %v8017_v45 = vpack.c.bf16 %v7955_v8, %v7952_v28 }
 0x995   : > { %v7944_v44 = vadd.f32 %v10476_v57, %v7895_v17  ;;  %v7898_v48 = vadd.f32 %v10380_v25, %v7849_v26  ;;  %9465 = vmatprep.mubr.bf16.mxu0 %v9996_v56  ;;  %9629 = vmatprep.mubr.bf16.mxu1 %v9996_v56 }
 0x997   : > { %v7947_v10 = vadd.f32 %v10477_v60, %v7898_v48  ;;  %v7958_v59 = vmax.f32 %v7944_v44, 0.0 }
 0x999   : > { %v7961_v33 = vmax.f32 %v7947_v10, 0.0 }
 0x99b   : > { %v8018_v39 = vpack.c.bf16 %v7961_v33, %v7958_v59 }
 0x99d   : > { %8023 = vrot.lane.b32.xlu0 %v8018_v39, %s16723_s9 }
 0x9a1   : > { %8021 = vrot.lane.b32.xlu0 %v8017_v45, %s16723_s9  ;;  %s16932_s9 = smov 100  }
 0x9f6   : > { %v7967_v26 = vpop.permute.xlu1 %7966 }
 0x9f7   : > { %7972 = vst.msk [vmem:[#allocation4] sm:$0xff] %vm4016_vm15, %v7967_v26  ;;  %v7991_v9 = vpop.permute.xlu0 %7990 }
 0x9f8   : > { %7981 = vst.msk [vmem:[#allocation4 + $0x8] sm:$0xff] %vm16724_vm1, %v7967_v26  ;;  %v7995_v29 = vsel %vm7994_vm3, %v7967_v26, %v7991_v9  ;;  %vm16727_vm1 = vcmask 1048528  }
 0x9f9   : > { %7974 = vst.msk [vmem:[#allocation4] sm:$0xff] %vm4033_vm10, %v7967_v26 }
 0x9fa   : > { %7984 = vst.msk [vmem:[#allocation4 + $0x8] sm:$0xff] %vm16725_vm13, %v7967_v26  ;;  %vm16729_vm13 = vcmask 900848  }
 0x9fb   : > { %8010 = vst.msk [vmem:[#allocation4 + $0x10] sm:$0xff] %vm16726_vm11, %v7991_v9  ;;  %vm16731_vm11 = vcmask 80896  }
 0x9fc   : > { %7976 = vst.msk [vmem:[#allocation4] sm:$0xff] %vm4050_vm5, %v7967_v26 }
 0x9fd   : > { %7999 = vst.msk [vmem:[#allocation4 + $0x8] sm:$0xff] %vm4144_vm7, %v7995_v29 }
 0x9fe   : > { %8013 = vst.msk [vmem:[#allocation4 + $0x10] sm:$0xff] %vm4242_vm9, %v7991_v9  ;;  %v7969_v15 = vpop.permute.xlu1 %7968 }
 0x9ff   : > { %7978 = vst.msk [vmem:[#allocation4] sm:$0xff] %vm4067_vm4, %v7967_v26 }
 0xa00   : > { %8003 = vst.msk [vmem:[#allocation4 + $0x8] sm:$0xff] %vm4161_vm2, %v7991_v9 }
 0xa01   : > { %8015 = vst.msk [vmem:[#allocation4 + $0x10] sm:$0xff] %vm4259_vm14, %v7991_v9 }
 0xa02   : > { %7980 = vst.msk [vmem:[#allocation4] sm:$0xff] %vm16727_vm1, %v7967_v26  ;;  %v7993_v40 = vpop.permute.xlu1 %7992 }
 0xa03   : > { %8005 = vst.msk [vmem:[#allocation4 + $0x8] sm:$0xff] %vm16728_vm8, %v7991_v9  ;;  %vm16733_vm8 = vmmov %vm16727_vm1  ;;  %v7996_v20 = vsel %vm7994_vm3, %v7969_v15, %v7993_v40  ;;  %vm16760_vm3 = vcmask 1039360  }
 0xa04   : > { %8007 = vst.msk [vmem:[#allocation4 + $0x8] sm:$0xff] %vm16729_vm13, %v7991_v9  ;;  %vm16761_vm1 = vmmov %vm16760_vm3 }
 0xa05   : > { %8009 = vst.msk [vmem:[#allocation4 + $0x8] sm:$0xff] %vm16730_vm0, %v7991_v9  ;;  %vm16734_vm0 = vcmask 15360  }
 0xa06   : > { %7973 = vst.msk [vmem:[#allocation4 + $0x20] sm:$0xff] %vm4016_vm15, %v7969_v15  ;;  %vm16735_vm15 = vcmask 736848  }
 0xa07   : > { %7983 = vst.msk [vmem:[#allocation4 + $0x28] sm:$0xff] %vm16731_vm11, %v7969_v15  ;;  %vm16765_vm11 = vcmask 1014784  }
 0xa08   : > { %7975 = vst.msk [vmem:[#allocation4 + $0x20] sm:$0xff] %vm4033_vm10, %v7969_v15  ;;  %vm16736_vm10 = vmmov %vm16729_vm13 }
 0xa09   : > { %7985 = vst.msk [vmem:[#allocation4 + $0x28] sm:$0xff] %vm16732_vm12, %v7969_v15  ;;  %v15170_v1 = vld [vmem:[#allocation4] sm:$0xff]  ;;  %vm16764_vm13 = vmmov %vm16761_vm1 }
 0xa0a   : > { %7977 = vst.msk [vmem:[#allocation4 + $0x20] sm:$0xff] %vm4050_vm5, %v7969_v15  ;;  %8061 = vrot.lane.b32.xlu1 %v15170_v1, %s16513_s29  ;;  %vm16740_vm5 = vcmask 835248  }
 0xa0b   : > { %7979 = vst.msk [vmem:[#allocation4 + $0x20] sm:$0xff] %vm4067_vm4, %v7969_v15  ;;  %vm16743_vm12 = vmmov %vm16740_vm5 }
 0xa0c   : > { %7982 = vst.msk [vmem:[#allocation4 + $0x20] sm:$0xff] %vm16733_vm8, %v7969_v15  ;;  %v15179_v50 = vld [vmem:[#allocation4 + $0x8] sm:$0xff]  ;;  %vm16766_vm8 = vmmov %vm16761_vm1 }
 0xa0d   : > { %8012 = vst.msk [vmem:[#allocation4 + $0x30] sm:$0xff] %vm16734_vm0, %v7993_v40  ;;  %9433 = vmatprep.subr.bf16.mxu0 %v15179_v50  ;;  %vm16767_vm0 = vcmask 1031168  }
 0xa0e   : > { %8000 = vst.msk [vmem:[#allocation4 + $0x28] sm:$0xff] %vm4144_vm7, %v7996_v20  ;;  %9434 = vmatpush1.bf16.msra.mxu0 %v15170_v1  ;;  %8111 = vrot.lane.b32.xlu1 %v15170_v1, %s16509_s23  ;;  %vm16737_vm7 = vcmask 1048464  }
 0xa0f   : > { %8014 = vst.msk [vmem:[#allocation4 + $0x30] sm:$0xff] %vm4242_vm9, %v7993_v40  ;;  %v8024_v7 = vpop.permute.xlu0 %8023 }
 0xa10   : > { %8004 = vst.msk [vmem:[#allocation4 + $0x28] sm:$0xff] %vm4161_vm2, %v7993_v40  ;;  %vm16738_vm2 = vcmask 507248  }
 0xa11   : > { %8016 = vst.msk [vmem:[#allocation4 + $0x30] sm:$0xff] %vm4259_vm14, %v7993_v40  ;;  %vm16739_vm14 = vcmask 671248   ;;  %vm16741_vm4 = vmmov %vm16738_vm2 }
 0xa12   : > { %8006 = vst.msk [vmem:[#allocation4 + $0x28] sm:$0xff] %vm16735_vm15, %v7993_v40  ;;  %8161 = vrot.lane.b32.xlu1 %v15170_v1, %s16514_s20  ;;  %vm16742_vm9 = vmmov %vm16739_vm14 }
 0xa13   : > { %8008 = vst.msk [vmem:[#allocation4 + $0x28] sm:$0xff] %vm16736_vm10, %v7993_v40  ;;  %v15190_v6 = vld [vmem:[#allocation4 + $0x20] sm:$0xff]  ;;  %v8022_v21 = vpop.permute.xlu0 %8021  ;;  %vm16768_vm15 = vmmov %vm16767_vm0 }
 0xa14   : > { %8011 = vst.msk [vmem:[#allocation4 + $0x28] sm:$0xff] %vm16737_vm7, %v7993_v40  ;;  %8069 = vrot.lane.b32.xlu0 %v15190_v6, %s16513_s29  ;;  %vm16769_vm10 = vmmov %vm16767_vm0 }
 0xa15   : > { %8028 = vst.msk [vmem:[#allocation4 + $0x30] sm:$0xff] %vm16738_vm2, %v8024_v7  ;;  %vm16770_vm7 = vmmov %vm16767_vm0  ;;  %vm16771_vm2 = vcmask 1022976  }
 0xa16   : > { %8211 = vrot.lane.b32.xlu1 %v15170_v1, %s16516_s14  ;;  %8030 = vst.msk [vmem:[#allocation4 + $0x30] sm:$0xff] %vm16739_vm14, %v8024_v7  ;;  %vm16772_vm14 = vmmov %vm16765_vm11 }
 0xa17   : > { %8032 = vst.msk [vmem:[#allocation4 + $0x30] sm:$0xff] %vm16740_vm5, %v8024_v7  ;;  %vm16773_vm5 = vmmov %vm16771_vm2 }
 0xa18   : > { %8119 = vrot.lane.b32.xlu0 %v15190_v6, %s16509_s23  ;;  %8027 = vst.msk [vmem:[#allocation4 + $0x10] sm:$0xff] %vm16741_vm4, %v8022_v21  ;;  %vm16774_vm4 = vmmov %vm16771_vm2 }
 0xa19   : > { %8029 = vst.msk [vmem:[#allocation4 + $0x10] sm:$0xff] %vm16742_vm9, %v8022_v21  ;;  %vm16775_vm9 = vcmask 883712  }
 0xa1a   : > { %8261 = vrot.lane.b32.xlu1 %v15170_v1, %s16448_s13  ;;  %8031 = vst.msk [vmem:[#allocation4 + $0x10] sm:$0xff] %vm16743_vm12, %v8022_v21  ;;  %vm16776_vm12 = vmmov %vm16771_vm2 }
 0xa1b   : > { %v15200_v3 = vld [vmem:[#allocation4 + $0x28] sm:$0xff] }
 0xa1c   : > { %9435 = vmatprep.subr.bf16.mxu0 %v15200_v3  ;;  %8169 = vrot.lane.b32.xlu0 %v15190_v6, %s16514_s20 }
 0xa1d   : > { %9436 = vmatpush1.bf16.msra.mxu0 %v15190_v6 }
 0xa1e   : > { %8311 = vrot.lane.b32.xlu1 %v15170_v1, %s16620_s0  ;;  %v15306_v63 = vld [vmem:[#allocation4 + $0x30] sm:$0xff] }
 0xa20   : > { %8219 = vrot.lane.b32.xlu0 %v15190_v6, %s16516_s14 }
 0xa21   : > { %v15314_v38 = vld [vmem:[#allocation4 + $0x10] sm:$0xff] }
 0xa22   : > { %8361 = vrot.lane.b32.xlu1 %v15170_v1, %s16532_s8 }
 0xa24   : > { %8269 = vrot.lane.b32.xlu0 %v15190_v6, %s16448_s13 }
 0xa26   : > { %8411 = vrot.lane.b32.xlu1 %v15170_v1, %s16535_s25 }
 0xa28   : > { %8319 = vrot.lane.b32.xlu0 %v15190_v6, %s16620_s0 }
 0xa2a   : > { %8461 = vrot.lane.b32.xlu1 %v15170_v1, %s16458_s16 }
 0xa2c   : > { %8369 = vrot.lane.b32.xlu0 %v15190_v6, %s16532_s8 }
 0xa2e   : > { %8511 = vrot.lane.b32.xlu1 %v15170_v1, %s16537_s12 }
 0xa30   : > { %8419 = vrot.lane.b32.xlu0 %v15190_v6, %s16535_s25 }
 0xa32   : > { %8561 = vrot.lane.b32.xlu1 %v15170_v1, %s16550_s21 }
 0xa34   : > { %8469 = vrot.lane.b32.xlu0 %v15190_v6, %s16458_s16 }
 0xa36   : > { %8611 = vrot.lane.b32.xlu1 %v15170_v1, %s16560_s19 }
 0xa38   : > { %8519 = vrot.lane.b32.xlu0 %v15190_v6, %s16537_s12 }
 0xa3a   : > { %8661 = vrot.lane.b32.xlu1 %v15170_v1, %s16571_s26 }
 0xa3c   : > { %8569 = vrot.lane.b32.xlu0 %v15190_v6, %s16550_s21 }
 0xa3e   : > { %8711 = vrot.lane.b32.xlu1 %v15170_v1, %s16480_s22 }
 0xa40   : > { %8619 = vrot.lane.b32.xlu0 %v15190_v6, %s16560_s19 }
 0xa42   : > { %8761 = vrot.lane.b32.xlu1 %v15170_v1, %s16606_s15 }
 0xa44   : > { %8719 = vrot.lane.b32.xlu0 %v15190_v6, %s16480_s22 }
 0xa46   : > { %8063 = vrot.lane.b32.xlu1 %v15179_v50, %s16513_s29 }
 0xa48   : > { %8071 = vrot.lane.b32.xlu0 %v15200_v3, %s16513_s29 }
 0xa4a   : > { %8113 = vrot.lane.b32.xlu1 %v15179_v50, %s16509_s23 }
 0xa4c   : > { %8121 = vrot.lane.b32.xlu0 %v15200_v3, %s16509_s23 }
 0xa4e   : > { %8163 = vrot.lane.b32.xlu1 %v15179_v50, %s16514_s20 }
 0xa50   : > { %8171 = vrot.lane.b32.xlu0 %v15200_v3, %s16514_s20 }
 0xa52   : > { %8213 = vrot.lane.b32.xlu1 %v15179_v50, %s16516_s14 }
 0xa54   : > { %8221 = vrot.lane.b32.xlu0 %v15200_v3, %s16516_s14 }
 0xa56   : > { %8263 = vrot.lane.b32.xlu1 %v15179_v50, %s16448_s13 }
 0xa58   : > { %8271 = vrot.lane.b32.xlu0 %v15200_v3, %s16448_s13 }
 0xa5a   : > { %8313 = vrot.lane.b32.xlu1 %v15179_v50, %s16620_s0 }
 0xa5c   : > { %8321 = vrot.lane.b32.xlu0 %v15200_v3, %s16620_s0 }
 0xa5e   : > { %8363 = vrot.lane.b32.xlu1 %v15179_v50, %s16532_s8 }
 0xa60   : > { %8371 = vrot.lane.b32.xlu0 %v15200_v3, %s16532_s8 }
 0xa62   : > { %8413 = vrot.lane.b32.xlu1 %v15179_v50, %s16535_s25 }
 0xa64   : > { %8421 = vrot.lane.b32.xlu0 %v15200_v3, %s16535_s25 }
 0xa66   : > { %8463 = vrot.lane.b32.xlu1 %v15179_v50, %s16458_s16 }
 0xa68   : > { %8471 = vrot.lane.b32.xlu0 %v15200_v3, %s16458_s16 }
 0xa6a   : > { %8513 = vrot.lane.b32.xlu1 %v15179_v50, %s16537_s12 }
 0xa6c   : > { %8521 = vrot.lane.b32.xlu0 %v15200_v3, %s16537_s12 }
 0xa6e   : > { %8563 = vrot.lane.b32.xlu1 %v15179_v50, %s16550_s21 }
 0xa70   : > { %8571 = vrot.lane.b32.xlu0 %v15200_v3, %s16550_s21 }
 0xa72   : > { %8613 = vrot.lane.b32.xlu1 %v15179_v50, %s16560_s19 }
 0xa74   : > { %8621 = vrot.lane.b32.xlu0 %v15200_v3, %s16560_s19 }
 0xa76   : > { %8663 = vrot.lane.b32.xlu1 %v15179_v50, %s16571_s26 }
 0xa78   : > { %8721 = vrot.lane.b32.xlu0 %v15200_v3, %s16480_s22 }
 0xa7a   : > { %8713 = vrot.lane.b32.xlu1 %v15179_v50, %s16480_s22 }
 0xa7c   : > { %8673 = vrot.lane.b32.xlu0 %v15306_v63, %s16571_s26  ;;  %v15312_v62 = vpop.permute.xlu1 %8061 }
 0xa7e   : > { %8763 = vrot.lane.b32.xlu1 %v15179_v50, %s16606_s15 }
 0xa80   : > { %8065 = vrot.lane.b32.xlu0 %v15314_v38, %s16513_s29  ;;  %v15320_v37 = vpop.permute.xlu1 %8111 }
 0xa82   : > { %8669 = vrot.lane.b32.xlu1 %v15190_v6, %s16571_s26 }
 0xa84   : > { %8115 = vrot.lane.b32.xlu0 %v15314_v38, %s16509_s23  ;;  %v15326_v52 = vpop.permute.xlu1 %8161 }
 0xa86   : > { %v15328_v19 = vpop.permute.xlu0 %8069  ;;  %8671 = vrot.lane.b32.xlu1 %v15200_v3, %s16571_s26 }
 0xa88   : > { %8165 = vrot.lane.b32.xlu0 %v15314_v38, %s16514_s20  ;;  %v15334_v61 = vpop.permute.xlu1 %8211 }
 0xa8a   : > { %v15336_v27 = vpop.permute.xlu0 %8119  ;;  %8073 = vrot.lane.b32.xlu1 %v15306_v63, %s16513_s29 }
 0xa8c   : > { %8215 = vrot.lane.b32.xlu0 %v15314_v38, %s16516_s14  ;;  %v15342_v35 = vpop.permute.xlu1 %8261 }
 0xa8e   : > { %v15344_v51 = vpop.permute.xlu0 %8169  ;;  %8123 = vrot.lane.b32.xlu1 %v15306_v63, %s16509_s23 }
 0xa90   : > { %8265 = vrot.lane.b32.xlu0 %v15314_v38, %s16448_s13  ;;  %v15350_v14 = vpop.permute.xlu1 %8311 }
 0xa92   : > { %v15352_v41 = vpop.permute.xlu0 %8219  ;;  %8173 = vrot.lane.b32.xlu1 %v15306_v63, %s16514_s20 }
 0xa94   : > { %8315 = vrot.lane.b32.xlu0 %v15314_v38, %s16620_s0  ;;  %v15358_v2 = vpop.permute.xlu1 %8361 }
 0xa96   : > { %v15360_v42 = vpop.permute.xlu0 %8269  ;;  %8223 = vrot.lane.b32.xlu1 %v15306_v63, %s16516_s14 }
 0xa98   : > { %8365 = vrot.lane.b32.xlu0 %v15314_v38, %s16532_s8  ;;  %v15366_v36 = vpop.permute.xlu1 %8411 }
 0xa9a   : > { %v15368_v31 = vpop.permute.xlu0 %8319  ;;  %8273 = vrot.lane.b32.xlu1 %v15306_v63, %s16448_s13 }
 0xa9c   : > { %8415 = vrot.lane.b32.xlu0 %v15314_v38, %s16535_s25  ;;  %v15374_v46 = vpop.permute.xlu1 %8461 }
 0xa9e   : > { %v15376_v12 = vpop.permute.xlu0 %8369  ;;  %8323 = vrot.lane.b32.xlu1 %v15306_v63, %s16620_s0 }
 0xaa0   : > { %8465 = vrot.lane.b32.xlu0 %v15314_v38, %s16458_s16  ;;  %v15382_v34 = vpop.permute.xlu1 %8511 }
 0xaa2   : > { %v15384_v22 = vpop.permute.xlu0 %8419  ;;  %8373 = vrot.lane.b32.xlu1 %v15306_v63, %s16532_s8 }
 0xaa4   : > { %8515 = vrot.lane.b32.xlu0 %v15314_v38, %s16537_s12  ;;  %v15390_v57 = vpop.permute.xlu1 %8561 }
 0xaa5   : > { %16744 = vst [vmem:[#allocation15_spill] sm:$0xff] %v15390_v57 }
 0xaa6   : > { %v15392_v43 = vpop.permute.xlu0 %8469  ;;  %8423 = vrot.lane.b32.xlu1 %v15306_v63, %s16535_s25 }
 0xaa8   : > { %8565 = vrot.lane.b32.xlu0 %v15314_v38, %s16550_s21  ;;  %v15398_v49 = vpop.permute.xlu1 %8611 }
 0xaa9   : > { %16745 = vst [vmem:[#allocation17_spill] sm:$0xff] %v15398_v49 }
 0xaaa   : > { %v15400_v5 = vpop.permute.xlu0 %8519  ;;  %8473 = vrot.lane.b32.xlu1 %v15306_v63, %s16458_s16 }
 0xaac   : > { %8615 = vrot.lane.b32.xlu0 %v15314_v38, %s16560_s19  ;;  %v15406_v60 = vpop.permute.xlu1 %8661 }
 0xaad   : > { %16746 = vst [vmem:[#allocation11_spill] sm:$0xff] %v15406_v60 }
 0xaae   : > { %v15408_v23 = vpop.permute.xlu0 %8569  ;;  %8523 = vrot.lane.b32.xlu1 %v15306_v63, %s16537_s12 }
 0xaaf   : > { %16747 = vst [vmem:[#allocation8_spill] sm:$0xff] %v15408_v23 }
 0xab0   : > { %8665 = vrot.lane.b32.xlu0 %v15314_v38, %s16571_s26  ;;  %v15414_v53 = vpop.permute.xlu1 %8711 }
 0xab1   : > { %16748 = vst [vmem:[#allocation14_spill] sm:$0xff] %v15414_v53 }
 0xab2   : > { %v15416_v30 = vpop.permute.xlu0 %8619  ;;  %8573 = vrot.lane.b32.xlu1 %v15306_v63, %s16550_s21 }
 0xab3   : > { %16749 = vst [vmem:[#allocation10_spill] sm:$0xff] %v15416_v30 }
 0xab4   : > { %8715 = vrot.lane.b32.xlu0 %v15314_v38, %s16480_s22  ;;  %v15429_v32 = vpop.permute.xlu1 %8761 }
 0xab5   : > { %16750 = vst [vmem:[#allocation12_spill] sm:$0xff] %v15429_v32 }
 0xab6   : > { %v15431_v28 = vpop.permute.xlu0 %8719  ;;  %8623 = vrot.lane.b32.xlu1 %v15306_v63, %s16560_s19 }
 0xab7   : > { %16751 = vst [vmem:[#allocation9_spill] sm:$0xff] %v15431_v28 }
 0xab8   : > { %8765 = vrot.lane.b32.xlu0 %v15314_v38, %s16606_s15  ;;  %v15437_v8 = vpop.permute.xlu1 %8063 }
 0xaba   : > { %v15439_v4 = vpop.permute.xlu0 %8071  ;;  %8723 = vrot.lane.b32.xlu1 %v15306_v63, %s16480_s22 }
 0xabc   : > { %8317 = vrot.lane.b32.xlu0 %v15106_v58, %s16620_s0  ;;  %v15445_v17 = vpop.permute.xlu1 %8113 }
 0xabe   : > { %v15447_v25 = vpop.permute.xlu0 %8121  ;;  %8117 = vrot.lane.b32.xlu1 %v15106_v58, %s16509_s23 }
 0xac0   : > { %8771 = vrot.lane.b32.xlu0 %v15200_v3, %s16606_s15  ;;  %v15453_v45 = vpop.permute.xlu1 %8163 }
 0xac2   : > { %v15455_v44 = vpop.permute.xlu0 %8171  ;;  %8773 = vrot.lane.b32.xlu1 %v15306_v63, %s16606_s15 }
 0xac4   : > { %8769 = vrot.lane.b32.xlu0 %v15190_v6, %s16606_s15  ;;  %v15461_v48 = vpop.permute.xlu1 %8213 }
 0xac6   : > { %v15463_v10 = vpop.permute.xlu0 %8221  ;;  %8325 = vrot.lane.b32.xlu1 %v15115_v54, %s16620_s0 }
 0xac8   : > { %8125 = vrot.lane.b32.xlu0 %v15115_v54, %s16509_s23  ;;  %v15469_v59 = vpop.permute.xlu1 %8263 }
 0xaca   : > { %v15471_v33 = vpop.permute.xlu0 %8271  ;;  %8813 = vrot.lane.b32.xlu1 %v15179_v50, %s16678_s11 }
 0xacc   : > { %8815 = vrot.lane.b32.xlu0 %v15314_v38, %s16678_s11  ;;  %v15477_v39 = vpop.permute.xlu1 %8313 }
 0xace   : > { %v15479_v26 = vpop.permute.xlu0 %8321  ;;  %8811 = vrot.lane.b32.xlu1 %v15170_v1, %s16678_s11 }
 0xad0   : > { %8367 = vrot.lane.b32.xlu0 %v15106_v58, %s16532_s8  ;;  %v15485_v9 = vpop.permute.xlu1 %8363 }
 0xad2   : > { %v15487_v29 = vpop.permute.xlu0 %8371  ;;  %8167 = vrot.lane.b32.xlu1 %v15106_v58, %s16514_s20 }
 0xad4   : > { %8821 = vrot.lane.b32.xlu0 %v15200_v3, %s16678_s11  ;;  %v15493_v15 = vpop.permute.xlu1 %8413 }
 0xad6   : > { %v15495_v40 = vpop.permute.xlu0 %8421  ;;  %8823 = vrot.lane.b32.xlu1 %v15306_v63, %s16678_s11 }
 0xad8   : > { %8819 = vrot.lane.b32.xlu0 %v15190_v6, %s16678_s11  ;;  %v15501_v20 = vpop.permute.xlu1 %8463 }
 0xada   : > { %v15503_v7 = vpop.permute.xlu0 %8471  ;;  %8375 = vrot.lane.b32.xlu1 %v15115_v54, %s16532_s8 }
 0xadc   : > { %8175 = vrot.lane.b32.xlu0 %v15115_v54, %s16514_s20  ;;  %v15509_v21 = vpop.permute.xlu1 %8513 }
 0xade   : > { %v15511_v56 = vpop.permute.xlu0 %8521  ;;  %8863 = vrot.lane.b32.xlu1 %v15179_v50, %s16693_s2 }
 0xae0   : > { %8865 = vrot.lane.b32.xlu0 %v15314_v38, %s16693_s2  ;;  %v15517_v13 = vpop.permute.xlu1 %8563 }
 0xae2   : > { %v15519_v32 = vpop.permute.xlu0 %8571  ;;  %8861 = vrot.lane.b32.xlu1 %v15170_v1, %s16693_s2 }
 0xae3   : > { %16752 = vst [vmem:[#allocation16_spill] sm:$0xff] %v15519_v32 }
 0xae4   : > { %8617 = vrot.lane.b32.xlu0 %v15106_v58, %s16560_s19  ;;  %v15525_v28 = vpop.permute.xlu1 %8613 }
 0xae5   : > { %16753 = vst [vmem:[#allocation19_spill] sm:$0xff] %v15525_v28 }
 0xae6   : > { %v15527_v53 = vpop.permute.xlu0 %8621  ;;  %8417 = vrot.lane.b32.xlu1 %v15106_v58, %s16535_s25 }
 0xae7   : > { %16754 = vst [vmem:[#allocation18_spill] sm:$0xff] %v15527_v53 }
 0xae8   : > { %8871 = vrot.lane.b32.xlu0 %v15200_v3, %s16693_s2  ;;  %v15533_v60 = vpop.permute.xlu1 %8663 }
 0xae9   : > { %16755 = vst [vmem:[#allocation21_spill] sm:$0xff] %v15533_v60 }
 0xaea   : > { %v15535_v30 = vpop.permute.xlu0 %8721  ;;  %8873 = vrot.lane.b32.xlu1 %v15306_v63, %s16693_s2 }
 0xaeb   : > { %16756 = vst [vmem:[#allocation20_spill] sm:$0xff] %v15535_v30 }
 0xaec   : > { %8869 = vrot.lane.b32.xlu0 %v15190_v6, %s16693_s2  ;;  %v15541_v49 = vpop.permute.xlu1 %8713 }
 0xaed   : > { %16757 = vst [vmem:[#allocation13_spill] sm:$0xff] %v15541_v49  ;;  %v8077_v49 = vsel %vm16761_vm1, %v15312_v62, %v15437_v8 }
 0xaee   : > { %v15543_v28 = vpop.permute.xlu0 %8673  ;;  %8625 = vrot.lane.b32.xlu1 %v15115_v54, %s16560_s19 }
 0xaef   : > { %16758 = vst [vmem:[#allocation23_spill] sm:$0xff] %v15543_v28 }
 0xaf0   : > { %8425 = vrot.lane.b32.xlu0 %v15115_v54, %s16535_s25  ;;  %v15549_v53 = vpop.permute.xlu1 %8763  ;;  %s16856_s25 = smov 44  }
 0xaf1   : > { %16759 = vst [vmem:[#allocation22_spill] sm:$0xff] %v15549_v53 }
 0xaf2   : > { %v15551_v60 = vpop.permute.xlu0 %8065  ;;  %8913 = vrot.lane.b32.xlu1 %v15179_v50, %s16675_s28 }
 0xaf3   : > { %v8078_v30 = vsel %vm16760_vm3, %v15437_v8, %v15551_v60  ;;  %vm16777_vm3 = vmmov %vm16761_vm1 }
 0xaf4   : > { %8915 = vrot.lane.b32.xlu0 %v15314_v38, %s16675_s28  ;;  %9437 = vmatprep.subr.bf16.mxu0 %v8078_v30  ;;  %v15563_v28 = vpop.permute.xlu1 %8669  ;;  %vm16778_vm1 = vmmov %vm16765_vm11 }
 0xaf5   : > { %9438 = vmatpush1.bf16.msra.mxu0 %v8077_v49  ;;  %16762 = vst [vmem:[#allocation24_spill] sm:$0xff] %v15563_v28  ;;  %v8080_v28 = vsel %vm16766_vm8, %v15328_v19, %v15439_v4  ;;  %v8127_v19 = vsel %vm16768_vm15, %v15320_v37, %v15445_v17  ;;  %vm16781_vm8 = vmmov %vm16777_vm3 }
 0xaf6   : > { %v15565_v53 = vpop.permute.xlu0 %8115  ;;  %8911 = vrot.lane.b32.xlu1 %v15170_v1, %s16675_s28 }
 0xaf8   : > { %8667 = vrot.lane.b32.xlu0 %v15106_v58, %s16571_s26  ;;  %v15571_v23 = vpop.permute.xlu1 %8671 }
 0xaf9   : > { %16763 = vst [vmem:[#allocation25_spill] sm:$0xff] %v15571_v23 }
 0xafa   : > { %v15573_v32 = vpop.permute.xlu0 %8165  ;;  %8467 = vrot.lane.b32.xlu1 %v15106_v58, %s16458_s16 }
 0xafc   : > { %8921 = vrot.lane.b32.xlu0 %v15200_v3, %s16675_s28  ;;  %v8074_v62 = vpop.permute.xlu1 %8073 }
 0xafd   : > { %v8081_v30 = vsel %vm16764_vm13, %v15439_v4, %v8074_v62  ;;  %vm16779_vm13 = vmmov %vm16775_vm9 }
 0xafe   : > { %v8216_v49 = vpop.permute.xlu0 %8215  ;;  %8923 = vrot.lane.b32.xlu1 %v15306_v63, %s16675_s28  ;;  %9439 = vmatprep.subr.bf16.mxu0 %v8081_v30 }
 0xaff   : > { %v8229_v8 = vsel %vm16765_vm11, %v8216_v49, %v15136_v11  ;;  %9440 = vmatpush1.bf16.msra.mxu0 %v8080_v28  ;;  %v8128_v11 = vsel %vm16767_vm0, %v15445_v17, %v15565_v53  ;;  %v8178_v17 = vsel %vm16771_vm2, %v15453_v45, %v15573_v32  ;;  %vm16780_vm11 = vmmov %vm16778_vm1 }
 0xb00   : > { %8919 = vrot.lane.b32.xlu0 %v15190_v6, %s16675_s28  ;;  %10387 = vmatprep.subr.bf16.mxu1 %v8229_v8  ;;  %v15591_v23 = vpop.permute.xlu1 %8123  ;;  %vm16782_vm0 = vmmov %vm16778_vm1 }
 0xb01   : > { %10388 = vmatpush3.bf16.msra.mxu1 %v15314_v38  ;;  %9441 = vmatprep.subr.bf16.mxu0 %v8128_v11  ;;  %v8131_v4 = vsel %vm16769_vm10, %v15447_v25, %v15591_v23  ;;  %vm16783_vm15 = vmmov %vm16782_vm0 }
 0xb02   : > { %v8266_v57 = vpop.permute.xlu0 %8265  ;;  %8675 = vrot.lane.b32.xlu1 %v15115_v54, %s16571_s26  ;;  %vm16784_vm10 = vmmov %vm16775_vm9  ;;  %s16867_s26 = sld [smem:[#allocation29_spill]] }
 0xb03   : > { %9442 = vmatpush1.bf16.msra.mxu0 %v8127_v19 }
 0xb04   : > { %8475 = vrot.lane.b32.xlu0 %v15115_v54, %s16458_s16  ;;  %v15603_v28 = vpop.permute.xlu1 %8173  ;;  %9443 = vmatprep.subr.bf16.mxu0 %v8131_v4  ;;  %v8130_v54 = vsel %vm16770_vm7, %v15336_v27, %v15447_v25  ;;  %v8177_v27 = vsel %vm16773_vm5, %v15326_v52, %v15453_v45  ;;  %v8180_v52 = vsel %vm16776_vm12, %v15344_v51, %v15455_v44  ;;  %vm16785_vm7 = vmmov %vm16775_vm9  ;;  %vm16788_vm5 = vcmask 875520  }
 0xb05   : > { %v8181_v19 = vsel %vm16774_vm4, %v15455_v44, %v15603_v28  ;;  %v8079_v45 = vsel %vm16777_vm3, %v15551_v60, %v15140_v47  ;;  %v8227_v47 = vsel %vm16780_vm11, %v15334_v61, %v15461_v48  ;;  %v8082_v51 = vsel %vm16781_vm8, %v8074_v62, %v15146_v55  ;;  %v15666_v60 = vld [vmem:[#allocation4 + $0x38] sm:$0xff]  ;;  %vm16786_vm2 = vmmov %vm16785_vm7 }
 0xb06   : > { %v15608_v30 = vpop.permute.xlu0 %8315  ;;  %8963 = vrot.lane.b32.xlu1 %v15179_v50, %s16660_s30  ;;  %v8230_v55 = vsel %vm16783_vm15, %v15352_v41, %v15463_v10  ;;  %v15694_v41 = vld [vmem:[#allocation4 + $0x18] sm:$0xff]  ;;  %vm16789_vm4 = vmmov %vm16788_vm5  ;;  %vm16792_vm3 = vcmask 867328   ;;  %vm16798_vm15 = vcmask 1031168  }
 0xb07   : > { %9444 = vmatpush1.bf16.msra.mxu0 %v8130_v54  ;;  %v8228_v54 = vsel %vm16778_vm1, %v15461_v48, %v8216_v49  ;;  %v8278_v48 = vsel %vm16784_vm10, %v15469_v59, %v8266_v57  ;;  %vm16791_vm12 = vmmov %vm16789_vm4 }
 0xb08   : > { %8965 = vrot.lane.b32.xlu0 %v15314_v38, %s16660_s30  ;;  %v8224_v37 = vpop.permute.xlu1 %8223  ;;  %9445 = vmatprep.subr.bf16.mxu0 %v8178_v17  ;;  %vm16793_vm1 = vmmov %vm16792_vm3 }
 0xb09   : > { %v8232_v11 = vsel %vm16772_vm14, %v8224_v37, %v15138_v0  ;;  %v8279_v0 = vsel %vm16775_vm9, %v8266_v57, %v15142_v18  ;;  %v8231_v44 = vsel %vm16782_vm0, %v15463_v10, %v8224_v37  ;;  %v8277_v37 = vsel %vm16785_vm7, %v15342_v35, %v15469_v59  ;;  %vm16787_vm14 = vmmov %vm16786_vm2 }
 0xb0a   : > { %v15620_v8 = vpop.permute.xlu0 %8365  ;;  %8961 = vrot.lane.b32.xlu1 %v15170_v1, %s16660_s30  ;;  %10389 = vmatprep.subr.bf16.mxu1 %v8232_v11  ;;  %v8280_v35 = vsel %vm16787_vm14, %v15360_v42, %v15471_v33  ;;  %v8327_v42 = vsel %vm16789_vm4, %v15350_v14, %v15477_v39  ;;  %vm16790_vm9 = vmmov %vm16789_vm4  ;;  %v8330_v14 = vsel %vm16791_vm12, %v15368_v31, %v15479_v26  ;;  %vm16797_vm0 = vcmask 859136  }
 0xb0b   : > { %9446 = vmatpush1.bf16.msra.mxu0 %v8177_v27  ;;  %10390 = vmatpush3.bf16.msra.mxu1 %v15306_v63  ;;  %v8328_v27 = vsel %vm16788_vm5, %v15477_v39, %v15608_v30  ;;  %v8377_v31 = vsel %vm16793_vm1, %v15358_v2, %v15485_v9  ;;  %vm16795_vm11 = vmmov %vm16789_vm4  ;;  %vm16802_vm14 = vcmask 850944  }
 0xb0c   : > { %8717 = vrot.lane.b32.xlu0 %v15106_v58, %s16480_s22  ;;  %v8274_v25 = vpop.permute.xlu1 %8273  ;;  %9447 = vmatprep.subr.bf16.mxu0 %v8181_v19  ;;  %vm16796_vm8 = vmmov %vm16793_vm1 }
 0xb0d   : > { %10391 = vmatprep.subr.bf16.mxu1 %v8279_v0  ;;  %v8281_v57 = vsel %vm16786_vm2, %v15471_v33, %v8274_v25  ;;  %v8380_v2 = vsel %vm16796_vm8, %v15376_v12, %v15487_v29  ;;  %vm16799_vm10 = vmmov %vm16797_vm0 }
 0xb0e   : > { %v15637_v4 = vpop.permute.xlu0 %8415  ;;  %8517 = vrot.lane.b32.xlu1 %v15106_v58, %s16537_s12  ;;  %v8282_v58 = vsel %vm16779_vm13, %v8274_v25, %v15144_v24  ;;  %vm16794_vm13 = vmmov %vm16793_vm1  ;;  %v8427_v12 = vsel %vm16799_vm10, %v15366_v36, %v15493_v15  ;;  %vm16807_vm1 = vcmask 719872   ;;  %vm16813_vm10 = vcmask 711680  }
 0xb0f   : > { %9448 = vmatpush1.bf16.msra.mxu0 %v8180_v52  ;;  %10392 = vmatpush3.bf16.msra.mxu1 %v8079_v45  ;;  %v8378_v52 = vsel %vm16792_vm3, %v15485_v9, %v15620_v8  ;;  %v15772_v9 = vcombine.low %v15421_v16, %v15421_v16  ;;  %vm16800_vm7 = vmmov %vm16797_vm0 }
 0xb10   : > { %8971 = vrot.lane.b32.xlu0 %v15200_v3, %s16660_s30  ;;  %v15649_v18 = vpop.permute.xlu1 %8323  ;;  %9449 = vmatprep.subr.bf16.mxu0 %v8228_v54  ;;  %vm16801_vm2 = vmmov %vm16797_vm0 }
 0xb11   : > { %10393 = vmatprep.subr.bf16.mxu1 %v8282_v58  ;;  %v8331_v19 = vsel %vm16790_vm9, %v15479_v26, %v15649_v18  ;;  %vm16803_vm5 = vmmov %vm16798_vm15 }
 0xb12   : > { %v15655_v17 = vpop.permute.xlu0 %8465  ;;  %8973 = vrot.lane.b32.xlu1 %v15306_v63, %s16660_s30  ;;  %vm16804_vm9 = vmmov %vm16802_vm14 }
 0xb13   : > { %9450 = vmatpush1.bf16.msra.mxu0 %v8227_v47  ;;  %10394 = vmatpush3.bf16.msra.mxu1 %v8082_v51  ;;  %v15761_v51 = vld [vmem:[%s16212_s5 + $0x8] sm:$0xff]  ;;  %vm16805_vm12 = vmmov %vm16804_vm9 }
 0xb14   : > { %8969 = vrot.lane.b32.xlu0 %v15190_v6, %s16660_s30  ;;  %v15668_v24 = vpop.permute.xlu1 %8373  ;;  %9451 = vmatprep.subr.bf16.mxu0 %v8231_v44  ;;  %v8428_v44 = vsel %vm16797_vm0, %v15493_v15, %v15637_v4  ;;  %v8478_v15 = vsel %vm16802_vm14, %v15501_v20, %v15655_v17  ;;  %vm16806_vm3 = vmmov %vm16804_vm9  ;;  %vm16811_vm0 = vcmask 1022976  }
 0xb15   : > { %v8381_v54 = vsel %vm16794_vm13, %v15487_v29, %v15668_v24  ;;  %vm16808_vm13 = vmmov %vm16796_vm8 }
 0xb16   : > { %v15672_v49 = vpop.permute.xlu0 %8515  ;;  %8725 = vrot.lane.b32.xlu1 %v15666_v60, %s16480_s22  ;;  %vm16810_vm8 = vmmov %vm16807_vm1 }
 0xb17   : > { %9452 = vmatpush1.bf16.msra.mxu0 %v8230_v55  ;;  %vm16818_vm14 = vmmov %vm16811_vm0 }
 0xb18   : > { %8525 = vrot.lane.b32.xlu0 %v15666_v60, %s16537_s12  ;;  %v15681_v61 = vpop.permute.xlu1 %8423  ;;  %9453 = vmatprep.subr.bf16.mxu0 %v8278_v48 }
 0xb1a   : > { %v15685_v62 = vpop.permute.xlu0 %8565  ;;  %9013 = vrot.lane.b32.xlu1 %v15179_v50, %s16443_s18 }
 0xb1b   : > { %9454 = vmatpush1.bf16.msra.mxu0 %v8277_v37 }
 0xb1c   : > { %9015 = vrot.lane.b32.xlu0 %v15314_v38, %s16443_s18  ;;  %v15696_v10 = vpop.permute.xlu1 %8473  ;;  %9455 = vmatprep.subr.bf16.mxu0 %v8281_v57 }
 0xb1e   : > { %v15700_v11 = vpop.permute.xlu0 %8615  ;;  %9011 = vrot.lane.b32.xlu1 %v15170_v1, %s16443_s18 }
 0xb1f   : > { %9456 = vmatpush1.bf16.msra.mxu0 %v8280_v35 }
 0xb20   : > { %8767 = vrot.lane.b32.xlu0 %v15694_v41, %s16606_s15  ;;  %v15709_v59 = vpop.permute.xlu1 %8523  ;;  %9457 = vmatprep.subr.bf16.mxu0 %v8328_v27  ;;  %v15841_v27 = vld [vmem:[#allocation4 + $0x8] sm:$0xff] }
 0xb22   : > { %v15714_v25 = vpop.permute.xlu0 %8665  ;;  %8567 = vrot.lane.b32.xlu1 %v15694_v41, %s16550_s21 }
 0xb23   : > { %9458 = vmatpush1.bf16.msra.mxu0 %v8327_v42 }
 0xb24   : > { %9021 = vrot.lane.b32.xlu0 %v15200_v3, %s16443_s18  ;;  %v15723_v33 = vpop.permute.xlu1 %8573  ;;  %9459 = vmatprep.subr.bf16.mxu0 %v8331_v19  ;;  %v8531_v19 = vsel %vm16810_vm8, %v15511_v56, %v15709_v59  ;;  %vm16834_vm8 = vcmask 859136  }
 0xb26   : > { %v15728_v0 = vpop.permute.xlu0 %8715  ;;  %9023 = vrot.lane.b32.xlu1 %v15306_v63, %s16443_s18 }
 0xb27   : > { %9460 = vmatpush1.bf16.msra.mxu0 %v8330_v14 }
 0xb28   : > { %9019 = vrot.lane.b32.xlu0 %v15190_v6, %s16443_s18  ;;  %v15737_v39 = vpop.permute.xlu1 %8623  ;;  %9461 = vmatprep.subr.bf16.mxu0 %v8378_v52  ;;  %v15859_v52 = vld [vmem:[#allocation4] sm:$0xff] }
 0xb2a   : > { %v15742_v45 = vpop.permute.xlu0 %8765  ;;  %8775 = vrot.lane.b32.xlu1 %v15666_v60, %s16606_s15 }
 0xb2b   : > { %9462 = vmatpush1.bf16.msra.mxu0 %v8377_v31 }
 0xb2c   : > { %8575 = vrot.lane.b32.xlu0 %v15666_v60, %s16550_s21  ;;  %v15751_v26 = vpop.permute.xlu1 %8723  ;;  %9463 = vmatprep.subr.bf16.mxu0 %v8381_v54  ;;  %v15875_v54 = vld [vmem:[#allocation4 + $0x28] sm:$0xff] }
 0xb2e   : > { %v8318_v58 = vpop.permute.xlu0 %8317  ;;  %9063 = vrot.lane.b32.xlu1 %v15179_v50, %s16713_s24  ;;  %v15781_v50 = vcombine.high %v15761_v51, %v15761_v51 }
 0xb2f   : > { %v8329_v47 = vsel %vm16795_vm11, %v15608_v30, %v8318_v58  ;;  %9464 = vmatpush1.bf16.msra.mxu0 %v8380_v2  ;;  %vm16809_vm11 = vmmov %vm16807_vm1 }
 0xb30   : > { %9065 = vrot.lane.b32.xlu0 %v15314_v38, %s16713_s24  ;;  %10395 = vmatprep.subr.bf16.mxu1 %v8329_v47  ;;  %v8118_v30 = vpop.permute.xlu1 %8117  ;;  %v16816_v47 = vld [vmem:[#allocation16_spill] sm:$0xff] }
 0xb31   : > { %v8129_v48 = vsel %vm16798_vm15, %v15565_v53, %v8118_v30  ;;  %9474 = vmatprep.subr.bf16.mxu0 %v8428_v44  ;;  %v8431_v53 = vsel %vm16800_vm7, %v15495_v40, %v15681_v61  ;;  %vm16812_vm15 = vmmov %vm16807_vm1 }
 0xb32   : > { %v15777_v55 = vpop.permute.xlu0 %8771  ;;  %9061 = vrot.lane.b32.xlu1 %v15170_v1, %s16713_s24  ;;  %10396 = vmatpush3.bf16.msra.mxu1 %v8129_v48  ;;  %v8430_v1 = vsel %vm16801_vm2, %v15384_v22, %v15495_v40  ;;  %vm16815_vm7 = vmmov %vm16813_vm10  ;;  %v15889_v48 = vld [vmem:[#allocation4 + $0x20] sm:$0xff] }
 0xb33   : > { %9466 = vmatmul.mubr.bf16.vlgmr.msra.gmra.mrb[64].mxu0 %v15772_v9  ;;  %vm16817_vm2 = vmmov %vm16815_vm7 }
 0xb34   : > { %9017 = vrot.lane.b32.xlu0 %v15694_v41, %s16443_s18  ;;  %9475 = vmatpush1.bf16.msra.mxu0 %v8427_v12  ;;  %v15793_v16 = vpop.permute.xlu1 %8773  ;;  %v8581_v2 = vsel %vm16817_vm2, %v16816_v47, %v15723_v33 }
 0xb35   : > { %9506 = vmatprep.mubr.bf16.mxu0 %v15781_v50  ;;  %9476 = vmatprep.subr.bf16.mxu0 %v8431_v53 }
 0xb36   : > { %v15798_v29 = vpop.permute.xlu0 %8769  ;;  %8817 = vrot.lane.b32.xlu1 %v15694_v41, %s16678_s11 }
 0xb38   : > { %9071 = vrot.lane.b32.xlu0 %v15200_v3, %s16713_s24  ;;  %9477 = vmatpush1.bf16.msra.mxu0 %v8430_v1  ;;  %v8326_v36 = vpop.permute.xlu1 %8325  ;;  %v8477_v3 = vsel %vm16804_vm9, %v15374_v46, %v15501_v20  ;;  %v8528_v20 = vsel %vm16807_vm1, %v15509_v21, %v15672_v49  ;;  %vm16823_vm9 = vcmask 703488  }
 0xb39   : > { %9478 = vmatprep.subr.bf16.mxu0 %v8478_v15  ;;  %v8332_v35 = vsel %vm16789_vm4, %v15649_v18, %v8326_v36  ;;  %vm16821_vm4 = vmmov %vm16817_vm2  ;;  %v16824_v15 = vld [vmem:[#allocation17_spill] sm:$0xff] }
 0xb3a   : > { %v8126_v37 = vpop.permute.xlu0 %8125  ;;  %9073 = vrot.lane.b32.xlu1 %v15306_v63, %s16713_s24  ;;  %10397 = vmatprep.subr.bf16.mxu1 %v8332_v35  ;;  %v16826_v35 = vld [vmem:[#allocation18_spill] sm:$0xff]  ;;  %vm16844_vm2 = vmmov %vm16834_vm8 }
 0xb3b   : > { %v8132_v57 = vsel %vm16803_vm5, %v15591_v23, %v8126_v37  ;;  %v8481_v23 = vsel %vm16805_vm12, %v15503_v7, %v15696_v10  ;;  %vm16819_vm5 = vmmov %vm16808_vm13 }
 0xb3c   : > { %9069 = vrot.lane.b32.xlu0 %v15190_v6, %s16713_s24  ;;  %9479 = vmatpush1.bf16.msra.mxu0 %v8477_v3  ;;  %v15822_v22 = vpop.permute.xlu1 %8813  ;;  %v8480_v6 = vsel %vm16806_vm3, %v15392_v43, %v15503_v7  ;;  %v8527_v43 = vsel %vm16809_vm11, %v15382_v34, %v15509_v21  ;;  %v8530_v34 = vsel %vm16812_vm15, %v15400_v5, %v15511_v56  ;;  %v16814_v5 = vld [vmem:[#allocation15_spill] sm:$0xff]  ;;  %vm16825_vm12 = vmmov %vm16823_vm9  ;;  %vm16833_vm11 = vcmask 695296  }
 0xb3d   : > { %10398 = vmatpush3.bf16.msra.mxu1 %v8132_v57  ;;  %9480 = vmatprep.subr.bf16.mxu0 %v8481_v23  ;;  %v8577_v56 = vsel %vm16815_vm7, %v16814_v5, %v15517_v13  ;;  %vm16827_vm3 = vmmov %vm16823_vm9  ;;  %v16840_v5 = vld [vmem:[#allocation24_spill] sm:$0xff]  ;;  %vm16843_vm7 = vcmask 687104  }
 0xb3e   : > { %v15827_v40 = vpop.permute.xlu0 %8815  ;;  %9025 = vrot.lane.b32.xlu1 %v15666_v60, %s16443_s18  ;;  %v8631_v3 = vsel %vm16827_vm3, %v16826_v35, %v15737_v39  ;;  %vm16828_vm1 = vmmov %vm16827_vm3  ;;  %s16829_s18 = smov 45   ;;  %vm16855_vm3 = vcmask 850944  }
 0xb40   : > { %8825 = vrot.lane.b32.xlu0 %v15666_v60, %s16678_s11  ;;  %9481 = vmatpush1.bf16.msra.mxu0 %v8480_v6  ;;  %v15836_v46 = vpop.permute.xlu1 %8811  ;;  %s16922_s11 = sld [smem:[#allocation7_spill]] }
 0xb41   : > { %9482 = vmatprep.subr.bf16.mxu0 %v8528_v20 }
 0xb42   : > { %v8368_v18 = vpop.permute.xlu0 %8367  ;;  %9113 = vrot.lane.b32.xlu1 %v15841_v27, %s16704_s7 }
 0xb43   : > { %v8379_v42 = vsel %vm16808_vm13, %v15620_v8, %v8368_v18  ;;  %vm16831_vm13 = vmmov %vm16828_vm1 }
 0xb44   : > { %9115 = vrot.lane.b32.xlu0 %v15314_v38, %s16704_s7  ;;  %10399 = vmatprep.subr.bf16.mxu1 %v8379_v42  ;;  %v8168_v7 = vpop.permute.xlu1 %8167  ;;  %v16832_v42 = vld [vmem:[#allocation21_spill] sm:$0xff] }
 0xb45   : > { %9483 = vmatpush1.bf16.msra.mxu0 %v8527_v43  ;;  %v8179_v8 = vsel %vm16811_vm0, %v15573_v32, %v8168_v7  ;;  %v8578_v32 = vsel %vm16813_vm10, %v15517_v13, %v15685_v62  ;;  %v16820_v13 = vld [vmem:[#allocation8_spill] sm:$0xff]  ;;  %vm16836_vm0 = vmmov %vm16833_vm11 }
 0xb46   : > { %v15855_v14 = vpop.permute.xlu0 %8821  ;;  %9484 = vmatprep.subr.bf16.mxu0 %v8531_v19  ;;  %9111 = vrot.lane.b32.xlu1 %v15859_v52, %s16704_s7  ;;  %v8580_v53 = vsel %vm16821_vm4, %v16820_v13, %v16816_v47  ;;  %vm16839_vm15 = vmmov %vm16836_vm0  ;;  %v16842_v47 = vld [vmem:[#allocation13_spill] sm:$0xff]  ;;  %v16846_v13 = vld [vmem:[#allocation14_spill] sm:$0xff] }
 0xb47   : > { %10400 = vmatpush3.bf16.msra.mxu1 %v8179_v8  ;;  %v16837_v8 = vld [vmem:[#allocation23_spill] sm:$0xff]  ;;  %vm16841_vm10 = vmmov %vm16836_vm0 }
 0xb48   : > { %9067 = vrot.lane.b32.xlu0 %v15694_v41, %s16713_s24  ;;  %v15868_v21 = vpop.permute.xlu1 %8823 }
 0xb49   : > { %9485 = vmatpush1.bf16.msra.mxu0 %v8530_v34  ;;  %v16838_v34 = vld [vmem:[#allocation25_spill] sm:$0xff] }
 0xb4a   : > { %v15873_v31 = vpop.permute.xlu0 %8819  ;;  %9486 = vmatprep.subr.bf16.mxu0 %v8578_v32  ;;  %8867 = vrot.lane.b32.xlu1 %v15694_v41, %s16693_s2  ;;  %v8681_v32 = vsel %vm16839_vm15, %v16838_v34, %v16837_v8 }
 0xb4c   : > { %9121 = vrot.lane.b32.xlu0 %v15875_v54, %s16704_s7  ;;  %v8376_v58 = vpop.permute.xlu1 %8375 }
 0xb4d   : > { %9487 = vmatpush1.bf16.msra.mxu0 %v8577_v56  ;;  %v8382_v12 = vsel %vm16819_vm5, %v15668_v24, %v8376_v58  ;;  %v8680_v56 = vsel %vm16841_vm10, %v16840_v5, %v16838_v34  ;;  %vm16847_vm5 = vmmov %vm16843_vm7  ;;  %vm16862_vm10 = vcmask 539648  }
 0xb4e   : > { %v8176_v30 = vpop.permute.xlu0 %8175  ;;  %9488 = vmatprep.subr.bf16.mxu0 %v8581_v2  ;;  %9123 = vrot.lane.b32.xlu1 %v15306_v63, %s16704_s7  ;;  %v8728_v2 = vsel %vm16843_vm7, %v16842_v47, %v15728_v0  ;;  %vm16849_vm4 = vmmov %vm16847_vm5 }
 0xb4f   : > { %v8182_v44 = vsel %vm16818_vm14, %v15603_v28, %v8176_v30  ;;  %10401 = vmatprep.subr.bf16.mxu1 %v8382_v12  ;;  %v16822_v28 = vld [vmem:[#allocation19_spill] sm:$0xff]  ;;  %vm16845_vm14 = vmmov %vm16828_vm1 }
 0xb50   : > { %9119 = vrot.lane.b32.xlu0 %v15889_v48, %s16704_s7  ;;  %10402 = vmatpush3.bf16.msra.mxu1 %v8182_v44  ;;  %v15900_v1 = vpop.permute.xlu1 %8863  ;;  %v8628_v36 = vsel %vm16823_vm9, %v16822_v28, %v15700_v11  ;;  %v8627_v37 = vsel %vm16825_vm12, %v16824_v15, %v16822_v28  ;;  %vm16851_vm9 = vmmov %vm16849_vm4 }
 0xb51   : > { %9489 = vmatpush1.bf16.msra.mxu0 %v8580_v53  ;;  %v8727_v53 = vsel %vm16847_vm5, %v16846_v13, %v16842_v47  ;;  %vm16853_vm12 = vmmov %vm16836_vm0 }
 0xb52   : > { %v15905_v24 = vpop.permute.xlu0 %8865  ;;  %9490 = vmatprep.subr.bf16.mxu0 %v8628_v36  ;;  %9075 = vrot.lane.b32.xlu1 %v15666_v60, %s16713_s24  ;;  %vm16863_vm7 = vmmov %vm16862_vm10  ;;  %s16926_s24 = smov 120  }
 0xb53   : > { %9630 = vmatmul.mubr.bf16.vlgmr.msra.gmra.mrb[116].mxu1 %v15772_v9  ;;  %v16830_v9 = vld [vmem:[#allocation10_spill] sm:$0xff] }
 0xb54   : > { %8875 = vrot.lane.b32.xlu0 %v15666_v60, %s16693_s2  ;;  %v15915_v57 = vpop.permute.xlu1 %8861  ;;  %9669 = vmatprep.mubr.bf16.mxu1 %v15781_v50  ;;  %v8630_v20 = vsel %vm16831_vm13, %v16830_v9, %v16826_v35  ;;  %v8678_v50 = vsel %vm16833_vm11, %v16832_v42, %v15714_v25  ;;  %v16852_v35 = vld [vmem:[#allocation22_spill] sm:$0xff]  ;;  %v16854_v9 = vld [vmem:[#allocation12_spill] sm:$0xff]  ;;  %s16924_s2 = smov 72  }
 0xb55   : > { %9491 = vmatpush1.bf16.msra.mxu0 %v8627_v37 }
 0xb56   : > { %v8618_v23 = vpop.permute.xlu0 %8617  ;;  %9492 = vmatprep.subr.bf16.mxu0 %v8631_v3  ;;  %9163 = vrot.lane.b32.xlu1 %v15841_v27, %s16829_s18  ;;  %v8778_v3 = vsel %vm5803_vm6, %v16852_v35, %v15742_v45 }
 0xb57   : > { %v8629_v6 = vsel %vm16828_vm1, %v15700_v11, %v8618_v23  ;;  %vm16857_vm1 = vcmask 547840  }
 0xb58   : > { %9165 = vrot.lane.b32.xlu0 %v15314_v38, %s16829_s18  ;;  %10409 = vmatprep.subr.bf16.mxu1 %v8629_v6  ;;  %v8418_v18 = vpop.permute.xlu1 %8417  ;;  %v16835_v38 = vld [vmem:[#allocation11_spill] sm:$0xff]  ;;  %vm16858_vm13 = vmmov %vm16857_vm1 }
 0xb59   : > { %9493 = vmatpush1.bf16.msra.mxu0 %v8630_v20  ;;  %v8429_v11 = vsel %vm16834_vm8, %v15637_v4, %v8418_v18  ;;  %v8677_v7 = vsel %vm16836_vm0, %v16835_v38, %v16832_v42  ;;  %v8777_v20 = vsel %vm5803_vm6, %v16854_v9, %v16852_v35  ;;  %v8781_v42 = vsel %vm5803_vm6, %v15777_v55, %v15793_v16  ;;  %v16010_v38 = vld [vmem:[%s16212_s5 + $0x10] sm:$0xff]  ;;  %vm16859_vm11 = vmmov %vm16857_vm1 }
 0xb5a   : > { %v15933_v43 = vpop.permute.xlu0 %8871  ;;  %9494 = vmatprep.subr.bf16.mxu0 %v8678_v50  ;;  %9161 = vrot.lane.b32.xlu1 %v15859_v52, %s16829_s18  ;;  %vm16860_vm8 = vmmov %vm16855_vm3 }
 0xb5b   : > { %10410 = vmatpush3.bf16.msra.mxu1 %v8429_v11  ;;  %v9197_v11 = vld [vmem:[#allocation4 + $0x10] sm:$0xff]  ;;  %vm16861_vm15 = vmmov %vm16857_vm1 }
 0xb5c   : > { %9117 = vrot.lane.b32.xlu0 %v15694_v41, %s16704_s7  ;;  %v15944_v19 = vpop.permute.xlu1 %8873 }
 0xb5d   : > { %9495 = vmatpush1.bf16.msra.mxu0 %v8677_v7  ;;  %v8780_v7 = vsel %vm5803_vm6, %v15798_v29, %v15777_v55  ;;  %v8831_v29 = vsel %vm16859_vm11, %v15855_v14, %v15868_v21 }
 0xb5e   : > { %v15949_v4 = vpop.permute.xlu0 %8869  ;;  %9496 = vmatprep.subr.bf16.mxu0 %v8681_v32  ;;  %8917 = vrot.lane.b32.xlu1 %v15694_v41, %s16675_s28  ;;  %v8828_v32 = vsel %vm16857_vm1, %v15822_v22, %v15827_v40 }
 0xb60   : > { %9171 = vrot.lane.b32.xlu0 %v15875_v54, %s16829_s18  ;;  %v8626_v58 = vpop.permute.xlu1 %8625 }
 0xb61   : > { %9497 = vmatpush1.bf16.msra.mxu0 %v8680_v56  ;;  %v8632_v12 = vsel %vm16845_vm14, %v15737_v39, %v8626_v58  ;;  %vm16865_vm14 = vmmov %vm16849_vm4 }
 0xb62   : > { %v8426_v30 = vpop.permute.xlu0 %8425  ;;  %9498 = vmatprep.subr.bf16.mxu0 %v8728_v2  ;;  %9173 = vrot.lane.b32.xlu1 %v15306_v63, %s16829_s18  ;;  %v16850_v63 = vld [vmem:[#allocation9_spill] sm:$0xff] }
 0xb63   : > { %v8432_v44 = vsel %vm16844_vm2, %v15681_v61, %v8426_v30  ;;  %10411 = vmatprep.subr.bf16.mxu1 %v8632_v12  ;;  %v16848_v61 = vld [vmem:[#allocation20_spill] sm:$0xff]  ;;  %vm16864_vm2 = vmmov %vm16863_vm7 }
 0xb64   : > { %9169 = vrot.lane.b32.xlu0 %v15889_v48, %s16829_s18  ;;  %10412 = vmatpush3.bf16.msra.mxu1 %v8432_v44  ;;  %v15972_v28 = vpop.permute.xlu1 %8913  ;;  %v8731_v36 = vsel %vm16849_vm4, %v16848_v61, %v15751_v26  ;;  %v8730_v15 = vsel %vm16851_vm9, %v16850_v63, %v16848_v61  ;;  %vm16866_vm5 = vmmov %vm16864_vm2  ;;  %vm16868_vm4 = vcmask 531456   ;;  %vm16869_vm9 = vcmask 719872  }
 0xb65   : > { %9499 = vmatpush1.bf16.msra.mxu0 %v8727_v53  ;;  %vm16874_vm11 = vmmov %vm16869_vm9 }
 0xb66   : > { %v15977_v39 = vpop.permute.xlu0 %8915  ;;  %9500 = vmatprep.subr.bf16.mxu0 %v8731_v36  ;;  %9125 = vrot.lane.b32.xlu1 %v15666_v60, %s16704_s7  ;;  %s16925_s7 = smov 76  }
 0xb68   : > { %8925 = vrot.lane.b32.xlu0 %v15666_v60, %s16675_s28  ;;  %v15986_v37 = vpop.permute.xlu1 %8911 }
 0xb69   : > { %9501 = vmatpush1.bf16.msra.mxu0 %v8730_v15 }
 0xb6a   : > { %v8668_v23 = vpop.permute.xlu0 %8667  ;;  %9502 = vmatprep.subr.bf16.mxu0 %v8778_v3  ;;  %9167 = vrot.lane.b32.xlu1 %v15694_v41, %s16829_s18 }
 0xb6b   : > { %v8679_v6 = vsel %vm16853_vm12, %v15714_v25, %v8668_v23  ;;  %vm16870_vm12 = vmmov %vm16868_vm4 }
 0xb6c   : > { %8967 = vrot.lane.b32.xlu0 %v15694_v41, %s16660_s30  ;;  %10413 = vmatprep.subr.bf16.mxu1 %v8679_v6  ;;  %v8468_v18 = vpop.permute.xlu1 %8467 }
 0xb6d   : > { %9503 = vmatpush1.bf16.msra.mxu0 %v8777_v20  ;;  %v8479_v25 = vsel %vm16855_vm3, %v15655_v17, %v8468_v18  ;;  %v16020_v17 = vcombine.low %v15761_v51, %v15761_v51  ;;  %v8827_v51 = vsel %vm16858_vm13, %v15836_v46, %v15822_v22  ;;  %v8830_v22 = vsel %vm16861_vm15, %v15873_v31, %v15855_v14  ;;  %vm16871_vm3 = vmmov %vm16868_vm4 }
 0xb6e   : > { %v16003_v50 = vpop.permute.xlu0 %8921  ;;  %9504 = vmatprep.subr.bf16.mxu0 %v8781_v42  ;;  %9213 = vrot.lane.b32.xlu1 %v15841_v27, %s16856_s25  ;;  %v16029_v27 = vcombine.high %v16010_v38, %v16010_v38  ;;  %v8877_v14 = vsel %vm16863_vm7, %v15915_v57, %v15900_v1  ;;  %vm16872_vm1 = vmmov %vm16871_vm3  ;;  %vm16873_vm13 = vcmask 523264   ;;  %vm16879_vm7 = vcmask 392192  }
 0xb6f   : > { %10414 = vmatpush3.bf16.msra.mxu1 %v8479_v25 }
 0xb70   : > { %9215 = vrot.lane.b32.xlu0 %v9197_v11, %s16856_s25  ;;  %v16022_v34 = vpop.permute.xlu1 %8923 }
 0xb71   : > { %9505 = vmatpush1.bf16.msra.mxu0 %v8780_v7 }
 0xb72   : > { %v8920_v5 = vpop.permute.xlu0 %8919  ;;  %9515 = vmatprep.subr.bf16.mxu0 %v8828_v32  ;;  %9211 = vrot.lane.b32.xlu1 %v15859_v52, %s16856_s25 }
 0xb73   : > { %v8930_v13 = vsel %vm16872_vm1, %v8920_v5, %v16003_v50 }
 0xb74   : > { %9175 = vrot.lane.b32.xlu0 %v15666_v60, %s16829_s18  ;;  %9507 = vmatmul.mubr.bf16.vlgmr.msra.gmra.mrb[64].mxu0 %v16020_v17  ;;  %v8676_v55 = vpop.permute.xlu1 %8675 }
 0xb75   : > { %9516 = vmatpush1.bf16.msra.mxu0 %v8827_v51  ;;  %9547 = vmatprep.mubr.bf16.mxu0 %v16029_v27  ;;  %v8682_v58 = vsel %vm16836_vm0, %v16837_v8, %v8676_v55  ;;  %v9201_v8 = vld [vmem:[#allocation4 + $0x30] sm:$0xff]  ;;  %vm16876_vm0 = vmmov %vm16873_vm13 }
 0xb76   : > { %v8476_v56 = vpop.permute.xlu0 %8475  ;;  %9517 = vmatprep.subr.bf16.mxu0 %v8831_v29  ;;  %8975 = vrot.lane.b32.xlu1 %v15666_v60, %s16660_s30  ;;  %vm16877_vm15 = vmmov %vm16876_vm0 }
 0xb77   : > { %v8482_v52 = vsel %vm16860_vm8, %v15696_v10, %v8476_v56  ;;  %10415 = vmatprep.subr.bf16.mxu1 %v8682_v58  ;;  %v8878_v10 = vsel %vm16862_vm10, %v15900_v1, %v15905_v24  ;;  %v9399_v1 = vld [vmem:[%s16867_s26] sm:$0xff]  ;;  %vm16875_vm8 = vmmov %vm16865_vm14 }
 0xb78   : > { %9221 = vrot.lane.b32.xlu0 %v15875_v54, %s16856_s25  ;;  %10416 = vmatpush3.bf16.msra.mxu1 %v8482_v52  ;;  %v8964_v46 = vpop.permute.xlu1 %8963  ;;  %v8881_v54 = vsel %vm16864_vm2, %v15933_v43, %v15944_v19  ;;  %vm16878_vm10 = vmmov %vm16876_vm0 }
 0xb79   : > { %9518 = vmatpush1.bf16.msra.mxu0 %v8830_v22  ;;  %vm16880_vm2 = vmmov %vm16879_vm7 }
 0xb7a   : > { %v16057_v47 = vpop.permute.xlu0 %8965  ;;  %9519 = vmatprep.subr.bf16.mxu0 %v8878_v10  ;;  %9223 = vrot.lane.b32.xlu1 %v9201_v8, %s16856_s25  ;;  %vm16887_vm1 = vmmov %vm16880_vm2 }
 0xb7b   : > { %v8978_v53 = vsel %vm16873_vm13, %v8964_v46, %v16057_v47 }
 0xb7c   : > { %9219 = vrot.lane.b32.xlu0 %v15889_v48, %s16856_s25  ;;  %v8962_v31 = vpop.permute.xlu1 %8961  ;;  %v8880_v48 = vsel %vm16866_vm5, %v15949_v4, %v15933_v43  ;;  %v8931_v4 = vsel %vm16871_vm3, %v16003_v50, %v16022_v34  ;;  %vm16882_vm5 = vmmov %vm16880_vm2 }
 0xb7d   : > { %9520 = vmatpush1.bf16.msra.mxu0 %v8877_v14  ;;  %v8977_v63 = vsel %vm16876_vm0, %v8962_v31, %v8964_v46  ;;  %vm16892_vm0 = vmmov %vm16887_vm1 }
 0xb7e   : > { %v8718_v2 = vpop.permute.xlu0 %8717  ;;  %9521 = vmatprep.subr.bf16.mxu0 %v8881_v54  ;;  %9217 = vrot.lane.b32.xlu1 %v15694_v41, %s16856_s25 }
 0xb7f   : > { %v8729_v30 = vsel %vm16865_vm14, %v15728_v0, %v8718_v2  ;;  %v8928_v0 = vsel %vm16868_vm4, %v15972_v28, %v15977_v39  ;;  %vm16881_vm14 = vcmask 711680   ;;  %vm16883_vm4 = vmmov %vm16880_vm2 }
 0xb80   : > { %9225 = vrot.lane.b32.xlu0 %v15666_v60, %s16856_s25  ;;  %10417 = vmatprep.subr.bf16.mxu1 %v8729_v30  ;;  %v8518_v57 = vpop.permute.xlu1 %8517  ;;  %v8927_v60 = vsel %vm16870_vm12, %v15986_v37, %v15972_v28  ;;  %vm16885_vm12 = vcmask 384000  }
 0xb81   : > { %9522 = vmatpush1.bf16.msra.mxu0 %v8880_v48  ;;  %v8529_v41 = vsel %vm16869_vm9, %v15672_v49, %v8518_v57  ;;  %vm16884_vm9 = vmmov %vm16881_vm14 }
 0xb82   : > { %v8972_v44 = vpop.permute.xlu0 %8971  ;;  %9523 = vmatprep.subr.bf16.mxu0 %v8928_v0  ;;  %9402 = vperm.xlu1 %10763, %v9399_v1   ;;  %vm16886_vm3 = vmmov %vm16885_vm12 }
 0xb83   : > { %10418 = vmatpush3.bf16.msra.mxu1 %v8529_v41  ;;  %vm16889_vm13 = vmmov %vm16886_vm3 }
 0xb84   : > { %v16088_v43 = vpop.permute.xlu1 %8973 }
 0xb85   : > { %9524 = vmatpush1.bf16.msra.mxu0 %v8927_v60  ;;  %v8981_v37 = vsel %vm16877_vm15, %v8972_v44, %v16088_v43  ;;  %vm16893_vm15 = vcmask 375808  }
 0xb86   : > { %v8970_v12 = vpop.permute.xlu0 %8969  ;;  %9525 = vmatprep.subr.bf16.mxu0 %v8931_v4 }
 0xb87   : > { %v8980_v3 = vsel %vm16878_vm10, %v8970_v12, %v8972_v44  ;;  %vm16894_vm10 = vmmov %vm16893_vm15 }
 0xb88   : > { %v8726_v49 = vpop.permute.xlu1 %8725 }
 0xb89   : > { %9526 = vmatpush1.bf16.msra.mxu0 %v8930_v13  ;;  %v8732_v36 = vsel %vm16875_vm8, %v15751_v26, %v8726_v49 }
 0xb8a   : > { %v8526_v61 = vpop.permute.xlu0 %8525  ;;  %9527 = vmatprep.subr.bf16.mxu0 %v8978_v53  ;;  %10419 = vmatprep.subr.bf16.mxu1 %v8732_v36 }
 0xb8b   : > { %v8532_v28 = vsel %vm16874_vm11, %v15709_v59, %v8526_v61  ;;  %vm16890_vm11 = vmmov %vm16886_vm3 }
 0xb8c   : > { %10420 = vmatpush3.bf16.msra.mxu1 %v8532_v28  ;;  %v9014_v15 = vpop.permute.xlu1 %9013 }
 0xb8d   : > { %9528 = vmatpush1.bf16.msra.mxu0 %v8977_v63 }
 0xb8e   : > { %v9016_v35 = vpop.permute.xlu0 %9015  ;;  %9529 = vmatprep.subr.bf16.mxu0 %v8981_v37 }
 0xb8f   : > { %v9028_v59 = vsel %vm16879_vm7, %v9014_v15, %v9016_v35  ;;  %vm16895_vm7 = vmmov %vm16886_vm3 }
 0xb90   : > { %v9012_v23 = vpop.permute.xlu1 %9011 }
 0xb91   : > { %9530 = vmatpush1.bf16.msra.mxu0 %v8980_v3  ;;  %v9027_v26 = vsel %vm16880_vm2, %v9012_v23, %v9014_v15  ;;  %vm16896_vm2 = vcmask 539648  }
 0xb92   : > { %v8768_v6 = vpop.permute.xlu0 %8767  ;;  %9531 = vmatprep.subr.bf16.mxu0 %v9028_v59 }
 0xb93   : > { %v8779_v9 = vsel %vm5803_vm6, %v15742_v45, %v8768_v6 }
 0xb94   : > { %10421 = vmatprep.subr.bf16.mxu1 %v8779_v9  ;;  %v8568_v20 = vpop.permute.xlu1 %8567 }
 0xb95   : > { %9532 = vmatpush1.bf16.msra.mxu0 %v9027_v26  ;;  %v8579_v42 = vsel %vm16881_vm14, %v15685_v62, %v8568_v20  ;;  %vm16897_vm14 = vmmov %vm16894_vm10 }
 0xb96   : > { %v9022_v18 = vpop.permute.xlu0 %9021  ;;  %10422 = vmatpush3.bf16.msra.mxu1 %v8579_v42  ;;  %v9999_v42 = vcombine.low %v16010_v38, %v16010_v38 }
 0xb98   : > { %v9024_v50 = vpop.permute.xlu1 %9023 }
 0xb99   : > { %v9031_v7 = vsel %vm16883_vm4, %v9022_v18, %v9024_v50  ;;  %vm16899_vm4 = vmmov %vm16896_vm2 }
 0xb9a   : > { %v9020_v25 = vpop.permute.xlu0 %9019  ;;  %9533 = vmatprep.subr.bf16.mxu0 %v9031_v7 }
 0xb9b   : > { %v9030_v11 = vsel %vm16882_vm5, %v9020_v25, %v9022_v18  ;;  %vm16898_vm5 = vmmov %vm16894_vm10 }
 0xb9c   : > { %9534 = vmatpush1.bf16.msra.mxu0 %v9030_v11  ;;  %v8776_v32 = vpop.permute.xlu1 %8775 }
 0xb9d   : > { %v8782_v51 = vsel %vm5803_vm6, %v15793_v16, %v8776_v32  ;;  %vm16888_vm6 = vcmask 547840  }
 0xb9e   : > { %v8576_v5 = vpop.permute.xlu0 %8575  ;;  %10423 = vmatprep.subr.bf16.mxu1 %v8782_v51  ;;  %vm16891_vm8 = vmmov %vm16888_vm6 }
 0xb9f   : > { %v8582_v45 = vsel %vm16884_vm9, %v15723_v33, %v8576_v5  ;;  %vm16900_vm9 = vmmov %vm16886_vm3 }
 0xba0   : > { %10424 = vmatpush3.bf16.msra.mxu1 %v8582_v45  ;;  %v9064_v62 = vpop.permute.xlu1 %9063 }
 0xba2   : > { %v9066_v55 = vpop.permute.xlu0 %9065 }
 0xba3   : > { %v9078_v29 = vsel %vm16885_vm12, %v9064_v62, %v9066_v55  ;;  %9670 = vmatmul.mubr.bf16.vlgmr.msra.gmra.mrb[120].mxu1 %v16020_v17  ;;  %vm16901_vm12 = vcmask 367616  }
 0xba4   : > { %9535 = vmatprep.subr.bf16.mxu0 %v9078_v29  ;;  %9709 = vmatprep.mubr.bf16.mxu1 %v16029_v27  ;;  %v9062_v56 = vpop.permute.xlu1 %9061 }
 0xba5   : > { %v9077_v58 = vsel %vm16886_vm3, %v9062_v56, %v9064_v62  ;;  %vm16902_vm3 = vmmov %vm16901_vm12 }
 0xba6   : > { %v9018_v52 = vpop.permute.xlu0 %9017  ;;  %9536 = vmatpush1.bf16.msra.mxu0 %v9077_v58 }
 0xba7   : > { %v9029_v33 = vsel %vm16887_vm1, %v9016_v35, %v9018_v52  ;;  %vm16903_vm1 = vmmov %vm16898_vm5 }
 0xba8   : > { %10431 = vmatprep.subr.bf16.mxu1 %v9029_v33  ;;  %v8818_v16 = vpop.permute.xlu1 %8817 }
 0xba9   : > { %v8829_v46 = vsel %vm16888_vm6, %v15827_v40, %v8818_v16  ;;  %vm16904_vm6 = vcmask 531456   ;;  %v11009_v16 = vmov 0.0  }
 0xbaa   : > { %v9072_v22 = vpop.permute.xlu0 %9071  ;;  %10432 = vmatpush3.bf16.msra.mxu1 %v8829_v46 }
 0xbac   : > { %v9074_v10 = vpop.permute.xlu1 %9073 }
 0xbad   : > { %v9081_v27 = vsel %vm16890_vm11, %v9072_v22, %v9074_v10  ;;  %vm16906_vm11 = vmmov %vm16902_vm3 }
 0xbae   : > { %v9070_v8 = vpop.permute.xlu0 %9069  ;;  %9537 = vmatprep.subr.bf16.mxu0 %v9081_v27 }
 0xbaf   : > { %v9080_v17 = vsel %vm16889_vm13, %v9070_v8, %v9072_v22  ;;  %vm16905_vm13 = vmmov %vm16902_vm3 }
 0xbb0   : > { %9538 = vmatpush1.bf16.msra.mxu0 %v9080_v17  ;;  %v9026_v14 = vpop.permute.xlu1 %9025  ;;  %v10888_v17 = vld [vmem:[%s16212_s5 + $0x18] ss:$0 sps:$4 sm:$0xff]  }
 0xbb1   : > { %v9032_v2 = vsel %vm16892_vm0, %v9024_v50, %v9026_v14  ;;  %vm16908_vm0 = vmmov %vm16903_vm1 }
 0xbb2   : > { %v8826_v31 = vpop.permute.xlu0 %8825  ;;  %10433 = vmatprep.subr.bf16.mxu1 %v9032_v2 }
 0xbb3   : > { %v8832_v54 = vsel %vm16891_vm8, %v15868_v21, %v8826_v31  ;;  %vm16907_vm8 = vmmov %vm16904_vm6 }
 0xbb4   : > { %10434 = vmatpush3.bf16.msra.mxu1 %v8832_v54  ;;  %v9114_v30 = vpop.permute.xlu1 %9113 }
 0xbb6   : > { %v9116_v40 = vpop.permute.xlu0 %9115 }
 0xbb7   : > { %v9128_v48 = vsel %vm16893_vm15, %v9114_v30, %v9116_v40  ;;  %vm16910_vm15 = vcmask 523264  }
 0xbb8   : > { %9539 = vmatprep.subr.bf16.mxu0 %v9128_v48  ;;  %v9112_v1 = vpop.permute.xlu1 %9111 }
 0xbb9   : > { %v9127_v0 = vsel %vm16894_vm10, %v9112_v1, %v9114_v30  ;;  %vm16911_vm10 = vmmov %vm16902_vm3 }
 0xbba   : > { %v9068_v57 = vpop.permute.xlu0 %9067  ;;  %9540 = vmatpush1.bf16.msra.mxu0 %v9127_v0 }
 0xbbb   : > { %v9079_v44 = vsel %vm16895_vm7, %v9066_v55, %v9068_v57  ;;  %vm16912_vm7 = vcmask 359424  }
 0xbbc   : > { %10435 = vmatprep.subr.bf16.mxu1 %v9079_v44  ;;  %v8868_v41 = vpop.permute.xlu1 %8867 }
 0xbbd   : > { %v8879_v21 = vsel %vm16896_vm2, %v15905_v24, %v8868_v41  ;;  %vm16913_vm2 = vmmov %vm16912_vm7 }
 0xbbe   : > { %v9122_v60 = vpop.permute.xlu0 %9121  ;;  %10436 = vmatpush3.bf16.msra.mxu1 %v8879_v21 }
 0xbc0   : > { %v9124_v4 = vpop.permute.xlu1 %9123 }
 0xbc1   : > { %v9131_v49 = vsel %vm16898_vm5, %v9122_v60, %v9124_v4  ;;  %vm16915_vm5 = vmmov %vm16910_vm15 }
 0xbc2   : > { %v9120_v12 = vpop.permute.xlu0 %9119  ;;  %9541 = vmatprep.subr.bf16.mxu0 %v9131_v49 }
 0xbc3   : > { %v9130_v13 = vsel %vm16897_vm14, %v9120_v12, %v9122_v60  ;;  %vm16914_vm14 = vmmov %vm16902_vm3 }
 0xbc4   : > { %9542 = vmatpush1.bf16.msra.mxu0 %v9130_v13  ;;  %v9076_v53 = vpop.permute.xlu1 %9075 }
 0xbc5   : > { %v9082_v36 = vsel %vm16900_vm9, %v9074_v10, %v9076_v53  ;;  %vm16917_vm9 = vmmov %vm16913_vm2 }
 0xbc6   : > { %v8876_v61 = vpop.permute.xlu0 %8875  ;;  %10437 = vmatprep.subr.bf16.mxu1 %v9082_v36 }
 0xbc7   : > { %v8882_v28 = vsel %vm16899_vm4, %v15944_v19, %v8876_v61  ;;  %vm16916_vm4 = vmmov %vm16913_vm2 }
 0xbc8   : > { %10438 = vmatpush3.bf16.msra.mxu1 %v8882_v28  ;;  %v9164_v63 = vpop.permute.xlu1 %9163 }
 0xbca   : > { %v9166_v24 = vpop.permute.xlu0 %9165 }
 0xbcb   : > { %v9178_v15 = vsel %vm16901_vm12, %v9164_v63, %v9166_v24  ;;  %vm11010_vm12 = vmmov 0  }
 0xbcc   : > { %9543 = vmatprep.subr.bf16.mxu0 %v9178_v15  ;;  %v9162_v37 = vpop.permute.xlu1 %9161 }
 0xbcd   : > { %v9177_v3 = vsel %vm16902_vm3, %v9162_v37, %v9164_v63  ;;  %vm16918_vm3 = vmmov %vm16913_vm2 }
 0xbce   : > { %v9118_v35 = vpop.permute.xlu0 %9117  ;;  %9544 = vmatpush1.bf16.msra.mxu0 %v9177_v3 }
 0xbcf   : > { %v9129_v23 = vsel %vm16903_vm1, %v9116_v40, %v9118_v35  ;;  %vm16919_vm1 = vcmask 261120  }
 0xbd0   : > { %10439 = vmatprep.subr.bf16.mxu1 %v9129_v23  ;;  %v8918_v59 = vpop.permute.xlu1 %8917 }
 0xbd1   : > { %v8929_v19 = vsel %vm16904_vm6, %v15977_v39, %v8918_v59  ;;  %v16909_v39 = vmov 0   ;;  %vm16920_vm6 = vmmov %vm16913_vm2 }
 0xbd2   : > { %v9172_v6 = vpop.permute.xlu0 %9171  ;;  %10440 = vmatpush3.bf16.msra.mxu1 %v8929_v19 }
 0xbd4   : > { %v9174_v26 = vpop.permute.xlu1 %9173 }
 0xbd5   : > { %v9181_v18 = vsel %vm16906_vm11, %v9172_v6, %v9174_v26  ;;  %vm16923_vm11 = vcmask 130048  }
 0xbd6   : > { %v9170_v9 = vpop.permute.xlu0 %9169  ;;  %9545 = vmatprep.subr.bf16.mxu0 %v9181_v18 }
 0xbd7   : > { %v9180_v20 = vsel %vm16905_vm13, %v9170_v9, %v9172_v6  ;;  %vm16921_vm13 = vmmov %vm16919_vm1 }
 0xbd8   : > { %9546 = vmatpush1.bf16.msra.mxu0 %v9180_v20  ;;  %v9126_v50 = vpop.permute.xlu1 %9125 }
 0xbd9   : > { %v9132_v7 = vsel %vm16908_vm0, %v9124_v4, %v9126_v50  ;;  %vm9767_vm0 = vcmask 392448  }
 0xbda   : > { %v8926_v25 = vpop.permute.xlu0 %8925  ;;  %10441 = vmatprep.subr.bf16.mxu1 %v9132_v7 }
 0xbdb   : > { %v8932_v11 = vsel %vm16907_vm8, %v16022_v34, %v8926_v25  ;;  %9548 = vmatmul.mubr.bf16.vlgmr.msra.gmra.mrb[64].mxu0 %v9999_v42  ;;  %vm9762_vm8 = vcmask 261248  }
 0xbdc   : > { %10442 = vmatpush3.bf16.msra.mxu1 %v8932_v11  ;;  %9588 = vmatprep.mubr.bf16.mxu0 %v16909_v39  ;;  %v9168_v32 = vpop.permute.xlu1 %9167 }
 0xbdd   : > { %v9179_v38 = vsel %vm16911_vm10, %v9166_v24, %v9168_v32  ;;  %vm9772_vm10 = vcmask 523648  }
 0xbde   : > { %v8968_v5 = vpop.permute.xlu0 %8967  ;;  %10443 = vmatprep.subr.bf16.mxu1 %v9179_v38 }
 0xbdf   : > { %v8979_v45 = vsel %vm16910_vm15, %v16057_v47, %v8968_v5  ;;  %vm16933_vm15 = vmmov %vm16923_vm11 }
 0xbe0   : > { %10444 = vmatpush3.bf16.msra.mxu1 %v8979_v45  ;;  %v9214_v51 = vpop.permute.xlu1 %9213 }
 0xbe2   : > { %v9216_v62 = vpop.permute.xlu0 %9215 }
 0xbe3   : > { %v9228_v34 = vsel %vm16912_vm7, %v9214_v51, %v9216_v62  ;;  %vm9777_vm7 = vcmask 654848  }
 0xbe4   : > { %9556 = vmatprep.subr.bf16.mxu0 %v9228_v34  ;;  %v9212_v55 = vpop.permute.xlu1 %9211 }
 0xbe5   : > { %v9227_v56 = vsel %vm16913_vm2, %v9212_v55, %v9214_v51  ;;  %vm9782_vm2 = vcmask 786048  }
 0xbe6   : > { %v9176_v29 = vpop.permute.xlu0 %9175  ;;  %9557 = vmatpush1.bf16.msra.mxu0 %v9227_v56 }
 0xbe7   : > { %v9182_v52 = vsel %vm16914_vm14, %v9174_v26, %v9176_v29  ;;  %vm9792_vm14 = vcmask 917248  }
 0xbe8   : > { %10445 = vmatprep.subr.bf16.mxu1 %v9182_v52  ;;  %v8976_v58 = vpop.permute.xlu1 %8975 }
 0xbe9   : > { %v8982_v47 = vsel %vm16915_vm5, %v16088_v43, %v8976_v58  ;;  %vm16934_vm5 = vcmask 850944  }
 0xbea   : > { %v9222_v33 = vpop.permute.xlu0 %9221  ;;  %10446 = vmatpush3.bf16.msra.mxu1 %v8982_v47 }
 0xbeb   : > { %10478 = vmatprep.subr.bf16.mxu1 %v11009_v16 }
 0xbec   : > { %v9224_v22 = vpop.permute.xlu1 %9223 }
 0xbed   : > { %9710 = vmatmul.mubr.bf16.vlgmr.msra.gmra.mrb[124].mxu1 %v9999_v42  ;;  %v9231_v8 = vsel %vm16917_vm9, %v9222_v33, %v9224_v22 }
 0xbee   : > { %v9220_v46 = vpop.permute.xlu0 %9219  ;;  %9558 = vmatprep.subr.bf16.mxu0 %v9231_v8  ;;  %10482 = vmatprep.mubr.msk.bf16.mxu1 %vm11010_vm12, %v11009_v16 }
 0xbef   : > { %v9230_v10 = vsel %vm16916_vm4, %v9220_v46, %v9222_v33  ;;  %vm9797_vm4 = vcmask 1048448  }
 0xbf0   : > { %9559 = vmatpush1.bf16.msra.mxu0 %v9230_v10  ;;  %v9218_v27 = vpop.permute.xlu1 %9217 }
 0xbf1   : > { %v9229_v43 = vsel %vm16918_vm3, %v9216_v62, %v9218_v27 }
 0xbf2   : > { %v9226_v14 = vpop.permute.xlu0 %9225  ;;  %10479 = vmatpush3.bf16.msra.mxu1 %v9229_v43 }
 0xbf3   : > { %10002 = vmatmul.mubr.msk.bf16.vlgmr.msra.gmra.mrb[64].mxu0 %vm16919_vm1, %v10888_v17  ;;  %10480 = vmatprep.subr.bf16.mxu1 %v11009_v16  ;;  %v9232_v31 = vsel %vm16920_vm6, %v9224_v22, %v9226_v14 }
 0xbf6   : > { %10481 = vmatpush3.bf16.msra.mxu1 %v9232_v31 }
 0xbf9   : > { %10483 = vmatmul.mubr.msk.bf16.vlgmr.msra.gmra.mrb[128].mxu1 %vm16921_vm13, %v10888_v17 }
 0xc01   : > { %v9403_v57 = vpop.permute.xlu1 %9402 }
 0xc26   : > { %v10403_v54 = vpop.f32.mrb[116].mxu1 }
 0xc27   : > { %v10404_v2 = vpop.f32.mrb[117].mxu1 }
 0xc28   : > { %v10405_v30 = vadd.f32 %v10404_v2, %v10403_v54  ;;  %v10406_v40 = vpop.f32.mrb[118].mxu1 }
 0xc29   : > { %v10407_v48 = vpop.f32.mrb[119].mxu1 }
 0xc2a   : > { %v9632_v44 = vadd.f32 %v10405_v30, %v9403_v57 }
 0xc76   : > { %v10425_v1 = vpop.f32.mrb[120].mxu1 }
 0xc77   : > { %v10426_v0 = vpop.f32.mrb[121].mxu1 }
 0xc78   : > { %v10427_v41 = vadd.f32 %v10426_v0, %v10425_v1  ;;  %v10428_v60 = vpop.f32.mrb[122].mxu1 }
 0xc79   : > { %v10429_v21 = vpop.f32.mrb[123].mxu1 }
 0xc7a   : > { %v9672_v4 = vadd.f32 %v10427_v41, %v9632_v44 }
 0xcc0   : > { %v10447_v12 = vpop.f32.mrb[124].mxu1 }
 0xcc1   : > { %v10448_v13 = vpop.f32.mrb[125].mxu1 }
 0xcc2   : > { %v10449_v49 = vadd.f32 %v10448_v13, %v10447_v12  ;;  %v10450_v53 = vpop.f32.mrb[126].mxu1 }
 0xcc3   : > { %v10451_v61 = vpop.f32.mrb[127].mxu1 }
 0xcc4   : > { %v9712_v28 = vadd.f32 %v10449_v49, %v9672_v4 }
 0xcc6   : > { %v9590_v36 = vpop.f32.mrb[64].mxu0 }
 0xcc7   : > { %v10526_v63 = vadd.f32 %v9590_v36, %v9403_v57  ;;  %v9592_v24 = vpop.f32.mrb[65].mxu0 }
 0xcc8   : > { %v9594_v15 = vpop.f32.mrb[66].mxu0  ;;  %v10527_v19 = vadd.f32 %v9592_v24, %v9403_v57 }
 0xcc9   : > { %9757 = vst.msk [vmem:[%s16922_s11] sm:$0xff] %vm16923_vm11, %v10526_v63  ;;  %v9595_v37 = vpop.f32.mrb[67].mxu0 }
 0xccc   : > { %v9751_v35 = vpop.f32.mrb[128].mxu1 }
 0xccd   : > { %v9752_v3 = vadd.f32 %v9751_v35, %v9712_v28  ;;  %v10484_v23 = vpop.f32.mrb[129].mxu1 }
 0xcce   : > { %v9754_v59 = vpop.f32.mrb[130].mxu1 }
 0xccf   : > { %9824 = vrot.lane.b32.xlu1 %v9752_v3, %s16924_s2  ;;  %9820 = vrot.lane.b32.xlu0 %v9752_v3, %s16925_s7  ;;  %v10485_v6 = vpop.f32.mrb[131].mxu1 }
 0xcd3   : > { %9759 = vrot.lane.b32.xlu1 %v10526_v63, %s16516_s14  ;;  %9785 = vrot.lane.b32.xlu0 %v10526_v63, %s16458_s16  ;;  %s16931_s14 = smov 80  }
 0xcd7   : > { %9764 = vrot.lane.b32.xlu1 %v10526_v63, %s16926_s24  ;;  %9799 = vrot.lane.b32.xlu0 %v10527_v19, %s16927_s6 }
 0xcdb   : > { %9769 = vrot.lane.b32.xlu1 %v10526_v63, %s16928_s10  ;;  %9803 = vrot.lane.b32.xlu0 %v10527_v19, %s16929_s1 }
 0xcdf   : > { %9774 = vrot.lane.b32.xlu1 %v10526_v63, %s16930_s17  ;;  %9807 = vrot.lane.b32.xlu0 %v10527_v19, %s16537_s12 }
 0xce3   : > { %9779 = vrot.lane.b32.xlu1 %v10526_v63, %s16448_s13  ;;  %9811 = vrot.lane.b32.xlu0 %v10527_v19, %s16480_s22 }
 0xce7   : > { %9787 = vrot.lane.b32.xlu1 %v10527_v19, %s16458_s16  ;;  %9815 = vrot.lane.b32.xlu0 %v10527_v19, %s16931_s14 }
 0xceb   : > { %9828 = vrot.lane.b32.xlu1 %v9752_v3, %s16606_s15  ;;  %9794 = vrot.lane.b32.xlu0 %v10527_v19, %s16932_s9 }
 0xd41   : > { %v9825_v26 = vpop.permute.xlu1 %9824  ;;  %v9821_v9 = vpop.permute.xlu0 %9820 }
 0xd45   : > { %v9760_v20 = vpop.permute.xlu1 %9759  ;;  %v9786_v18 = vpop.permute.xlu0 %9785 }
 0xd46   : > { %9763 = vst.msk [vmem:[%s16922_s11] sm:$0xff] %vm9762_vm8, %v9760_v20 }
 0xd49   : > { %v9765_v42 = vpop.permute.xlu1 %9764  ;;  %v9800_v50 = vpop.permute.xlu0 %9799 }
 0xd4a   : > { %9768 = vst.msk [vmem:[%s16922_s11] sm:$0xff] %vm9767_vm0, %v9765_v42 }
 0xd4b   : > { %9802 = vst.msk [vmem:[%s16922_s11 + $0x8] sm:$0xff] %vm16933_vm15, %v9800_v50 }
 0xd4d   : > { %v9770_v25 = vpop.permute.xlu1 %9769  ;;  %v9804_v11 = vpop.permute.xlu0 %9803 }
 0xd4e   : > { %9773 = vst.msk [vmem:[%s16922_s11] sm:$0xff] %vm9772_vm10, %v9770_v25 }
 0xd4f   : > { %9806 = vst.msk [vmem:[%s16922_s11 + $0x8] sm:$0xff] %vm9762_vm8, %v9804_v11 }
 0xd51   : > { %v9775_v7 = vpop.permute.xlu1 %9774  ;;  %v9808_v39 = vpop.permute.xlu0 %9807 }
 0xd52   : > { %9778 = vst.msk [vmem:[%s16922_s11] sm:$0xff] %vm9777_vm7, %v9775_v7 }
 0xd53   : > { %9810 = vst.msk [vmem:[%s16922_s11 + $0x8] sm:$0xff] %vm9767_vm0, %v9808_v39 }
 0xd55   : > { %v9780_v32 = vpop.permute.xlu1 %9779  ;;  %v9812_v5 = vpop.permute.xlu0 %9811 }
 0xd56   : > { %9783 = vst.msk [vmem:[%s16922_s11] sm:$0xff] %vm9782_vm2, %v9780_v32 }
 0xd57   : > { %9814 = vst.msk [vmem:[%s16922_s11 + $0x8] sm:$0xff] %vm9772_vm10, %v9812_v5 }
 0xd59   : > { %v9788_v45 = vpop.permute.xlu1 %9787  ;;  %v9816_v38 = vpop.permute.xlu0 %9815 }
 0xd5a   : > { %v9790_v51 = vsel %vm16934_vm5, %v9786_v18, %v9788_v45  ;;  %9818 = vst.msk [vmem:[%s16922_s11 + $0x8] sm:$0xff] %vm9777_vm7, %v9816_v38 }
 0xd5b   : > { %9823 = vst.msk [vmem:[%s16922_s11 + $0x8] sm:$0xff] %vm9782_vm2, %v9821_v9 }
 0xd5c   : > { %9793 = vst.msk [vmem:[%s16922_s11] sm:$0xff] %vm9792_vm14, %v9790_v51  ;;  %9827 = vst.msk [vmem:[%s16922_s11 + $0x8] sm:$0xff] %vm9792_vm14, %v9825_v26 }
 0xd5d   : > { %v9829_v62 = vpop.permute.xlu1 %9828  ;;  %v9795_v34 = vpop.permute.xlu0 %9794 }
 0xd5e   : > { %9831 = vst.msk [vmem:[%s16922_s11 + $0x8] sm:$0xff] %vm9797_vm4, %v9829_v62  ;;  %9798 = vst.msk [vmem:[%s16922_s11] sm:$0xff] %vm9797_vm4, %v9795_v34 }
 0xd5f PF: > { %s16935_s13 = sld [smem:[#allocation6_spill]] }
 0xd65   : > { %s17_s24 = sadd.s32 1, %s16935_s13  }
 0xd66   : > { %p14_p5 = scmp.ge.s32.totalorder %s17_s24, 4  }
 0xd68   :  { %16 = sbr.rel (!%p14_p5) target bundleno = 6 (0x6), region = 82 }

</bundles_post_ra>
